<compile_context>
chip_gen: v7x
topology: tpu7x:2x2x1
jax: 0.10.0
libtpu: 0.0.40
codegen_flags: <defaults>
</compile_context>

<pallas_src>
import functools
import math

import jax
import jax.numpy as jnp
from jax.experimental import pallas as pl
from jax.experimental.pallas import tpu as pltpu


def _gelu_exact(h):
    # Exact (erf-based) GELU, matching torch.nn.GELU() default.
    # TODO(synk): switch to tanh-approx (EUP) GELU on v6e/v7x if parity allows.
    inv_sqrt2 = jnp.float32(1.0 / math.sqrt(2.0))
    return jnp.float32(0.5) * h * (jnp.float32(1.0) + jax.lax.erf(h * inv_sqrt2))


def expert_kernel_resident(x_ref, w1_ref, b1_ref, w2_ref, b2_ref, o_ref):
    # Weights fully VMEM-resident (constant index maps -> DMA'd once).
    # x_ref : (tm, d_model)   token tile
    # w1_ref: (d_model, d_ff) full W1
    # b1_ref: (1, d_ff)       f32 bias
    # w2_ref: (d_ff, d_model) full W2
    # b2_ref: (1, d_model)    f32 bias
    # o_ref : (tm, d_model)   output tile (written directly, no scratch)
    h = jnp.dot(x_ref[...], w1_ref[...], preferred_element_type=jnp.float32)
    h = _gelu_exact(h + b1_ref[...])
    y = jnp.dot(h.astype(w2_ref.dtype), w2_ref[...],
                preferred_element_type=jnp.float32)
    o_ref[...] = (y + b2_ref[...]).astype(o_ref.dtype)


def expert_kernel_streamed(x_ref, w1_ref, b1_ref, w2_ref, b2_ref, o_ref, acc_ref):
    # d_ff streamed in tf chunks (innermost "arbitrary" grid axis); f32
    # accumulator in VMEM, init at f==0, + b2 and writeback at the last f.
    f = pl.program_id(1)

    @pl.when(f == 0)
    def _():
        acc_ref[...] = jnp.zeros_like(acc_ref)

    h = jnp.dot(x_ref[...], w1_ref[...], preferred_element_type=jnp.float32)
    h = _gelu_exact(h + b1_ref[...])
    acc_ref[...] += jnp.dot(h.astype(w2_ref.dtype), w2_ref[...],
                            preferred_element_type=jnp.float32)

    @pl.when(f == pl.num_programs(1) - 1)
    def _():
        o_ref[...] = (acc_ref[...] + b2_ref[...]).astype(o_ref.dtype)


def _round_up(x, m):
    return (x + m - 1) // m * m


def _sublane(dtype):
    # Sublane granule of the row axis per dtype packing.
    return {4: 8, 2: 16, 1: 32}.get(jnp.dtype(dtype).itemsize, 8)


def _vmem_budget_bytes():
    # Generation-aware VMEM budget (~60% of capacity), conservative fallback
    # to v7x's 64 MiB per-TensorCore VMEM when the query is unavailable.
    cap = 64 * 1024 * 1024
    try:
        info = pltpu.get_tpu_info()
        cap = int(getattr(info, "vmem_capacity_bytes", cap))
    except Exception:
        pass
    return int(0.6 * cap)


def _pick_tf(d_ff, tf_max):
    # Largest multiple of 128 that divides d_ff and is <= tf_max.
    tf = max(128, (min(tf_max, d_ff) // 128) * 128)
    while d_ff % tf != 0:
        tf -= 128
    return tf


@functools.partial(jax.jit, static_argnames=("tm", "tf", "matmul_dtype"))
def expert_forward(x, w1, b1, w2, b2, *, tm=256, tf=512, matmul_dtype=None):
    """x: [B, S, d_model]; w1: [d_model, d_ff]; b1: [d_ff];
       w2: [d_ff, d_model]; b2: [d_model]  ->  [B, S, d_model]"""
    B, S, d_model = x.shape
    d_ff = w1.shape[1]
    # Lane-dense stores / (8,128) tiling require 128-multiples on fast axes.
    assert d_model % 128 == 0, "d_model must be a multiple of 128"
    assert d_ff % 128 == 0, "d_ff must be a multiple of 128"

    out_dtype = x.dtype
    if matmul_dtype is not None:
        # Optional low-precision MXU path (recommended bf16 on v6e/v7x).
        # NOTE: only the f32 path is validated against the 2e-4 tolerance.
        x = x.astype(matmul_dtype)
        w1 = w1.astype(matmul_dtype)
        w2 = w2.astype(matmul_dtype)

    xb = jnp.dtype(x.dtype).itemsize
    ob = jnp.dtype(out_dtype).itemsize
    w1b = jnp.dtype(w1.dtype).itemsize
    w2b = jnp.dtype(w2.dtype).itemsize

    # --- row tiling: minimal padding, >=2 tiles when splittable (dual TC) ---
    N = B * S
    sub = _sublane(x.dtype)
    Np = _round_up(N, sub)           # pad only to the sublane granule
    tm = min(tm, Np)
    Np = _round_up(Np, tm)
    num_row_tiles = Np // tm
    if num_row_tiles == 1 and tm >= 2 * sub and (tm // 2) % sub == 0:
        tm //= 2                     # give both TensorCores a row tile
        num_row_tiles = Np // tm

    x2 = x.reshape(N, d_model)
    if Np != N:
        x2 = jnp.pad(x2, ((0, Np - N), (0, 0)))

    # Biases cast to f32 once here (hoisted out of the kernel).
    b1_2 = b1.reshape(1, d_ff).astype(jnp.float32)
    b2_2 = b2.reshape(1, d_model).astype(jnp.float32)

    budget = _vmem_budget_bytes()
    w_bytes = d_model * d_ff * w1b + d_ff * d_model * w2b
    io_bytes = 2 * tm * d_model * (xb + ob) + 2 * (d_ff + d_model) * 4
    resident_need = io_bytes + 2 * w_bytes + tm * d_ff * 4   # 2x-buffer safe bound
    weights_resident = resident_need <= budget

    # Honest bytes estimate for XLA scheduling around the kernel.
    weight_traffic = w_bytes if weights_resident else w_bytes * num_row_tiles
    cost = pl.CostEstimate(
        flops=4 * Np * d_model * d_ff,           # two matmuls
        transcendentals=Np * d_ff,               # erf per hidden element
        bytes_accessed=(Np * d_model * (xb + ob) + weight_traffic
                        + d_ff * 4 + d_model * 4),
    )

    if weights_resident:
        vmem_limit = int(min(max(int(1.25 * resident_need), 32 * 1024 * 1024),
                             budget))
        out = pl.pallas_call(
            expert_kernel_resident,
            out_shape=jax.ShapeDtypeStruct((Np, d_model), out_dtype),
            grid_spec=pltpu.PrefetchScalarGridSpec(
                num_scalar_prefetch=0,
                grid=(num_row_tiles,),
                in_specs=[
                    pl.BlockSpec((tm, d_model), lambda i: (i, 0)),      # x tile
                    pl.BlockSpec((d_model, d_ff), lambda i: (0, 0)),    # W1 (resident)
                    pl.BlockSpec((1, d_ff), lambda i: (0, 0)),          # b1
                    pl.BlockSpec((d_ff, d_model), lambda i: (0, 0)),    # W2 (resident)
                    pl.BlockSpec((1, d_model), lambda i: (0, 0)),       # b2
                ],
                out_specs=pl.BlockSpec((tm, d_model), lambda i: (i, 0)),
            ),
            compiler_params=pltpu.CompilerParams(
                dimension_semantics=("parallel",),
                vmem_limit_bytes=vmem_limit,
            ),
            cost_estimate=cost,
        )(x2, w1, b1_2, w2, b2_2)
    else:
        # Streaming fallback for d_ff too large to keep resident.
        tf_sel = _pick_tf(d_ff, tf)
        nf = d_ff // tf_sel
        stream_need = (2 * tm * d_model * (xb + ob)
                       + 3 * d_model * tf_sel * w1b      # Buffered(3) W1 chunks
                       + 3 * tf_sel * d_model * w2b      # Buffered(3) W2 chunks
                       + 3 * tf_sel * 4 + 2 * d_model * 4
                       + tm * d_model * 4                # accumulator
                       + tm * tf_sel * 4)                # GELU temp
        vmem_limit = int(min(max(int(1.25 * stream_need), 32 * 1024 * 1024),
                             budget))
        out = pl.pallas_call(
            expert_kernel_streamed,
            out_shape=jax.ShapeDtypeStruct((Np, d_model), out_dtype),
            grid_spec=pltpu.PrefetchScalarGridSpec(
                num_scalar_prefetch=0,
                grid=(num_row_tiles, nf),           # d_ff reduction innermost
                in_specs=[
                    pl.BlockSpec((tm, d_model), lambda i, f: (i, 0)),
                    pl.BlockSpec((d_model, tf_sel), lambda i, f: (0, f),
                                 pipeline_mode=pl.Buffered(3)),
                    pl.BlockSpec((1, tf_sel), lambda i, f: (0, f)),
                    pl.BlockSpec((tf_sel, d_model), lambda i, f: (f, 0),
                                 pipeline_mode=pl.Buffered(3)),
                    pl.BlockSpec((1, d_model), lambda i, f: (0, 0)),
                ],
                out_specs=pl.BlockSpec((tm, d_model), lambda i, f: (i, 0)),
                scratch_shapes=[pltpu.VMEM((tm, d_model), jnp.float32)],
            ),
            compiler_params=pltpu.CompilerParams(
                dimension_semantics=("parallel", "arbitrary"),
                vmem_limit_bytes=vmem_limit,
            ),
            cost_estimate=cost,
        )(x2, w1, b1_2, w2, b2_2)

    return out[:N].reshape(B, S, d_model)


def _init_linear_params(key, in_features, out_features, dtype=jnp.float32):
    # Mirrors torch.nn.Linear init: uniform(-1/sqrt(fan_in), 1/sqrt(fan_in)).
    kw, kb = jax.random.split(key)
    bound = 1.0 / math.sqrt(in_features)
    # Stored as [in_features, out_features] (transposed vs torch) for row-major matmul.
    w = jax.random.uniform(kw, (in_features, out_features), dtype,
                           minval=-bound, maxval=bound)
    b = jax.random.uniform(kb, (out_features,), dtype, minval=-bound, maxval=bound)
    return w, b


if __name__ == "__main__":
    # Module constants: d_model=512, d_ff=2048; small batch/seq.
    B, S = 2, 8
    d_model, d_ff = 512, 2048

    key = jax.random.PRNGKey(0)
    kx, k1, k2 = jax.random.split(key, 3)

    x = jax.random.normal(kx, (B, S, d_model), jnp.float32)
    w1, b1 = _init_linear_params(k1, d_model, d_ff)
    w2, b2 = _init_linear_params(k2, d_ff, d_model)

    y = expert_forward(x, w1, b1, w2, b2)
    y = jax.block_until_ready(y)

    # Plain-JAX reference (exact erf GELU).
    h_ref = x.reshape(-1, d_model) @ w1 + b1
    h_ref = 0.5 * h_ref * (1.0 + jax.lax.erf(h_ref / jnp.sqrt(2.0)))
    y_ref = (h_ref @ w2 + b2).reshape(B, S, d_model)
    assert jnp.allclose(y, y_ref, atol=2e-4, rtol=2e-4), "mismatch vs reference"

    print("KERNEL_OK")
</pallas_src>

<mosaic_0001>
module attributes {stable_mosaic.version = 11 : i64} {
  func.func @expert_kernel_resident(%arg0: i32, %arg1: memref<8x512xf32, #tpu.memory_space<vmem>>, %arg2: memref<512x2048xf32, #tpu.memory_space<vmem>>, %arg3: memref<1x2048xf32, #tpu.memory_space<vmem>>, %arg4: memref<2048x512xf32, #tpu.memory_space<vmem>>, %arg5: memref<1x512xf32, #tpu.memory_space<vmem>>, %arg6: memref<8x512xf32, #tpu.memory_space<vmem>>) attributes {dimension_semantics = [#tpu.dimension_semantics<parallel>], iteration_bounds = array<i64: 2>, scalar_prefetch = 0 : i64, scratch_operands = 0 : i64, tpu.core_type = #tpu.core_type<tc>, window_params = [{transform_indices = @transform_0, window_bounds = array<i64: 8, 512>}, {pipeline_mode = #tpu.pipeline_mode<synchronous>, transform_indices = @transform_1, window_bounds = array<i64: 512, 2048>}, {pipeline_mode = #tpu.pipeline_mode<synchronous>, transform_indices = @transform_2, window_bounds = array<i64: 1, 2048>}, {pipeline_mode = #tpu.pipeline_mode<synchronous>, transform_indices = @transform_3, window_bounds = array<i64: 2048, 512>}, {pipeline_mode = #tpu.pipeline_mode<synchronous>, transform_indices = @transform_4, window_bounds = array<i64: 1, 512>}, {transform_indices = @transform_5, window_bounds = array<i64: 8, 512>}]} {
    %c0 = arith.constant 0 : index
    %c0_0 = arith.constant 0 : index
    %0 = vector.load %arg1[%c0, %c0_0] : memref<8x512xf32, #tpu.memory_space<vmem>>, vector<8x512xf32>
    %c0_1 = arith.constant 0 : index
    %c0_2 = arith.constant 0 : index
    %1 = vector.load %arg2[%c0_1, %c0_2] : memref<512x2048xf32, #tpu.memory_space<vmem>>, vector<512x2048xf32>
    %cst = arith.constant dense<0.000000e+00> : vector<8x2048xf32>
    %2 = tpu.matmul %0, %1, %cst {dimension_numbers = #tpu.dot_dimension_numbers<[1], [0], [0], [1], [0, 0, 1, 1], [], []>} : vector<8x512xf32>, vector<512x2048xf32>, vector<8x2048xf32> -> vector<8x2048xf32>
    %c0_3 = arith.constant 0 : index
    %c0_4 = arith.constant 0 : index
    %3 = vector.load %arg3[%c0_3, %c0_4] : memref<1x2048xf32, #tpu.memory_space<vmem>>, vector<1x2048xf32>
    %4 = vector.broadcast %3 : vector<1x2048xf32> to vector<8x2048xf32>
    %5 = arith.addf %2, %4 : vector<8x2048xf32>
    %cst_5 = arith.constant 5.000000e-01 : f32
    %6 = vector.broadcast %cst_5 : f32 to vector<8x2048xf32>
    %7 = arith.mulf %6, %5 : vector<8x2048xf32>
    %cst_6 = arith.constant 0.707106769 : f32
    %8 = vector.broadcast %cst_6 : f32 to vector<8x2048xf32>
    %9 = arith.mulf %5, %8 : vector<8x2048xf32>
    %10 = math.erf %9 : vector<8x2048xf32>
    %cst_7 = arith.constant 1.000000e+00 : f32
    %11 = vector.broadcast %cst_7 : f32 to vector<8x2048xf32>
    %12 = arith.addf %11, %10 : vector<8x2048xf32>
    %13 = arith.mulf %7, %12 : vector<8x2048xf32>
    %c0_8 = arith.constant 0 : index
    %c0_9 = arith.constant 0 : index
    %14 = vector.load %arg4[%c0_8, %c0_9] : memref<2048x512xf32, #tpu.memory_space<vmem>>, vector<2048x512xf32>
    %cst_10 = arith.constant dense<0.000000e+00> : vector<8x512xf32>
    %15 = tpu.matmul %13, %14, %cst_10 {dimension_numbers = #tpu.dot_dimension_numbers<[1], [0], [0], [1], [0, 0, 1, 1], [], []>} : vector<8x2048xf32>, vector<2048x512xf32>, vector<8x512xf32> -> vector<8x512xf32>
    %c0_11 = arith.constant 0 : index
    %c0_12 = arith.constant 0 : index
    %16 = vector.load %arg5[%c0_11, %c0_12] : memref<1x512xf32, #tpu.memory_space<vmem>>, vector<1x512xf32>
    %17 = vector.broadcast %16 : vector<1x512xf32> to vector<8x512xf32>
    %18 = arith.addf %15, %17 : vector<8x512xf32>
    %c0_13 = arith.constant 0 : index
    %c0_14 = arith.constant 0 : index
    %19 = vector.load %arg6[%c0_13, %c0_14] : memref<8x512xf32, #tpu.memory_space<vmem>>, vector<8x512xf32>
    tpu.vector_store %arg6[%c0_13, %c0_14], %18 {strides = array<i32>} : memref<8x512xf32, #tpu.memory_space<vmem>>, vector<8x512xf32>,
    return
  }
  func.func @transform_0(%arg0: i32) -> (i32, i32) {
    %c0_i32 = arith.constant 0 : i32
    %c0_i32_0 = arith.constant 0 : i32
    return %arg0, %c0_i32 : i32, i32
  }
  func.func @transform_1(%arg0: i32) -> (i32, i32) {
    %c0_i32 = arith.constant 0 : i32
    %c0_i32_0 = arith.constant 0 : i32
    %c0_i32_1 = arith.constant 0 : i32
    return %c0_i32, %c0_i32_0 : i32, i32
  }
  func.func @transform_2(%arg0: i32) -> (i32, i32) {
    %c0_i32 = arith.constant 0 : i32
    %c0_i32_0 = arith.constant 0 : i32
    %c0_i32_1 = arith.constant 0 : i32
    return %c0_i32, %c0_i32_0 : i32, i32
  }
  func.func @transform_3(%arg0: i32) -> (i32, i32) {
    %c0_i32 = arith.constant 0 : i32
    %c0_i32_0 = arith.constant 0 : i32
    %c0_i32_1 = arith.constant 0 : i32
    return %c0_i32, %c0_i32_0 : i32, i32
  }
  func.func @transform_4(%arg0: i32) -> (i32, i32) {
    %c0_i32 = arith.constant 0 : i32
    %c0_i32_0 = arith.constant 0 : i32
    %c0_i32_1 = arith.constant 0 : i32
    return %c0_i32, %c0_i32_0 : i32, i32
  }
  func.func @transform_5(%arg0: i32) -> (i32, i32) {
    %c0_i32 = arith.constant 0 : i32
    %c0_i32_0 = arith.constant 0 : i32
    return %arg0, %c0_i32 : i32, i32
  }
}

</mosaic_0001>

<bundles_post_ra>
// kernel: expert_forward.1
= control target key start
LH: loop header
LB: loop body
LE: loop exit
PB: predicated region body
PF: predicated region fallthrough
CT: control target
= control target key end

     0   :  { %10 = vsyncpa [#allocation3], 0  ;;  %s7951_s0 = inlined_call_operand.hbm [shape: f32[16,512], index: 0, kind: input, shape index: {}]   ;;  %s7952_s1 = inlined_call_operand.hbm [shape: f32[512,2048], index: 1, kind: input, shape index: {}]   ;;  %s7953_s2 = inlined_call_operand.hbm [shape: f32[1,2048], index: 2, kind: input, shape index: {}]   ;;  %s7954_s3 = inlined_call_operand.hbm [shape: f32[2048,512], index: 3, kind: input, shape index: {}]   ;;  %s7955_s4 = inlined_call_operand.hbm [shape: f32[1,512], index: 4, kind: input, shape index: {}]   ;;  %s7956_s5 = inlined_call_operand.hbm [shape: f32[16,512], index: 5, kind: output, shape index: {}]  }
   0x1   :  { %12 = vsyncpa [#allocation3 + $0x1], 0 }
   0x2   :  { %13 = vsyncpa [#allocation6], 0 }
   0x3   :  { %14 = vsyncpa [#allocation9], 0 }
   0x4   :  { %15 = vsyncpa [#allocation4], 0 }
   0x5   :  { %17 = vsyncpa [#allocation4 + $0x1], 0  ;;  %s7463_s18 = smov 0   ;;  %s7465_s19 = smov 0  }
   0x6   :  { %s7467_s20 = smov 0   ;;  %s7469_s21 = smov 0  }
   0x7 LB: > { %s7423_s22 = smov [#allocation5]   ;;  %s7484_s24 = sadd.s32 4294967295, %s7421_s21   ;;  %s7421_s21 = sphi %s7469_s21, %s7980_s21   ;;  %s7417_s20 = sphi %s7467_s20, %s7979_s20   ;;  %s7413_s19 = sphi %s7465_s19, %s7978_s19   ;;  %s7409_s18 = sphi %s7463_s18, %s7977_s18  }
   0x8   : > { %s176_s23 = sshll.u32 %s7423_s22, 4  ;;  %p4933_p0 = scmp.ge.s32.totalorder %s7421_s21, 1  ;;  %s7489_s23 = int_to_ptr.vmem [resolvable:$true] %s176_s23 }
   0x9   : > { %p7957_p1 = scmp.eq.s32.totalorder %s7484_s24, 0  ;;  %p164_p2 = scmp.lt.s32.totalorder %s7421_s21, 3 }
   0xa   : > { %s7424_s26 = smov [#allocation8]   ;;  %s7425_s29 = smov [#allocation7]  }
   0xb   : > { %p7491_p3 = pnand %p4933_p0, %p164_p2  ;;  %s200_s27 = sshll.u32 %s7424_s26, 4  ;;  %s7504_s27 = int_to_ptr.vmem [resolvable:$true] %s200_s27 }
   0xc   : > { %s7506_s30 = sshll.u32 %s7425_s29, 4  ;;  %s7205_s8 = scalar_lea.hbm %s7952_s1, 131072  ;;  %s191_s30 = int_to_ptr.vmem [resolvable:$true] %s7506_s30 }
   0xd   : > { %s7960_s25 = scalar_select %p7491_p3, 1, 0 }
   0xe   : > { %p7088_p5 = pneg %p7491_p3  ;;  %p7206_p7 = scmp.ne.s32.totalorder %s7952_s1, %s7205_s8 }
   0xf   : > { %p7212_p11 = scmp.lt.u32.totalorder %s7205_s8, %s7952_s1 }
  0x10   : > { %p7500_p6 = pnand %p7088_p5, %p7957_p1 }
  0x12   : > { %p7516_p8 = pneg %p7500_p6 }
  0x14   : > { %p7208_p9 = pnand %p7516_p8, %p7206_p7 }
  0x16   : > { %p7209_p10 = pneg %p7208_p9 }
  0x18   : > { %p7214_p12 = pnand %p7212_p11, %p7209_p10 }
  0x1a   : > { %7217 = shalt.err (!%p7214_p12)
}
  0x1b   : > { %s7218_s14 = scalar_lea.vmem %s7489_s23, 131072  ;;  %p7226_p5 = scmp.lt.s32.totalorder %s7489_s23, %s7489_s23 }
  0x1c   : > { %p7219_p13 = scmp.ne.s32.totalorder %s7489_s23, %s7218_s14  ;;  %p7227_p4 = scmp.lt.s32.totalorder %s7218_s14, %s7218_s14 }
  0x1e   : > { %p7221_p0 = pnand %p7219_p13, %p7516_p8  ;;  %p7228_p7 = por %p7227_p4, %p7226_p5 }
  0x20   : > { %p7222_p2 = pneg %p7221_p0 }
  0x22   : > { %p7229_p9 = pnand %p7228_p7, %p7222_p2 }
  0x24   : > { %7232 = shalt.err (!%p7229_p9)
}
  0x25   : > { %s7426_s15 = smov 2048   ;;  %s7427_s16 = smov 128  }
  0x26   : > { %7091 = dma.hbm_to_vmem [thread:$0]  (!%p7500_p6), %s7952_s1, 131072, %s7489_s23, [#allocation6], %s7426_s15, %s7426_s15, %s7427_s16  }
  0x27   : > { %s7233_s6 = scalar_lea.hbm %s7954_s3, 131072 }
  0x28   : > { %p7234_p4 = scmp.ne.s32.totalorder %s7954_s3, %s7233_s6  ;;  %p7240_p12 = scmp.lt.u32.totalorder %s7233_s6, %s7954_s3 }
  0x2a   : > { %p7236_p10 = pnand %p7234_p4, %p7516_p8 }
  0x2c   : > { %p7237_p11 = pneg %p7236_p10 }
  0x2e   : > { %p7242_p13 = pnand %p7240_p12, %p7237_p11 }
  0x30   : > { %7245 = shalt.err (!%p7242_p13)
}
  0x31   : > { %s7246_s23 = scalar_lea.vmem %s7504_s27, 131072  ;;  %p7254_p7 = scmp.lt.s32.totalorder %s7504_s27, %s7504_s27 }
  0x32   : > { %p7247_p0 = scmp.ne.s32.totalorder %s7504_s27, %s7246_s23  ;;  %p7255_p9 = scmp.lt.s32.totalorder %s7246_s23, %s7246_s23 }
  0x34   : > { %p7249_p2 = pnand %p7247_p0, %p7516_p8  ;;  %p7256_p4 = por %p7255_p9, %p7254_p7 }
  0x36   : > { %p7250_p5 = pneg %p7249_p2 }
  0x38   : > { %p7257_p10 = pnand %p7256_p4, %p7250_p5 }
  0x3a   : > { %7260 = shalt.err (!%p7257_p10)
}
  0x3b   : > { %s7428_s12 = smov 512   ;;  %s7429_s13 = smov 32  }
  0x3c   : > { %7097 = dma.hbm_to_vmem [thread:$0]  (!%p7500_p6), %s7954_s3, 131072, %s7504_s27, [#allocation9], %s7428_s12, %s7428_s12, %s7429_s13  }
  0x3d   : > { %s7261_s22 = scalar_lea.hbm %s7953_s2, 256 }
  0x3e   : > { %p7262_p11 = scmp.ne.s32.totalorder %s7953_s2, %s7261_s22  ;;  %p7268_p0 = scmp.lt.u32.totalorder %s7261_s22, %s7953_s2 }
  0x40   : > { %p7264_p12 = pnand %p7262_p11, %p7516_p8 }
  0x42   : > { %p7265_p13 = pneg %p7264_p12 }
  0x44   : > { %p7270_p2 = pnand %p7268_p0, %p7265_p13 }
  0x46   : > { %7273 = shalt.err (!%p7270_p2)
}
  0x47   : > { %s7274_s8 = scalar_lea.vmem %s191_s30, 256  ;;  %p7282_p4 = scmp.lt.s32.totalorder %s191_s30, %s191_s30 }
  0x48   : > { %p7275_p5 = scmp.ne.s32.totalorder %s191_s30, %s7274_s8  ;;  %p7283_p10 = scmp.lt.s32.totalorder %s7274_s8, %s7274_s8 }
  0x4a   : > { %p7277_p7 = pnand %p7275_p5, %p7516_p8  ;;  %p7284_p1 = por %p7283_p10, %p7282_p4 }
  0x4c   : > { %p7278_p9 = pneg %p7277_p7 }
  0x4e   : > { %p7285_p3 = pnand %p7284_p1, %p7278_p9 }
  0x50   : > { %7288 = shalt.err (!%p7285_p3)
}
  0x51   : > { %7094 = dma.hbm_to_vmem [thread:$0]  (!%p7500_p6), %s7953_s2, 256, %s191_s30, [#allocation6]  }
  0x52   : > { %s7430_s10 = smov [#allocation10]   ;;  %s7289_s14 = scalar_lea.hbm %s7955_s4, 64 }
  0x53   : > { %s214_s23 = sshll.u32 %s7430_s10, 4  ;;  %p7290_p11 = scmp.ne.s32.totalorder %s7955_s4, %s7289_s14  ;;  %s215_s23 = int_to_ptr.vmem [resolvable:$true] %s214_s23 }
  0x54   : > { %p7296_p12 = scmp.lt.u32.totalorder %s7289_s14, %s7955_s4 }
  0x55   : > { %p7292_p1 = pnand %p7290_p11, %p7516_p8 }
  0x57   : > { %p7293_p3 = pneg %p7292_p1 }
  0x59   : > { %p7298_p13 = pnand %p7296_p12, %p7293_p3 }
  0x5b   : > { %7301 = shalt.err (!%p7298_p13)
}
  0x5c   : > { %s7302_s30 = scalar_lea.vmem %s215_s23, 64  ;;  %p7310_p7 = scmp.lt.s32.totalorder %s215_s23, %s215_s23 }
  0x5d   : > { %p7303_p0 = scmp.ne.s32.totalorder %s215_s23, %s7302_s30  ;;  %p7311_p9 = scmp.lt.s32.totalorder %s7302_s30, %s7302_s30 }
  0x5f   : > { %p7305_p2 = pnand %p7303_p0, %p7516_p8  ;;  %p7312_p4 = por %p7311_p9, %p7310_p7 }
  0x61   : > { %p7306_p5 = pneg %p7305_p2 }
  0x63   : > { %p7313_p10 = pnand %p7312_p4, %p7306_p5 }
  0x65   : > { %7316 = shalt.err (!%p7313_p10)
}
  0x66   : > { %7100 = dma.hbm_to_vmem [thread:$0]  (!%p7500_p6), %s7955_s4, 64, %s215_s23, [#allocation9]  }
  0x67   : > { %s4932_s11 = sadd.s32 4294967294, %s7421_s21   ;;  %s7599_s28 = sadd.s32 1, %s7421_s21  }
  0x68   : > { %s27_s6 = ssub.s32 %s7421_s21, %s7599_s28  ;;  %s30_s7 = sadd.s32 1, %s7417_s20 }
  0x69   : > { %p28_p8 = scmp.eq.s32.totalorder %s27_s6, 0  ;;  %p37_p11 = scmp.ne.s32.totalorder %s7417_s20, %s7413_s19 }
  0x6a   : > { %p38_p1 = scmp.eq.s32.totalorder %s7421_s21, 0  ;;  %p43_p3 = scmp.ne.s32.totalorder %s7413_s19, %s7409_s18 }
  0x6b   : > { %s7610_s8 = scalar_select %p28_p8, %s7417_s20, %s30_s7  }
  0x6c   : > { %p7612_p12 = por %p38_p1, %p37_p11  ;;  %p7964_p13 = scmp.eq.s32.totalorder %s7484_s24, 0 }
  0x6d   : > { %p151_p0 = scmp.eq.s32.totalorder %s7484_s24, 1  ;;  %p157_p2 = scmp.eq.s32.totalorder %s4932_s11, 1 }
  0x6e   : > { %p7618_p6 = por %p7964_p13, %p43_p3  ;;  %p7113_p5 = scmp.lt.s32.totalorder %s7421_s21, 2 }
  0x6f   : > { %s225_s10 = sand.u32 1, %s7417_s20   ;;  %p7625_p7 = por %p151_p0, %p37_p11 }
  0x70   : > { %p7629_p9 = por %p157_p2, %p43_p3  ;;  %s4939_s13 = sshll.u32 %s225_s10, 5 }
  0x71   : > { %s7966_s23 = scalar_select %p7625_p7, 1, 0 }
  0x72   : > { %s7967_s12 = scalar_select %p7629_p9, 1, 0 }
  0x73   : > { %s4954_s14 = sshll.u32 %s7421_s21, 9  ;;  %s229_s22 = scalar_lea.vmem [#allocation2], %s4939_s13 }
  0x74   : > { %s7637_s17 = scalar_lea.hbm %s7951_s0, %s4954_s14  ;;  %s237_s30 = sshll.u32 %s229_s22, 4  ;;  %s7639_s30 = int_to_ptr.vmem [resolvable:$true] %s237_s30 }
  0x75   : > { %p7643_p4 = pnand %p7113_p5, %p7612_p12  ;;  %s226_s29 = scalar_lea.sflag [#allocation3], %s225_s10 }
  0x76   : > { %s7317_s11 = scalar_lea.hbm %s7637_s17, 512  ;;  %s7322_s13 = scalar_lea.hbm %s7951_s0, 1024 }
  0x77   : > { %p7318_p10 = scmp.ne.s32.totalorder %s7637_s17, %s7317_s11  ;;  %p7319_p8 = pneg %p7643_p4 }
  0x78   : > { %p7323_p3 = scmp.lt.u32.totalorder %s7637_s17, %s7951_s0  ;;  %p7324_p12 = scmp.lt.u32.totalorder %s7322_s13, %s7317_s11 }
  0x79   : > { %p7320_p11 = pnand %p7319_p8, %p7318_p10  ;;  %p7326_p0 = scmp.lt.u32.totalorder %s7317_s11, %s7637_s17 }
  0x7a   : > { %p7325_p13 = por %p7324_p12, %p7323_p3 }
  0x7b   : > { %p7321_p1 = pneg %p7320_p11 }
  0x7c   : > { %p7327_p2 = por %p7326_p0, %p7325_p13 }
  0x7e   : > { %p7328_p5 = pnand %p7327_p2, %p7321_p1 }
  0x80   : > { %7331 = shalt.err (!%p7328_p5)
}
  0x81   : > { %s7332_s10 = scalar_lea.vmem %s7639_s30, 512  ;;  %s7431_s15 = smov [#allocation2]  }
  0x82   : > { %p7333_p10 = scmp.ne.s32.totalorder %s7639_s30, %s7332_s10  ;;  %s7337_s16 = sshll.u32 %s7431_s15, 4  ;;  %s7338_s16 = int_to_ptr.vmem [resolvable:$false] %s7337_s16 }
  0x83   : > { %s7339_s22 = scalar_lea.vmem %s7338_s16, 1024  ;;  %p7340_p7 = scmp.lt.s32.totalorder %s7639_s30, %s7338_s16 }
  0x84   : > { %p7335_p11 = pnand %p7333_p10, %p7319_p8  ;;  %p7341_p3 = scmp.lt.s32.totalorder %s7339_s22, %s7332_s10 }
  0x86   : > { %p7336_p9 = pneg %p7335_p11  ;;  %p7342_p12 = por %p7341_p3, %p7340_p7 }
  0x88   : > { %p7343_p13 = pnand %p7342_p12, %p7336_p9 }
  0x8a   : > { %7346 = shalt.err (!%p7343_p13)
}
  0x8b   : > { %7104 = dma.hbm_to_vmem [thread:$0]  (!%p7643_p4), %s7637_s17, 512, %s7639_s30, %s226_s29  }
  0x8c   : > { %p7969_p1 = scmp.ne.s32.totalorder %s7960_s25, 0 }
  0x8d   : > { %s7675_s11 = sand.u32 (!%p7969_p1), 1, %s7413_s19  }
  0x8e   : > { %246 = sbr.rel (%p7969_p1) target bundleno = 1414 (0x586), region = 40  ;;  %s4943_s6 = sshll.u32 (!%p7969_p1), %s7675_s11, 5 }
  0x8f   : > { %s249_s7 = scalar_lea.sflag (!%p7969_p1), [#allocation3], %s7675_s11  ;;  %s7681_s13 = scalar_lea.vmem (!%p7969_p1), [#allocation2], %s4943_s6 }
  0x95   : > { %7392 = dma.done.wait (%p7618_p6), %s249_s7, 512  }
  0x96   : > { %7394 = vsyncadd (%p7618_p6), %s249_s7, 4294966784  ;;  %p7970_p7 = scmp.eq.s32.totalorder %s7484_s24, 0 }
  0x98   : > { %7396 = dma.done.wait (%p7970_p7), [#allocation6], 131328   ;;  %p7971_p9 = pmov %p7970_p7 }
  0x99   : > { %p7972_p4 = pmov %p7970_p7 }
  0x9a   : > { %7398 = vsyncadd (%p7971_p9), [#allocation6], 4294835968 }
  0x9b   : > { %7400 = dma.done.wait (%p7972_p4), [#allocation9], 131136   ;;  %p7973_p8 = pmov %p7972_p4 }
  0x9c   : > { %v300_v0 = vld [vmem:[#allocation5 + $0x8] sm:$0xff]  ;;  %v302_v2 = vld [vmem:[#allocation5 + $0x18] sm:$0xff]  ;;  %v299_v5 = vld [vmem:[#allocation5] sm:$0xff]  ;;  %s4955_s25 = sshll.u32 %s7484_s24, 9  ;;  %s294_s9 = scalar_lea.vmem [#allocation11], %s4943_s6 }
  0x9d   : > { %7402 = vsyncadd (%p7973_p8), [#allocation9], 4294836160  ;;  %v316_v1 = vld [vmem:[#allocation5 + $0x88] sm:$0xff]  ;;  %v318_v4 = vld [vmem:[#allocation5 + $0x98] sm:$0xff]  ;;  %s4824_s17 = sshll.u32 %s294_s9, 4  ;;  %s7907_s29 = scalar_lea.hbm %s7956_s5, %s4955_s25  ;;  %s7909_s17 = int_to_ptr.vmem [resolvable:$true] %s4824_s17 }
  0x9e   : > { %v4956_v3 = vpack.c.bf16 %v316_v1, %v300_v0  ;;  %v315_v6 = vld [vmem:[#allocation5 + $0x80] sm:$0xff]  ;;  %v5084_v7 = vpack.c.bf16 %v318_v4, %v302_v2  ;;  %v301_v9 = vld [vmem:[#allocation5 + $0x10] sm:$0xff]  ;;  %v332_v11 = vld [vmem:[#allocation5 + $0x108] sm:$0xff]  ;;  %s4810_s24 = scalar_lea.sflag [#allocation4], %s7675_s11  ;;  %s7347_s27 = scalar_lea.vmem %s7909_s17, 512 }
  0x9f   : > { %v4958_v8 = vpack.c.bf16 %v315_v6, %v299_v5  ;;  %v317_v10 = vld [vmem:[#allocation5 + $0x90] sm:$0xff]  ;;  %v348_v13 = vld [vmem:[#allocation5 + $0x188] sm:$0xff]  ;;  %v334_v14 = vld [vmem:[#allocation5 + $0x118] sm:$0xff]  ;;  %p7348_p6 = scmp.ne.s32.totalorder %s7909_s17, %s7347_s27  ;;  %p7974_p0 = scmp.ne.s32.totalorder %s7966_s23, 0 }
  0xa0   : > { %4957 = vmatprep.subr.bf16.mxu0 %v4956_v3  ;;  %v5086_v12 = vpack.c.bf16 %v317_v10, %v301_v9  ;;  %v350_v15 = vld [vmem:[#allocation5 + $0x198] sm:$0xff]  ;;  %5085 = vmatprep.subr.bf16.mxu1 %v5084_v7  ;;  %v4960_v16 = vpack.c.bf16 %v348_v13, %v332_v11  ;;  %v331_v18 = vld [vmem:[#allocation5 + $0x100] sm:$0xff]  ;;  %v333_v20 = vld [vmem:[#allocation5 + $0x110] sm:$0xff]  ;;  %s7432_s14 = smov [#allocation11]  }
  0xa1   : > { %4959 = vmatpush1.bf16.msra.mxu0 %v4958_v8  ;;  %v5088_v17 = vpack.c.bf16 %v350_v15, %v334_v14  ;;  %v347_v19 = vld [vmem:[#allocation5 + $0x180] sm:$0xff]  ;;  %v349_v22 = vld [vmem:[#allocation5 + $0x190] sm:$0xff]  ;;  %v364_v23 = vld [vmem:[#allocation5 + $0x208] sm:$0xff]  ;;  %p7349_p2 = pnand %p7348_p6, %p7974_p0  ;;  %s7351_s10 = sshll.u32 %s7432_s14, 4  ;;  %s7352_s10 = int_to_ptr.vmem [resolvable:$false] %s7351_s10 }
  0xa2   : > { %5087 = vmatpush1.bf16.msra.mxu1 %v5086_v12  ;;  %v4962_v21 = vpack.c.bf16 %v347_v19, %v331_v18  ;;  %v380_v24 = vld [vmem:[#allocation5 + $0x288] sm:$0xff]  ;;  %4961 = vmatprep.subr.bf16.mxu0 %v4960_v16  ;;  %v5090_v25 = vpack.c.bf16 %v349_v22, %v333_v20  ;;  %v366_v27 = vld [vmem:[#allocation5 + $0x218] sm:$0xff]  ;;  %v363_v29 = vld [vmem:[#allocation5 + $0x200] sm:$0xff]  ;;  %s7353_s15 = scalar_lea.vmem %s7352_s10, 1024  ;;  %p7354_p10 = scmp.lt.s32.totalorder %s7909_s17, %s7352_s10 }
  0xa3   : > { %5089 = vmatprep.subr.bf16.mxu1 %v5088_v17  ;;  %v4964_v26 = vpack.c.bf16 %v380_v24, %v364_v23  ;;  %v382_v28 = vld [vmem:[#allocation5 + $0x298] sm:$0xff]  ;;  %v379_v31 = vld [vmem:[#allocation5 + $0x280] sm:$0xff]  ;;  %v365_v32 = vld [vmem:[#allocation5 + $0x210] sm:$0xff]  ;;  %p7350_p5 = pneg %p7349_p2  ;;  %p7355_p11 = scmp.lt.s32.totalorder %s7353_s15, %s7347_s27 }
  0xa4   : > { %v5092_v30 = vpack.c.bf16 %v382_v28, %v366_v27  ;;  %v381_v33 = vld [vmem:[#allocation5 + $0x290] sm:$0xff]  ;;  %v4966_v34 = vpack.c.bf16 %v379_v31, %v363_v29  ;;  %v396_v35 = vld [vmem:[#allocation5 + $0x308] sm:$0xff]  ;;  %v398_v37 = vld [vmem:[#allocation5 + $0x318] sm:$0xff] }
  0xa5   : > { %4963 = vmatpush1.bf16.msra.mxu0 %v4962_v21  ;;  %v412_v36 = vld [vmem:[#allocation5 + $0x388] sm:$0xff]  ;;  %v5094_v38 = vpack.c.bf16 %v381_v33, %v365_v32  ;;  %v414_v40 = vld [vmem:[#allocation5 + $0x398] sm:$0xff]  ;;  %v395_v41 = vld [vmem:[#allocation5 + $0x300] sm:$0xff]  ;;  %p7356_p3 = por %p7355_p11, %p7354_p10 }
  0xa6   : > { %5091 = vmatpush1.bf16.msra.mxu1 %v5090_v25  ;;  %4965 = vmatprep.subr.bf16.mxu0 %v4964_v26  ;;  %v4968_v39 = vpack.c.bf16 %v412_v36, %v396_v35  ;;  %v411_v42 = vld [vmem:[#allocation5 + $0x380] sm:$0xff]  ;;  %v5096_v43 = vpack.c.bf16 %v414_v40, %v398_v37  ;;  %v397_v44 = vld [vmem:[#allocation5 + $0x310] sm:$0xff]  ;;  %v428_v46 = vld [vmem:[#allocation5 + $0x408] sm:$0xff] }
  0xa7   : > { %5093 = vmatprep.subr.bf16.mxu1 %v5092_v30  ;;  %v413_v45 = vld [vmem:[#allocation5 + $0x390] sm:$0xff]  ;;  %v444_v47 = vld [vmem:[#allocation5 + $0x488] sm:$0xff]  ;;  %v430_v48 = vld [vmem:[#allocation5 + $0x418] sm:$0xff]  ;;  %v4970_v50 = vpack.c.bf16 %v411_v42, %v395_v41  ;;  %p7357_p12 = pnand %p7356_p3, %p7350_p5 }
  0xa8   : > { %v446_v49 = vld [vmem:[#allocation5 + $0x498] sm:$0xff]  ;;  %v5098_v51 = vpack.c.bf16 %v413_v45, %v397_v44  ;;  %v4972_v52 = vpack.c.bf16 %v444_v47, %v428_v46  ;;  %v427_v53 = vld [vmem:[#allocation5 + $0x400] sm:$0xff]  ;;  %v429_v55 = vld [vmem:[#allocation5 + $0x410] sm:$0xff] }
  0xa9   : > { %4967 = vmatpush1.bf16.msra.mxu0 %v4966_v34  ;;  %v443_v54 = vld [vmem:[#allocation5 + $0x480] sm:$0xff]  ;;  %v5100_v56 = vpack.c.bf16 %v446_v49, %v430_v48  ;;  %v445_v57 = vld [vmem:[#allocation5 + $0x490] sm:$0xff]  ;;  %v460_v58 = vld [vmem:[#allocation5 + $0x508] sm:$0xff] }
  0xaa   : > { %5095 = vmatpush1.bf16.msra.mxu1 %v5094_v38  ;;  %4969 = vmatprep.subr.bf16.mxu0 %v4968_v39  ;;  %v476_v59 = vld [vmem:[#allocation5 + $0x588] sm:$0xff]  ;;  %v462_v60 = vld [vmem:[#allocation5 + $0x518] sm:$0xff]  ;;  %v4974_v62 = vpack.c.bf16 %v443_v54, %v427_v53  ;;  %v5102_v63 = vpack.c.bf16 %v445_v57, %v429_v55  ;;  %v459_v1 = vld [vmem:[#allocation5 + $0x500] sm:$0xff] }
  0xab   : > { %5097 = vmatprep.subr.bf16.mxu1 %v5096_v43  ;;  %v478_v61 = vld [vmem:[#allocation5 + $0x598] sm:$0xff]  ;;  %v4976_v0 = vpack.c.bf16 %v476_v59, %v460_v58  ;;  %v475_v2 = vld [vmem:[#allocation5 + $0x580] sm:$0xff]  ;;  %v461_v3 = vld [vmem:[#allocation5 + $0x510] sm:$0xff] }
  0xac   : > { %v5104_v4 = vpack.c.bf16 %v478_v61, %v462_v60  ;;  %v477_v5 = vld [vmem:[#allocation5 + $0x590] sm:$0xff]  ;;  %v492_v6 = vld [vmem:[#allocation5 + $0x608] sm:$0xff]  ;;  %v494_v8 = vld [vmem:[#allocation5 + $0x618] sm:$0xff]  ;;  %v4978_v10 = vpack.c.bf16 %v475_v2, %v459_v1 }
  0xad   : > { %4971 = vmatpush1.bf16.msra.mxu0 %v4970_v50  ;;  %v508_v7 = vld [vmem:[#allocation5 + $0x688] sm:$0xff]  ;;  %v510_v9 = vld [vmem:[#allocation5 + $0x698] sm:$0xff]  ;;  %v5106_v11 = vpack.c.bf16 %v477_v5, %v461_v3  ;;  %v491_v13 = vld [vmem:[#allocation5 + $0x600] sm:$0xff] }
  0xae   : > { %5099 = vmatpush1.bf16.msra.mxu1 %v5098_v51  ;;  %4973 = vmatprep.subr.bf16.mxu0 %v4972_v52  ;;  %v4980_v12 = vpack.c.bf16 %v508_v7, %v492_v6  ;;  %v507_v14 = vld [vmem:[#allocation5 + $0x680] sm:$0xff]  ;;  %v493_v15 = vld [vmem:[#allocation5 + $0x610] sm:$0xff]  ;;  %v5108_v16 = vpack.c.bf16 %v510_v9, %v494_v8  ;;  %v524_v18 = vld [vmem:[#allocation5 + $0x708] sm:$0xff] }
  0xaf   : > { %5101 = vmatprep.subr.bf16.mxu1 %v5100_v56  ;;  %v509_v17 = vld [vmem:[#allocation5 + $0x690] sm:$0xff]  ;;  %v540_v19 = vld [vmem:[#allocation5 + $0x788] sm:$0xff]  ;;  %v526_v20 = vld [vmem:[#allocation5 + $0x718] sm:$0xff]  ;;  %v4982_v22 = vpack.c.bf16 %v507_v14, %v491_v13 }
  0xb0   : > { %v542_v21 = vld [vmem:[#allocation5 + $0x798] sm:$0xff]  ;;  %v5110_v23 = vpack.c.bf16 %v509_v17, %v493_v15  ;;  %v4984_v24 = vpack.c.bf16 %v540_v19, %v524_v18  ;;  %v523_v25 = vld [vmem:[#allocation5 + $0x700] sm:$0xff]  ;;  %v525_v27 = vld [vmem:[#allocation5 + $0x710] sm:$0xff] }
  0xb1   : > { %4975 = vmatpush1.bf16.msra.mxu0 %v4974_v62  ;;  %v539_v26 = vld [vmem:[#allocation5 + $0x780] sm:$0xff]  ;;  %v5112_v28 = vpack.c.bf16 %v542_v21, %v526_v20  ;;  %v541_v29 = vld [vmem:[#allocation5 + $0x790] sm:$0xff]  ;;  %v556_v30 = vld [vmem:[#allocation5 + $0x808] sm:$0xff] }
  0xb2   : > { %5103 = vmatpush1.bf16.msra.mxu1 %v5102_v63  ;;  %4977 = vmatprep.subr.bf16.mxu0 %v4976_v0  ;;  %v572_v31 = vld [vmem:[#allocation5 + $0x888] sm:$0xff]  ;;  %v558_v32 = vld [vmem:[#allocation5 + $0x818] sm:$0xff]  ;;  %v4986_v34 = vpack.c.bf16 %v539_v26, %v523_v25  ;;  %v5114_v35 = vpack.c.bf16 %v541_v29, %v525_v27  ;;  %v555_v37 = vld [vmem:[#allocation5 + $0x800] sm:$0xff] }
  0xb3   : > { %5105 = vmatprep.subr.bf16.mxu1 %v5104_v4  ;;  %v574_v33 = vld [vmem:[#allocation5 + $0x898] sm:$0xff]  ;;  %v4988_v36 = vpack.c.bf16 %v572_v31, %v556_v30  ;;  %v571_v38 = vld [vmem:[#allocation5 + $0x880] sm:$0xff]  ;;  %v557_v39 = vld [vmem:[#allocation5 + $0x810] sm:$0xff] }
  0xb4   : > { %v5116_v40 = vpack.c.bf16 %v574_v33, %v558_v32  ;;  %v573_v41 = vld [vmem:[#allocation5 + $0x890] sm:$0xff]  ;;  %v588_v42 = vld [vmem:[#allocation5 + $0x908] sm:$0xff]  ;;  %v590_v44 = vld [vmem:[#allocation5 + $0x918] sm:$0xff]  ;;  %v4990_v46 = vpack.c.bf16 %v571_v38, %v555_v37 }
  0xb5   : > { %4979 = vmatpush1.bf16.msra.mxu0 %v4978_v10  ;;  %v604_v43 = vld [vmem:[#allocation5 + $0x988] sm:$0xff]  ;;  %v606_v45 = vld [vmem:[#allocation5 + $0x998] sm:$0xff]  ;;  %v5118_v47 = vpack.c.bf16 %v573_v41, %v557_v39  ;;  %v587_v49 = vld [vmem:[#allocation5 + $0x900] sm:$0xff] }
  0xb6   : > { %5107 = vmatpush1.bf16.msra.mxu1 %v5106_v11  ;;  %4981 = vmatprep.subr.bf16.mxu0 %v4980_v12  ;;  %v4992_v48 = vpack.c.bf16 %v604_v43, %v588_v42  ;;  %v603_v50 = vld [vmem:[#allocation5 + $0x980] sm:$0xff]  ;;  %v589_v51 = vld [vmem:[#allocation5 + $0x910] sm:$0xff]  ;;  %v5120_v52 = vpack.c.bf16 %v606_v45, %v590_v44  ;;  %v620_v54 = vld [vmem:[#allocation5 + $0xa08] sm:$0xff] }
  0xb7   : > { %5109 = vmatprep.subr.bf16.mxu1 %v5108_v16  ;;  %v605_v53 = vld [vmem:[#allocation5 + $0x990] sm:$0xff]  ;;  %v636_v55 = vld [vmem:[#allocation5 + $0xa88] sm:$0xff]  ;;  %v622_v56 = vld [vmem:[#allocation5 + $0xa18] sm:$0xff]  ;;  %v4994_v58 = vpack.c.bf16 %v603_v50, %v587_v49 }
  0xb8   : > { %v638_v57 = vld [vmem:[#allocation5 + $0xa98] sm:$0xff]  ;;  %v5122_v59 = vpack.c.bf16 %v605_v53, %v589_v51  ;;  %v4996_v60 = vpack.c.bf16 %v636_v55, %v620_v54  ;;  %v619_v61 = vld [vmem:[#allocation5 + $0xa00] sm:$0xff]  ;;  %v621_v63 = vld [vmem:[#allocation5 + $0xa10] sm:$0xff] }
  0xb9   : > { %4983 = vmatpush1.bf16.msra.mxu0 %v4982_v22  ;;  %v635_v62 = vld [vmem:[#allocation5 + $0xa80] sm:$0xff]  ;;  %v5124_v0 = vpack.c.bf16 %v638_v57, %v622_v56  ;;  %v637_v1 = vld [vmem:[#allocation5 + $0xa90] sm:$0xff]  ;;  %v652_v2 = vld [vmem:[#allocation5 + $0xb08] sm:$0xff] }
  0xba   : > { %5111 = vmatpush1.bf16.msra.mxu1 %v5110_v23  ;;  %4985 = vmatprep.subr.bf16.mxu0 %v4984_v24  ;;  %v668_v3 = vld [vmem:[#allocation5 + $0xb88] sm:$0xff]  ;;  %v654_v4 = vld [vmem:[#allocation5 + $0xb18] sm:$0xff]  ;;  %v4998_v6 = vpack.c.bf16 %v635_v62, %v619_v61  ;;  %v651_v7 = vld [vmem:[#allocation5 + $0xb00] sm:$0xff]  ;;  %v5126_v8 = vpack.c.bf16 %v637_v1, %v621_v63 }
  0xbb   : > { %5113 = vmatprep.subr.bf16.mxu1 %v5112_v28  ;;  %v670_v5 = vld [vmem:[#allocation5 + $0xb98] sm:$0xff]  ;;  %v5000_v9 = vpack.c.bf16 %v668_v3, %v652_v2  ;;  %v667_v10 = vld [vmem:[#allocation5 + $0xb80] sm:$0xff]  ;;  %v653_v11 = vld [vmem:[#allocation5 + $0xb10] sm:$0xff] }
  0xbc   : > { %v669_v12 = vld [vmem:[#allocation5 + $0xb90] sm:$0xff]  ;;  %v5128_v13 = vpack.c.bf16 %v670_v5, %v654_v4  ;;  %v684_v14 = vld [vmem:[#allocation5 + $0xc08] sm:$0xff]  ;;  %v686_v17 = vld [vmem:[#allocation5 + $0xc18] sm:$0xff]  ;;  %v5002_v19 = vpack.c.bf16 %v667_v10, %v651_v7 }
  0xbd   : > { %4987 = vmatpush1.bf16.msra.mxu0 %v4986_v34  ;;  %v700_v15 = vld [vmem:[#allocation5 + $0xc88] sm:$0xff]  ;;  %v702_v18 = vld [vmem:[#allocation5 + $0xc98] sm:$0xff]  ;;  %v5130_v20 = vpack.c.bf16 %v669_v12, %v653_v11  ;;  %v683_v22 = vld [vmem:[#allocation5 + $0xc00] sm:$0xff] }
  0xbe   : > { %5115 = vmatpush1.bf16.msra.mxu1 %v5114_v35  ;;  %4989 = vmatprep.subr.bf16.mxu0 %v4988_v36  ;;  %v7696_v16 = vld [vmem:[%s7681_s13 + $0x8] sm:$0xff]  ;;  %v5004_v21 = vpack.c.bf16 %v700_v15, %v684_v14  ;;  %v699_v23 = vld [vmem:[#allocation5 + $0xc80] sm:$0xff]  ;;  %v685_v24 = vld [vmem:[#allocation5 + $0xc10] sm:$0xff]  ;;  %v5132_v25 = vpack.c.bf16 %v702_v18, %v686_v17 }
  0xbf   : > { %5117 = vmatprep.subr.bf16.mxu1 %v5116_v40  ;;  %1471 = vmatprep.mubr.f32.mxu0 %v7696_v16  ;;  %v701_v26 = vld [vmem:[#allocation5 + $0xc90] sm:$0xff]  ;;  %v716_v27 = vld [vmem:[#allocation5 + $0xd08] sm:$0xff]  ;;  %v718_v29 = vld [vmem:[#allocation5 + $0xd18] sm:$0xff]  ;;  %v5006_v31 = vpack.c.bf16 %v699_v23, %v683_v22 }
  0xc0   : > { %1613 = vmatprep.mubr.f32.mxu1 %v7696_v16  ;;  %v732_v28 = vld [vmem:[#allocation5 + $0xd88] sm:$0xff]  ;;  %v734_v30 = vld [vmem:[#allocation5 + $0xd98] sm:$0xff]  ;;  %v5134_v32 = vpack.c.bf16 %v701_v26, %v685_v24  ;;  %v715_v34 = vld [vmem:[#allocation5 + $0xd00] sm:$0xff] }
  0xc1   : > { %4991 = vmatpush1.bf16.msra.mxu0 %v4990_v46  ;;  %v5008_v33 = vpack.c.bf16 %v732_v28, %v716_v27  ;;  %v731_v35 = vld [vmem:[#allocation5 + $0xd80] sm:$0xff]  ;;  %v717_v36 = vld [vmem:[#allocation5 + $0xd10] sm:$0xff]  ;;  %v5136_v37 = vpack.c.bf16 %v734_v30, %v718_v29  ;;  %v748_v39 = vld [vmem:[#allocation5 + $0xe08] sm:$0xff] }
  0xc2   : > { %5119 = vmatpush1.bf16.msra.mxu1 %v5118_v47  ;;  %4993 = vmatprep.subr.bf16.mxu0 %v4992_v48  ;;  %v733_v38 = vld [vmem:[#allocation5 + $0xd90] sm:$0xff]  ;;  %v764_v40 = vld [vmem:[#allocation5 + $0xe88] sm:$0xff]  ;;  %v750_v41 = vld [vmem:[#allocation5 + $0xe18] sm:$0xff]  ;;  %v5010_v43 = vpack.c.bf16 %v731_v35, %v715_v34 }
  0xc3   : > { %5121 = vmatprep.subr.bf16.mxu1 %v5120_v52  ;;  %v766_v42 = vld [vmem:[#allocation5 + $0xe98] sm:$0xff]  ;;  %v5138_v44 = vpack.c.bf16 %v733_v38, %v717_v36  ;;  %v5012_v45 = vpack.c.bf16 %v764_v40, %v748_v39  ;;  %v747_v46 = vld [vmem:[#allocation5 + $0xe00] sm:$0xff]  ;;  %v749_v48 = vld [vmem:[#allocation5 + $0xe10] sm:$0xff] }
  0xc4   : > { %v763_v47 = vld [vmem:[#allocation5 + $0xe80] sm:$0xff]  ;;  %v5140_v49 = vpack.c.bf16 %v766_v42, %v750_v41  ;;  %v765_v50 = vld [vmem:[#allocation5 + $0xe90] sm:$0xff]  ;;  %v780_v51 = vld [vmem:[#allocation5 + $0xf08] sm:$0xff] }
  0xc5   : > { %4995 = vmatpush1.bf16.msra.mxu0 %v4994_v58  ;;  %v796_v52 = vld [vmem:[#allocation5 + $0xf88] sm:$0xff]  ;;  %v782_v53 = vld [vmem:[#allocation5 + $0xf18] sm:$0xff]  ;;  %v5014_v55 = vpack.c.bf16 %v763_v47, %v747_v46  ;;  %v5142_v56 = vpack.c.bf16 %v765_v50, %v749_v48  ;;  %v779_v58 = vld [vmem:[#allocation5 + $0xf00] sm:$0xff] }
  0xc6   : > { %5123 = vmatpush1.bf16.msra.mxu1 %v5122_v59  ;;  %4997 = vmatprep.subr.bf16.mxu0 %v4996_v60  ;;  %v798_v54 = vld [vmem:[#allocation5 + $0xf98] sm:$0xff]  ;;  %v5016_v57 = vpack.c.bf16 %v796_v52, %v780_v51  ;;  %v795_v59 = vld [vmem:[#allocation5 + $0xf80] sm:$0xff]  ;;  %v781_v60 = vld [vmem:[#allocation5 + $0xf10] sm:$0xff] }
  0xc7   : > { %5125 = vmatprep.subr.bf16.mxu1 %v5124_v0  ;;  %v5144_v61 = vpack.c.bf16 %v798_v54, %v782_v53  ;;  %v797_v62 = vld [vmem:[#allocation5 + $0xf90] sm:$0xff]  ;;  %v812_v63 = vld [vmem:[#allocation5 + $0x1008] sm:$0xff]  ;;  %v814_v1 = vld [vmem:[#allocation5 + $0x1018] sm:$0xff]  ;;  %v5018_v3 = vpack.c.bf16 %v795_v59, %v779_v58 }
  0xc8   : > { %v828_v0 = vld [vmem:[#allocation5 + $0x1088] sm:$0xff]  ;;  %v830_v2 = vld [vmem:[#allocation5 + $0x1098] sm:$0xff]  ;;  %v5146_v4 = vpack.c.bf16 %v797_v62, %v781_v60  ;;  %v827_v7 = vld [vmem:[#allocation5 + $0x1080] sm:$0xff] }
  0xc9   : > { %4999 = vmatpush1.bf16.msra.mxu0 %v4998_v6  ;;  %v5020_v5 = vpack.c.bf16 %v828_v0, %v812_v63  ;;  %v811_v6 = vld [vmem:[#allocation5 + $0x1000] sm:$0xff]  ;;  %v829_v10 = vld [vmem:[#allocation5 + $0x1090] sm:$0xff]  ;;  %v844_v11 = vld [vmem:[#allocation5 + $0x1108] sm:$0xff] }
  0xca   : > { %5127 = vmatpush1.bf16.msra.mxu1 %v5126_v8  ;;  %5001 = vmatprep.subr.bf16.mxu0 %v5000_v9  ;;  %v813_v8 = vld [vmem:[#allocation5 + $0x1010] sm:$0xff]  ;;  %v5148_v9 = vpack.c.bf16 %v830_v2, %v814_v1  ;;  %v860_v12 = vld [vmem:[#allocation5 + $0x1188] sm:$0xff]  ;;  %v862_v14 = vld [vmem:[#allocation5 + $0x1198] sm:$0xff]  ;;  %v5022_v17 = vpack.c.bf16 %v827_v7, %v811_v6 }
  0xcb   : > { %5129 = vmatprep.subr.bf16.mxu1 %v5128_v13  ;;  %v846_v13 = vld [vmem:[#allocation5 + $0x1118] sm:$0xff]  ;;  %v295_v15 = vld [vmem:[%s7681_s13] sm:$0xff]  ;;  %v5150_v18 = vpack.c.bf16 %v829_v10, %v813_v8  ;;  %v845_v22 = vld [vmem:[#allocation5 + $0x1110] sm:$0xff] }
  0xcc   : > { %v5152_v23 = vpack.c.bf16 %v862_v14, %v846_v13  ;;  %v861_v24 = vld [vmem:[#allocation5 + $0x1190] sm:$0xff]  ;;  %v892_v26 = vld [vmem:[#allocation5 + $0x1288] sm:$0xff]  ;;  %v878_v27 = vld [vmem:[#allocation5 + $0x1218] sm:$0xff] }
  0xcd   : > { %5003 = vmatpush1.bf16.msra.mxu0 %v5002_v19  ;;  %v5024_v19 = vpack.c.bf16 %v860_v12, %v844_v11  ;;  %v894_v28 = vld [vmem:[#allocation5 + $0x1298] sm:$0xff]  ;;  %v5154_v30 = vpack.c.bf16 %v861_v24, %v845_v22  ;;  %v877_v34 = vld [vmem:[#allocation5 + $0x1210] sm:$0xff]  ;;  %v924_v38 = vld [vmem:[#allocation5 + $0x1388] sm:$0xff] }
  0xce   : > { %5131 = vmatpush1.bf16.msra.mxu1 %v5130_v20  ;;  %5005 = vmatprep.subr.bf16.mxu0 %v5004_v21  ;;  %v843_v20 = vld [vmem:[#allocation5 + $0x1100] sm:$0xff]  ;;  %v5156_v35 = vpack.c.bf16 %v894_v28, %v878_v27  ;;  %v893_v36 = vld [vmem:[#allocation5 + $0x1290] sm:$0xff]  ;;  %v910_v39 = vld [vmem:[#allocation5 + $0x1318] sm:$0xff] }
  0xcf   : > { %5133 = vmatprep.subr.bf16.mxu1 %v5132_v25  ;;  %v859_v21 = vld [vmem:[#allocation5 + $0x1180] sm:$0xff]  ;;  %v876_v25 = vld [vmem:[#allocation5 + $0x1208] sm:$0xff]  ;;  %v926_v40 = vld [vmem:[#allocation5 + $0x1398] sm:$0xff]  ;;  %v5158_v42 = vpack.c.bf16 %v893_v36, %v877_v34 }
  0xd0   : > { %v5026_v29 = vpack.c.bf16 %v859_v21, %v843_v20  ;;  %v909_v46 = vld [vmem:[#allocation5 + $0x1310] sm:$0xff]  ;;  %v5160_v47 = vpack.c.bf16 %v926_v40, %v910_v39  ;;  %v956_v50 = vld [vmem:[#allocation5 + $0x1488] sm:$0xff]  ;;  %v942_v51 = vld [vmem:[#allocation5 + $0x1418] sm:$0xff] }
  0xd1   : > { %5007 = vmatpush1.bf16.msra.mxu0 %v5006_v31  ;;  %v5028_v31 = vpack.c.bf16 %v892_v26, %v876_v25  ;;  %v925_v48 = vld [vmem:[#allocation5 + $0x1390] sm:$0xff]  ;;  %v958_v52 = vld [vmem:[#allocation5 + $0x1498] sm:$0xff]  ;;  %v988_v62 = vld [vmem:[#allocation5 + $0x1588] sm:$0xff] }
  0xd2   : > { %5135 = vmatpush1.bf16.msra.mxu1 %v5134_v32  ;;  %5009 = vmatprep.subr.bf16.mxu0 %v5008_v33  ;;  %v875_v32 = vld [vmem:[#allocation5 + $0x1200] sm:$0xff]  ;;  %v5162_v54 = vpack.c.bf16 %v925_v48, %v909_v46  ;;  %v941_v58 = vld [vmem:[#allocation5 + $0x1410] sm:$0xff]  ;;  %v5164_v59 = vpack.c.bf16 %v958_v52, %v942_v51  ;;  %v974_v63 = vld [vmem:[#allocation5 + $0x1518] sm:$0xff] }
  0xd3   : > { %5137 = vmatprep.subr.bf16.mxu1 %v5136_v37  ;;  %v891_v33 = vld [vmem:[#allocation5 + $0x1280] sm:$0xff]  ;;  %v908_v37 = vld [vmem:[#allocation5 + $0x1308] sm:$0xff]  ;;  %v957_v60 = vld [vmem:[#allocation5 + $0x1490] sm:$0xff] }
  0xd4   : > { %v5030_v41 = vpack.c.bf16 %v891_v33, %v875_v32  ;;  %v990_v0 = vld [vmem:[#allocation5 + $0x1598] sm:$0xff]  ;;  %v5166_v2 = vpack.c.bf16 %v957_v60, %v941_v58  ;;  %v973_v6 = vld [vmem:[#allocation5 + $0x1510] sm:$0xff]  ;;  %v1020_v10 = vld [vmem:[#allocation5 + $0x1688] sm:$0xff] }
  0xd5   : > { %5011 = vmatpush1.bf16.msra.mxu0 %v5010_v43  ;;  %v5032_v43 = vpack.c.bf16 %v924_v38, %v908_v37  ;;  %v5168_v7 = vpack.c.bf16 %v990_v0, %v974_v63  ;;  %v989_v8 = vld [vmem:[#allocation5 + $0x1590] sm:$0xff]  ;;  %v1006_v11 = vld [vmem:[#allocation5 + $0x1618] sm:$0xff]  ;;  %v1003_v14 = vld [vmem:[#allocation5 + $0x1600] sm:$0xff] }
  0xd6   : > { %5139 = vmatpush1.bf16.msra.mxu1 %v5138_v44  ;;  %5013 = vmatprep.subr.bf16.mxu0 %v5012_v45  ;;  %v907_v44 = vld [vmem:[#allocation5 + $0x1300] sm:$0xff]  ;;  %v1022_v12 = vld [vmem:[#allocation5 + $0x1698] sm:$0xff]  ;;  %v1021_v20 = vld [vmem:[#allocation5 + $0x1690] sm:$0xff] }
  0xd7   : > { %5141 = vmatprep.subr.bf16.mxu1 %v5140_v49  ;;  %v923_v45 = vld [vmem:[#allocation5 + $0x1380] sm:$0xff]  ;;  %v940_v49 = vld [vmem:[#allocation5 + $0x1408] sm:$0xff]  ;;  %v5172_v21 = vpack.c.bf16 %v1022_v12, %v1006_v11  ;;  %v7702_v24 = vld [vmem:[%s7681_s13 + $0x18] sm:$0xff] }
  0xd8   : > { %v5034_v53 = vpack.c.bf16 %v923_v45, %v907_v44  ;;  %v1036_v22 = vld [vmem:[#allocation5 + $0x1708] sm:$0xff]  ;;  %v1038_v25 = vld [vmem:[#allocation5 + $0x1718] sm:$0xff]  ;;  %v1037_v32 = vld [vmem:[#allocation5 + $0x1710] sm:$0xff] }
  0xd9   : > { %5015 = vmatpush1.bf16.msra.mxu0 %v5014_v55  ;;  %v5036_v55 = vpack.c.bf16 %v956_v50, %v940_v49  ;;  %v1054_v26 = vld [vmem:[#allocation5 + $0x1798] sm:$0xff]  ;;  %v1053_v34 = vld [vmem:[#allocation5 + $0x1790] sm:$0xff]  ;;  %v1084_v36 = vld [vmem:[#allocation5 + $0x1888] sm:$0xff] }
  0xda   : > { %5143 = vmatpush1.bf16.msra.mxu1 %v5142_v56  ;;  %5017 = vmatprep.subr.bf16.mxu0 %v5016_v57  ;;  %v939_v56 = vld [vmem:[#allocation5 + $0x1400] sm:$0xff]  ;;  %v5176_v33 = vpack.c.bf16 %v1054_v26, %v1038_v25  ;;  %v1070_v37 = vld [vmem:[#allocation5 + $0x1818] sm:$0xff]  ;;  %v5178_v40 = vpack.c.bf16 %v1053_v34, %v1037_v32  ;;  %v1069_v44 = vld [vmem:[#allocation5 + $0x1810] sm:$0xff] }
  0xdb   : > { %5145 = vmatprep.subr.bf16.mxu1 %v5144_v61  ;;  %v955_v57 = vld [vmem:[#allocation5 + $0x1480] sm:$0xff]  ;;  %v972_v61 = vld [vmem:[#allocation5 + $0x1508] sm:$0xff]  ;;  %v1086_v38 = vld [vmem:[#allocation5 + $0x1898] sm:$0xff] }
  0xdc   : > { %v5038_v1 = vpack.c.bf16 %v955_v57, %v939_v56  ;;  %v5180_v45 = vpack.c.bf16 %v1086_v38, %v1070_v37  ;;  %v1085_v46 = vld [vmem:[#allocation5 + $0x1890] sm:$0xff]  ;;  %v1116_v48 = vld [vmem:[#allocation5 + $0x1988] sm:$0xff]  ;;  %v1102_v49 = vld [vmem:[#allocation5 + $0x1918] sm:$0xff] }
  0xdd   : > { %5019 = vmatpush1.bf16.msra.mxu0 %v5018_v3  ;;  %v5040_v3 = vpack.c.bf16 %v988_v62, %v972_v61  ;;  %v1118_v50 = vld [vmem:[#allocation5 + $0x1998] sm:$0xff]  ;;  %v5182_v52 = vpack.c.bf16 %v1085_v46, %v1069_v44  ;;  %v1101_v56 = vld [vmem:[#allocation5 + $0x1910] sm:$0xff]  ;;  %v1148_v60 = vld [vmem:[#allocation5 + $0x1a88] sm:$0xff] }
  0xde   : > { %5147 = vmatpush1.bf16.msra.mxu1 %v5146_v4  ;;  %5021 = vmatprep.subr.bf16.mxu0 %v5020_v5  ;;  %v971_v4 = vld [vmem:[#allocation5 + $0x1500] sm:$0xff]  ;;  %v5184_v57 = vpack.c.bf16 %v1118_v50, %v1102_v49  ;;  %v1117_v58 = vld [vmem:[#allocation5 + $0x1990] sm:$0xff]  ;;  %v1134_v61 = vld [vmem:[#allocation5 + $0x1a18] sm:$0xff] }
  0xdf   : > { %5149 = vmatprep.subr.bf16.mxu1 %v5148_v9  ;;  %v987_v5 = vld [vmem:[#allocation5 + $0x1580] sm:$0xff]  ;;  %v1004_v9 = vld [vmem:[#allocation5 + $0x1608] sm:$0xff]  ;;  %v1150_v62 = vld [vmem:[#allocation5 + $0x1a98] sm:$0xff]  ;;  %v5186_v0 = vpack.c.bf16 %v1117_v58, %v1101_v56 }
  0xe0   : > { %1472 = vmatmul.mubr.f32.vlgmr.msra.gmra.mrb[0].mxu0 %v295_v15  ;;  %v5042_v13 = vpack.c.bf16 %v987_v5, %v971_v4  ;;  %v1133_v4 = vld [vmem:[#allocation5 + $0x1a10] sm:$0xff]  ;;  %v5188_v5 = vpack.c.bf16 %v1150_v62, %v1134_v61  ;;  %v1244_v34 = vld [vmem:[#allocation5 + $0x1d88] sm:$0xff] }
  0xe1   : > { %5023 = vmatpush1.bf16.msra.mxu0 %v5022_v17  ;;  %1614 = vmatmul.mubr.f32.vlgmr.msra.gmra.mrb[0].mxu1 %v295_v15  ;;  %v5170_v15 = vpack.c.bf16 %v989_v8, %v973_v6  ;;  %v5044_v17 = vpack.c.bf16 %v1020_v10, %v1004_v9  ;;  %v1149_v6 = vld [vmem:[#allocation5 + $0x1a90] sm:$0xff]  ;;  %v1180_v8 = vld [vmem:[#allocation5 + $0x1b88] sm:$0xff]  ;;  %v1166_v9 = vld [vmem:[#allocation5 + $0x1b18] sm:$0xff] }
  0xe2   : > { %5151 = vmatpush1.bf16.msra.mxu1 %v5150_v18  ;;  %5025 = vmatprep.subr.bf16.mxu0 %v5024_v19  ;;  %v1019_v18 = vld [vmem:[#allocation5 + $0x1680] sm:$0xff]  ;;  %v1005_v19 = vld [vmem:[#allocation5 + $0x1610] sm:$0xff]  ;;  %v1182_v10 = vld [vmem:[#allocation5 + $0x1b98] sm:$0xff]  ;;  %v5190_v12 = vpack.c.bf16 %v1149_v6, %v1133_v4 }
  0xe3   : > { %5153 = vmatprep.subr.bf16.mxu1 %v5152_v23  ;;  %v1052_v23 = vld [vmem:[#allocation5 + $0x1788] sm:$0xff]  ;;  %1542 = vmatprep.mubr.f32.mxu0 %v7702_v24  ;;  %v5046_v27 = vpack.c.bf16 %v1019_v18, %v1003_v14  ;;  %v5174_v28 = vpack.c.bf16 %v1021_v20, %v1005_v19  ;;  %v1163_v14 = vld [vmem:[#allocation5 + $0x1b00] sm:$0xff]  ;;  %v5192_v18 = vpack.c.bf16 %v1182_v10, %v1166_v9  ;;  %v1181_v19 = vld [vmem:[#allocation5 + $0x1b90] sm:$0xff] }
  0xe4   : > { %1684 = vmatprep.mubr.f32.mxu1 %v7702_v24  ;;  %v1196_v20 = vld [vmem:[#allocation5 + $0x1c08] sm:$0xff]  ;;  %v1213_v32 = vld [vmem:[#allocation5 + $0x1c90] sm:$0xff] }
  0xe5   : > { %5027 = vmatpush1.bf16.msra.mxu0 %v5026_v29  ;;  %v5048_v29 = vpack.c.bf16 %v1052_v23, %v1036_v22  ;;  %v1198_v22 = vld [vmem:[#allocation5 + $0x1c18] sm:$0xff]  ;;  %v1245_v44 = vld [vmem:[#allocation5 + $0x1d90] sm:$0xff]  ;;  %v1276_v46 = vld [vmem:[#allocation5 + $0x1e88] sm:$0xff] }
  0xe6   : > { %5155 = vmatpush1.bf16.msra.mxu1 %v5154_v30  ;;  %5029 = vmatprep.subr.bf16.mxu0 %v5028_v31  ;;  %v1035_v30 = vld [vmem:[#allocation5 + $0x1700] sm:$0xff]  ;;  %v1214_v23 = vld [vmem:[#allocation5 + $0x1c98] sm:$0xff]  ;;  %v1277_v56 = vld [vmem:[#allocation5 + $0x1e90] sm:$0xff] }
  0xe7   : > { %5157 = vmatprep.subr.bf16.mxu1 %v5156_v35  ;;  %v1051_v31 = vld [vmem:[#allocation5 + $0x1780] sm:$0xff]  ;;  %v1068_v35 = vld [vmem:[#allocation5 + $0x1808] sm:$0xff]  ;;  %v1309_v4 = vld [vmem:[#allocation5 + $0x1f90] sm:$0xff] }
  0xe8   : > { %v5050_v39 = vpack.c.bf16 %v1051_v31, %v1035_v30  ;;  %v1197_v30 = vld [vmem:[#allocation5 + $0x1c10] sm:$0xff]  ;;  %v5196_v31 = vpack.c.bf16 %v1214_v23, %v1198_v22  ;;  %v1308_v58 = vld [vmem:[#allocation5 + $0x1f88] sm:$0xff] }
  0xe9   : > { %5031 = vmatpush1.bf16.msra.mxu0 %v5030_v41  ;;  %v5052_v41 = vpack.c.bf16 %v1084_v36, %v1068_v35  ;;  %v1230_v35 = vld [vmem:[#allocation5 + $0x1d18] sm:$0xff]  ;;  %v5198_v38 = vpack.c.bf16 %v1213_v32, %v1197_v30  ;;  %v320_v6 = vld [vmem:[#allocation5 + $0xa8] sm:$0xff]  ;;  %v297_v22 = vld [vmem:[%s7681_s13 + $0x10] sm:$0xff] }
  0xea   : > { %5159 = vmatpush1.bf16.msra.mxu1 %v5158_v42  ;;  %5033 = vmatprep.subr.bf16.mxu0 %v5032_v43  ;;  %v1067_v42 = vld [vmem:[#allocation5 + $0x1800] sm:$0xff]  ;;  %v1246_v36 = vld [vmem:[#allocation5 + $0x1d98] sm:$0xff]  ;;  %v368_v32 = vld [vmem:[#allocation5 + $0x228] sm:$0xff] }
  0xeb   : > { %5161 = vmatprep.subr.bf16.mxu1 %v5160_v47  ;;  %v1083_v43 = vld [vmem:[#allocation5 + $0x1880] sm:$0xff]  ;;  %v1100_v47 = vld [vmem:[#allocation5 + $0x1908] sm:$0xff] }
  0xec   : > { %v5054_v51 = vpack.c.bf16 %v1083_v43, %v1067_v42  ;;  %v1229_v42 = vld [vmem:[#allocation5 + $0x1d10] sm:$0xff]  ;;  %v5200_v43 = vpack.c.bf16 %v1246_v36, %v1230_v35  ;;  %v386_v35 = vld [vmem:[#allocation5 + $0x2b8] sm:$0xff] }
  0xed   : > { %5035 = vmatpush1.bf16.msra.mxu0 %v5034_v53  ;;  %v5056_v53 = vpack.c.bf16 %v1116_v48, %v1100_v47  ;;  %v1262_v47 = vld [vmem:[#allocation5 + $0x1e18] sm:$0xff]  ;;  %v5202_v50 = vpack.c.bf16 %v1245_v44, %v1229_v42  ;;  %v400_v44 = vld [vmem:[#allocation5 + $0x328] sm:$0xff] }
  0xee   : > { %5163 = vmatpush1.bf16.msra.mxu1 %v5162_v54  ;;  %5037 = vmatprep.subr.bf16.mxu0 %v5036_v55  ;;  %v1099_v54 = vld [vmem:[#allocation5 + $0x1900] sm:$0xff]  ;;  %v1278_v48 = vld [vmem:[#allocation5 + $0x1e98] sm:$0xff] }
  0xef   : > { %5165 = vmatprep.subr.bf16.mxu1 %v5164_v59  ;;  %v1115_v55 = vld [vmem:[#allocation5 + $0x1980] sm:$0xff]  ;;  %v1132_v59 = vld [vmem:[#allocation5 + $0x1a08] sm:$0xff] }
  0xf0   : > { %v5058_v63 = vpack.c.bf16 %v1115_v55, %v1099_v54  ;;  %v1261_v54 = vld [vmem:[#allocation5 + $0x1e10] sm:$0xff]  ;;  %v5204_v55 = vpack.c.bf16 %v1278_v48, %v1262_v47  ;;  %v418_v47 = vld [vmem:[#allocation5 + $0x3b8] sm:$0xff] }
  0xf1   : > { %5039 = vmatpush1.bf16.msra.mxu0 %v5038_v1  ;;  %v5060_v1 = vpack.c.bf16 %v1148_v60, %v1132_v59  ;;  %v1294_v59 = vld [vmem:[#allocation5 + $0x1f18] sm:$0xff]  ;;  %v5206_v62 = vpack.c.bf16 %v1277_v56, %v1261_v54  ;;  %v432_v56 = vld [vmem:[#allocation5 + $0x428] sm:$0xff] }
  0xf2   : > { %5167 = vmatpush1.bf16.msra.mxu1 %v5166_v2  ;;  %5041 = vmatprep.subr.bf16.mxu0 %v5040_v3  ;;  %v1131_v2 = vld [vmem:[#allocation5 + $0x1a00] sm:$0xff]  ;;  %v1310_v60 = vld [vmem:[#allocation5 + $0x1f98] sm:$0xff] }
  0xf3   : > { %5169 = vmatprep.subr.bf16.mxu1 %v5168_v7  ;;  %v1147_v3 = vld [vmem:[#allocation5 + $0x1a80] sm:$0xff]  ;;  %v1164_v7 = vld [vmem:[#allocation5 + $0x1b08] sm:$0xff] }
  0xf4   : > { %v5062_v11 = vpack.c.bf16 %v1147_v3, %v1131_v2  ;;  %v1293_v2 = vld [vmem:[#allocation5 + $0x1f10] sm:$0xff]  ;;  %v5208_v3 = vpack.c.bf16 %v1310_v60, %v1294_v59  ;;  %v450_v59 = vld [vmem:[#allocation5 + $0x4b8] sm:$0xff] }
  0xf5   : > { %5043 = vmatpush1.bf16.msra.mxu0 %v5042_v13  ;;  %v5064_v13 = vpack.c.bf16 %v1180_v8, %v1164_v7  ;;  %v306_v7 = vld [vmem:[#allocation5 + $0x38] sm:$0xff]  ;;  %v5210_v10 = vpack.c.bf16 %v1309_v4, %v1293_v2  ;;  %v449_v2 = vld [vmem:[#allocation5 + $0x4b0] sm:$0xff]  ;;  %v480_v4 = vld [vmem:[#allocation5 + $0x5a8] sm:$0xff] }
  0xf6   : > { %5171 = vmatpush1.bf16.msra.mxu1 %v5170_v15  ;;  %5045 = vmatprep.subr.bf16.mxu0 %v5044_v17  ;;  %v1179_v15 = vld [vmem:[#allocation5 + $0x1b80] sm:$0xff]  ;;  %v1165_v17 = vld [vmem:[#allocation5 + $0x1b10] sm:$0xff]  ;;  %v322_v8 = vld [vmem:[#allocation5 + $0xb8] sm:$0xff] }
  0xf7   : > { %5173 = vmatprep.subr.bf16.mxu1 %v5172_v21  ;;  %v1212_v21 = vld [vmem:[#allocation5 + $0x1c88] sm:$0xff]  ;;  %v5066_v25 = vpack.c.bf16 %v1179_v15, %v1163_v14  ;;  %v5194_v26 = vpack.c.bf16 %v1181_v19, %v1165_v17  ;;  %v305_v14 = vld [vmem:[#allocation5 + $0x30] sm:$0xff]  ;;  %v5340_v15 = vpack.c.bf16 %v322_v8, %v306_v7 }
  0xf8   : > { %v321_v17 = vld [vmem:[#allocation5 + $0xb0] sm:$0xff]  ;;  %v352_v19 = vld [vmem:[#allocation5 + $0x1a8] sm:$0xff] }
  0xf9   : > { %5047 = vmatpush1.bf16.msra.mxu0 %v5046_v27  ;;  %v5068_v27 = vpack.c.bf16 %v1212_v21, %v1196_v20  ;;  %v338_v20 = vld [vmem:[#allocation5 + $0x138] sm:$0xff] }
  0xfa   : > { %5175 = vmatpush1.bf16.msra.mxu1 %v5174_v28  ;;  %5049 = vmatprep.subr.bf16.mxu0 %v5048_v29  ;;  %v1195_v28 = vld [vmem:[#allocation5 + $0x1c00] sm:$0xff]  ;;  %v354_v21 = vld [vmem:[#allocation5 + $0x1b8] sm:$0xff] }
  0xfb   : > { %5177 = vmatprep.subr.bf16.mxu1 %v5176_v33  ;;  %v1211_v29 = vld [vmem:[#allocation5 + $0x1c80] sm:$0xff]  ;;  %v1228_v33 = vld [vmem:[#allocation5 + $0x1d08] sm:$0xff]  ;;  %v5344_v30 = vpack.c.bf16 %v354_v21, %v338_v20 }
  0xfc   : > { %v5070_v37 = vpack.c.bf16 %v1211_v29, %v1195_v28  ;;  %v351_v28 = vld [vmem:[#allocation5 + $0x1a0] sm:$0xff]  ;;  %v337_v29 = vld [vmem:[#allocation5 + $0x130] sm:$0xff] }
  0xfd   : > { %5051 = vmatpush1.bf16.msra.mxu0 %v5050_v39  ;;  %v5072_v39 = vpack.c.bf16 %v1244_v34, %v1228_v33  ;;  %v384_v33 = vld [vmem:[#allocation5 + $0x2a8] sm:$0xff]  ;;  %v370_v34 = vld [vmem:[#allocation5 + $0x238] sm:$0xff] }
  0xfe   : > { %5179 = vmatpush1.bf16.msra.mxu1 %v5178_v40  ;;  %5053 = vmatprep.subr.bf16.mxu0 %v5052_v41  ;;  %v1227_v40 = vld [vmem:[#allocation5 + $0x1d00] sm:$0xff]  ;;  %v5348_v42 = vpack.c.bf16 %v386_v35, %v370_v34 }
  0xff   : > { %5181 = vmatprep.subr.bf16.mxu1 %v5180_v45  ;;  %v1243_v41 = vld [vmem:[#allocation5 + $0x1d80] sm:$0xff]  ;;  %v1260_v45 = vld [vmem:[#allocation5 + $0x1e08] sm:$0xff] }
 0x100   : > { %v5074_v49 = vpack.c.bf16 %v1243_v41, %v1227_v40  ;;  %v383_v40 = vld [vmem:[#allocation5 + $0x2a0] sm:$0xff]  ;;  %v369_v41 = vld [vmem:[#allocation5 + $0x230] sm:$0xff] }
 0x101   : > { %5055 = vmatpush1.bf16.msra.mxu0 %v5054_v51  ;;  %v5076_v51 = vpack.c.bf16 %v1276_v46, %v1260_v45  ;;  %v416_v45 = vld [vmem:[#allocation5 + $0x3a8] sm:$0xff]  ;;  %v402_v46 = vld [vmem:[#allocation5 + $0x338] sm:$0xff] }
 0x102   : > { %5183 = vmatpush1.bf16.msra.mxu1 %v5182_v52  ;;  %5057 = vmatprep.subr.bf16.mxu0 %v5056_v53  ;;  %v1259_v52 = vld [vmem:[#allocation5 + $0x1e00] sm:$0xff]  ;;  %v5352_v54 = vpack.c.bf16 %v418_v47, %v402_v46 }
 0x103   : > { %5185 = vmatprep.subr.bf16.mxu1 %v5184_v57  ;;  %v1275_v53 = vld [vmem:[#allocation5 + $0x1e80] sm:$0xff]  ;;  %v1292_v57 = vld [vmem:[#allocation5 + $0x1f08] sm:$0xff] }
 0x104   : > { %v5078_v61 = vpack.c.bf16 %v1275_v53, %v1259_v52  ;;  %v415_v52 = vld [vmem:[#allocation5 + $0x3a0] sm:$0xff]  ;;  %v401_v53 = vld [vmem:[#allocation5 + $0x330] sm:$0xff] }
 0x105   : > { %5059 = vmatpush1.bf16.msra.mxu0 %v5058_v63  ;;  %v5080_v63 = vpack.c.bf16 %v1308_v58, %v1292_v57  ;;  %v448_v57 = vld [vmem:[#allocation5 + $0x4a8] sm:$0xff]  ;;  %v434_v58 = vld [vmem:[#allocation5 + $0x438] sm:$0xff] }
 0x106   : > { %5187 = vmatpush1.bf16.msra.mxu1 %v5186_v0  ;;  %5061 = vmatprep.subr.bf16.mxu0 %v5060_v1  ;;  %v1291_v0 = vld [vmem:[#allocation5 + $0x1f00] sm:$0xff] }
 0x107   : > { %5189 = vmatprep.subr.bf16.mxu1 %v5188_v5  ;;  %v1307_v1 = vld [vmem:[#allocation5 + $0x1f80] sm:$0xff]  ;;  %v304_v5 = vld [vmem:[#allocation5 + $0x28] sm:$0xff] }
 0x108   : > { %v5082_v9 = vpack.c.bf16 %v1307_v1, %v1291_v0  ;;  %v433_v0 = vld [vmem:[#allocation5 + $0x430] sm:$0xff]  ;;  %v5356_v1 = vpack.c.bf16 %v450_v59, %v434_v58 }
 0x109   : > { %5063 = vmatpush1.bf16.msra.mxu0 %v5062_v11  ;;  %v5212_v11 = vpack.c.bf16 %v320_v6, %v304_v5  ;;  %v466_v5 = vld [vmem:[#allocation5 + $0x538] sm:$0xff]  ;;  %v5358_v8 = vpack.c.bf16 %v449_v2, %v433_v0  ;;  %v624_v0 = vld [vmem:[#allocation5 + $0xa28] sm:$0xff] }
 0x10a   : > { %5191 = vmatpush1.bf16.msra.mxu1 %v5190_v12  ;;  %5065 = vmatprep.subr.bf16.mxu0 %v5064_v13  ;;  %v303_v12 = vld [vmem:[#allocation5 + $0x20] sm:$0xff]  ;;  %v482_v6 = vld [vmem:[#allocation5 + $0x5b8] sm:$0xff] }
 0x10b   : > { %5193 = vmatprep.subr.bf16.mxu1 %v5192_v18  ;;  %v319_v13 = vld [vmem:[#allocation5 + $0xa0] sm:$0xff]  ;;  %v336_v18 = vld [vmem:[#allocation5 + $0x128] sm:$0xff]  ;;  %v626_v2 = vld [vmem:[#allocation5 + $0xa38] sm:$0xff] }
 0x10c   : > { %v5214_v23 = vpack.c.bf16 %v319_v13, %v303_v12  ;;  %v465_v12 = vld [vmem:[#allocation5 + $0x530] sm:$0xff]  ;;  %v5360_v13 = vpack.c.bf16 %v482_v6, %v466_v5 }
 0x10d   : > { %5067 = vmatpush1.bf16.msra.mxu0 %v5066_v25  ;;  %v5342_v25 = vpack.c.bf16 %v321_v17, %v305_v14  ;;  %v481_v14 = vld [vmem:[#allocation5 + $0x5b0] sm:$0xff]  ;;  %v512_v17 = vld [vmem:[#allocation5 + $0x6a8] sm:$0xff] }
 0x10e   : > { %5195 = vmatpush1.bf16.msra.mxu1 %v5194_v26  ;;  %5069 = vmatprep.subr.bf16.mxu0 %v5068_v27  ;;  %v5216_v26 = vpack.c.bf16 %v352_v19, %v336_v18  ;;  %v335_v27 = vld [vmem:[#allocation5 + $0x120] sm:$0xff]  ;;  %v498_v18 = vld [vmem:[#allocation5 + $0x638] sm:$0xff]  ;;  %v5362_v21 = vpack.c.bf16 %v481_v14, %v465_v12  ;;  %v656_v12 = vld [vmem:[#allocation5 + $0xb28] sm:$0xff] }
 0x10f   : > { %5197 = vmatprep.subr.bf16.mxu1 %v5196_v31  ;;  %v353_v31 = vld [vmem:[#allocation5 + $0x1b0] sm:$0xff]  ;;  %v5218_v36 = vpack.c.bf16 %v351_v28, %v335_v27  ;;  %v514_v19 = vld [vmem:[#allocation5 + $0x6b8] sm:$0xff] }
 0x110   : > { %v5364_v27 = vpack.c.bf16 %v514_v19, %v498_v18  ;;  %v513_v28 = vld [vmem:[#allocation5 + $0x6b0] sm:$0xff]  ;;  %v658_v14 = vld [vmem:[#allocation5 + $0xb38] sm:$0xff] }
 0x111   : > { %5071 = vmatpush1.bf16.msra.mxu0 %v5070_v37  ;;  %v5346_v37 = vpack.c.bf16 %v353_v31, %v337_v29  ;;  %v528_v29 = vld [vmem:[#allocation5 + $0x728] sm:$0xff]  ;;  %v530_v31 = vld [vmem:[#allocation5 + $0x738] sm:$0xff] }
 0x112   : > { %5199 = vmatpush1.bf16.msra.mxu1 %v5198_v38  ;;  %5073 = vmatprep.subr.bf16.mxu0 %v5072_v39  ;;  %v5220_v38 = vpack.c.bf16 %v384_v33, %v368_v32  ;;  %v367_v39 = vld [vmem:[#allocation5 + $0x220] sm:$0xff]  ;;  %v546_v32 = vld [vmem:[#allocation5 + $0x7b8] sm:$0xff] }
 0x113   : > { %5201 = vmatprep.subr.bf16.mxu1 %v5200_v43  ;;  %v385_v43 = vld [vmem:[#allocation5 + $0x2b0] sm:$0xff]  ;;  %v5222_v48 = vpack.c.bf16 %v383_v40, %v367_v39  ;;  %v5368_v39 = vpack.c.bf16 %v546_v32, %v530_v31 }
 0x114   : > { %v545_v40 = vld [vmem:[#allocation5 + $0x7b0] sm:$0xff] }
 0x115   : > { %5075 = vmatpush1.bf16.msra.mxu0 %v5074_v49  ;;  %v5350_v49 = vpack.c.bf16 %v385_v43, %v369_v41  ;;  %v560_v41 = vld [vmem:[#allocation5 + $0x828] sm:$0xff]  ;;  %v562_v43 = vld [vmem:[#allocation5 + $0x838] sm:$0xff] }
 0x116   : > { %5203 = vmatpush1.bf16.msra.mxu1 %v5202_v50  ;;  %5077 = vmatprep.subr.bf16.mxu0 %v5076_v51  ;;  %v5224_v50 = vpack.c.bf16 %v416_v45, %v400_v44  ;;  %v399_v51 = vld [vmem:[#allocation5 + $0x320] sm:$0xff]  ;;  %v578_v44 = vld [vmem:[#allocation5 + $0x8b8] sm:$0xff] }
 0x117   : > { %5205 = vmatprep.subr.bf16.mxu1 %v5204_v55  ;;  %v417_v55 = vld [vmem:[#allocation5 + $0x3b0] sm:$0xff]  ;;  %v5226_v60 = vpack.c.bf16 %v415_v52, %v399_v51  ;;  %v5372_v51 = vpack.c.bf16 %v578_v44, %v562_v43 }
 0x118   : > { %v577_v52 = vld [vmem:[#allocation5 + $0x8b0] sm:$0xff] }
 0x119   : > { %5079 = vmatpush1.bf16.msra.mxu0 %v5078_v61  ;;  %v5228_v61 = vpack.c.bf16 %v448_v57, %v432_v56  ;;  %v610_v56 = vld [vmem:[#allocation5 + $0x9b8] sm:$0xff] }
 0x11a   : > { %5207 = vmatpush1.bf16.msra.mxu1 %v5206_v62  ;;  %5081 = vmatprep.subr.bf16.mxu0 %v5080_v63  ;;  %v431_v62 = vld [vmem:[#allocation5 + $0x420] sm:$0xff] }
 0x11b   : > { %5209 = vmatprep.subr.bf16.mxu1 %v5208_v3  ;;  %v447_v63 = vld [vmem:[#allocation5 + $0x4a0] sm:$0xff]  ;;  %v464_v3 = vld [vmem:[#allocation5 + $0x528] sm:$0xff] }
 0x11c   : > { %v5230_v7 = vpack.c.bf16 %v447_v63, %v431_v62  ;;  %v609_v63 = vld [vmem:[#allocation5 + $0x9b0] sm:$0xff] }
 0x11d   : > { %5083 = vmatpush1.bf16.msra.mxu0 %v5082_v9  ;;  %v5232_v9 = vpack.c.bf16 %v480_v4, %v464_v3  ;;  %v642_v3 = vld [vmem:[#allocation5 + $0xab8] sm:$0xff] }
 0x11e   : > { %5211 = vmatpush1.bf16.msra.mxu1 %v5210_v10  ;;  %5213 = vmatprep.subr.bf16.mxu0 %v5212_v11  ;;  %v463_v10 = vld [vmem:[#allocation5 + $0x520] sm:$0xff] }
 0x11f   : > { %5341 = vmatprep.subr.bf16.mxu1 %v5340_v15  ;;  %v479_v11 = vld [vmem:[#allocation5 + $0x5a0] sm:$0xff]  ;;  %v496_v15 = vld [vmem:[#allocation5 + $0x628] sm:$0xff] }
 0x120   : > { %1543 = vmatmul.mubr.f32.vlgmr.msra.gmra.mrb[0].mxu0 %v297_v22  ;;  %v5234_v20 = vpack.c.bf16 %v479_v11, %v463_v10  ;;  %v5380_v10 = vpack.c.bf16 %v642_v3, %v626_v2  ;;  %v641_v11 = vld [vmem:[#allocation5 + $0xab0] sm:$0xff] }
 0x121   : > { %1685 = vmatmul.mubr.f32.vlgmr.msra.gmra.mrb[0].mxu1 %v297_v22  ;;  %5215 = vmatpush1.bf16.msra.mxu0 %v5214_v23  ;;  %v5236_v22 = vpack.c.bf16 %v512_v17, %v496_v15  ;;  %v495_v23 = vld [vmem:[#allocation5 + $0x620] sm:$0xff]  ;;  %v674_v15 = vld [vmem:[#allocation5 + $0xbb8] sm:$0xff] }
 0x122   : > { %5343 = vmatpush1.bf16.msra.mxu1 %v5342_v25  ;;  %5217 = vmatprep.subr.bf16.mxu0 %v5216_v26  ;;  %v511_v25 = vld [vmem:[#allocation5 + $0x6a0] sm:$0xff]  ;;  %v497_v26 = vld [vmem:[#allocation5 + $0x630] sm:$0xff] }
 0x123   : > { %5345 = vmatprep.subr.bf16.mxu1 %v5344_v30  ;;  %1755 = vmatprep.mubr.f32.mxu0 %v7696_v16  ;;  %v544_v30 = vld [vmem:[#allocation5 + $0x7a8] sm:$0xff]  ;;  %v5238_v33 = vpack.c.bf16 %v511_v25, %v495_v23  ;;  %v5366_v34 = vpack.c.bf16 %v513_v28, %v497_v26  ;;  %v5384_v23 = vpack.c.bf16 %v674_v15, %v658_v14  ;;  %v673_v25 = vld [vmem:[#allocation5 + $0xbb0] sm:$0xff]  ;;  %v690_v28 = vld [vmem:[#allocation5 + $0xc38] sm:$0xff] }
 0x124   : > { %1897 = vmatprep.mubr.f32.mxu1 %v7696_v16  ;;  %v5354_v16 = vpack.c.bf16 %v417_v55, %v401_v53  ;;  %v5240_v35 = vpack.c.bf16 %v544_v30, %v528_v29  ;;  %v592_v53 = vld [vmem:[#allocation5 + $0x928] sm:$0xff]  ;;  %v594_v55 = vld [vmem:[#allocation5 + $0x938] sm:$0xff] }
 0x125   : > { %5219 = vmatpush1.bf16.msra.mxu0 %v5218_v36  ;;  %v527_v36 = vld [vmem:[#allocation5 + $0x720] sm:$0xff]  ;;  %v5376_v62 = vpack.c.bf16 %v610_v56, %v594_v55  ;;  %v688_v26 = vld [vmem:[#allocation5 + $0xc28] sm:$0xff]  ;;  %v706_v29 = vld [vmem:[#allocation5 + $0xcb8] sm:$0xff] }
 0x126   : > { %5347 = vmatpush1.bf16.msra.mxu1 %v5346_v37  ;;  %5221 = vmatprep.subr.bf16.mxu0 %v5220_v38  ;;  %v543_v37 = vld [vmem:[#allocation5 + $0x7a0] sm:$0xff]  ;;  %v529_v38 = vld [vmem:[#allocation5 + $0x730] sm:$0xff] }
 0x127   : > { %5349 = vmatprep.subr.bf16.mxu1 %v5348_v42  ;;  %v576_v42 = vld [vmem:[#allocation5 + $0x8a8] sm:$0xff]  ;;  %v5242_v45 = vpack.c.bf16 %v543_v37, %v527_v36  ;;  %v5370_v46 = vpack.c.bf16 %v545_v40, %v529_v38  ;;  %v5388_v36 = vpack.c.bf16 %v706_v29, %v690_v28  ;;  %v705_v37 = vld [vmem:[#allocation5 + $0xcb0] sm:$0xff]  ;;  %v722_v40 = vld [vmem:[#allocation5 + $0xd38] sm:$0xff] }
 0x128   : > { %v5244_v47 = vpack.c.bf16 %v576_v42, %v560_v41  ;;  %v720_v38 = vld [vmem:[#allocation5 + $0xd28] sm:$0xff]  ;;  %v738_v41 = vld [vmem:[#allocation5 + $0xdb8] sm:$0xff] }
 0x129   : > { %5223 = vmatpush1.bf16.msra.mxu0 %v5222_v48  ;;  %v559_v48 = vld [vmem:[#allocation5 + $0x820] sm:$0xff] }
 0x12a   : > { %5351 = vmatpush1.bf16.msra.mxu1 %v5350_v49  ;;  %5225 = vmatprep.subr.bf16.mxu0 %v5224_v50  ;;  %v575_v49 = vld [vmem:[#allocation5 + $0x8a0] sm:$0xff]  ;;  %v561_v50 = vld [vmem:[#allocation5 + $0x830] sm:$0xff] }
 0x12b   : > { %5353 = vmatprep.subr.bf16.mxu1 %v5352_v54  ;;  %v608_v54 = vld [vmem:[#allocation5 + $0x9a8] sm:$0xff]  ;;  %v5246_v57 = vpack.c.bf16 %v575_v49, %v559_v48  ;;  %v5374_v58 = vpack.c.bf16 %v577_v52, %v561_v50  ;;  %v5392_v48 = vpack.c.bf16 %v738_v41, %v722_v40  ;;  %v737_v49 = vld [vmem:[#allocation5 + $0xdb0] sm:$0xff]  ;;  %v754_v52 = vld [vmem:[#allocation5 + $0xe38] sm:$0xff] }
 0x12c   : > { %v5248_v59 = vpack.c.bf16 %v608_v54, %v592_v53  ;;  %v752_v50 = vld [vmem:[#allocation5 + $0xe28] sm:$0xff]  ;;  %v770_v53 = vld [vmem:[#allocation5 + $0xeb8] sm:$0xff] }
 0x12d   : > { %5227 = vmatpush1.bf16.msra.mxu0 %v5226_v60  ;;  %v591_v60 = vld [vmem:[#allocation5 + $0x920] sm:$0xff] }
 0x12e   : > { %5355 = vmatpush1.bf16.msra.mxu1 %v5354_v16  ;;  %5229 = vmatprep.subr.bf16.mxu0 %v5228_v61  ;;  %v607_v16 = vld [vmem:[#allocation5 + $0x9a0] sm:$0xff]  ;;  %v593_v61 = vld [vmem:[#allocation5 + $0x930] sm:$0xff] }
 0x12f   : > { %5357 = vmatprep.subr.bf16.mxu1 %v5356_v1  ;;  %v640_v1 = vld [vmem:[#allocation5 + $0xaa8] sm:$0xff]  ;;  %v5250_v4 = vpack.c.bf16 %v607_v16, %v591_v60  ;;  %v5378_v5 = vpack.c.bf16 %v609_v63, %v593_v61  ;;  %v5396_v60 = vpack.c.bf16 %v770_v53, %v754_v52  ;;  %v769_v16 = vld [vmem:[#allocation5 + $0xeb0] sm:$0xff]  ;;  %v786_v63 = vld [vmem:[#allocation5 + $0xf38] sm:$0xff] }
 0x130   : > { %v5252_v6 = vpack.c.bf16 %v640_v1, %v624_v0  ;;  %v784_v61 = vld [vmem:[#allocation5 + $0xf28] sm:$0xff]  ;;  %v802_v0 = vld [vmem:[#allocation5 + $0xfb8] sm:$0xff] }
 0x131   : > { %5231 = vmatpush1.bf16.msra.mxu0 %v5230_v7  ;;  %v623_v7 = vld [vmem:[#allocation5 + $0xa20] sm:$0xff] }
 0x132   : > { %5359 = vmatpush1.bf16.msra.mxu1 %v5358_v8  ;;  %5233 = vmatprep.subr.bf16.mxu0 %v5232_v9  ;;  %v639_v8 = vld [vmem:[#allocation5 + $0xaa0] sm:$0xff]  ;;  %v625_v9 = vld [vmem:[#allocation5 + $0xa30] sm:$0xff] }
 0x133   : > { %5361 = vmatprep.subr.bf16.mxu1 %v5360_v13  ;;  %v672_v13 = vld [vmem:[#allocation5 + $0xba8] sm:$0xff]  ;;  %v5254_v17 = vpack.c.bf16 %v639_v8, %v623_v7  ;;  %v5382_v18 = vpack.c.bf16 %v641_v11, %v625_v9  ;;  %v5400_v7 = vpack.c.bf16 %v802_v0, %v786_v63  ;;  %v801_v8 = vld [vmem:[#allocation5 + $0xfb0] sm:$0xff]  ;;  %v818_v11 = vld [vmem:[#allocation5 + $0x1038] sm:$0xff] }
 0x134   : > { %v5256_v19 = vpack.c.bf16 %v672_v13, %v656_v12  ;;  %v816_v9 = vld [vmem:[#allocation5 + $0x1028] sm:$0xff]  ;;  %v834_v12 = vld [vmem:[#allocation5 + $0x10b8] sm:$0xff] }
 0x135   : > { %5235 = vmatpush1.bf16.msra.mxu0 %v5234_v20  ;;  %v655_v20 = vld [vmem:[#allocation5 + $0xb20] sm:$0xff] }
 0x136   : > { %5363 = vmatpush1.bf16.msra.mxu1 %v5362_v21  ;;  %5237 = vmatprep.subr.bf16.mxu0 %v5236_v22  ;;  %v671_v21 = vld [vmem:[#allocation5 + $0xba0] sm:$0xff]  ;;  %v657_v22 = vld [vmem:[#allocation5 + $0xb30] sm:$0xff] }
 0x137   : > { %5365 = vmatprep.subr.bf16.mxu1 %v5364_v27  ;;  %v704_v27 = vld [vmem:[#allocation5 + $0xca8] sm:$0xff]  ;;  %v5258_v30 = vpack.c.bf16 %v671_v21, %v655_v20  ;;  %v5386_v31 = vpack.c.bf16 %v673_v25, %v657_v22  ;;  %v5404_v20 = vpack.c.bf16 %v834_v12, %v818_v11  ;;  %v833_v21 = vld [vmem:[#allocation5 + $0x10b0] sm:$0xff]  ;;  %v850_v25 = vld [vmem:[#allocation5 + $0x1138] sm:$0xff] }
 0x138   : > { %v5260_v32 = vpack.c.bf16 %v704_v27, %v688_v26  ;;  %v848_v22 = vld [vmem:[#allocation5 + $0x1128] sm:$0xff]  ;;  %v866_v26 = vld [vmem:[#allocation5 + $0x11b8] sm:$0xff] }
 0x139   : > { %5239 = vmatpush1.bf16.msra.mxu0 %v5238_v33  ;;  %v687_v33 = vld [vmem:[#allocation5 + $0xc20] sm:$0xff] }
 0x13a   : > { %5367 = vmatpush1.bf16.msra.mxu1 %v5366_v34  ;;  %5241 = vmatprep.subr.bf16.mxu0 %v5240_v35  ;;  %v703_v34 = vld [vmem:[#allocation5 + $0xca0] sm:$0xff]  ;;  %v689_v35 = vld [vmem:[#allocation5 + $0xc30] sm:$0xff] }
 0x13b   : > { %5369 = vmatprep.subr.bf16.mxu1 %v5368_v39  ;;  %v736_v39 = vld [vmem:[#allocation5 + $0xda8] sm:$0xff]  ;;  %v5262_v42 = vpack.c.bf16 %v703_v34, %v687_v33  ;;  %v5390_v43 = vpack.c.bf16 %v705_v37, %v689_v35  ;;  %v5408_v33 = vpack.c.bf16 %v866_v26, %v850_v25  ;;  %v865_v34 = vld [vmem:[#allocation5 + $0x11b0] sm:$0xff]  ;;  %v7191_v37 = vld [vmem:[%s7681_s13] sm:$0xff] }
 0x13c   : > { %v5264_v44 = vpack.c.bf16 %v736_v39, %v720_v38  ;;  %v880_v35 = vld [vmem:[#allocation5 + $0x1228] sm:$0xff]  ;;  %v882_v38 = vld [vmem:[#allocation5 + $0x1238] sm:$0xff] }
 0x13d   : > { %5243 = vmatpush1.bf16.msra.mxu0 %v5242_v45  ;;  %v719_v45 = vld [vmem:[#allocation5 + $0xd20] sm:$0xff]  ;;  %v898_v39 = vld [vmem:[#allocation5 + $0x12b8] sm:$0xff] }
 0x13e   : > { %5371 = vmatpush1.bf16.msra.mxu1 %v5370_v46  ;;  %5245 = vmatprep.subr.bf16.mxu0 %v5244_v47  ;;  %v735_v46 = vld [vmem:[#allocation5 + $0xda0] sm:$0xff]  ;;  %v721_v47 = vld [vmem:[#allocation5 + $0xd30] sm:$0xff] }
 0x13f   : > { %5373 = vmatprep.subr.bf16.mxu1 %v5372_v51  ;;  %v768_v51 = vld [vmem:[#allocation5 + $0xea8] sm:$0xff]  ;;  %v5266_v54 = vpack.c.bf16 %v735_v46, %v719_v45  ;;  %v5394_v55 = vpack.c.bf16 %v737_v49, %v721_v47  ;;  %v881_v45 = vld [vmem:[#allocation5 + $0x1230] sm:$0xff]  ;;  %v5412_v46 = vpack.c.bf16 %v898_v39, %v882_v38  ;;  %v1039_v39 = vld [vmem:[#allocation5 + $0x1720] sm:$0xff] }
 0x140   : > { %v5268_v56 = vpack.c.bf16 %v768_v51, %v752_v50  ;;  %v897_v47 = vld [vmem:[#allocation5 + $0x12b0] sm:$0xff]  ;;  %v928_v49 = vld [vmem:[#allocation5 + $0x13a8] sm:$0xff]  ;;  %v914_v50 = vld [vmem:[#allocation5 + $0x1338] sm:$0xff] }
 0x141   : > { %5247 = vmatpush1.bf16.msra.mxu0 %v5246_v57  ;;  %v751_v57 = vld [vmem:[#allocation5 + $0xe20] sm:$0xff]  ;;  %v930_v51 = vld [vmem:[#allocation5 + $0x13b8] sm:$0xff]  ;;  %v5414_v53 = vpack.c.bf16 %v897_v47, %v881_v45  ;;  %v1088_v45 = vld [vmem:[#allocation5 + $0x18a8] sm:$0xff] }
 0x142   : > { %5375 = vmatpush1.bf16.msra.mxu1 %v5374_v58  ;;  %5249 = vmatprep.subr.bf16.mxu0 %v5248_v59  ;;  %v767_v58 = vld [vmem:[#allocation5 + $0xea0] sm:$0xff]  ;;  %v753_v59 = vld [vmem:[#allocation5 + $0xe30] sm:$0xff]  ;;  %v1090_v47 = vld [vmem:[#allocation5 + $0x18b8] sm:$0xff] }
 0x143   : > { %5377 = vmatprep.subr.bf16.mxu1 %v5376_v62  ;;  %v800_v62 = vld [vmem:[#allocation5 + $0xfa8] sm:$0xff]  ;;  %v5270_v1 = vpack.c.bf16 %v767_v58, %v751_v57  ;;  %v5398_v2 = vpack.c.bf16 %v769_v16, %v753_v59  ;;  %v913_v57 = vld [vmem:[#allocation5 + $0x1330] sm:$0xff]  ;;  %v5416_v58 = vpack.c.bf16 %v930_v51, %v914_v50  ;;  %v1071_v51 = vld [vmem:[#allocation5 + $0x1820] sm:$0xff] }
 0x144   : > { %v5272_v3 = vpack.c.bf16 %v800_v62, %v784_v61  ;;  %v929_v59 = vld [vmem:[#allocation5 + $0x13b0] sm:$0xff]  ;;  %v960_v16 = vld [vmem:[#allocation5 + $0x14a8] sm:$0xff]  ;;  %v946_v61 = vld [vmem:[#allocation5 + $0x1438] sm:$0xff] }
 0x145   : > { %5251 = vmatpush1.bf16.msra.mxu0 %v5250_v4  ;;  %v783_v4 = vld [vmem:[#allocation5 + $0xf20] sm:$0xff]  ;;  %v962_v62 = vld [vmem:[#allocation5 + $0x14b8] sm:$0xff] }
 0x146   : > { %5379 = vmatpush1.bf16.msra.mxu1 %v5378_v5  ;;  %5253 = vmatprep.subr.bf16.mxu0 %v5252_v6  ;;  %v799_v5 = vld [vmem:[#allocation5 + $0xfa0] sm:$0xff]  ;;  %v785_v6 = vld [vmem:[#allocation5 + $0xf30] sm:$0xff] }
 0x147   : > { %5381 = vmatprep.subr.bf16.mxu1 %v5380_v10  ;;  %v832_v10 = vld [vmem:[#allocation5 + $0x10a8] sm:$0xff]  ;;  %v5274_v13 = vpack.c.bf16 %v799_v5, %v783_v4  ;;  %v5402_v14 = vpack.c.bf16 %v801_v8, %v785_v6  ;;  %v5420_v4 = vpack.c.bf16 %v962_v62, %v946_v61  ;;  %v961_v5 = vld [vmem:[#allocation5 + $0x14b0] sm:$0xff]  ;;  %v978_v8 = vld [vmem:[#allocation5 + $0x1538] sm:$0xff] }
 0x148   : > { %v5276_v15 = vpack.c.bf16 %v832_v10, %v816_v9  ;;  %v976_v6 = vld [vmem:[#allocation5 + $0x1528] sm:$0xff]  ;;  %v994_v9 = vld [vmem:[#allocation5 + $0x15b8] sm:$0xff]  ;;  %v1103_v62 = vld [vmem:[#allocation5 + $0x1920] sm:$0xff] }
 0x149   : > { %5255 = vmatpush1.bf16.msra.mxu0 %v5254_v17  ;;  %v815_v17 = vld [vmem:[#allocation5 + $0x1020] sm:$0xff] }
 0x14a   : > { %5383 = vmatpush1.bf16.msra.mxu1 %v5382_v18  ;;  %5257 = vmatprep.subr.bf16.mxu0 %v5256_v19  ;;  %v831_v18 = vld [vmem:[#allocation5 + $0x10a0] sm:$0xff]  ;;  %v817_v19 = vld [vmem:[#allocation5 + $0x1030] sm:$0xff] }
 0x14b   : > { %5385 = vmatprep.subr.bf16.mxu1 %v5384_v23  ;;  %v864_v23 = vld [vmem:[#allocation5 + $0x11a8] sm:$0xff]  ;;  %v5278_v27 = vpack.c.bf16 %v831_v18, %v815_v17  ;;  %v5406_v28 = vpack.c.bf16 %v833_v21, %v817_v19  ;;  %v5424_v17 = vpack.c.bf16 %v994_v9, %v978_v8  ;;  %v993_v18 = vld [vmem:[#allocation5 + $0x15b0] sm:$0xff]  ;;  %v1010_v21 = vld [vmem:[#allocation5 + $0x1638] sm:$0xff] }
 0x14c   : > { %v5280_v29 = vpack.c.bf16 %v864_v23, %v848_v22  ;;  %v1008_v19 = vld [vmem:[#allocation5 + $0x1628] sm:$0xff]  ;;  %v1026_v22 = vld [vmem:[#allocation5 + $0x16b8] sm:$0xff]  ;;  %v1135_v9 = vld [vmem:[#allocation5 + $0x1a20] sm:$0xff] }
 0x14d   : > { %5259 = vmatpush1.bf16.msra.mxu0 %v5258_v30  ;;  %v847_v30 = vld [vmem:[#allocation5 + $0x1120] sm:$0xff] }
 0x14e   : > { %5387 = vmatpush1.bf16.msra.mxu1 %v5386_v31  ;;  %5261 = vmatprep.subr.bf16.mxu0 %v5260_v32  ;;  %v863_v31 = vld [vmem:[#allocation5 + $0x11a0] sm:$0xff]  ;;  %v849_v32 = vld [vmem:[#allocation5 + $0x1130] sm:$0xff] }
 0x14f   : > { %5389 = vmatprep.subr.bf16.mxu1 %v5388_v36  ;;  %v896_v36 = vld [vmem:[#allocation5 + $0x12a8] sm:$0xff]  ;;  %v5282_v40 = vpack.c.bf16 %v863_v31, %v847_v30  ;;  %v5410_v41 = vpack.c.bf16 %v865_v34, %v849_v32  ;;  %v5428_v30 = vpack.c.bf16 %v1026_v22, %v1010_v21  ;;  %v1025_v31 = vld [vmem:[#allocation5 + $0x16b0] sm:$0xff]  ;;  %v1042_v34 = vld [vmem:[#allocation5 + $0x1738] sm:$0xff] }
 0x150   : > { %v1040_v32 = vld [vmem:[#allocation5 + $0x1728] sm:$0xff]  ;;  %v1167_v22 = vld [vmem:[#allocation5 + $0x1b20] sm:$0xff] }
 0x151   : > { %5263 = vmatpush1.bf16.msra.mxu0 %v5262_v42  ;;  %v5284_v42 = vpack.c.bf16 %v896_v36, %v880_v35  ;;  %v1058_v35 = vld [vmem:[#allocation5 + $0x17b8] sm:$0xff] }
 0x152   : > { %5391 = vmatpush1.bf16.msra.mxu1 %v5390_v43  ;;  %5265 = vmatprep.subr.bf16.mxu0 %v5264_v44  ;;  %v879_v43 = vld [vmem:[#allocation5 + $0x1220] sm:$0xff] }
 0x153   : > { %5393 = vmatprep.subr.bf16.mxu1 %v5392_v48  ;;  %v895_v44 = vld [vmem:[#allocation5 + $0x12a0] sm:$0xff]  ;;  %v912_v48 = vld [vmem:[#allocation5 + $0x1328] sm:$0xff] }
 0x154   : > { %v5286_v52 = vpack.c.bf16 %v895_v44, %v879_v43  ;;  %v1057_v43 = vld [vmem:[#allocation5 + $0x17b0] sm:$0xff]  ;;  %v1072_v44 = vld [vmem:[#allocation5 + $0x1828] sm:$0xff] }
 0x155   : > { %5267 = vmatpush1.bf16.msra.mxu0 %v5266_v54  ;;  %v5288_v54 = vpack.c.bf16 %v928_v49, %v912_v48  ;;  %v5308_v50 = vpack.c.bf16 %v1088_v45, %v1072_v44 }
 0x156   : > { %5395 = vmatpush1.bf16.msra.mxu1 %v5394_v55  ;;  %5269 = vmatprep.subr.bf16.mxu0 %v5268_v56  ;;  %v911_v55 = vld [vmem:[#allocation5 + $0x1320] sm:$0xff] }
 0x157   : > { %5397 = vmatprep.subr.bf16.mxu1 %v5396_v60  ;;  %v927_v56 = vld [vmem:[#allocation5 + $0x13a0] sm:$0xff]  ;;  %v944_v60 = vld [vmem:[#allocation5 + $0x1428] sm:$0xff] }
 0x158   : > { %v5290_v63 = vpack.c.bf16 %v927_v56, %v911_v55  ;;  %v5292_v0 = vpack.c.bf16 %v960_v16, %v944_v60  ;;  %v1089_v55 = vld [vmem:[#allocation5 + $0x18b0] sm:$0xff]  ;;  %v1104_v56 = vld [vmem:[#allocation5 + $0x1928] sm:$0xff] }
 0x159   : > { %5271 = vmatpush1.bf16.msra.mxu0 %v5270_v1  ;;  %v943_v1 = vld [vmem:[#allocation5 + $0x1420] sm:$0xff] }
 0x15a   : > { %5399 = vmatpush1.bf16.msra.mxu1 %v5398_v2  ;;  %5273 = vmatprep.subr.bf16.mxu0 %v5272_v3  ;;  %v959_v2 = vld [vmem:[#allocation5 + $0x14a0] sm:$0xff]  ;;  %v945_v3 = vld [vmem:[#allocation5 + $0x1430] sm:$0xff] }
 0x15b   : > { %5401 = vmatprep.subr.bf16.mxu1 %v5400_v7  ;;  %v992_v7 = vld [vmem:[#allocation5 + $0x15a8] sm:$0xff]  ;;  %v5294_v10 = vpack.c.bf16 %v959_v2, %v943_v1  ;;  %v5422_v11 = vpack.c.bf16 %v961_v5, %v945_v3  ;;  %v1121_v1 = vld [vmem:[#allocation5 + $0x19b0] sm:$0xff]  ;;  %v1154_v5 = vld [vmem:[#allocation5 + $0x1ab8] sm:$0xff] }
 0x15c   : > { %v5296_v12 = vpack.c.bf16 %v992_v7, %v976_v6  ;;  %v1136_v2 = vld [vmem:[#allocation5 + $0x1a28] sm:$0xff] }
 0x15d   : > { %5275 = vmatpush1.bf16.msra.mxu0 %v5274_v13  ;;  %v975_v13 = vld [vmem:[#allocation5 + $0x1520] sm:$0xff]  ;;  %v1152_v3 = vld [vmem:[#allocation5 + $0x1aa8] sm:$0xff] }
 0x15e   : > { %5403 = vmatpush1.bf16.msra.mxu1 %v5402_v14  ;;  %5277 = vmatprep.subr.bf16.mxu0 %v5276_v15  ;;  %v991_v14 = vld [vmem:[#allocation5 + $0x15a0] sm:$0xff]  ;;  %v977_v15 = vld [vmem:[#allocation5 + $0x1530] sm:$0xff]  ;;  %v5316_v8 = vpack.c.bf16 %v1152_v3, %v1136_v2 }
 0x15f   : > { %5405 = vmatprep.subr.bf16.mxu1 %v5404_v20  ;;  %v1024_v20 = vld [vmem:[#allocation5 + $0x16a8] sm:$0xff]  ;;  %v5298_v23 = vpack.c.bf16 %v991_v14, %v975_v13  ;;  %v5426_v25 = vpack.c.bf16 %v993_v18, %v977_v15  ;;  %v1153_v13 = vld [vmem:[#allocation5 + $0x1ab0] sm:$0xff]  ;;  %v1186_v18 = vld [vmem:[#allocation5 + $0x1bb8] sm:$0xff] }
 0x160   : > { %1756 = vmatmul.mubr.f32.vlgmr.msra.gmra.mrb[2].mxu0 %v7191_v37  ;;  %v5300_v26 = vpack.c.bf16 %v1024_v20, %v1008_v19  ;;  %v1168_v14 = vld [vmem:[#allocation5 + $0x1b28] sm:$0xff] }
 0x161   : > { %5279 = vmatpush1.bf16.msra.mxu0 %v5278_v27  ;;  %1898 = vmatmul.mubr.f32.vlgmr.msra.gmra.mrb[2].mxu1 %v7191_v37  ;;  %v1007_v27 = vld [vmem:[#allocation5 + $0x1620] sm:$0xff]  ;;  %v1184_v15 = vld [vmem:[#allocation5 + $0x1ba8] sm:$0xff] }
 0x162   : > { %5407 = vmatpush1.bf16.msra.mxu1 %v5406_v28  ;;  %5281 = vmatprep.subr.bf16.mxu0 %v5280_v29  ;;  %v1023_v28 = vld [vmem:[#allocation5 + $0x16a0] sm:$0xff]  ;;  %v1009_v29 = vld [vmem:[#allocation5 + $0x1630] sm:$0xff]  ;;  %v5320_v21 = vpack.c.bf16 %v1184_v15, %v1168_v14 }
 0x163   : > { %5409 = vmatprep.subr.bf16.mxu1 %v5408_v33  ;;  %1826 = vmatprep.mubr.f32.mxu0 %v7702_v24  ;;  %v1056_v33 = vld [vmem:[#allocation5 + $0x17a8] sm:$0xff]  ;;  %v5302_v36 = vpack.c.bf16 %v1023_v28, %v1007_v27  ;;  %v5430_v37 = vpack.c.bf16 %v1025_v31, %v1009_v29  ;;  %v1185_v27 = vld [vmem:[#allocation5 + $0x1bb0] sm:$0xff]  ;;  %v1218_v31 = vld [vmem:[#allocation5 + $0x1cb8] sm:$0xff] }
 0x164   : > { %1968 = vmatprep.mubr.f32.mxu1 %v7702_v24  ;;  %v5418_v24 = vpack.c.bf16 %v929_v59, %v913_v57  ;;  %v5304_v38 = vpack.c.bf16 %v1056_v33, %v1040_v32  ;;  %v1120_v57 = vld [vmem:[#allocation5 + $0x19a8] sm:$0xff]  ;;  %v1122_v59 = vld [vmem:[#allocation5 + $0x19b8] sm:$0xff] }
 0x165   : > { %5283 = vmatpush1.bf16.msra.mxu0 %v5282_v40  ;;  %v1055_v40 = vld [vmem:[#allocation5 + $0x17a0] sm:$0xff]  ;;  %v5312_v61 = vpack.c.bf16 %v1120_v57, %v1104_v56  ;;  %v1200_v28 = vld [vmem:[#allocation5 + $0x1c28] sm:$0xff] }
 0x166   : > { %5411 = vmatpush1.bf16.msra.mxu1 %v5410_v41  ;;  %5285 = vmatprep.subr.bf16.mxu0 %v5284_v42  ;;  %v1041_v41 = vld [vmem:[#allocation5 + $0x1730] sm:$0xff]  ;;  %v5432_v42 = vpack.c.bf16 %v1058_v35, %v1042_v34  ;;  %v5306_v48 = vpack.c.bf16 %v1055_v40, %v1039_v39  ;;  %v1216_v29 = vld [vmem:[#allocation5 + $0x1ca8] sm:$0xff]  ;;  %v1199_v35 = vld [vmem:[#allocation5 + $0x1c20] sm:$0xff] }
 0x167   : > { %5413 = vmatprep.subr.bf16.mxu1 %v5412_v46  ;;  %v1074_v46 = vld [vmem:[#allocation5 + $0x1838] sm:$0xff]  ;;  %v5434_v49 = vpack.c.bf16 %v1057_v43, %v1041_v41  ;;  %v5324_v34 = vpack.c.bf16 %v1216_v29, %v1200_v28  ;;  %v1217_v39 = vld [vmem:[#allocation5 + $0x1cb0] sm:$0xff]  ;;  %v1232_v40 = vld [vmem:[#allocation5 + $0x1d28] sm:$0xff] }
 0x168   : > { %v1248_v41 = vld [vmem:[#allocation5 + $0x1da8] sm:$0xff]  ;;  %v1250_v43 = vld [vmem:[#allocation5 + $0x1db8] sm:$0xff] }
 0x169   : > { %5287 = vmatpush1.bf16.msra.mxu0 %v5286_v52  ;;  %v1087_v52 = vld [vmem:[#allocation5 + $0x18a0] sm:$0xff] }
 0x16a   : > { %5415 = vmatpush1.bf16.msra.mxu1 %v5414_v53  ;;  %5289 = vmatprep.subr.bf16.mxu0 %v5288_v54  ;;  %v1073_v53 = vld [vmem:[#allocation5 + $0x1830] sm:$0xff]  ;;  %v5436_v54 = vpack.c.bf16 %v1090_v47, %v1074_v46  ;;  %v5310_v60 = vpack.c.bf16 %v1087_v52, %v1071_v51  ;;  %v5328_v46 = vpack.c.bf16 %v1248_v41, %v1232_v40  ;;  %v1231_v47 = vld [vmem:[#allocation5 + $0x1d20] sm:$0xff]  ;;  %v1264_v52 = vld [vmem:[#allocation5 + $0x1e28] sm:$0xff] }
 0x16b   : > { %5417 = vmatprep.subr.bf16.mxu1 %v5416_v58  ;;  %v1106_v58 = vld [vmem:[#allocation5 + $0x1938] sm:$0xff]  ;;  %v5438_v16 = vpack.c.bf16 %v1089_v55, %v1073_v53  ;;  %v1249_v51 = vld [vmem:[#allocation5 + $0x1db0] sm:$0xff]  ;;  %v1280_v53 = vld [vmem:[#allocation5 + $0x1ea8] sm:$0xff] }
 0x16c   : > { %v1282_v55 = vld [vmem:[#allocation5 + $0x1eb8] sm:$0xff] }
 0x16d   : > { %5291 = vmatpush1.bf16.msra.mxu0 %v5290_v63  ;;  %v1119_v63 = vld [vmem:[#allocation5 + $0x19a0] sm:$0xff]  ;;  %v390_v40 = vld [vmem:[#allocation5 + $0x2d8] sm:$0xff] }
 0x16e   : > { %5419 = vmatpush1.bf16.msra.mxu1 %v5418_v24  ;;  %5293 = vmatprep.subr.bf16.mxu0 %v5292_v0  ;;  %v1105_v24 = vld [vmem:[#allocation5 + $0x1930] sm:$0xff]  ;;  %v5440_v0 = vpack.c.bf16 %v1122_v59, %v1106_v58  ;;  %v5314_v6 = vpack.c.bf16 %v1119_v63, %v1103_v62  ;;  %v5332_v58 = vpack.c.bf16 %v1280_v53, %v1264_v52  ;;  %v1263_v59 = vld [vmem:[#allocation5 + $0x1e20] sm:$0xff]  ;;  %v1296_v63 = vld [vmem:[#allocation5 + $0x1f28] sm:$0xff] }
 0x16f   : > { %5421 = vmatprep.subr.bf16.mxu1 %v5420_v4  ;;  %v1138_v4 = vld [vmem:[#allocation5 + $0x1a38] sm:$0xff]  ;;  %v5442_v7 = vpack.c.bf16 %v1121_v1, %v1105_v24  ;;  %v1281_v62 = vld [vmem:[#allocation5 + $0x1eb0] sm:$0xff]  ;;  %v1312_v24 = vld [vmem:[#allocation5 + $0x1fa8] sm:$0xff] }
 0x170   : > { %v1314_v1 = vld [vmem:[#allocation5 + $0x1fb8] sm:$0xff] }
 0x171   : > { %5295 = vmatpush1.bf16.msra.mxu0 %v5294_v10  ;;  %v1151_v10 = vld [vmem:[#allocation5 + $0x1aa0] sm:$0xff]  ;;  %v406_v52 = vld [vmem:[#allocation5 + $0x358] sm:$0xff] }
 0x172   : > { %5423 = vmatpush1.bf16.msra.mxu1 %v5422_v11  ;;  %5297 = vmatprep.subr.bf16.mxu0 %v5296_v12  ;;  %v1137_v11 = vld [vmem:[#allocation5 + $0x1a30] sm:$0xff]  ;;  %v5444_v12 = vpack.c.bf16 %v1154_v5, %v1138_v4  ;;  %v5318_v19 = vpack.c.bf16 %v1151_v10, %v1135_v9  ;;  %v5336_v4 = vpack.c.bf16 %v1312_v24, %v1296_v63  ;;  %v1295_v5 = vld [vmem:[#allocation5 + $0x1f20] sm:$0xff]  ;;  %v308_v10 = vld [vmem:[#allocation5 + $0x48] sm:$0xff] }
 0x173   : > { %5425 = vmatprep.subr.bf16.mxu1 %v5424_v17  ;;  %v1170_v17 = vld [vmem:[#allocation5 + $0x1b38] sm:$0xff]  ;;  %v5446_v20 = vpack.c.bf16 %v1153_v13, %v1137_v11  ;;  %v1313_v9 = vld [vmem:[#allocation5 + $0x1fb0] sm:$0xff]  ;;  %v324_v11 = vld [vmem:[#allocation5 + $0xc8] sm:$0xff] }
 0x174   : > { %v326_v13 = vld [vmem:[#allocation5 + $0xd8] sm:$0xff] }
 0x175   : > { %5299 = vmatpush1.bf16.msra.mxu0 %v5298_v23  ;;  %v1183_v23 = vld [vmem:[#allocation5 + $0x1ba0] sm:$0xff]  ;;  %v422_v53 = vld [vmem:[#allocation5 + $0x3d8] sm:$0xff] }
 0x176   : > { %5427 = vmatpush1.bf16.msra.mxu1 %v5426_v25  ;;  %5301 = vmatprep.subr.bf16.mxu0 %v5300_v26  ;;  %v1169_v25 = vld [vmem:[#allocation5 + $0x1b30] sm:$0xff]  ;;  %v5448_v26 = vpack.c.bf16 %v1186_v18, %v1170_v17  ;;  %v5322_v32 = vpack.c.bf16 %v1183_v23, %v1167_v22  ;;  %v5468_v17 = vpack.c.bf16 %v324_v11, %v308_v10  ;;  %v307_v18 = vld [vmem:[#allocation5 + $0x40] sm:$0xff]  ;;  %v340_v23 = vld [vmem:[#allocation5 + $0x148] sm:$0xff] }
 0x177   : > { %5429 = vmatprep.subr.bf16.mxu1 %v5428_v30  ;;  %v1202_v30 = vld [vmem:[#allocation5 + $0x1c38] sm:$0xff]  ;;  %v5450_v33 = vpack.c.bf16 %v1185_v27, %v1169_v25  ;;  %v325_v22 = vld [vmem:[#allocation5 + $0xd0] sm:$0xff]  ;;  %v356_v25 = vld [vmem:[#allocation5 + $0x1c8] sm:$0xff] }
 0x178   : > { %v358_v27 = vld [vmem:[#allocation5 + $0x1d8] sm:$0xff] }
 0x179   : > { %5303 = vmatpush1.bf16.msra.mxu0 %v5302_v36  ;;  %v1215_v36 = vld [vmem:[#allocation5 + $0x1ca0] sm:$0xff]  ;;  %v438_v63 = vld [vmem:[#allocation5 + $0x458] sm:$0xff] }
 0x17a   : > { %5431 = vmatpush1.bf16.msra.mxu1 %v5430_v37  ;;  %5305 = vmatprep.subr.bf16.mxu0 %v5304_v38  ;;  %v1201_v37 = vld [vmem:[#allocation5 + $0x1c30] sm:$0xff]  ;;  %v5452_v38 = vpack.c.bf16 %v1218_v31, %v1202_v30  ;;  %v5326_v44 = vpack.c.bf16 %v1215_v36, %v1199_v35  ;;  %v5472_v30 = vpack.c.bf16 %v356_v25, %v340_v23  ;;  %v339_v31 = vld [vmem:[#allocation5 + $0x140] sm:$0xff]  ;;  %v372_v36 = vld [vmem:[#allocation5 + $0x248] sm:$0xff] }
 0x17b   : > { %5433 = vmatprep.subr.bf16.mxu1 %v5432_v42  ;;  %v1234_v42 = vld [vmem:[#allocation5 + $0x1d38] sm:$0xff]  ;;  %v5454_v45 = vpack.c.bf16 %v1217_v39, %v1201_v37  ;;  %v357_v35 = vld [vmem:[#allocation5 + $0x1d0] sm:$0xff]  ;;  %v388_v37 = vld [vmem:[#allocation5 + $0x2c8] sm:$0xff] }
 0x17c   : > { %v374_v39 = vld [vmem:[#allocation5 + $0x258] sm:$0xff] }
 0x17d   : > { %5307 = vmatpush1.bf16.msra.mxu0 %v5306_v48  ;;  %v1247_v48 = vld [vmem:[#allocation5 + $0x1da0] sm:$0xff]  ;;  %v454_v24 = vld [vmem:[#allocation5 + $0x4d8] sm:$0xff] }
 0x17e   : > { %5435 = vmatpush1.bf16.msra.mxu1 %v5434_v49  ;;  %5309 = vmatprep.subr.bf16.mxu0 %v5308_v50  ;;  %v1233_v49 = vld [vmem:[#allocation5 + $0x1d30] sm:$0xff]  ;;  %v5456_v50 = vpack.c.bf16 %v1250_v43, %v1234_v42  ;;  %v5330_v56 = vpack.c.bf16 %v1247_v48, %v1231_v47  ;;  %v5476_v43 = vpack.c.bf16 %v388_v37, %v372_v36  ;;  %v470_v10 = vld [vmem:[#allocation5 + $0x558] sm:$0xff] }
 0x17f   : > { %5437 = vmatprep.subr.bf16.mxu1 %v5436_v54  ;;  %v1266_v54 = vld [vmem:[#allocation5 + $0x1e38] sm:$0xff]  ;;  %v5458_v57 = vpack.c.bf16 %v1249_v51, %v1233_v49  ;;  %v5604_v47 = vpack.c.bf16 %v390_v40, %v374_v39  ;;  %v389_v48 = vld [vmem:[#allocation5 + $0x2d0] sm:$0xff]  ;;  %v404_v49 = vld [vmem:[#allocation5 + $0x348] sm:$0xff] }
 0x180   : > { %v7193_v51 = vld [vmem:[%s7681_s13 + $0x8] sm:$0xff]  ;;  %v486_v11 = vld [vmem:[#allocation5 + $0x5d8] sm:$0xff] }
 0x181   : > { %5311 = vmatpush1.bf16.msra.mxu0 %v5310_v60  ;;  %v1279_v60 = vld [vmem:[#allocation5 + $0x1ea0] sm:$0xff]  ;;  %v502_v23 = vld [vmem:[#allocation5 + $0x658] sm:$0xff] }
 0x182   : > { %5439 = vmatpush1.bf16.msra.mxu1 %v5438_v16  ;;  %5313 = vmatprep.subr.bf16.mxu0 %v5312_v61  ;;  %v1265_v16 = vld [vmem:[#allocation5 + $0x1e30] sm:$0xff]  ;;  %v5460_v61 = vpack.c.bf16 %v1282_v55, %v1266_v54  ;;  %v5334_v2 = vpack.c.bf16 %v1279_v60, %v1263_v59  ;;  %v5608_v60 = vpack.c.bf16 %v422_v53, %v406_v52  ;;  %v518_v25 = vld [vmem:[#allocation5 + $0x6d8] sm:$0xff]  ;;  %v563_v53 = vld [vmem:[#allocation5 + $0x840] sm:$0xff] }
 0x183   : > { %5441 = vmatprep.subr.bf16.mxu1 %v5440_v0  ;;  %v1298_v0 = vld [vmem:[#allocation5 + $0x1f38] sm:$0xff]  ;;  %v5462_v3 = vpack.c.bf16 %v1281_v62, %v1265_v16  ;;  %v405_v59 = vld [vmem:[#allocation5 + $0x350] sm:$0xff]  ;;  %v452_v62 = vld [vmem:[#allocation5 + $0x4c8] sm:$0xff] }
 0x184   : > { %v421_v16 = vld [vmem:[#allocation5 + $0x3d0] sm:$0xff]  ;;  %v534_v36 = vld [vmem:[#allocation5 + $0x758] sm:$0xff] }
 0x185   : > { %5315 = vmatpush1.bf16.msra.mxu0 %v5314_v6  ;;  %v1311_v6 = vld [vmem:[#allocation5 + $0x1fa0] sm:$0xff]  ;;  %v550_v37 = vld [vmem:[#allocation5 + $0x7d8] sm:$0xff] }
 0x186   : > { %5443 = vmatpush1.bf16.msra.mxu1 %v5442_v7  ;;  %5317 = vmatprep.subr.bf16.mxu0 %v5316_v8  ;;  %v1297_v7 = vld [vmem:[#allocation5 + $0x1f30] sm:$0xff]  ;;  %v5464_v8 = vpack.c.bf16 %v1314_v1, %v1298_v0  ;;  %v5338_v14 = vpack.c.bf16 %v1311_v6, %v1295_v5  ;;  %v5610_v1 = vpack.c.bf16 %v421_v16, %v405_v59  ;;  %v612_v59 = vld [vmem:[#allocation5 + $0x9c8] sm:$0xff]  ;;  %v614_v16 = vld [vmem:[#allocation5 + $0x9d8] sm:$0xff] }
 0x187   : > { %5445 = vmatprep.subr.bf16.mxu1 %v5444_v12  ;;  %v310_v12 = vld [vmem:[#allocation5 + $0x58] sm:$0xff]  ;;  %v5466_v15 = vpack.c.bf16 %v1313_v9, %v1297_v7  ;;  %v437_v5 = vld [vmem:[#allocation5 + $0x450] sm:$0xff]  ;;  %v5612_v6 = vpack.c.bf16 %v454_v24, %v438_v63  ;;  %v484_v9 = vld [vmem:[#allocation5 + $0x5c8] sm:$0xff] }
 0x188   : > { %v453_v7 = vld [vmem:[#allocation5 + $0x4d0] sm:$0xff]  ;;  %v595_v24 = vld [vmem:[#allocation5 + $0x940] sm:$0xff] }
 0x189   : > { %5319 = vmatpush1.bf16.msra.mxu0 %v5318_v19  ;;  %v323_v19 = vld [vmem:[#allocation5 + $0xc0] sm:$0xff] }
 0x18a   : > { %5447 = vmatpush1.bf16.msra.mxu1 %v5446_v20  ;;  %5321 = vmatprep.subr.bf16.mxu0 %v5320_v21  ;;  %v309_v20 = vld [vmem:[#allocation5 + $0x50] sm:$0xff]  ;;  %v5596_v21 = vpack.c.bf16 %v326_v13, %v310_v12  ;;  %v5470_v28 = vpack.c.bf16 %v323_v19, %v307_v18  ;;  %v5614_v13 = vpack.c.bf16 %v453_v7, %v437_v5  ;;  %v644_v5 = vld [vmem:[#allocation5 + $0xac8] sm:$0xff]  ;;  %v646_v7 = vld [vmem:[#allocation5 + $0xad8] sm:$0xff] }
 0x18b   : > { %5449 = vmatprep.subr.bf16.mxu1 %v5448_v26  ;;  %v342_v26 = vld [vmem:[#allocation5 + $0x158] sm:$0xff]  ;;  %v5598_v29 = vpack.c.bf16 %v325_v22, %v309_v20  ;;  %v469_v18 = vld [vmem:[#allocation5 + $0x550] sm:$0xff]  ;;  %v5616_v19 = vpack.c.bf16 %v486_v11, %v470_v10  ;;  %v516_v22 = vld [vmem:[#allocation5 + $0x6c8] sm:$0xff] }
 0x18c   : > { %v485_v20 = vld [vmem:[#allocation5 + $0x5d0] sm:$0xff]  ;;  %v627_v11 = vld [vmem:[#allocation5 + $0xa40] sm:$0xff] }
 0x18d   : > { %5323 = vmatpush1.bf16.msra.mxu0 %v5322_v32  ;;  %v355_v32 = vld [vmem:[#allocation5 + $0x1c0] sm:$0xff] }
 0x18e   : > { %5451 = vmatpush1.bf16.msra.mxu1 %v5450_v33  ;;  %5325 = vmatprep.subr.bf16.mxu0 %v5324_v34  ;;  %v341_v33 = vld [vmem:[#allocation5 + $0x150] sm:$0xff]  ;;  %v5600_v34 = vpack.c.bf16 %v358_v27, %v342_v26  ;;  %v5474_v41 = vpack.c.bf16 %v355_v32, %v339_v31  ;;  %v5618_v27 = vpack.c.bf16 %v485_v20, %v469_v18  ;;  %v676_v18 = vld [vmem:[#allocation5 + $0xbc8] sm:$0xff]  ;;  %v678_v20 = vld [vmem:[#allocation5 + $0xbd8] sm:$0xff] }
 0x18f   : > { %5453 = vmatprep.subr.bf16.mxu1 %v5452_v38  ;;  %v7192_v38 = vld [vmem:[%s7681_s13 + $0x10] sm:$0xff]  ;;  %v5602_v42 = vpack.c.bf16 %v357_v35, %v341_v33  ;;  %v5620_v32 = vpack.c.bf16 %v518_v25, %v502_v23  ;;  %v548_v35 = vld [vmem:[#allocation5 + $0x7c8] sm:$0xff]  ;;  %v659_v25 = vld [vmem:[#allocation5 + $0xb40] sm:$0xff] }
 0x190   : > { %v501_v31 = vld [vmem:[#allocation5 + $0x650] sm:$0xff] }
 0x191   : > { %5327 = vmatpush1.bf16.msra.mxu0 %v5326_v44  ;;  %v371_v44 = vld [vmem:[#allocation5 + $0x240] sm:$0xff]  ;;  %v517_v33 = vld [vmem:[#allocation5 + $0x6d0] sm:$0xff] }
 0x192   : > { %5455 = vmatpush1.bf16.msra.mxu1 %v5454_v45  ;;  %5329 = vmatprep.subr.bf16.mxu0 %v5328_v46  ;;  %v387_v45 = vld [vmem:[#allocation5 + $0x2c0] sm:$0xff]  ;;  %v373_v46 = vld [vmem:[#allocation5 + $0x250] sm:$0xff]  ;;  %v5622_v39 = vpack.c.bf16 %v517_v33, %v501_v31  ;;  %v708_v31 = vld [vmem:[#allocation5 + $0xcc8] sm:$0xff] }
 0x193   : > { %5457 = vmatprep.subr.bf16.mxu1 %v5456_v50  ;;  %v420_v50 = vld [vmem:[#allocation5 + $0x3c8] sm:$0xff]  ;;  %v5478_v54 = vpack.c.bf16 %v387_v45, %v371_v44  ;;  %v5606_v55 = vpack.c.bf16 %v389_v48, %v373_v46  ;;  %v5624_v44 = vpack.c.bf16 %v550_v37, %v534_v36  ;;  %v549_v45 = vld [vmem:[#allocation5 + $0x7d0] sm:$0xff]  ;;  %v566_v48 = vld [vmem:[#allocation5 + $0x858] sm:$0xff] }
 0x194   : > { %v564_v46 = vld [vmem:[#allocation5 + $0x848] sm:$0xff]  ;;  %v710_v33 = vld [vmem:[#allocation5 + $0xcd8] sm:$0xff]  ;;  %v691_v37 = vld [vmem:[#allocation5 + $0xc40] sm:$0xff] }
 0x195   : > { %5331 = vmatpush1.bf16.msra.mxu0 %v5330_v56  ;;  %v5480_v56 = vpack.c.bf16 %v420_v50, %v404_v49  ;;  %v582_v49 = vld [vmem:[#allocation5 + $0x8d8] sm:$0xff] }
 0x196   : > { %5459 = vmatpush1.bf16.msra.mxu1 %v5458_v57  ;;  %5333 = vmatprep.subr.bf16.mxu0 %v5332_v58  ;;  %v403_v57 = vld [vmem:[#allocation5 + $0x340] sm:$0xff] }
 0x197   : > { %5461 = vmatprep.subr.bf16.mxu1 %v5460_v61  ;;  %v419_v58 = vld [vmem:[#allocation5 + $0x3c0] sm:$0xff]  ;;  %v436_v61 = vld [vmem:[#allocation5 + $0x448] sm:$0xff] }
 0x198   : > { %v5482_v0 = vpack.c.bf16 %v419_v58, %v403_v57  ;;  %v581_v57 = vld [vmem:[#allocation5 + $0x8d0] sm:$0xff]  ;;  %v596_v58 = vld [vmem:[#allocation5 + $0x948] sm:$0xff] }
 0x199   : > { %5335 = vmatpush1.bf16.msra.mxu0 %v5334_v2  ;;  %v5484_v2 = vpack.c.bf16 %v452_v62, %v436_v61  ;;  %v5504_v63 = vpack.c.bf16 %v612_v59, %v596_v58 }
 0x19a   : > { %5463 = vmatpush1.bf16.msra.mxu1 %v5462_v3  ;;  %5337 = vmatprep.subr.bf16.mxu0 %v5336_v4  ;;  %v435_v3 = vld [vmem:[#allocation5 + $0x440] sm:$0xff] }
 0x19b   : > { %5465 = vmatprep.subr.bf16.mxu1 %v5464_v8  ;;  %v451_v4 = vld [vmem:[#allocation5 + $0x4c0] sm:$0xff]  ;;  %v468_v8 = vld [vmem:[#allocation5 + $0x548] sm:$0xff] }
 0x19c   : > { %v5486_v12 = vpack.c.bf16 %v451_v4, %v435_v3  ;;  %v613_v3 = vld [vmem:[#allocation5 + $0x9d0] sm:$0xff]  ;;  %v628_v4 = vld [vmem:[#allocation5 + $0xa48] sm:$0xff] }
 0x19d   : > { %5339 = vmatpush1.bf16.msra.mxu0 %v5338_v14  ;;  %v5488_v14 = vpack.c.bf16 %v484_v9, %v468_v8  ;;  %v5508_v10 = vpack.c.bf16 %v644_v5, %v628_v4 }
 0x19e   : > { %5467 = vmatpush1.bf16.msra.mxu1 %v5466_v15  ;;  %5469 = vmatprep.subr.bf16.mxu0 %v5468_v17  ;;  %v467_v15 = vld [vmem:[#allocation5 + $0x540] sm:$0xff] }
 0x19f   : > { %5597 = vmatprep.subr.bf16.mxu1 %v5596_v21  ;;  %v483_v17 = vld [vmem:[#allocation5 + $0x5c0] sm:$0xff]  ;;  %v500_v21 = vld [vmem:[#allocation5 + $0x648] sm:$0xff] }
 0x1a0   : > { %1827 = vmatmul.mubr.f32.vlgmr.msra.gmra.mrb[2].mxu0 %v7192_v38  ;;  %v5490_v26 = vpack.c.bf16 %v483_v17, %v467_v15  ;;  %v645_v15 = vld [vmem:[#allocation5 + $0xad0] sm:$0xff]  ;;  %v660_v17 = vld [vmem:[#allocation5 + $0xb48] sm:$0xff] }
 0x1a1   : > { %1969 = vmatmul.mubr.f32.vlgmr.msra.gmra.mrb[2].mxu1 %v7192_v38  ;;  %5471 = vmatpush1.bf16.msra.mxu0 %v5470_v28  ;;  %v5492_v28 = vpack.c.bf16 %v516_v22, %v500_v21  ;;  %v5512_v23 = vpack.c.bf16 %v676_v18, %v660_v17 }
 0x1a2   : > { %5599 = vmatpush1.bf16.msra.mxu1 %v5598_v29  ;;  %5473 = vmatprep.subr.bf16.mxu0 %v5472_v30  ;;  %v499_v29 = vld [vmem:[#allocation5 + $0x640] sm:$0xff] }
 0x1a3   : > { %5601 = vmatprep.subr.bf16.mxu1 %v5600_v34  ;;  %2039 = vmatprep.mubr.f32.mxu0 %v7193_v51  ;;  %v515_v30 = vld [vmem:[#allocation5 + $0x6c0] sm:$0xff]  ;;  %v532_v34 = vld [vmem:[#allocation5 + $0x748] sm:$0xff] }
 0x1a4   : > { %2181 = vmatprep.mubr.f32.mxu1 %v7193_v51  ;;  %v5494_v38 = vpack.c.bf16 %v515_v30, %v499_v29  ;;  %v5496_v40 = vpack.c.bf16 %v548_v35, %v532_v34  ;;  %v677_v29 = vld [vmem:[#allocation5 + $0xbd0] sm:$0xff]  ;;  %v692_v30 = vld [vmem:[#allocation5 + $0xc48] sm:$0xff] }
 0x1a5   : > { %5475 = vmatpush1.bf16.msra.mxu0 %v5474_v41  ;;  %v531_v41 = vld [vmem:[#allocation5 + $0x740] sm:$0xff]  ;;  %v5516_v36 = vpack.c.bf16 %v708_v31, %v692_v30 }
 0x1a6   : > { %5603 = vmatpush1.bf16.msra.mxu1 %v5602_v42  ;;  %5477 = vmatprep.subr.bf16.mxu0 %v5476_v43  ;;  %v547_v42 = vld [vmem:[#allocation5 + $0x7c0] sm:$0xff]  ;;  %v533_v43 = vld [vmem:[#allocation5 + $0x750] sm:$0xff] }
 0x1a7   : > { %5605 = vmatprep.subr.bf16.mxu1 %v5604_v47  ;;  %v580_v47 = vld [vmem:[#allocation5 + $0x8c8] sm:$0xff]  ;;  %v5498_v50 = vpack.c.bf16 %v547_v42, %v531_v41  ;;  %v5626_v51 = vpack.c.bf16 %v549_v45, %v533_v43  ;;  %v709_v41 = vld [vmem:[#allocation5 + $0xcd0] sm:$0xff]  ;;  %v742_v45 = vld [vmem:[#allocation5 + $0xdd8] sm:$0xff] }
 0x1a8   : > { %v5500_v52 = vpack.c.bf16 %v580_v47, %v564_v46  ;;  %v724_v42 = vld [vmem:[#allocation5 + $0xd48] sm:$0xff] }
 0x1a9   : > { %5479 = vmatpush1.bf16.msra.mxu0 %v5478_v54  ;;  %v579_v54 = vld [vmem:[#allocation5 + $0x8c0] sm:$0xff]  ;;  %v740_v43 = vld [vmem:[#allocation5 + $0xdc8] sm:$0xff] }
 0x1aa   : > { %5607 = vmatpush1.bf16.msra.mxu1 %v5606_v55  ;;  %5481 = vmatprep.subr.bf16.mxu0 %v5480_v56  ;;  %v565_v55 = vld [vmem:[#allocation5 + $0x850] sm:$0xff]  ;;  %v5628_v56 = vpack.c.bf16 %v582_v49, %v566_v48  ;;  %v5502_v61 = vpack.c.bf16 %v579_v54, %v563_v53  ;;  %v5520_v48 = vpack.c.bf16 %v740_v43, %v724_v42  ;;  %v723_v49 = vld [vmem:[#allocation5 + $0xd40] sm:$0xff]  ;;  %v756_v54 = vld [vmem:[#allocation5 + $0xe48] sm:$0xff] }
 0x1ab   : > { %5609 = vmatprep.subr.bf16.mxu1 %v5608_v60  ;;  %v598_v60 = vld [vmem:[#allocation5 + $0x958] sm:$0xff]  ;;  %v5630_v62 = vpack.c.bf16 %v581_v57, %v565_v55  ;;  %v741_v53 = vld [vmem:[#allocation5 + $0xdd0] sm:$0xff]  ;;  %v772_v55 = vld [vmem:[#allocation5 + $0xec8] sm:$0xff] }
 0x1ac   : > { %v774_v57 = vld [vmem:[#allocation5 + $0xed8] sm:$0xff] }
 0x1ad   : > { %5483 = vmatpush1.bf16.msra.mxu0 %v5482_v0  ;;  %v611_v0 = vld [vmem:[#allocation5 + $0x9c0] sm:$0xff]  ;;  %v902_v42 = vld [vmem:[#allocation5 + $0x12d8] sm:$0xff] }
 0x1ae   : > { %5611 = vmatpush1.bf16.msra.mxu1 %v5610_v1  ;;  %5485 = vmatprep.subr.bf16.mxu0 %v5484_v2  ;;  %v597_v1 = vld [vmem:[#allocation5 + $0x950] sm:$0xff]  ;;  %v5632_v2 = vpack.c.bf16 %v614_v16, %v598_v60  ;;  %v5506_v8 = vpack.c.bf16 %v611_v0, %v595_v24  ;;  %v5524_v60 = vpack.c.bf16 %v772_v55, %v756_v54  ;;  %v755_v16 = vld [vmem:[#allocation5 + $0xe40] sm:$0xff]  ;;  %v788_v0 = vld [vmem:[#allocation5 + $0xf48] sm:$0xff] }
 0x1af   : > { %5613 = vmatprep.subr.bf16.mxu1 %v5612_v6  ;;  %v630_v6 = vld [vmem:[#allocation5 + $0xa58] sm:$0xff]  ;;  %v5634_v9 = vpack.c.bf16 %v613_v3, %v597_v1  ;;  %v773_v24 = vld [vmem:[#allocation5 + $0xed0] sm:$0xff]  ;;  %v804_v1 = vld [vmem:[#allocation5 + $0xfc8] sm:$0xff] }
 0x1b0   : > { %v806_v3 = vld [vmem:[#allocation5 + $0xfd8] sm:$0xff] }
 0x1b1   : > { %5487 = vmatpush1.bf16.msra.mxu0 %v5486_v12  ;;  %v643_v12 = vld [vmem:[#allocation5 + $0xac0] sm:$0xff]  ;;  %v918_v54 = vld [vmem:[#allocation5 + $0x1358] sm:$0xff] }
 0x1b2   : > { %5615 = vmatpush1.bf16.msra.mxu1 %v5614_v13  ;;  %5489 = vmatprep.subr.bf16.mxu0 %v5488_v14  ;;  %v629_v13 = vld [vmem:[#allocation5 + $0xa50] sm:$0xff]  ;;  %v5636_v14 = vpack.c.bf16 %v646_v7, %v630_v6  ;;  %v5510_v21 = vpack.c.bf16 %v643_v12, %v627_v11  ;;  %v5528_v6 = vpack.c.bf16 %v804_v1, %v788_v0  ;;  %v787_v7 = vld [vmem:[#allocation5 + $0xf40] sm:$0xff]  ;;  %v820_v12 = vld [vmem:[#allocation5 + $0x1048] sm:$0xff] }
 0x1b3   : > { %5617 = vmatprep.subr.bf16.mxu1 %v5616_v19  ;;  %v662_v19 = vld [vmem:[#allocation5 + $0xb58] sm:$0xff]  ;;  %v5638_v22 = vpack.c.bf16 %v645_v15, %v629_v13  ;;  %v805_v11 = vld [vmem:[#allocation5 + $0xfd0] sm:$0xff]  ;;  %v836_v13 = vld [vmem:[#allocation5 + $0x10c8] sm:$0xff] }
 0x1b4   : > { %v838_v15 = vld [vmem:[#allocation5 + $0x10d8] sm:$0xff] }
 0x1b5   : > { %5491 = vmatpush1.bf16.msra.mxu0 %v5490_v26  ;;  %v675_v26 = vld [vmem:[#allocation5 + $0xbc0] sm:$0xff]  ;;  %v934_v55 = vld [vmem:[#allocation5 + $0x13d8] sm:$0xff] }
 0x1b6   : > { %5619 = vmatpush1.bf16.msra.mxu1 %v5618_v27  ;;  %5493 = vmatprep.subr.bf16.mxu0 %v5492_v28  ;;  %v661_v27 = vld [vmem:[#allocation5 + $0xb50] sm:$0xff]  ;;  %v5640_v28 = vpack.c.bf16 %v678_v20, %v662_v19  ;;  %v5514_v34 = vpack.c.bf16 %v675_v26, %v659_v25  ;;  %v5532_v19 = vpack.c.bf16 %v836_v13, %v820_v12  ;;  %v819_v20 = vld [vmem:[#allocation5 + $0x1040] sm:$0xff]  ;;  %v852_v26 = vld [vmem:[#allocation5 + $0x1148] sm:$0xff] }
 0x1b7   : > { %5621 = vmatprep.subr.bf16.mxu1 %v5620_v32  ;;  %v694_v32 = vld [vmem:[#allocation5 + $0xc58] sm:$0xff]  ;;  %v5642_v35 = vpack.c.bf16 %v677_v29, %v661_v27  ;;  %v837_v25 = vld [vmem:[#allocation5 + $0x10d0] sm:$0xff]  ;;  %v868_v27 = vld [vmem:[#allocation5 + $0x11c8] sm:$0xff] }
 0x1b8   : > { %v870_v29 = vld [vmem:[#allocation5 + $0x11d8] sm:$0xff] }
 0x1b9   : > { %5495 = vmatpush1.bf16.msra.mxu0 %v5494_v38  ;;  %v707_v38 = vld [vmem:[#allocation5 + $0xcc0] sm:$0xff]  ;;  %v950_v0 = vld [vmem:[#allocation5 + $0x1458] sm:$0xff] }
 0x1ba   : > { %5623 = vmatpush1.bf16.msra.mxu1 %v5622_v39  ;;  %5497 = vmatprep.subr.bf16.mxu0 %v5496_v40  ;;  %v693_v39 = vld [vmem:[#allocation5 + $0xc50] sm:$0xff]  ;;  %v5644_v40 = vpack.c.bf16 %v710_v33, %v694_v32  ;;  %v5518_v46 = vpack.c.bf16 %v707_v38, %v691_v37  ;;  %v5536_v32 = vpack.c.bf16 %v868_v27, %v852_v26  ;;  %v851_v33 = vld [vmem:[#allocation5 + $0x1140] sm:$0xff]  ;;  %v884_v38 = vld [vmem:[#allocation5 + $0x1248] sm:$0xff] }
 0x1bb   : > { %5625 = vmatprep.subr.bf16.mxu1 %v5624_v44  ;;  %v726_v44 = vld [vmem:[#allocation5 + $0xd58] sm:$0xff]  ;;  %v5646_v47 = vpack.c.bf16 %v709_v41, %v693_v39  ;;  %v869_v37 = vld [vmem:[#allocation5 + $0x11d0] sm:$0xff]  ;;  %v900_v39 = vld [vmem:[#allocation5 + $0x12c8] sm:$0xff] }
 0x1bc   : > { %v886_v41 = vld [vmem:[#allocation5 + $0x1258] sm:$0xff] }
 0x1bd   : > { %5499 = vmatpush1.bf16.msra.mxu0 %v5498_v50  ;;  %v739_v50 = vld [vmem:[#allocation5 + $0xdc0] sm:$0xff]  ;;  %v966_v1 = vld [vmem:[#allocation5 + $0x14d8] sm:$0xff] }
 0x1be   : > { %5627 = vmatpush1.bf16.msra.mxu1 %v5626_v51  ;;  %5501 = vmatprep.subr.bf16.mxu0 %v5500_v52  ;;  %v725_v51 = vld [vmem:[#allocation5 + $0xd50] sm:$0xff]  ;;  %v5648_v52 = vpack.c.bf16 %v742_v45, %v726_v44  ;;  %v5522_v58 = vpack.c.bf16 %v739_v50, %v723_v49  ;;  %v5540_v45 = vpack.c.bf16 %v900_v39, %v884_v38  ;;  %v982_v12 = vld [vmem:[#allocation5 + $0x1558] sm:$0xff]  ;;  %v1060_v38 = vld [vmem:[#allocation5 + $0x17c8] sm:$0xff] }
 0x1bf   : > { %5629 = vmatprep.subr.bf16.mxu1 %v5628_v56  ;;  %v758_v56 = vld [vmem:[#allocation5 + $0xe58] sm:$0xff]  ;;  %v5650_v59 = vpack.c.bf16 %v741_v53, %v725_v51  ;;  %v5668_v49 = vpack.c.bf16 %v902_v42, %v886_v41  ;;  %v901_v50 = vld [vmem:[#allocation5 + $0x12d0] sm:$0xff]  ;;  %v916_v51 = vld [vmem:[#allocation5 + $0x1348] sm:$0xff] }
 0x1c0   : > { %v7195_v53 = vld [vmem:[%s7681_s13 + $0x18] sm:$0xff] }
 0x1c1   : > { %5503 = vmatpush1.bf16.msra.mxu0 %v5502_v61  ;;  %v771_v61 = vld [vmem:[#allocation5 + $0xec0] sm:$0xff]  ;;  %v998_v13 = vld [vmem:[#allocation5 + $0x15d8] sm:$0xff] }
 0x1c2   : > { %5631 = vmatpush1.bf16.msra.mxu1 %v5630_v62  ;;  %5505 = vmatprep.subr.bf16.mxu0 %v5504_v63  ;;  %v757_v62 = vld [vmem:[#allocation5 + $0xe50] sm:$0xff]  ;;  %v5652_v63 = vpack.c.bf16 %v774_v57, %v758_v56  ;;  %v5526_v4 = vpack.c.bf16 %v771_v61, %v755_v16  ;;  %v5672_v61 = vpack.c.bf16 %v934_v55, %v918_v54  ;;  %v1014_v26 = vld [vmem:[#allocation5 + $0x1658] sm:$0xff] }
 0x1c3   : > { %5633 = vmatprep.subr.bf16.mxu1 %v5632_v2  ;;  %v790_v2 = vld [vmem:[#allocation5 + $0xf58] sm:$0xff]  ;;  %v5654_v5 = vpack.c.bf16 %v773_v24, %v757_v62  ;;  %v917_v16 = vld [vmem:[#allocation5 + $0x1350] sm:$0xff]  ;;  %v964_v24 = vld [vmem:[#allocation5 + $0x14c8] sm:$0xff] }
 0x1c4   : > { %v933_v62 = vld [vmem:[#allocation5 + $0x13d0] sm:$0xff]  ;;  %v1030_v27 = vld [vmem:[#allocation5 + $0x16d8] sm:$0xff] }
 0x1c5   : > { %5507 = vmatpush1.bf16.msra.mxu0 %v5506_v8  ;;  %v803_v8 = vld [vmem:[#allocation5 + $0xfc0] sm:$0xff]  ;;  %v1046_v41 = vld [vmem:[#allocation5 + $0x1758] sm:$0xff] }
 0x1c6   : > { %5635 = vmatpush1.bf16.msra.mxu1 %v5634_v9  ;;  %5509 = vmatprep.subr.bf16.mxu0 %v5508_v10  ;;  %v789_v9 = vld [vmem:[#allocation5 + $0xf50] sm:$0xff]  ;;  %v5656_v10 = vpack.c.bf16 %v806_v3, %v790_v2  ;;  %v5530_v17 = vpack.c.bf16 %v803_v8, %v787_v7  ;;  %v5674_v3 = vpack.c.bf16 %v933_v62, %v917_v16  ;;  %v1062_v42 = vld [vmem:[#allocation5 + $0x17d8] sm:$0xff] }
 0x1c7   : > { %5637 = vmatprep.subr.bf16.mxu1 %v5636_v14  ;;  %v822_v14 = vld [vmem:[#allocation5 + $0x1058] sm:$0xff]  ;;  %v5658_v18 = vpack.c.bf16 %v805_v11, %v789_v9  ;;  %v949_v7 = vld [vmem:[#allocation5 + $0x1450] sm:$0xff]  ;;  %v5676_v8 = vpack.c.bf16 %v966_v1, %v950_v0  ;;  %v996_v11 = vld [vmem:[#allocation5 + $0x15c8] sm:$0xff] }
 0x1c8   : > { %v965_v9 = vld [vmem:[#allocation5 + $0x14d0] sm:$0xff]  ;;  %v1078_v54 = vld [vmem:[#allocation5 + $0x1858] sm:$0xff] }
 0x1c9   : > { %5511 = vmatpush1.bf16.msra.mxu0 %v5510_v21  ;;  %v835_v21 = vld [vmem:[#allocation5 + $0x10c0] sm:$0xff]  ;;  %v1094_v55 = vld [vmem:[#allocation5 + $0x18d8] sm:$0xff]  ;;  %v1077_v16 = vld [vmem:[#allocation5 + $0x1850] sm:$0xff] }
 0x1ca   : > { %5639 = vmatpush1.bf16.msra.mxu1 %v5638_v22  ;;  %5513 = vmatprep.subr.bf16.mxu0 %v5512_v23  ;;  %v821_v22 = vld [vmem:[#allocation5 + $0x1050] sm:$0xff]  ;;  %v5660_v23 = vpack.c.bf16 %v838_v15, %v822_v14  ;;  %v5534_v30 = vpack.c.bf16 %v835_v21, %v819_v20  ;;  %v5678_v15 = vpack.c.bf16 %v965_v9, %v949_v7  ;;  %v1110_v0 = vld [vmem:[#allocation5 + $0x1958] sm:$0xff] }
 0x1cb   : > { %5641 = vmatprep.subr.bf16.mxu1 %v5640_v28  ;;  %v854_v28 = vld [vmem:[#allocation5 + $0x1158] sm:$0xff]  ;;  %v5662_v31 = vpack.c.bf16 %v837_v25, %v821_v22  ;;  %v981_v20 = vld [vmem:[#allocation5 + $0x1550] sm:$0xff]  ;;  %v5680_v21 = vpack.c.bf16 %v998_v13, %v982_v12  ;;  %v1028_v25 = vld [vmem:[#allocation5 + $0x16c8] sm:$0xff] }
 0x1cc   : > { %v997_v22 = vld [vmem:[#allocation5 + $0x15d0] sm:$0xff]  ;;  %v1126_v1 = vld [vmem:[#allocation5 + $0x19d8] sm:$0xff] }
 0x1cd   : > { %5515 = vmatpush1.bf16.msra.mxu0 %v5514_v34  ;;  %v867_v34 = vld [vmem:[#allocation5 + $0x11c0] sm:$0xff]  ;;  %v1093_v62 = vld [vmem:[#allocation5 + $0x18d0] sm:$0xff]  ;;  %v1142_v12 = vld [vmem:[#allocation5 + $0x1a58] sm:$0xff] }
 0x1ce   : > { %5643 = vmatpush1.bf16.msra.mxu1 %v5642_v35  ;;  %5517 = vmatprep.subr.bf16.mxu0 %v5516_v36  ;;  %v853_v35 = vld [vmem:[#allocation5 + $0x1150] sm:$0xff]  ;;  %v5664_v36 = vpack.c.bf16 %v870_v29, %v854_v28  ;;  %v5538_v43 = vpack.c.bf16 %v867_v34, %v851_v33  ;;  %v5682_v29 = vpack.c.bf16 %v997_v22, %v981_v20  ;;  %v1158_v13 = vld [vmem:[#allocation5 + $0x1ad8] sm:$0xff] }
 0x1cf   : > { %5645 = vmatprep.subr.bf16.mxu1 %v5644_v40  ;;  %v7194_v40 = vld [vmem:[%s7681_s13] sm:$0xff]  ;;  %v5666_v44 = vpack.c.bf16 %v869_v37, %v853_v35  ;;  %v1013_v33 = vld [vmem:[#allocation5 + $0x1650] sm:$0xff]  ;;  %v5684_v35 = vpack.c.bf16 %v1030_v27, %v1014_v26  ;;  %v1044_v37 = vld [vmem:[#allocation5 + $0x1748] sm:$0xff] }
 0x1d0   : > { %v1109_v7 = vld [vmem:[#allocation5 + $0x1950] sm:$0xff]  ;;  %v1174_v26 = vld [vmem:[#allocation5 + $0x1b58] sm:$0xff] }
 0x1d1   : > { %5519 = vmatpush1.bf16.msra.mxu0 %v5518_v46  ;;  %v883_v46 = vld [vmem:[#allocation5 + $0x1240] sm:$0xff]  ;;  %v1125_v9 = vld [vmem:[#allocation5 + $0x19d0] sm:$0xff]  ;;  %v1190_v27 = vld [vmem:[#allocation5 + $0x1bd8] sm:$0xff] }
 0x1d2   : > { %5647 = vmatpush1.bf16.msra.mxu1 %v5646_v47  ;;  %5521 = vmatprep.subr.bf16.mxu0 %v5520_v48  ;;  %v899_v47 = vld [vmem:[#allocation5 + $0x12c0] sm:$0xff]  ;;  %v885_v48 = vld [vmem:[#allocation5 + $0x1250] sm:$0xff] }
 0x1d3   : > { %5649 = vmatprep.subr.bf16.mxu1 %v5648_v52  ;;  %v932_v52 = vld [vmem:[#allocation5 + $0x13c8] sm:$0xff]  ;;  %v5542_v56 = vpack.c.bf16 %v899_v47, %v883_v46  ;;  %v5670_v57 = vpack.c.bf16 %v901_v50, %v885_v48  ;;  %v5560_v46 = vpack.c.bf16 %v1060_v38, %v1044_v37  ;;  %v1043_v47 = vld [vmem:[#allocation5 + $0x1740] sm:$0xff]  ;;  %v5688_v50 = vpack.c.bf16 %v1062_v42, %v1046_v41  ;;  %v1141_v20 = vld [vmem:[#allocation5 + $0x1a50] sm:$0xff] }
 0x1d4   : > { %v1059_v48 = vld [vmem:[#allocation5 + $0x17c0] sm:$0xff]  ;;  %v1157_v22 = vld [vmem:[#allocation5 + $0x1ad0] sm:$0xff]  ;;  %v1204_v37 = vld [vmem:[#allocation5 + $0x1c48] sm:$0xff] }
 0x1d5   : > { %5523 = vmatpush1.bf16.msra.mxu0 %v5522_v58  ;;  %v5544_v58 = vpack.c.bf16 %v932_v52, %v916_v51  ;;  %v1061_v51 = vld [vmem:[#allocation5 + $0x17d0] sm:$0xff]  ;;  %v1076_v52 = vld [vmem:[#allocation5 + $0x1848] sm:$0xff]  ;;  %v1206_v41 = vld [vmem:[#allocation5 + $0x1c58] sm:$0xff] }
 0x1d6   : > { %5651 = vmatpush1.bf16.msra.mxu1 %v5650_v59  ;;  %5525 = vmatprep.subr.bf16.mxu0 %v5524_v60  ;;  %v915_v59 = vld [vmem:[#allocation5 + $0x1340] sm:$0xff]  ;;  %v1220_v38 = vld [vmem:[#allocation5 + $0x1cc8] sm:$0xff]  ;;  %v1222_v42 = vld [vmem:[#allocation5 + $0x1cd8] sm:$0xff] }
 0x1d7   : > { %5653 = vmatprep.subr.bf16.mxu1 %v5652_v63  ;;  %v931_v60 = vld [vmem:[#allocation5 + $0x13c0] sm:$0xff]  ;;  %v948_v63 = vld [vmem:[#allocation5 + $0x1448] sm:$0xff] }
 0x1d8   : > { %v5546_v2 = vpack.c.bf16 %v931_v60, %v915_v59  ;;  %v1075_v59 = vld [vmem:[#allocation5 + $0x1840] sm:$0xff] }
 0x1d9   : > { %5527 = vmatpush1.bf16.msra.mxu0 %v5526_v4  ;;  %v5548_v4 = vpack.c.bf16 %v964_v24, %v948_v63  ;;  %v1091_v60 = vld [vmem:[#allocation5 + $0x18c0] sm:$0xff]  ;;  %v1108_v63 = vld [vmem:[#allocation5 + $0x1948] sm:$0xff] }
 0x1da   : > { %5655 = vmatpush1.bf16.msra.mxu1 %v5654_v5  ;;  %5529 = vmatprep.subr.bf16.mxu0 %v5528_v6  ;;  %v947_v5 = vld [vmem:[#allocation5 + $0x1440] sm:$0xff]  ;;  %v1124_v24 = vld [vmem:[#allocation5 + $0x19c8] sm:$0xff] }
 0x1db   : > { %5657 = vmatprep.subr.bf16.mxu1 %v5656_v10  ;;  %v963_v6 = vld [vmem:[#allocation5 + $0x14c0] sm:$0xff]  ;;  %v980_v10 = vld [vmem:[#allocation5 + $0x1548] sm:$0xff] }
 0x1dc   : > { %v5550_v14 = vpack.c.bf16 %v963_v6, %v947_v5  ;;  %v1107_v5 = vld [vmem:[#allocation5 + $0x1940] sm:$0xff] }
 0x1dd   : > { %5531 = vmatpush1.bf16.msra.mxu0 %v5530_v17  ;;  %v5552_v17 = vpack.c.bf16 %v996_v11, %v980_v10  ;;  %v1123_v6 = vld [vmem:[#allocation5 + $0x19c0] sm:$0xff]  ;;  %v1140_v10 = vld [vmem:[#allocation5 + $0x1a48] sm:$0xff] }
 0x1de   : > { %5659 = vmatpush1.bf16.msra.mxu1 %v5658_v18  ;;  %5533 = vmatprep.subr.bf16.mxu0 %v5532_v19  ;;  %v979_v18 = vld [vmem:[#allocation5 + $0x1540] sm:$0xff]  ;;  %v1156_v11 = vld [vmem:[#allocation5 + $0x1ac8] sm:$0xff] }
 0x1df   : > { %5661 = vmatprep.subr.bf16.mxu1 %v5660_v23  ;;  %v995_v19 = vld [vmem:[#allocation5 + $0x15c0] sm:$0xff]  ;;  %v1012_v23 = vld [vmem:[#allocation5 + $0x1648] sm:$0xff] }
 0x1e0   : > { %2040 = vmatmul.mubr.f32.vlgmr.msra.gmra.mrb[4].mxu0 %v7194_v40  ;;  %v5554_v28 = vpack.c.bf16 %v995_v19, %v979_v18  ;;  %v1139_v18 = vld [vmem:[#allocation5 + $0x1a40] sm:$0xff] }
 0x1e1   : > { %5535 = vmatpush1.bf16.msra.mxu0 %v5534_v30  ;;  %2182 = vmatmul.mubr.f32.vlgmr.msra.gmra.mrb[4].mxu1 %v7194_v40  ;;  %v5556_v30 = vpack.c.bf16 %v1028_v25, %v1012_v23  ;;  %v1155_v19 = vld [vmem:[#allocation5 + $0x1ac0] sm:$0xff]  ;;  %v1172_v23 = vld [vmem:[#allocation5 + $0x1b48] sm:$0xff] }
 0x1e2   : > { %5663 = vmatpush1.bf16.msra.mxu1 %v5662_v31  ;;  %5537 = vmatprep.subr.bf16.mxu0 %v5536_v32  ;;  %v1011_v31 = vld [vmem:[#allocation5 + $0x1640] sm:$0xff]  ;;  %v1188_v25 = vld [vmem:[#allocation5 + $0x1bc8] sm:$0xff] }
 0x1e3   : > { %5665 = vmatprep.subr.bf16.mxu1 %v5664_v36  ;;  %2110 = vmatprep.mubr.f32.mxu0 %v7195_v53  ;;  %v1027_v32 = vld [vmem:[#allocation5 + $0x16c0] sm:$0xff]  ;;  %v1029_v36 = vld [vmem:[#allocation5 + $0x16d0] sm:$0xff] }
 0x1e4   : > { %2252 = vmatprep.mubr.f32.mxu1 %v7195_v53  ;;  %v1092_v53 = vld [vmem:[#allocation5 + $0x18c8] sm:$0xff] }
 0x1e5   : > { %5539 = vmatpush1.bf16.msra.mxu0 %v5538_v43 }
 0x1e6   : > { %5667 = vmatpush1.bf16.msra.mxu1 %v5666_v44  ;;  %5541 = vmatprep.subr.bf16.mxu0 %v5540_v45  ;;  %v5558_v44 = vpack.c.bf16 %v1027_v32, %v1011_v31  ;;  %v5686_v45 = vpack.c.bf16 %v1029_v36, %v1013_v33  ;;  %v1171_v31 = vld [vmem:[#allocation5 + $0x1b40] sm:$0xff]  ;;  %v1173_v33 = vld [vmem:[#allocation5 + $0x1b50] sm:$0xff] }
 0x1e7   : > { %5669 = vmatprep.subr.bf16.mxu1 %v5668_v49  ;;  %v1045_v49 = vld [vmem:[#allocation5 + $0x1750] sm:$0xff]  ;;  %v1187_v32 = vld [vmem:[#allocation5 + $0x1bc0] sm:$0xff] }
 0x1e8   : > { %v1189_v36 = vld [vmem:[#allocation5 + $0x1bd0] sm:$0xff] }
 0x1e9   : > { %5543 = vmatpush1.bf16.msra.mxu0 %v5542_v56  ;;  %v5562_v56 = vpack.c.bf16 %v1059_v48, %v1043_v47  ;;  %v1203_v47 = vld [vmem:[#allocation5 + $0x1c40] sm:$0xff] }
 0x1ea   : > { %5671 = vmatpush1.bf16.msra.mxu1 %v5670_v57  ;;  %5545 = vmatprep.subr.bf16.mxu0 %v5544_v58  ;;  %v5690_v57 = vpack.c.bf16 %v1061_v51, %v1045_v49  ;;  %v5564_v58 = vpack.c.bf16 %v1092_v53, %v1076_v52  ;;  %v1219_v48 = vld [vmem:[#allocation5 + $0x1cc0] sm:$0xff]  ;;  %v1205_v49 = vld [vmem:[#allocation5 + $0x1c50] sm:$0xff]  ;;  %v1236_v52 = vld [vmem:[#allocation5 + $0x1d48] sm:$0xff] }
 0x1eb   : > { %5673 = vmatprep.subr.bf16.mxu1 %v5672_v61  ;;  %v5692_v61 = vpack.c.bf16 %v1094_v55, %v1078_v54  ;;  %v1221_v51 = vld [vmem:[#allocation5 + $0x1cd0] sm:$0xff]  ;;  %v1252_v53 = vld [vmem:[#allocation5 + $0x1dc8] sm:$0xff]  ;;  %v1238_v54 = vld [vmem:[#allocation5 + $0x1d58] sm:$0xff] }
 0x1ec   : > { %v1254_v55 = vld [vmem:[#allocation5 + $0x1dd8] sm:$0xff] }
 0x1ed   : > { %5547 = vmatpush1.bf16.msra.mxu0 %v5546_v2  ;;  %v5566_v2 = vpack.c.bf16 %v1091_v60, %v1075_v59  ;;  %v1235_v59 = vld [vmem:[#allocation5 + $0x1d40] sm:$0xff] }
 0x1ee   : > { %5675 = vmatpush1.bf16.msra.mxu1 %v5674_v3  ;;  %5549 = vmatprep.subr.bf16.mxu0 %v5548_v4  ;;  %v5694_v3 = vpack.c.bf16 %v1093_v62, %v1077_v16  ;;  %v5568_v4 = vpack.c.bf16 %v1124_v24, %v1108_v63  ;;  %v1251_v60 = vld [vmem:[#allocation5 + $0x1dc0] sm:$0xff]  ;;  %v1237_v16 = vld [vmem:[#allocation5 + $0x1d50] sm:$0xff]  ;;  %v1268_v63 = vld [vmem:[#allocation5 + $0x1e48] sm:$0xff] }
 0x1ef   : > { %5677 = vmatprep.subr.bf16.mxu1 %v5676_v8  ;;  %v5696_v8 = vpack.c.bf16 %v1126_v1, %v1110_v0  ;;  %v1253_v62 = vld [vmem:[#allocation5 + $0x1dd0] sm:$0xff]  ;;  %v1284_v24 = vld [vmem:[#allocation5 + $0x1ec8] sm:$0xff]  ;;  %v1270_v0 = vld [vmem:[#allocation5 + $0x1e58] sm:$0xff] }
 0x1f0   : > { %v1286_v1 = vld [vmem:[#allocation5 + $0x1ed8] sm:$0xff] }
 0x1f1   : > { %5551 = vmatpush1.bf16.msra.mxu0 %v5550_v14  ;;  %v5570_v14 = vpack.c.bf16 %v1123_v6, %v1107_v5  ;;  %v1267_v5 = vld [vmem:[#allocation5 + $0x1e40] sm:$0xff] }
 0x1f2   : > { %5679 = vmatpush1.bf16.msra.mxu1 %v5678_v15  ;;  %5553 = vmatprep.subr.bf16.mxu0 %v5552_v17  ;;  %v5698_v15 = vpack.c.bf16 %v1125_v9, %v1109_v7  ;;  %v5572_v17 = vpack.c.bf16 %v1156_v11, %v1140_v10  ;;  %v1283_v6 = vld [vmem:[#allocation5 + $0x1ec0] sm:$0xff]  ;;  %v1269_v7 = vld [vmem:[#allocation5 + $0x1e50] sm:$0xff]  ;;  %v1300_v10 = vld [vmem:[#allocation5 + $0x1f48] sm:$0xff] }
 0x1f3   : > { %v7716_v34 = vpop.f32.mrb[0].mxu0  ;;  %5681 = vmatprep.subr.bf16.mxu1 %v5680_v21  ;;  %v5700_v21 = vpack.c.bf16 %v1158_v13, %v1142_v12  ;;  %v1285_v9 = vld [vmem:[#allocation5 + $0x1ed0] sm:$0xff]  ;;  %v1316_v11 = vld [vmem:[#allocation5 + $0x1fc8] sm:$0xff]  ;;  %v1302_v12 = vld [vmem:[#allocation5 + $0x1f58] sm:$0xff] }
 0x1f4   : > { %v7718_v39 = vpop.f32.mrb[0].mxu1  ;;  %v7720_v40 = vpop.f32.mrb[1].mxu0  ;;  %v1318_v13 = vld [vmem:[#allocation5 + $0x1fd8] sm:$0xff] }
 0x1f5   : > { %v7722_v43 = vpop.f32.mrb[1].mxu1  ;;  %5555 = vmatpush1.bf16.msra.mxu0 %v5554_v28  ;;  %v5574_v28 = vpack.c.bf16 %v1155_v19, %v1139_v18  ;;  %v1299_v18 = vld [vmem:[#allocation5 + $0x1f40] sm:$0xff] }
 0x1f6   : > { %5683 = vmatpush1.bf16.msra.mxu1 %v5682_v29  ;;  %5557 = vmatprep.subr.bf16.mxu0 %v5556_v30  ;;  %v5702_v29 = vpack.c.bf16 %v1157_v22, %v1141_v20  ;;  %v5576_v30 = vpack.c.bf16 %v1188_v25, %v1172_v23  ;;  %v1315_v19 = vld [vmem:[#allocation5 + $0x1fc0] sm:$0xff]  ;;  %v1301_v20 = vld [vmem:[#allocation5 + $0x1f50] sm:$0xff]  ;;  %v312_v23 = vld [vmem:[#allocation5 + $0x68] sm:$0xff] }
 0x1f7   : > { %5685 = vmatprep.subr.bf16.mxu1 %v5684_v35  ;;  %v5704_v35 = vpack.c.bf16 %v1190_v27, %v1174_v26  ;;  %v1317_v22 = vld [vmem:[#allocation5 + $0x1fd0] sm:$0xff]  ;;  %v328_v25 = vld [vmem:[#allocation5 + $0xe8] sm:$0xff]  ;;  %v314_v26 = vld [vmem:[#allocation5 + $0x78] sm:$0xff] }
 0x1f8   : > { %v330_v27 = vld [vmem:[#allocation5 + $0xf8] sm:$0xff] }
 0x1f9   : > { %5559 = vmatpush1.bf16.msra.mxu0 %v5558_v44  ;;  %v5578_v44 = vpack.c.bf16 %v1187_v32, %v1171_v31  ;;  %v311_v31 = vld [vmem:[#allocation5 + $0x60] sm:$0xff] }
 0x1fa   : > { %5687 = vmatpush1.bf16.msra.mxu1 %v5686_v45  ;;  %5561 = vmatprep.subr.bf16.mxu0 %v5560_v46  ;;  %v5706_v45 = vpack.c.bf16 %v1189_v36, %v1173_v33  ;;  %v5580_v46 = vpack.c.bf16 %v1220_v38, %v1204_v37  ;;  %v327_v32 = vld [vmem:[#allocation5 + $0xe0] sm:$0xff]  ;;  %v313_v33 = vld [vmem:[#allocation5 + $0x70] sm:$0xff]  ;;  %v344_v37 = vld [vmem:[#allocation5 + $0x168] sm:$0xff] }
 0x1fb   : > { %5689 = vmatprep.subr.bf16.mxu1 %v5688_v50  ;;  %v5708_v50 = vpack.c.bf16 %v1222_v42, %v1206_v41  ;;  %v329_v36 = vld [vmem:[#allocation5 + $0xf0] sm:$0xff]  ;;  %v360_v38 = vld [vmem:[#allocation5 + $0x1e8] sm:$0xff]  ;;  %v346_v41 = vld [vmem:[#allocation5 + $0x178] sm:$0xff] }
 0x1fc   : > { %v362_v42 = vld [vmem:[#allocation5 + $0x1f8] sm:$0xff] }
 0x1fd   : > { %5563 = vmatpush1.bf16.msra.mxu0 %v5562_v56  ;;  %v5582_v56 = vpack.c.bf16 %v1219_v48, %v1203_v47  ;;  %v343_v47 = vld [vmem:[#allocation5 + $0x160] sm:$0xff] }
 0x1fe   : > { %5691 = vmatpush1.bf16.msra.mxu1 %v5690_v57  ;;  %5565 = vmatprep.subr.bf16.mxu0 %v5564_v58  ;;  %v5710_v57 = vpack.c.bf16 %v1221_v51, %v1205_v49  ;;  %v5584_v58 = vpack.c.bf16 %v1252_v53, %v1236_v52  ;;  %v359_v48 = vld [vmem:[#allocation5 + $0x1e0] sm:$0xff]  ;;  %v345_v49 = vld [vmem:[#allocation5 + $0x170] sm:$0xff]  ;;  %v376_v52 = vld [vmem:[#allocation5 + $0x268] sm:$0xff] }
 0x1ff   : > { %5693 = vmatprep.subr.bf16.mxu1 %v5692_v61  ;;  %v5712_v61 = vpack.c.bf16 %v1254_v55, %v1238_v54  ;;  %v361_v51 = vld [vmem:[#allocation5 + $0x1f0] sm:$0xff]  ;;  %v392_v53 = vld [vmem:[#allocation5 + $0x2e8] sm:$0xff]  ;;  %v378_v55 = vld [vmem:[#allocation5 + $0x278] sm:$0xff] }
 0x200   : > { %v7196_v54 = vld [vmem:[%s7681_s13 + $0x10] sm:$0xff] }
 0x201   : > { %5567 = vmatpush1.bf16.msra.mxu0 %v5566_v2  ;;  %v5586_v2 = vpack.c.bf16 %v1251_v60, %v1235_v59  ;;  %v5732_v59 = vpack.c.bf16 %v392_v53, %v376_v52  ;;  %v375_v60 = vld [vmem:[#allocation5 + $0x260] sm:$0xff]  ;;  %v521_v53 = vld [vmem:[#allocation5 + $0x6f0] sm:$0xff] }
 0x202   : > { %5695 = vmatpush1.bf16.msra.mxu1 %v5694_v3  ;;  %5569 = vmatprep.subr.bf16.mxu0 %v5568_v4  ;;  %v5714_v3 = vpack.c.bf16 %v1253_v62, %v1237_v16  ;;  %v5588_v4 = vpack.c.bf16 %v1284_v24, %v1268_v63  ;;  %v391_v16 = vld [vmem:[#allocation5 + $0x2e0] sm:$0xff]  ;;  %v393_v63 = vld [vmem:[#allocation5 + $0x2f0] sm:$0xff]  ;;  %v408_v24 = vld [vmem:[#allocation5 + $0x368] sm:$0xff] }
 0x203   : > { %5697 = vmatprep.subr.bf16.mxu1 %v5696_v8  ;;  %v5716_v8 = vpack.c.bf16 %v1286_v1, %v1270_v0  ;;  %v424_v0 = vld [vmem:[#allocation5 + $0x3e8] sm:$0xff] }
 0x204   : > { %v7197_v1 = vld [vmem:[%s7681_s13 + $0x8] sm:$0xff] }
 0x205   : > { %5571 = vmatpush1.bf16.msra.mxu0 %v5570_v14  ;;  %v5590_v14 = vpack.c.bf16 %v1283_v6, %v1267_v5  ;;  %v5736_v6 = vpack.c.bf16 %v424_v0, %v408_v24  ;;  %v553_v24 = vld [vmem:[#allocation5 + $0x7f0] sm:$0xff]  ;;  %v568_v0 = vld [vmem:[#allocation5 + $0x868] sm:$0xff] }
 0x206   : > { %5699 = vmatpush1.bf16.msra.mxu1 %v5698_v15  ;;  %5573 = vmatprep.subr.bf16.mxu0 %v5572_v17  ;;  %v5718_v15 = vpack.c.bf16 %v1285_v9, %v1269_v7  ;;  %v5592_v17 = vpack.c.bf16 %v1316_v11, %v1300_v10  ;;  %v407_v7 = vld [vmem:[#allocation5 + $0x360] sm:$0xff]  ;;  %v409_v9 = vld [vmem:[#allocation5 + $0x370] sm:$0xff] }
 0x207   : > { %5701 = vmatprep.subr.bf16.mxu1 %v5700_v21  ;;  %v5720_v21 = vpack.c.bf16 %v1318_v13, %v1302_v12  ;;  %v425_v11 = vld [vmem:[#allocation5 + $0x3f0] sm:$0xff]  ;;  %v440_v12 = vld [vmem:[#allocation5 + $0x468] sm:$0xff] }
 0x208   : > { %v456_v13 = vld [vmem:[#allocation5 + $0x4e8] sm:$0xff] }
 0x209   : > { %5575 = vmatpush1.bf16.msra.mxu0 %v5574_v28  ;;  %v5594_v28 = vpack.c.bf16 %v1315_v19, %v1299_v18  ;;  %v5866_v18 = vpack.c.bf16 %v425_v11, %v409_v9  ;;  %v5740_v19 = vpack.c.bf16 %v456_v13, %v440_v12  ;;  %v569_v9 = vld [vmem:[#allocation5 + $0x870] sm:$0xff]  ;;  %v600_v12 = vld [vmem:[#allocation5 + $0x968] sm:$0xff] }
 0x20a   : > { %5703 = vmatpush1.bf16.msra.mxu1 %v5702_v29  ;;  %5577 = vmatprep.subr.bf16.mxu0 %v5576_v30  ;;  %v5722_v29 = vpack.c.bf16 %v1317_v22, %v1301_v20  ;;  %v5724_v30 = vpack.c.bf16 %v328_v25, %v312_v23  ;;  %v439_v20 = vld [vmem:[#allocation5 + $0x460] sm:$0xff]  ;;  %v441_v22 = vld [vmem:[#allocation5 + $0x470] sm:$0xff]  ;;  %v616_v13 = vld [vmem:[#allocation5 + $0x9e8] sm:$0xff] }
 0x20b   : > { %5705 = vmatprep.subr.bf16.mxu1 %v5704_v35  ;;  %v5852_v35 = vpack.c.bf16 %v330_v27, %v314_v26  ;;  %v457_v25 = vld [vmem:[#allocation5 + $0x4f0] sm:$0xff]  ;;  %v472_v26 = vld [vmem:[#allocation5 + $0x568] sm:$0xff] }
 0x20c   : > { %v488_v27 = vld [vmem:[#allocation5 + $0x5e8] sm:$0xff]  ;;  %v585_v11 = vld [vmem:[#allocation5 + $0x8f0] sm:$0xff] }
 0x20d   : > { %5579 = vmatpush1.bf16.msra.mxu0 %v5578_v44  ;;  %v5726_v44 = vpack.c.bf16 %v327_v32, %v311_v31  ;;  %v5870_v31 = vpack.c.bf16 %v457_v25, %v441_v22  ;;  %v5744_v32 = vpack.c.bf16 %v488_v27, %v472_v26  ;;  %v601_v22 = vld [vmem:[#allocation5 + $0x970] sm:$0xff]  ;;  %v632_v26 = vld [vmem:[#allocation5 + $0xa68] sm:$0xff] }
 0x20e   : > { %5707 = vmatpush1.bf16.msra.mxu1 %v5706_v45  ;;  %5581 = vmatprep.subr.bf16.mxu0 %v5580_v46  ;;  %v5854_v45 = vpack.c.bf16 %v329_v36, %v313_v33  ;;  %v5728_v46 = vpack.c.bf16 %v360_v38, %v344_v37  ;;  %v471_v33 = vld [vmem:[#allocation5 + $0x560] sm:$0xff]  ;;  %v473_v36 = vld [vmem:[#allocation5 + $0x570] sm:$0xff]  ;;  %v648_v27 = vld [vmem:[#allocation5 + $0xae8] sm:$0xff] }
 0x20f   : > { %5709 = vmatprep.subr.bf16.mxu1 %v5708_v50  ;;  %v5856_v50 = vpack.c.bf16 %v362_v42, %v346_v41  ;;  %v489_v38 = vld [vmem:[#allocation5 + $0x5f0] sm:$0xff]  ;;  %v504_v41 = vld [vmem:[#allocation5 + $0x668] sm:$0xff] }
 0x210   : > { %v520_v42 = vld [vmem:[#allocation5 + $0x6e8] sm:$0xff]  ;;  %v617_v25 = vld [vmem:[#allocation5 + $0x9f0] sm:$0xff] }
 0x211   : > { %5583 = vmatpush1.bf16.msra.mxu0 %v5582_v56  ;;  %v394_v56 = vld [vmem:[#allocation5 + $0x2f8] sm:$0xff] }
 0x212   : > { %5711 = vmatpush1.bf16.msra.mxu1 %v5710_v57  ;;  %5585 = vmatprep.subr.bf16.mxu0 %v5584_v58  ;;  %v5730_v57 = vpack.c.bf16 %v359_v48, %v343_v47  ;;  %v5858_v58 = vpack.c.bf16 %v361_v51, %v345_v49  ;;  %v5860_v62 = vpack.c.bf16 %v394_v56, %v378_v55  ;;  %v503_v49 = vld [vmem:[#allocation5 + $0x660] sm:$0xff]  ;;  %v505_v51 = vld [vmem:[#allocation5 + $0x670] sm:$0xff]  ;;  %v552_v55 = vld [vmem:[#allocation5 + $0x7e8] sm:$0xff] }
 0x213   : > { %5713 = vmatprep.subr.bf16.mxu1 %v5712_v61  ;;  %v377_v61 = vld [vmem:[#allocation5 + $0x270] sm:$0xff]  ;;  %v5874_v47 = vpack.c.bf16 %v489_v38, %v473_v36  ;;  %v5748_v48 = vpack.c.bf16 %v520_v42, %v504_v41  ;;  %v538_v56 = vld [vmem:[#allocation5 + $0x778] sm:$0xff]  ;;  %v664_v41 = vld [vmem:[#allocation5 + $0xb68] sm:$0xff] }
 0x214   : > { %v5862_v5 = vpack.c.bf16 %v393_v63, %v377_v61  ;;  %v551_v61 = vld [vmem:[#allocation5 + $0x7e0] sm:$0xff]  ;;  %v633_v36 = vld [vmem:[#allocation5 + $0xa70] sm:$0xff]  ;;  %v680_v42 = vld [vmem:[#allocation5 + $0xbe8] sm:$0xff] }
 0x215   : > { %5587 = vmatpush1.bf16.msra.mxu0 %v5586_v2  ;;  %v410_v2 = vld [vmem:[#allocation5 + $0x378] sm:$0xff]  ;;  %v649_v38 = vld [vmem:[#allocation5 + $0xaf0] sm:$0xff] }
 0x216   : > { %5715 = vmatpush1.bf16.msra.mxu1 %v5714_v3  ;;  %5589 = vmatprep.subr.bf16.mxu0 %v5588_v4  ;;  %v426_v3 = vld [vmem:[#allocation5 + $0x3f8] sm:$0xff]  ;;  %v5734_v4 = vpack.c.bf16 %v391_v16, %v375_v60  ;;  %v535_v16 = vld [vmem:[#allocation5 + $0x760] sm:$0xff] }
 0x217   : > { %5717 = vmatprep.subr.bf16.mxu1 %v5716_v8  ;;  %v423_v8 = vld [vmem:[#allocation5 + $0x3e0] sm:$0xff]  ;;  %v5864_v10 = vpack.c.bf16 %v426_v3, %v410_v2  ;;  %v570_v2 = vld [vmem:[#allocation5 + $0x878] sm:$0xff] }
 0x218   : > { %v586_v3 = vld [vmem:[#allocation5 + $0x8f8] sm:$0xff] }
 0x219   : > { %5591 = vmatpush1.bf16.msra.mxu0 %v5590_v14  ;;  %v442_v14 = vld [vmem:[#allocation5 + $0x478] sm:$0xff] }
 0x21a   : > { %5719 = vmatpush1.bf16.msra.mxu1 %v5718_v15  ;;  %5593 = vmatprep.subr.bf16.mxu0 %v5592_v17  ;;  %v458_v15 = vld [vmem:[#allocation5 + $0x4f8] sm:$0xff]  ;;  %v5738_v17 = vpack.c.bf16 %v423_v8, %v407_v7  ;;  %v567_v7 = vld [vmem:[#allocation5 + $0x860] sm:$0xff] }
 0x21b   : > { %5721 = vmatprep.subr.bf16.mxu1 %v5720_v21  ;;  %v455_v21 = vld [vmem:[#allocation5 + $0x4e0] sm:$0xff]  ;;  %v5868_v23 = vpack.c.bf16 %v458_v15, %v442_v14  ;;  %v602_v14 = vld [vmem:[#allocation5 + $0x978] sm:$0xff] }
 0x21c   : > { %v583_v8 = vld [vmem:[#allocation5 + $0x8e0] sm:$0xff]  ;;  %v618_v15 = vld [vmem:[#allocation5 + $0x9f8] sm:$0xff] }
 0x21d   : > { %5595 = vmatpush1.bf16.msra.mxu0 %v5594_v28  ;;  %v474_v28 = vld [vmem:[#allocation5 + $0x578] sm:$0xff] }
 0x21e   : > { %5723 = vmatpush1.bf16.msra.mxu1 %v5722_v29  ;;  %5725 = vmatprep.subr.bf16.mxu0 %v5724_v30  ;;  %v490_v29 = vld [vmem:[#allocation5 + $0x5f8] sm:$0xff]  ;;  %v5742_v30 = vpack.c.bf16 %v455_v21, %v439_v20  ;;  %v599_v20 = vld [vmem:[#allocation5 + $0x960] sm:$0xff] }
 0x21f   : > { %5853 = vmatprep.subr.bf16.mxu1 %v5852_v35  ;;  %v487_v35 = vld [vmem:[#allocation5 + $0x5e0] sm:$0xff]  ;;  %v5872_v37 = vpack.c.bf16 %v490_v29, %v474_v28  ;;  %v634_v28 = vld [vmem:[#allocation5 + $0xa78] sm:$0xff] }
 0x220   : > { %2111 = vmatmul.mubr.f32.vlgmr.msra.gmra.mrb[4].mxu0 %v7196_v54  ;;  %v615_v21 = vld [vmem:[#allocation5 + $0x9e0] sm:$0xff]  ;;  %v650_v29 = vld [vmem:[#allocation5 + $0xaf8] sm:$0xff] }
 0x221   : > { %2253 = vmatmul.mubr.f32.vlgmr.msra.gmra.mrb[4].mxu1 %v7196_v54  ;;  %5727 = vmatpush1.bf16.msra.mxu0 %v5726_v44  ;;  %v506_v44 = vld [vmem:[#allocation5 + $0x678] sm:$0xff]  ;;  %v536_v54 = vld [vmem:[#allocation5 + $0x768] sm:$0xff] }
 0x222   : > { %5855 = vmatpush1.bf16.msra.mxu1 %v5854_v45  ;;  %5729 = vmatprep.subr.bf16.mxu0 %v5728_v46  ;;  %v522_v45 = vld [vmem:[#allocation5 + $0x6f8] sm:$0xff]  ;;  %v5746_v46 = vpack.c.bf16 %v487_v35, %v471_v33  ;;  %v5752_v60 = vpack.c.bf16 %v552_v55, %v536_v54  ;;  %v631_v33 = vld [vmem:[#allocation5 + $0xa60] sm:$0xff]  ;;  %v696_v54 = vld [vmem:[#allocation5 + $0xc68] sm:$0xff] }
 0x223   : > { %5857 = vmatprep.subr.bf16.mxu1 %v5856_v50  ;;  %2323 = vmatprep.mubr.f32.mxu0 %v7197_v1  ;;  %v519_v50 = vld [vmem:[#allocation5 + $0x6e0] sm:$0xff]  ;;  %v5876_v52 = vpack.c.bf16 %v522_v45, %v506_v44  ;;  %v666_v44 = vld [vmem:[#allocation5 + $0xb78] sm:$0xff]  ;;  %v712_v55 = vld [vmem:[#allocation5 + $0xce8] sm:$0xff] }
 0x224   : > { %2465 = vmatprep.mubr.f32.mxu1 %v7197_v1  ;;  %v584_v1 = vld [vmem:[#allocation5 + $0x8e8] sm:$0xff]  ;;  %v647_v35 = vld [vmem:[#allocation5 + $0xae0] sm:$0xff]  ;;  %v682_v45 = vld [vmem:[#allocation5 + $0xbf8] sm:$0xff] }
 0x225   : > { %5731 = vmatpush1.bf16.msra.mxu0 %v5730_v57  ;;  %v554_v57 = vld [vmem:[#allocation5 + $0x7f8] sm:$0xff] }
 0x226   : > { %5859 = vmatpush1.bf16.msra.mxu1 %v5858_v58  ;;  %5733 = vmatprep.subr.bf16.mxu0 %v5732_v59  ;;  %v5750_v58 = vpack.c.bf16 %v519_v50, %v503_v49  ;;  %v5878_v59 = vpack.c.bf16 %v521_v53, %v505_v51  ;;  %v5880_v63 = vpack.c.bf16 %v554_v57, %v538_v56  ;;  %v663_v49 = vld [vmem:[#allocation5 + $0xb60] sm:$0xff]  ;;  %v665_v51 = vld [vmem:[#allocation5 + $0xb70] sm:$0xff]  ;;  %v698_v56 = vld [vmem:[#allocation5 + $0xc78] sm:$0xff] }
 0x227   : > { %5861 = vmatprep.subr.bf16.mxu1 %v5860_v62  ;;  %v537_v62 = vld [vmem:[#allocation5 + $0x770] sm:$0xff]  ;;  %v679_v50 = vld [vmem:[#allocation5 + $0xbe0] sm:$0xff]  ;;  %v714_v57 = vld [vmem:[#allocation5 + $0xcf8] sm:$0xff] }
 0x228   : > { %v681_v53 = vld [vmem:[#allocation5 + $0xbf0] sm:$0xff] }
 0x229   : > { %5735 = vmatpush1.bf16.msra.mxu0 %v5734_v4  ;;  %v5754_v4 = vpack.c.bf16 %v551_v61, %v535_v16  ;;  %v695_v16 = vld [vmem:[#allocation5 + $0xc60] sm:$0xff] }
 0x22a   : > { %5863 = vmatpush1.bf16.msra.mxu1 %v5862_v5  ;;  %5737 = vmatprep.subr.bf16.mxu0 %v5736_v6  ;;  %v5882_v5 = vpack.c.bf16 %v553_v24, %v537_v62  ;;  %v5756_v6 = vpack.c.bf16 %v584_v1, %v568_v0  ;;  %v711_v61 = vld [vmem:[#allocation5 + $0xce0] sm:$0xff]  ;;  %v697_v62 = vld [vmem:[#allocation5 + $0xc70] sm:$0xff]  ;;  %v728_v0 = vld [vmem:[#allocation5 + $0xd68] sm:$0xff] }
 0x22b   : > { %5865 = vmatprep.subr.bf16.mxu1 %v5864_v10  ;;  %v5884_v10 = vpack.c.bf16 %v586_v3, %v570_v2  ;;  %v713_v24 = vld [vmem:[#allocation5 + $0xcf0] sm:$0xff]  ;;  %v744_v1 = vld [vmem:[#allocation5 + $0xde8] sm:$0xff]  ;;  %v730_v2 = vld [vmem:[#allocation5 + $0xd78] sm:$0xff] }
 0x22c   : > { %v746_v3 = vld [vmem:[#allocation5 + $0xdf8] sm:$0xff] }
 0x22d   : > { %5739 = vmatpush1.bf16.msra.mxu0 %v5738_v17  ;;  %v5758_v17 = vpack.c.bf16 %v583_v8, %v567_v7  ;;  %v727_v7 = vld [vmem:[#allocation5 + $0xd60] sm:$0xff] }
 0x22e   : > { %5867 = vmatpush1.bf16.msra.mxu1 %v5866_v18  ;;  %5741 = vmatprep.subr.bf16.mxu0 %v5740_v19  ;;  %v5886_v18 = vpack.c.bf16 %v585_v11, %v569_v9  ;;  %v5760_v19 = vpack.c.bf16 %v616_v13, %v600_v12  ;;  %v743_v8 = vld [vmem:[#allocation5 + $0xde0] sm:$0xff]  ;;  %v729_v9 = vld [vmem:[#allocation5 + $0xd70] sm:$0xff]  ;;  %v760_v12 = vld [vmem:[#allocation5 + $0xe68] sm:$0xff] }
 0x22f   : > { %5869 = vmatprep.subr.bf16.mxu1 %v5868_v23  ;;  %v5888_v23 = vpack.c.bf16 %v618_v15, %v602_v14  ;;  %v745_v11 = vld [vmem:[#allocation5 + $0xdf0] sm:$0xff]  ;;  %v776_v13 = vld [vmem:[#allocation5 + $0xee8] sm:$0xff]  ;;  %v762_v14 = vld [vmem:[#allocation5 + $0xe78] sm:$0xff] }
 0x230   : > { %v778_v15 = vld [vmem:[#allocation5 + $0xef8] sm:$0xff] }
 0x231   : > { %5743 = vmatpush1.bf16.msra.mxu0 %v5742_v30  ;;  %v5762_v30 = vpack.c.bf16 %v615_v21, %v599_v20  ;;  %v759_v20 = vld [vmem:[#allocation5 + $0xe60] sm:$0xff] }
 0x232   : > { %5871 = vmatpush1.bf16.msra.mxu1 %v5870_v31  ;;  %5745 = vmatprep.subr.bf16.mxu0 %v5744_v32  ;;  %v5890_v31 = vpack.c.bf16 %v617_v25, %v601_v22  ;;  %v5764_v32 = vpack.c.bf16 %v648_v27, %v632_v26  ;;  %v775_v21 = vld [vmem:[#allocation5 + $0xee0] sm:$0xff]  ;;  %v761_v22 = vld [vmem:[#allocation5 + $0xe70] sm:$0xff]  ;;  %v792_v26 = vld [vmem:[#allocation5 + $0xf68] sm:$0xff] }
 0x233   : > { %5873 = vmatprep.subr.bf16.mxu1 %v5872_v37  ;;  %v5892_v37 = vpack.c.bf16 %v650_v29, %v634_v28  ;;  %v777_v25 = vld [vmem:[#allocation5 + $0xef0] sm:$0xff]  ;;  %v808_v27 = vld [vmem:[#allocation5 + $0xfe8] sm:$0xff]  ;;  %v794_v28 = vld [vmem:[#allocation5 + $0xf78] sm:$0xff] }
 0x234   : > { %v810_v29 = vld [vmem:[#allocation5 + $0xff8] sm:$0xff] }
 0x235   : > { %5747 = vmatpush1.bf16.msra.mxu0 %v5746_v46  ;;  %v5766_v46 = vpack.c.bf16 %v647_v35, %v631_v33  ;;  %v791_v33 = vld [vmem:[#allocation5 + $0xf60] sm:$0xff] }
 0x236   : > { %5875 = vmatpush1.bf16.msra.mxu1 %v5874_v47  ;;  %5749 = vmatprep.subr.bf16.mxu0 %v5748_v48  ;;  %v5894_v47 = vpack.c.bf16 %v649_v38, %v633_v36  ;;  %v5768_v48 = vpack.c.bf16 %v680_v42, %v664_v41  ;;  %v807_v35 = vld [vmem:[#allocation5 + $0xfe0] sm:$0xff]  ;;  %v793_v36 = vld [vmem:[#allocation5 + $0xf70] sm:$0xff]  ;;  %v824_v41 = vld [vmem:[#allocation5 + $0x1068] sm:$0xff] }
 0x237   : > { %5877 = vmatprep.subr.bf16.mxu1 %v5876_v52  ;;  %v5896_v52 = vpack.c.bf16 %v682_v45, %v666_v44  ;;  %v809_v38 = vld [vmem:[#allocation5 + $0xff0] sm:$0xff]  ;;  %v840_v42 = vld [vmem:[#allocation5 + $0x10e8] sm:$0xff]  ;;  %v826_v44 = vld [vmem:[#allocation5 + $0x1078] sm:$0xff] }
 0x238   : > { %v842_v45 = vld [vmem:[#allocation5 + $0x10f8] sm:$0xff] }
 0x239   : > { %5751 = vmatpush1.bf16.msra.mxu0 %v5750_v58  ;;  %v5770_v58 = vpack.c.bf16 %v679_v50, %v663_v49  ;;  %v823_v49 = vld [vmem:[#allocation5 + $0x1060] sm:$0xff] }
 0x23a   : > { %5879 = vmatpush1.bf16.msra.mxu1 %v5878_v59  ;;  %5753 = vmatprep.subr.bf16.mxu0 %v5752_v60  ;;  %v5898_v59 = vpack.c.bf16 %v681_v53, %v665_v51  ;;  %v5772_v60 = vpack.c.bf16 %v712_v55, %v696_v54  ;;  %v839_v50 = vld [vmem:[#allocation5 + $0x10e0] sm:$0xff]  ;;  %v825_v51 = vld [vmem:[#allocation5 + $0x1070] sm:$0xff]  ;;  %v856_v54 = vld [vmem:[#allocation5 + $0x1168] sm:$0xff] }
 0x23b   : > { %5881 = vmatprep.subr.bf16.mxu1 %v5880_v63  ;;  %v5900_v63 = vpack.c.bf16 %v714_v57, %v698_v56  ;;  %v841_v53 = vld [vmem:[#allocation5 + $0x10f0] sm:$0xff]  ;;  %v872_v55 = vld [vmem:[#allocation5 + $0x11e8] sm:$0xff]  ;;  %v858_v56 = vld [vmem:[#allocation5 + $0x1178] sm:$0xff] }
 0x23c   : > { %v874_v57 = vld [vmem:[#allocation5 + $0x11f8] sm:$0xff] }
 0x23d   : > { %5755 = vmatpush1.bf16.msra.mxu0 %v5754_v4  ;;  %v5774_v4 = vpack.c.bf16 %v711_v61, %v695_v16  ;;  %v855_v16 = vld [vmem:[#allocation5 + $0x1160] sm:$0xff] }
 0x23e   : > { %5883 = vmatpush1.bf16.msra.mxu1 %v5882_v5  ;;  %5757 = vmatprep.subr.bf16.mxu0 %v5756_v6  ;;  %v5902_v5 = vpack.c.bf16 %v713_v24, %v697_v62  ;;  %v5776_v6 = vpack.c.bf16 %v744_v1, %v728_v0  ;;  %v871_v61 = vld [vmem:[#allocation5 + $0x11e0] sm:$0xff]  ;;  %v857_v62 = vld [vmem:[#allocation5 + $0x1170] sm:$0xff]  ;;  %v888_v0 = vld [vmem:[#allocation5 + $0x1268] sm:$0xff] }
 0x23f   : > { %5885 = vmatprep.subr.bf16.mxu1 %v5884_v10  ;;  %v5904_v10 = vpack.c.bf16 %v746_v3, %v730_v2  ;;  %v873_v24 = vld [vmem:[#allocation5 + $0x11f0] sm:$0xff]  ;;  %v904_v1 = vld [vmem:[#allocation5 + $0x12e8] sm:$0xff]  ;;  %v7198_v2 = vld [vmem:[%s7681_s13] sm:$0xff] }
 0x240   : > { %v890_v3 = vld [vmem:[#allocation5 + $0x1278] sm:$0xff] }
 0x241   : > { %5759 = vmatpush1.bf16.msra.mxu0 %v5758_v17  ;;  %v5778_v17 = vpack.c.bf16 %v743_v8, %v727_v7  ;;  %v5796_v7 = vpack.c.bf16 %v904_v1, %v888_v0  ;;  %v887_v8 = vld [vmem:[#allocation5 + $0x1260] sm:$0xff] }
 0x242   : > { %5887 = vmatpush1.bf16.msra.mxu1 %v5886_v18  ;;  %5761 = vmatprep.subr.bf16.mxu0 %v5760_v19  ;;  %v5906_v18 = vpack.c.bf16 %v745_v11, %v729_v9  ;;  %v5780_v19 = vpack.c.bf16 %v776_v13, %v760_v12  ;;  %v903_v9 = vld [vmem:[#allocation5 + $0x12e0] sm:$0xff]  ;;  %v905_v12 = vld [vmem:[#allocation5 + $0x12f0] sm:$0xff]  ;;  %v920_v13 = vld [vmem:[#allocation5 + $0x1368] sm:$0xff] }
 0x243   : > { %5889 = vmatprep.subr.bf16.mxu1 %v5888_v23  ;;  %v5908_v23 = vpack.c.bf16 %v778_v15, %v762_v14  ;;  %v936_v14 = vld [vmem:[#allocation5 + $0x13e8] sm:$0xff]  ;;  %v7199_v15 = vld [vmem:[%s7681_s13 + $0x18] sm:$0xff] }
 0x245   : > { %5763 = vmatpush1.bf16.msra.mxu0 %v5762_v30  ;;  %v5782_v30 = vpack.c.bf16 %v775_v21, %v759_v20  ;;  %v5800_v21 = vpack.c.bf16 %v936_v14, %v920_v13  ;;  %v1047_v13 = vld [vmem:[#allocation5 + $0x1760] sm:$0xff] }
 0x246   : > { %5891 = vmatpush1.bf16.msra.mxu1 %v5890_v31  ;;  %5765 = vmatprep.subr.bf16.mxu0 %v5764_v32  ;;  %v5910_v31 = vpack.c.bf16 %v777_v25, %v761_v22  ;;  %v5784_v32 = vpack.c.bf16 %v808_v27, %v792_v26  ;;  %v919_v22 = vld [vmem:[#allocation5 + $0x1360] sm:$0xff]  ;;  %v921_v25 = vld [vmem:[#allocation5 + $0x1370] sm:$0xff] }
 0x247   : > { %5893 = vmatprep.subr.bf16.mxu1 %v5892_v37  ;;  %v5912_v37 = vpack.c.bf16 %v810_v29, %v794_v28  ;;  %v937_v27 = vld [vmem:[#allocation5 + $0x13f0] sm:$0xff]  ;;  %v952_v28 = vld [vmem:[#allocation5 + $0x1468] sm:$0xff]  ;;  %v1063_v14 = vld [vmem:[#allocation5 + $0x17e0] sm:$0xff] }
 0x248   : > { %v968_v29 = vld [vmem:[#allocation5 + $0x14e8] sm:$0xff] }
 0x249   : > { %5767 = vmatpush1.bf16.msra.mxu0 %v5766_v46  ;;  %v5786_v46 = vpack.c.bf16 %v807_v35, %v791_v33  ;;  %v5930_v33 = vpack.c.bf16 %v937_v27, %v921_v25  ;;  %v5804_v35 = vpack.c.bf16 %v968_v29, %v952_v28  ;;  %v5818_v25 = vpack.c.bf16 %v1063_v14, %v1047_v13  ;;  %v1079_v28 = vld [vmem:[#allocation5 + $0x1860] sm:$0xff] }
 0x24a   : > { %5895 = vmatpush1.bf16.msra.mxu1 %v5894_v47  ;;  %5769 = vmatprep.subr.bf16.mxu0 %v5768_v48  ;;  %v5914_v47 = vpack.c.bf16 %v809_v38, %v793_v36  ;;  %v5788_v48 = vpack.c.bf16 %v840_v42, %v824_v41  ;;  %v951_v36 = vld [vmem:[#allocation5 + $0x1460] sm:$0xff]  ;;  %v953_v38 = vld [vmem:[#allocation5 + $0x1470] sm:$0xff] }
 0x24b   : > { %5897 = vmatprep.subr.bf16.mxu1 %v5896_v52  ;;  %v5916_v52 = vpack.c.bf16 %v842_v45, %v826_v44  ;;  %v969_v42 = vld [vmem:[#allocation5 + $0x14f0] sm:$0xff]  ;;  %v984_v44 = vld [vmem:[#allocation5 + $0x1568] sm:$0xff]  ;;  %v1095_v29 = vld [vmem:[#allocation5 + $0x18e0] sm:$0xff] }
 0x24c   : > { %v1000_v45 = vld [vmem:[#allocation5 + $0x15e8] sm:$0xff] }
 0x24d   : > { %5771 = vmatpush1.bf16.msra.mxu0 %v5770_v58  ;;  %v5790_v58 = vpack.c.bf16 %v839_v50, %v823_v49  ;;  %v5934_v49 = vpack.c.bf16 %v969_v42, %v953_v38  ;;  %v5808_v50 = vpack.c.bf16 %v1000_v45, %v984_v44  ;;  %v1130_v38 = vld [vmem:[#allocation5 + $0x19f8] sm:$0xff]  ;;  %v1111_v45 = vld [vmem:[#allocation5 + $0x1960] sm:$0xff] }
 0x24e   : > { %5899 = vmatpush1.bf16.msra.mxu1 %v5898_v59  ;;  %5773 = vmatprep.subr.bf16.mxu0 %v5772_v60  ;;  %v5918_v59 = vpack.c.bf16 %v841_v53, %v825_v51  ;;  %v5792_v60 = vpack.c.bf16 %v872_v55, %v856_v54  ;;  %v983_v51 = vld [vmem:[#allocation5 + $0x1560] sm:$0xff]  ;;  %v985_v53 = vld [vmem:[#allocation5 + $0x1570] sm:$0xff] }
 0x24f   : > { %5901 = vmatprep.subr.bf16.mxu1 %v5900_v63  ;;  %v5920_v63 = vpack.c.bf16 %v874_v57, %v858_v56  ;;  %v1001_v55 = vld [vmem:[#allocation5 + $0x15f0] sm:$0xff]  ;;  %v1016_v56 = vld [vmem:[#allocation5 + $0x1668] sm:$0xff] }
 0x250   : > { %v1032_v57 = vld [vmem:[#allocation5 + $0x16e8] sm:$0xff] }
 0x251   : > { %5775 = vmatpush1.bf16.msra.mxu0 %v5774_v4  ;;  %v906_v4 = vld [vmem:[#allocation5 + $0x12f8] sm:$0xff] }
 0x252   : > { %5903 = vmatpush1.bf16.msra.mxu1 %v5902_v5  ;;  %5777 = vmatprep.subr.bf16.mxu0 %v5776_v6  ;;  %v5794_v5 = vpack.c.bf16 %v871_v61, %v855_v16  ;;  %v5922_v6 = vpack.c.bf16 %v873_v24, %v857_v62  ;;  %v5924_v11 = vpack.c.bf16 %v906_v4, %v890_v3  ;;  %v1015_v62 = vld [vmem:[#allocation5 + $0x1660] sm:$0xff]  ;;  %v1017_v24 = vld [vmem:[#allocation5 + $0x1670] sm:$0xff]  ;;  %v1048_v3 = vld [vmem:[#allocation5 + $0x1768] sm:$0xff] }
 0x253   : > { %5905 = vmatprep.subr.bf16.mxu1 %v5904_v10  ;;  %v889_v10 = vld [vmem:[#allocation5 + $0x1270] sm:$0xff]  ;;  %v5938_v16 = vpack.c.bf16 %v1001_v55, %v985_v53  ;;  %v5812_v61 = vpack.c.bf16 %v1032_v57, %v1016_v56  ;;  %v1064_v4 = vld [vmem:[#allocation5 + $0x17e8] sm:$0xff]  ;;  %v7741_v53 = vld [vmem:[#allocation7] sm:$0xff] }
 0x254   : > { %v5926_v20 = vpack.c.bf16 %v905_v12, %v889_v10  ;;  %v5816_v12 = vpack.c.bf16 %v1064_v4, %v1048_v3  ;;  %v1162_v55 = vld [vmem:[#allocation5 + $0x1af8] sm:$0xff] }
 0x255   : > { %5779 = vmatpush1.bf16.msra.mxu0 %v5778_v17  ;;  %v922_v17 = vld [vmem:[#allocation5 + $0x1378] sm:$0xff] }
 0x256   : > { %5907 = vmatpush1.bf16.msra.mxu1 %v5906_v18  ;;  %5781 = vmatprep.subr.bf16.mxu0 %v5780_v19  ;;  %v938_v18 = vld [vmem:[#allocation5 + $0x13f8] sm:$0xff]  ;;  %v5798_v19 = vpack.c.bf16 %v903_v9, %v887_v8 }
 0x257   : > { %5909 = vmatprep.subr.bf16.mxu1 %v5908_v23  ;;  %v935_v23 = vld [vmem:[#allocation5 + $0x13e0] sm:$0xff]  ;;  %v5928_v26 = vpack.c.bf16 %v938_v18, %v922_v17  ;;  %v1066_v8 = vld [vmem:[#allocation5 + $0x17f8] sm:$0xff]  ;;  %v1327_v17 = vlaneseq }
 0x258   : > { %v1194_v3 = vld [vmem:[#allocation5 + $0x1bf8] sm:$0xff] }
 0x259   : > { %5783 = vmatpush1.bf16.msra.mxu0 %v5782_v30  ;;  %v954_v30 = vld [vmem:[#allocation5 + $0x1478] sm:$0xff] }
 0x25a   : > { %5911 = vmatpush1.bf16.msra.mxu1 %v5910_v31  ;;  %5785 = vmatprep.subr.bf16.mxu0 %v5784_v32  ;;  %v970_v31 = vld [vmem:[#allocation5 + $0x14f8] sm:$0xff]  ;;  %v5802_v32 = vpack.c.bf16 %v935_v23, %v919_v22 }
 0x25b   : > { %5913 = vmatprep.subr.bf16.mxu1 %v5912_v37  ;;  %v967_v37 = vld [vmem:[#allocation5 + $0x14e0] sm:$0xff]  ;;  %v5932_v41 = vpack.c.bf16 %v970_v31, %v954_v30  ;;  %v1082_v22 = vld [vmem:[#allocation5 + $0x1878] sm:$0xff]  ;;  %v1081_v30 = vld [vmem:[#allocation5 + $0x1870] sm:$0xff]  ;;  %v7736_v31 = vshrl.u32 %v1327_v17, 7 }
 0x25c   : > { %v1098_v23 = vld [vmem:[#allocation5 + $0x18f8] sm:$0xff]  ;;  %v1208_v17 = vld [vmem:[#allocation5 + $0x1c68] sm:$0xff] }
 0x25d   : > { %5787 = vmatpush1.bf16.msra.mxu0 %v5786_v46  ;;  %v986_v46 = vld [vmem:[#allocation5 + $0x1578] sm:$0xff] }
 0x25e   : > { %5915 = vmatpush1.bf16.msra.mxu1 %v5914_v47  ;;  %5789 = vmatprep.subr.bf16.mxu0 %v5788_v48  ;;  %v1002_v47 = vld [vmem:[#allocation5 + $0x15f8] sm:$0xff]  ;;  %v5806_v48 = vpack.c.bf16 %v967_v37, %v951_v36  ;;  %v1128_v36 = vld [vmem:[#allocation5 + $0x19e8] sm:$0xff] }
 0x25f   : > { %5917 = vmatprep.subr.bf16.mxu1 %v5916_v52  ;;  %v999_v52 = vld [vmem:[#allocation5 + $0x15e0] sm:$0xff]  ;;  %v5936_v54 = vpack.c.bf16 %v1002_v47, %v986_v46  ;;  %v1114_v37 = vld [vmem:[#allocation5 + $0x1978] sm:$0xff]  ;;  %v1113_v47 = vld [vmem:[#allocation5 + $0x1970] sm:$0xff] }
 0x260   : > { %2324 = vmatmul.mubr.f32.vlgmr.msra.gmra.mrb[6].mxu0 %v7198_v2  ;;  %v1127_v46 = vld [vmem:[#allocation5 + $0x19e0] sm:$0xff] }
 0x261   : > { %5791 = vmatpush1.bf16.msra.mxu0 %v5790_v58  ;;  %2466 = vmatmul.mubr.f32.vlgmr.msra.gmra.mrb[6].mxu1 %v7198_v2  ;;  %v1018_v58 = vld [vmem:[#allocation5 + $0x1678] sm:$0xff]  ;;  %v1033_v2 = vld [vmem:[#allocation5 + $0x16f0] sm:$0xff]  ;;  %v5826_v56 = vpack.c.bf16 %v1127_v46, %v1111_v45 }
 0x262   : > { %5919 = vmatpush1.bf16.msra.mxu1 %v5918_v59  ;;  %5793 = vmatprep.subr.bf16.mxu0 %v5792_v60  ;;  %v1034_v59 = vld [vmem:[#allocation5 + $0x16f8] sm:$0xff]  ;;  %v5810_v60 = vpack.c.bf16 %v999_v52, %v983_v51  ;;  %v1144_v51 = vld [vmem:[#allocation5 + $0x1a68] sm:$0xff]  ;;  %v1257_v46 = vld [vmem:[#allocation5 + $0x1df0] sm:$0xff] }
 0x263   : > { %5921 = vmatprep.subr.bf16.mxu1 %v5920_v63  ;;  %2394 = vmatprep.mubr.f32.mxu0 %v7199_v15  ;;  %v1031_v63 = vld [vmem:[#allocation5 + $0x16e0] sm:$0xff]  ;;  %v5940_v1 = vpack.c.bf16 %v1034_v59, %v1018_v58  ;;  %v1160_v52 = vld [vmem:[#allocation5 + $0x1ae8] sm:$0xff] }
 0x264   : > { %2536 = vmatprep.mubr.f32.mxu1 %v7199_v15  ;;  %v5814_v10 = vpack.c.bf16 %v1031_v63, %v1015_v62  ;;  %v1049_v15 = vld [vmem:[#allocation5 + $0x1770] sm:$0xff]  ;;  %v5828_v58 = vpack.c.bf16 %v1160_v52, %v1144_v51  ;;  %v1143_v59 = vld [vmem:[#allocation5 + $0x1a60] sm:$0xff]  ;;  %v1290_v51 = vld [vmem:[#allocation5 + $0x1ef8] sm:$0xff] }
 0x265   : > { %5795 = vmatpush1.bf16.msra.mxu0 %v5794_v5  ;;  %v1161_v63 = vld [vmem:[#allocation5 + $0x1af0] sm:$0xff] }
 0x266   : > { %5923 = vmatpush1.bf16.msra.mxu1 %v5922_v6  ;;  %5797 = vmatprep.subr.bf16.mxu0 %v5796_v7  ;;  %v1050_v7 = vld [vmem:[#allocation5 + $0x1778] sm:$0xff] }
 0x267   : > { %5925 = vmatprep.subr.bf16.mxu1 %v5924_v11  ;;  %v5942_v11 = vpack.c.bf16 %v1033_v2, %v1017_v24  ;;  %v5944_v18 = vpack.c.bf16 %v1066_v8, %v1050_v7  ;;  %v1176_v24 = vld [vmem:[#allocation5 + $0x1b68] sm:$0xff]  ;;  %v1178_v2 = vld [vmem:[#allocation5 + $0x1b78] sm:$0xff] }
 0x268   : > { %v5960_v14 = vpack.c.bf16 %v1194_v3, %v1178_v2  ;;  %v1303_v3 = vld [vmem:[#allocation5 + $0x1f60] sm:$0xff] }
 0x269   : > { %5799 = vmatpush1.bf16.msra.mxu0 %v5798_v19  ;;  %v1065_v19 = vld [vmem:[#allocation5 + $0x17f0] sm:$0xff] }
 0x26a   : > { %5927 = vmatpush1.bf16.msra.mxu1 %v5926_v20  ;;  %5801 = vmatprep.subr.bf16.mxu0 %v5800_v21  ;;  %v1080_v20 = vld [vmem:[#allocation5 + $0x1868] sm:$0xff] }
 0x26b   : > { %5929 = vmatprep.subr.bf16.mxu1 %v5928_v26  ;;  %v1096_v21 = vld [vmem:[#allocation5 + $0x18e8] sm:$0xff]  ;;  %v5946_v26 = vpack.c.bf16 %v1065_v19, %v1049_v15  ;;  %v1193_v15 = vld [vmem:[#allocation5 + $0x1bf0] sm:$0xff]  ;;  %v1210_v19 = vld [vmem:[#allocation5 + $0x1c78] sm:$0xff] }
 0x26c   : > { %v5820_v27 = vpack.c.bf16 %v1096_v21, %v1080_v20  ;;  %v1226_v20 = vld [vmem:[#allocation5 + $0x1cf8] sm:$0xff] }
 0x26d   : > { %5803 = vmatpush1.bf16.msra.mxu0 %v5802_v32  ;;  %v5948_v32 = vpack.c.bf16 %v1098_v23, %v1082_v22 }
 0x26e   : > { %5931 = vmatpush1.bf16.msra.mxu1 %v5930_v33  ;;  %5805 = vmatprep.subr.bf16.mxu0 %v5804_v35  ;;  %v1097_v33 = vld [vmem:[#allocation5 + $0x18f0] sm:$0xff]  ;;  %v1112_v35 = vld [vmem:[#allocation5 + $0x1968] sm:$0xff] }
 0x26f   : > { %5933 = vmatprep.subr.bf16.mxu1 %v5932_v41  ;;  %v5822_v41 = vpack.c.bf16 %v1095_v29, %v1079_v28  ;;  %v5950_v42 = vpack.c.bf16 %v1097_v33, %v1081_v30  ;;  %v5824_v44 = vpack.c.bf16 %v1128_v36, %v1112_v35  ;;  %v1225_v29 = vld [vmem:[#allocation5 + $0x1cf0] sm:$0xff]  ;;  %v1240_v30 = vld [vmem:[#allocation5 + $0x1d68] sm:$0xff]  ;;  %v1242_v33 = vld [vmem:[#allocation5 + $0x1d78] sm:$0xff] }
 0x270   : > { %v1258_v35 = vld [vmem:[#allocation5 + $0x1df8] sm:$0xff] }
 0x271   : > { %5807 = vmatpush1.bf16.msra.mxu0 %v5806_v48  ;;  %v7739_v48 = vsub.s32 1, %v7736_v31  ;;  %v5968_v45 = vpack.c.bf16 %v1258_v35, %v1242_v33 }
 0x272   : > { %5935 = vmatpush1.bf16.msra.mxu1 %v5934_v49  ;;  %5809 = vmatprep.subr.bf16.mxu0 %v5808_v50  ;;  %v5952_v49 = vpack.c.bf16 %v1130_v38, %v1114_v37  ;;  %v1129_v50 = vld [vmem:[#allocation5 + $0x19f0] sm:$0xff] }
 0x273   : > { %v7728_v0 = vpop.f32.mrb[2].mxu0  ;;  %5937 = vmatprep.subr.bf16.mxu1 %v5936_v54  ;;  %v1146_v54 = vld [vmem:[#allocation5 + $0x1a78] sm:$0xff]  ;;  %v5954_v57 = vpack.c.bf16 %v1129_v50, %v1113_v47  ;;  %v1272_v47 = vld [vmem:[#allocation5 + $0x1e68] sm:$0xff] }
 0x274   : > { %v7730_v5 = vpop.f32.mrb[2].mxu1  ;;  %v7732_v6 = vpop.f32.mrb[3].mxu0  ;;  %v5956_v62 = vpack.c.bf16 %v1162_v55, %v1146_v54  ;;  %v1274_v50 = vld [vmem:[#allocation5 + $0x1e78] sm:$0xff] }
 0x275   : > { %v7734_v9 = vpop.f32.mrb[3].mxu1  ;;  %5811 = vmatpush1.bf16.msra.mxu0 %v5810_v60  ;;  %v1159_v60 = vld [vmem:[#allocation5 + $0x1ae0] sm:$0xff] }
 0x276   : > { %5939 = vmatpush1.bf16.msra.mxu1 %v5938_v16  ;;  %5813 = vmatprep.subr.bf16.mxu0 %v5812_v61  ;;  %v1145_v16 = vld [vmem:[#allocation5 + $0x1a70] sm:$0xff]  ;;  %v1334_v61 = vrot.slane %v7741_v53, %v7739_v48  ;;  %v5830_v4 = vpack.c.bf16 %v1159_v60, %v1143_v59  ;;  %v5972_v59 = vpack.c.bf16 %v1290_v51, %v1274_v50  ;;  %v2642_v50 = vld [vmem:[#allocation8 + $0x98] sm:$0xff] }
 0x277   : > { %5941 = vmatprep.subr.bf16.mxu1 %v5940_v1  ;;  %v1192_v1 = vld [vmem:[#allocation5 + $0x1be8] sm:$0xff]  ;;  %v5958_v7 = vpack.c.bf16 %v1161_v63, %v1145_v16  ;;  %v1289_v60 = vld [vmem:[#allocation5 + $0x1ef0] sm:$0xff]  ;;  %v1322_v63 = vld [vmem:[#allocation5 + $0x1ff8] sm:$0xff] }
 0x278   : > { %v5832_v8 = vpack.c.bf16 %v1192_v1, %v1176_v24  ;;  %v7746_v13 = vadd.f32 %v7720_v40, %v1334_v61  ;;  %v5964_v40 = vpack.c.bf16 %v1226_v20, %v1210_v19  ;;  %v1304_v16 = vld [vmem:[#allocation5 + $0x1f68] sm:$0xff] }
 0x279   : > { %5815 = vmatpush1.bf16.msra.mxu0 %v5814_v10  ;;  %v1175_v10 = vld [vmem:[#allocation5 + $0x1b60] sm:$0xff]  ;;  %v1320_v61 = vld [vmem:[#allocation5 + $0x1fe8] sm:$0xff] }
 0x27a   : > { %5943 = vmatpush1.bf16.msra.mxu1 %v5942_v11  ;;  %5817 = vmatprep.subr.bf16.mxu0 %v5816_v12  ;;  %v1191_v11 = vld [vmem:[#allocation5 + $0x1be0] sm:$0xff]  ;;  %v1177_v12 = vld [vmem:[#allocation5 + $0x1b70] sm:$0xff]  ;;  %v2560_v28 = vmul.f32 0.70710677, %v7746_v13  ;;  %v5848_v2 = vpack.c.bf16 %v1320_v61, %v1304_v16  ;;  %v2544_v33 = vmul.f32 0.5, %v7746_v13  ;;  %v2646_v51 = vld [vmem:[#allocation8 + $0xb8] sm:$0xff] }
 0x27b   : > { %5945 = vmatprep.subr.bf16.mxu1 %v5944_v18  ;;  %v1224_v18 = vld [vmem:[#allocation5 + $0x1ce8] sm:$0xff]  ;;  %v5834_v21 = vpack.c.bf16 %v1191_v11, %v1175_v10  ;;  %v5962_v22 = vpack.c.bf16 %v1193_v15, %v1177_v12  ;;  %v1321_v10 = vld [vmem:[#allocation5 + $0x1ff0] sm:$0xff]  ;;  %v2624_v11 = vld [vmem:[#allocation8 + $0x8] sm:$0xff] }
 0x27c   : > { %v5836_v23 = vpack.c.bf16 %v1224_v18, %v1208_v17  ;;  %7159 = verf.f32 %v2560_v28  ;;  %v2628_v12 = vld [vmem:[#allocation8 + $0x28] sm:$0xff]  ;;  %v2630_v15 = vld [vmem:[#allocation8 + $0x38] sm:$0xff] }
 0x27d   : > { %5819 = vmatpush1.bf16.msra.mxu0 %v5818_v25  ;;  %v1207_v25 = vld [vmem:[#allocation5 + $0x1c60] sm:$0xff]  ;;  %v5980_v20 = vpack.c.bf16 %v2628_v12, %v2624_v11  ;;  %v2632_v28 = vld [vmem:[#allocation8 + $0x48] sm:$0xff]  ;;  %v2650_v61 = vld [vmem:[#allocation8 + $0xd8] sm:$0xff] }
 0x27e   : > { %5947 = vmatpush1.bf16.msra.mxu1 %v5946_v26  ;;  %5821 = vmatprep.subr.bf16.mxu0 %v5820_v27  ;;  %v1223_v26 = vld [vmem:[#allocation5 + $0x1ce0] sm:$0xff]  ;;  %v1209_v27 = vld [vmem:[#allocation5 + $0x1c70] sm:$0xff]  ;;  %v2652_v16 = vld [vmem:[#allocation8 + $0xe8] sm:$0xff] }
 0x27f   : > { %5949 = vmatprep.subr.bf16.mxu1 %v5948_v32  ;;  %v1256_v32 = vld [vmem:[#allocation5 + $0x1de8] sm:$0xff]  ;;  %v5838_v36 = vpack.c.bf16 %v1223_v26, %v1207_v25  ;;  %v5966_v37 = vpack.c.bf16 %v1225_v29, %v1209_v27  ;;  %v2625_v25 = vld [vmem:[#allocation8 + $0x10] sm:$0xff]  ;;  %v2660_v11 = vld [vmem:[#allocation8 + $0x128] sm:$0xff] }
 0x280   : > { %v5840_v38 = vpack.c.bf16 %v1256_v32, %v1240_v30  ;;  %v2629_v26 = vld [vmem:[#allocation8 + $0x30] sm:$0xff]  ;;  %v2634_v30 = vld [vmem:[#allocation8 + $0x58] sm:$0xff] }
 0x281   : > { %5823 = vmatpush1.bf16.msra.mxu0 %v5822_v41  ;;  %v1239_v41 = vld [vmem:[#allocation5 + $0x1d60] sm:$0xff]  ;;  %v2638_v32 = vld [vmem:[#allocation8 + $0x78] sm:$0xff]  ;;  %v6494_v35 = vpack.c.bf16 %v2629_v26, %v2625_v25  ;;  %v2664_v25 = vld [vmem:[#allocation8 + $0x148] sm:$0xff] }
 0x282   : > { %5951 = vmatpush1.bf16.msra.mxu1 %v5950_v42  ;;  %5825 = vmatprep.subr.bf16.mxu0 %v5824_v44  ;;  %v1255_v42 = vld [vmem:[#allocation5 + $0x1de0] sm:$0xff]  ;;  %v1241_v44 = vld [vmem:[#allocation5 + $0x1d70] sm:$0xff]  ;;  %v2658_v12 = vld [vmem:[#allocation8 + $0x118] sm:$0xff] }
 0x283   : > { %5953 = vmatprep.subr.bf16.mxu1 %v5952_v49  ;;  %v1288_v49 = vld [vmem:[#allocation5 + $0x1ee8] sm:$0xff]  ;;  %v5842_v52 = vpack.c.bf16 %v1255_v42, %v1239_v41  ;;  %v5970_v54 = vpack.c.bf16 %v1257_v46, %v1241_v44  ;;  %v2637_v42 = vld [vmem:[#allocation8 + $0x70] sm:$0xff]  ;;  %v2640_v44 = vld [vmem:[#allocation8 + $0x88] sm:$0xff] }
 0x284   : > { %v5844_v55 = vpack.c.bf16 %v1288_v49, %v1272_v47  ;;  %v7200_v46 = vld [vmem:[%s7681_s13 + $0x10] sm:$0xff]  ;;  %v6496_v49 = vpack.c.bf16 %v2638_v32, %v2634_v30  ;;  %v2668_v26 = vld [vmem:[#allocation8 + $0x168] sm:$0xff] }
 0x285   : > { %5827 = vmatpush1.bf16.msra.mxu0 %v5826_v56  ;;  %v1271_v56 = vld [vmem:[#allocation5 + $0x1e60] sm:$0xff]  ;;  %v6000_v30 = vpack.c.bf16 %v2668_v26, %v2664_v25  ;;  %v2663_v32 = vld [vmem:[#allocation8 + $0x140] sm:$0xff] }
 0x286   : > { %5955 = vmatpush1.bf16.msra.mxu1 %v5954_v57  ;;  %5829 = vmatprep.subr.bf16.mxu0 %v5828_v58  ;;  %v1287_v57 = vld [vmem:[#allocation5 + $0x1ee0] sm:$0xff]  ;;  %v1273_v58 = vld [vmem:[#allocation5 + $0x1e70] sm:$0xff]  ;;  %v7160_v17 = vpop.eup %7159 }
 0x287   : > { %5957 = vmatprep.subr.bf16.mxu1 %v5956_v62  ;;  %v1306_v62 = vld [vmem:[#allocation5 + $0x1f78] sm:$0xff]  ;;  %v5846_v24 = vpack.c.bf16 %v1287_v57, %v1271_v56  ;;  %v5974_v1 = vpack.c.bf16 %v1289_v60, %v1273_v58  ;;  %v2592_v27 = vadd.f32 1.0, %v7160_v17  ;;  %v2643_v56 = vld [vmem:[#allocation8 + $0xa0] sm:$0xff]  ;;  %v2641_v57 = vld [vmem:[#allocation8 + $0x90] sm:$0xff]  ;;  %v6500_v58 = vpack.c.bf16 %v2646_v51, %v2642_v50 }
 0x288   : > { %v2648_v60 = vld [vmem:[#allocation8 + $0xc8] sm:$0xff]  ;;  %v2675_v50 = vld [vmem:[#allocation8 + $0x1a0] sm:$0xff]  ;;  %v2673_v51 = vld [vmem:[#allocation8 + $0x190] sm:$0xff] }
 0x289   : > { %5831 = vmatpush1.bf16.msra.mxu0 %v5830_v4  ;;  %v1319_v4 = vld [vmem:[#allocation5 + $0x1fe0] sm:$0xff]  ;;  %v2608_v47 = vmul.f32 %v2592_v27, %v2544_v33  ;;  %v2666_v27 = vld [vmem:[#allocation8 + $0x158] sm:$0xff]  ;;  %v2667_v33 = vld [vmem:[#allocation8 + $0x160] sm:$0xff] }
 0x28a   : > { %5959 = vmatpush1.bf16.msra.mxu1 %v5958_v7  ;;  %5833 = vmatprep.subr.bf16.mxu0 %v5832_v8  ;;  %v1305_v7 = vld [vmem:[#allocation5 + $0x1f70] sm:$0xff]  ;;  %v5976_v8 = vpack.c.bf16 %v1322_v63, %v1306_v62  ;;  %v5850_v18 = vpack.c.bf16 %v1319_v4, %v1303_v3  ;;  %v2654_v62 = vld [vmem:[#allocation8 + $0xf8] sm:$0xff]  ;;  %v2649_v4 = vld [vmem:[#allocation8 + $0xd0] sm:$0xff] }
 0x28b   : > { %5961 = vmatprep.subr.bf16.mxu1 %v5960_v14  ;;  %v2626_v14 = vld [vmem:[#allocation8 + $0x18] sm:$0xff]  ;;  %v5978_v19 = vpack.c.bf16 %v1321_v10, %v1305_v7  ;;  %v2651_v3 = vld [vmem:[#allocation8 + $0xe0] sm:$0xff]  ;;  %v6504_v7 = vpack.c.bf16 %v2654_v62, %v2650_v61  ;;  %v2656_v10 = vld [vmem:[#allocation8 + $0x108] sm:$0xff] }
 0x28c   : > { %v2683_v61 = vld [vmem:[#allocation8 + $0x1e0] sm:$0xff]  ;;  %v2681_v62 = vld [vmem:[#allocation8 + $0x1d0] sm:$0xff] }
 0x28d   : > { %5835 = vmatpush1.bf16.msra.mxu0 %v5834_v21  ;;  %v2623_v21 = vld [vmem:[#allocation8] sm:$0xff] }
 0x28e   : > { %5963 = vmatpush1.bf16.msra.mxu1 %v5962_v22  ;;  %5837 = vmatprep.subr.bf16.mxu0 %v5836_v23  ;;  %v2627_v22 = vld [vmem:[#allocation8 + $0x20] sm:$0xff]  ;;  %v6492_v23 = vpack.c.bf16 %v2630_v15, %v2626_v14  ;;  %v2662_v14 = vld [vmem:[#allocation8 + $0x138] sm:$0xff] }
 0x28f   : > { %5965 = vmatprep.subr.bf16.mxu1 %v5964_v40  ;;  %v2636_v40 = vld [vmem:[#allocation8 + $0x68] sm:$0xff]  ;;  %v5982_v29 = vpack.c.bf16 %v2627_v22, %v2623_v21  ;;  %v2657_v21 = vld [vmem:[#allocation8 + $0x110] sm:$0xff]  ;;  %v6508_v22 = vpack.c.bf16 %v2662_v14, %v2658_v12  ;;  %v2691_v12 = vld [vmem:[#allocation8 + $0x220] sm:$0xff] }
 0x290   : > { %v5984_v41 = vpack.c.bf16 %v2636_v40, %v2632_v28  ;;  %v2670_v28 = vld [vmem:[#allocation8 + $0x178] sm:$0xff]  ;;  %v2689_v14 = vld [vmem:[#allocation8 + $0x210] sm:$0xff] }
 0x291   : > { %5839 = vmatpush1.bf16.msra.mxu0 %v5838_v36  ;;  %v2631_v36 = vld [vmem:[#allocation8 + $0x40] sm:$0xff] }
 0x292   : > { %5967 = vmatpush1.bf16.msra.mxu1 %v5966_v37  ;;  %5841 = vmatprep.subr.bf16.mxu0 %v5840_v38  ;;  %v2635_v37 = vld [vmem:[#allocation8 + $0x60] sm:$0xff]  ;;  %v2633_v38 = vld [vmem:[#allocation8 + $0x50] sm:$0xff] }
 0x293   : > { %5969 = vmatprep.subr.bf16.mxu1 %v5968_v45  ;;  %v2644_v45 = vld [vmem:[#allocation8 + $0xa8] sm:$0xff]  ;;  %v5986_v13 = vpack.c.bf16 %v2635_v37, %v2631_v36  ;;  %v6512_v36 = vpack.c.bf16 %v2670_v28, %v2666_v27  ;;  %v2669_v37 = vld [vmem:[#allocation8 + $0x170] sm:$0xff]  ;;  %v2695_v27 = vld [vmem:[#allocation8 + $0x240] sm:$0xff] }
 0x294   : > { %v2699_v28 = vld [vmem:[#allocation8 + $0x260] sm:$0xff] }
 0x295   : > { %5843 = vmatpush1.bf16.msra.mxu0 %v5842_v52  ;;  %v6498_v52 = vpack.c.bf16 %v2637_v42, %v2633_v38  ;;  %v2672_v38 = vld [vmem:[#allocation8 + $0x188] sm:$0xff]  ;;  %v2674_v42 = vld [vmem:[#allocation8 + $0x198] sm:$0xff] }
 0x296   : > { %5971 = vmatpush1.bf16.msra.mxu1 %v5970_v54  ;;  %5845 = vmatprep.subr.bf16.mxu0 %v5844_v55  ;;  %v5988_v54 = vpack.c.bf16 %v2644_v45, %v2640_v44  ;;  %v2639_v55 = vld [vmem:[#allocation8 + $0x80] sm:$0xff]  ;;  %v2678_v44 = vld [vmem:[#allocation8 + $0x1b8] sm:$0xff]  ;;  %v6002_v45 = vpack.c.bf16 %v2667_v33, %v2663_v32  ;;  %v2701_v32 = vld [vmem:[#allocation8 + $0x270] sm:$0xff] }
 0x297   : > { %5973 = vmatprep.subr.bf16.mxu1 %v5972_v59  ;;  %v2645_v59 = vld [vmem:[#allocation8 + $0xb0] sm:$0xff]  ;;  %v5990_v63 = vpack.c.bf16 %v2643_v56, %v2639_v55  ;;  %v2684_v55 = vld [vmem:[#allocation8 + $0x1e8] sm:$0xff]  ;;  %v2682_v56 = vld [vmem:[#allocation8 + $0x1d8] sm:$0xff] }
 0x298   : > { %v2704_v33 = vld [vmem:[#allocation8 + $0x288] sm:$0xff] }
 0x299   : > { %5847 = vmatpush1.bf16.msra.mxu0 %v5846_v24  ;;  %v6502_v24 = vpack.c.bf16 %v2645_v59, %v2641_v57  ;;  %v2686_v57 = vld [vmem:[#allocation8 + $0x1f8] sm:$0xff] }
 0x29a   : > { %5975 = vmatpush1.bf16.msra.mxu1 %v5974_v1  ;;  %5849 = vmatprep.subr.bf16.mxu0 %v5848_v2  ;;  %v5992_v1 = vpack.c.bf16 %v2652_v16, %v2648_v60  ;;  %v2647_v2 = vld [vmem:[#allocation8 + $0xc0] sm:$0xff] }
 0x29b   : > { %5977 = vmatprep.subr.bf16.mxu1 %v5976_v8  ;;  %v2653_v8 = vld [vmem:[#allocation8 + $0xf0] sm:$0xff]  ;;  %v5994_v15 = vpack.c.bf16 %v2651_v3, %v2647_v2  ;;  %v2679_v16 = vld [vmem:[#allocation8 + $0x1c0] sm:$0xff]  ;;  %v2692_v2 = vld [vmem:[#allocation8 + $0x228] sm:$0xff] }
 0x29c   : > { %v6506_v17 = vpack.c.bf16 %v2653_v8, %v2649_v4  ;;  %v2690_v3 = vld [vmem:[#allocation8 + $0x218] sm:$0xff] }
 0x29d   : > { %5851 = vmatpush1.bf16.msra.mxu0 %v5850_v18  ;;  %v5996_v18 = vpack.c.bf16 %v2660_v11, %v2656_v10  ;;  %v2694_v4 = vld [vmem:[#allocation8 + $0x238] sm:$0xff]  ;;  %v2687_v11 = vld [vmem:[#allocation8 + $0x200] sm:$0xff] }
 0x29e   : > { %5979 = vmatpush1.bf16.msra.mxu1 %v5978_v19  ;;  %5981 = vmatprep.subr.bf16.mxu0 %v5980_v20  ;;  %v2655_v19 = vld [vmem:[#allocation8 + $0x100] sm:$0xff] }
 0x29f   : > { %6493 = vmatprep.subr.bf16.mxu1 %v6492_v23  ;;  %v2659_v20 = vld [vmem:[#allocation8 + $0x120] sm:$0xff]  ;;  %v2661_v23 = vld [vmem:[#allocation8 + $0x130] sm:$0xff] }
 0x2a0   : > { %2395 = vmatmul.mubr.f32.vlgmr.msra.gmra.mrb[6].mxu0 %v7200_v46  ;;  %v5998_v40 = vpack.c.bf16 %v2659_v20, %v2655_v19  ;;  %v2700_v19 = vld [vmem:[#allocation8 + $0x268] sm:$0xff]  ;;  %v2698_v20 = vld [vmem:[#allocation8 + $0x258] sm:$0xff] }
 0x2a1   : > { %2537 = vmatmul.mubr.f32.vlgmr.msra.gmra.mrb[6].mxu1 %v7200_v46  ;;  %5983 = vmatpush1.bf16.msra.mxu0 %v5982_v29  ;;  %v6510_v29 = vpack.c.bf16 %v2661_v23, %v2657_v21  ;;  %v2702_v21 = vld [vmem:[#allocation8 + $0x278] sm:$0xff]  ;;  %v6014_v23 = vpack.c.bf16 %v2691_v12, %v2687_v11  ;;  %v2723_v11 = vld [vmem:[#allocation8 + $0x320] sm:$0xff]  ;;  %v2721_v12 = vld [vmem:[#allocation8 + $0x310] sm:$0xff] }
 0x2a2   : > { %3733 = vmatprep.mubr.f32.mxu0 %v2608_v47  ;;  %6495 = vmatpush1.bf16.msra.mxu1 %v6494_v35  ;;  %v2665_v35 = vld [vmem:[#allocation8 + $0x150] sm:$0xff] }
 0x2a3   : > { %4301 = vmatprep.mubr.f32.mxu1 %v2608_v47  ;;  %5985 = vmatprep.subr.bf16.mxu0 %v5984_v41  ;;  %v2676_v41 = vld [vmem:[#allocation8 + $0x1a8] sm:$0xff]  ;;  %v6514_v46 = vpack.c.bf16 %v2669_v37, %v2665_v35  ;;  %v2710_v37 = vld [vmem:[#allocation8 + $0x2b8] sm:$0xff] }
 0x2a4   : > { %6497 = vmatprep.subr.bf16.mxu1 %v6496_v49  ;;  %v6004_v47 = vpack.c.bf16 %v2676_v41, %v2672_v38  ;;  %v2671_v49 = vld [vmem:[#allocation8 + $0x180] sm:$0xff]  ;;  %v2708_v35 = vld [vmem:[#allocation8 + $0x2a8] sm:$0xff]  ;;  %v6018_v41 = vpack.c.bf16 %v2699_v28, %v2695_v27  ;;  %v2729_v28 = vld [vmem:[#allocation8 + $0x350] sm:$0xff] }
 0x2a5   : > { %5987 = vmatpush1.bf16.msra.mxu0 %v5986_v13  ;;  %v6516_v13 = vpack.c.bf16 %v2678_v44, %v2674_v42  ;;  %v6020_v44 = vpack.c.bf16 %v2708_v35, %v2704_v33  ;;  %v2731_v27 = vld [vmem:[#allocation8 + $0x360] sm:$0xff]  ;;  %v2740_v33 = vld [vmem:[#allocation8 + $0x3a8] sm:$0xff]  ;;  %v2738_v35 = vld [vmem:[#allocation8 + $0x398] sm:$0xff] }
 0x2a6   : > { %6499 = vmatpush1.bf16.msra.mxu1 %v6498_v52  ;;  %5989 = vmatprep.subr.bf16.mxu0 %v5988_v54  ;;  %v2677_v52 = vld [vmem:[#allocation8 + $0x1b0] sm:$0xff]  ;;  %v2680_v54 = vld [vmem:[#allocation8 + $0x1c8] sm:$0xff] }
 0x2a7   : > { %6501 = vmatprep.subr.bf16.mxu1 %v6500_v58  ;;  %v6006_v58 = vpack.c.bf16 %v2675_v50, %v2671_v49  ;;  %v6518_v59 = vpack.c.bf16 %v2677_v52, %v2673_v51  ;;  %v6008_v60 = vpack.c.bf16 %v2684_v55, %v2680_v54  ;;  %v2709_v51 = vld [vmem:[#allocation8 + $0x2b0] sm:$0xff]  ;;  %v2716_v52 = vld [vmem:[#allocation8 + $0x2e8] sm:$0xff]  ;;  %v2714_v54 = vld [vmem:[#allocation8 + $0x2d8] sm:$0xff] }
 0x2a8   : > { %v2718_v55 = vld [vmem:[#allocation8 + $0x2f8] sm:$0xff] }
 0x2a9   : > { %5991 = vmatpush1.bf16.msra.mxu0 %v5990_v63  ;;  %v6520_v63 = vpack.c.bf16 %v2686_v57, %v2682_v56 }
 0x2aa   : > { %6503 = vmatpush1.bf16.msra.mxu1 %v6502_v24  ;;  %5993 = vmatprep.subr.bf16.mxu0 %v5992_v1  ;;  %v2685_v24 = vld [vmem:[#allocation8 + $0x1f0] sm:$0xff]  ;;  %v2688_v1 = vld [vmem:[#allocation8 + $0x208] sm:$0xff] }
 0x2ab   : > { %6505 = vmatprep.subr.bf16.mxu1 %v6504_v7  ;;  %v6010_v7 = vpack.c.bf16 %v2683_v61, %v2679_v16  ;;  %v6522_v8 = vpack.c.bf16 %v2685_v24, %v2681_v62  ;;  %v6012_v10 = vpack.c.bf16 %v2692_v2, %v2688_v1  ;;  %v2715_v16 = vld [vmem:[#allocation8 + $0x2e0] sm:$0xff]  ;;  %v2713_v61 = vld [vmem:[#allocation8 + $0x2d0] sm:$0xff]  ;;  %v6536_v62 = vpack.c.bf16 %v2718_v55, %v2714_v54  ;;  %v2720_v24 = vld [vmem:[#allocation8 + $0x308] sm:$0xff] }
 0x2ac   : > { %v2724_v1 = vld [vmem:[#allocation8 + $0x328] sm:$0xff]  ;;  %v2722_v2 = vld [vmem:[#allocation8 + $0x318] sm:$0xff] }
 0x2ad   : > { %5995 = vmatpush1.bf16.msra.mxu0 %v5994_v15  ;;  %v6524_v15 = vpack.c.bf16 %v2694_v4, %v2690_v3 }
 0x2ae   : > { %6507 = vmatpush1.bf16.msra.mxu1 %v6506_v17  ;;  %5997 = vmatprep.subr.bf16.mxu0 %v5996_v18  ;;  %v2693_v17 = vld [vmem:[#allocation8 + $0x230] sm:$0xff]  ;;  %v2696_v18 = vld [vmem:[#allocation8 + $0x248] sm:$0xff] }
 0x2af   : > { %6509 = vmatprep.subr.bf16.mxu1 %v6508_v22  ;;  %v7752_v22 = vsub.s32 0, %v7736_v31  ;;  %v6526_v25 = vpack.c.bf16 %v2693_v17, %v2689_v14  ;;  %v6016_v26 = vpack.c.bf16 %v2700_v19, %v2696_v18  ;;  %v2728_v17 = vld [vmem:[#allocation8 + $0x348] sm:$0xff]  ;;  %v2730_v19 = vld [vmem:[#allocation8 + $0x358] sm:$0xff] }
 0x2b0   : > { %v2732_v18 = vld [vmem:[#allocation8 + $0x368] sm:$0xff] }
 0x2b1   : > { %5999 = vmatpush1.bf16.msra.mxu0 %v5998_v40  ;;  %v2697_v40 = vld [vmem:[#allocation8 + $0x250] sm:$0xff]  ;;  %v1330_v38 = vrot.slane %v7741_v53, %v7752_v22 }
 0x2b2   : > { %6511 = vmatpush1.bf16.msra.mxu1 %v6510_v29  ;;  %6001 = vmatprep.subr.bf16.mxu0 %v6000_v30  ;;  %v7755_v29 = vsub.s32 3, %v7736_v31  ;;  %v6528_v30 = vpack.c.bf16 %v2702_v21, %v2698_v20  ;;  %v6530_v42 = vpack.c.bf16 %v2701_v32, %v2697_v40  ;;  %v2734_v20 = vld [vmem:[#allocation8 + $0x378] sm:$0xff]  ;;  %v2736_v32 = vld [vmem:[#allocation8 + $0x388] sm:$0xff] }
 0x2b3   : > { %6513 = vmatprep.subr.bf16.mxu1 %v6512_v36  ;;  %v2706_v36 = vld [vmem:[#allocation8 + $0x298] sm:$0xff]  ;;  %v7762_v56 = vadd.f32 %v7716_v34, %v1330_v38  ;;  %v6544_v40 = vpack.c.bf16 %v2734_v20, %v2730_v19 }
 0x2b4   : > { %v1342_v49 = vrot.slane %v7741_v53, %v7755_v29  ;;  %v6532_v50 = vpack.c.bf16 %v2710_v37, %v2706_v36  ;;  %v2726_v34 = vld [vmem:[#allocation8 + $0x338] sm:$0xff] }
 0x2b5   : > { %6003 = vmatpush1.bf16.msra.mxu0 %v6002_v45  ;;  %v2703_v45 = vld [vmem:[#allocation8 + $0x280] sm:$0xff]  ;;  %v2559_v3 = vmul.f32 0.70710677, %v7762_v56  ;;  %v6540_v14 = vpack.c.bf16 %v2726_v34, %v2722_v2  ;;  %v2742_v36 = vld [vmem:[#allocation8 + $0x3b8] sm:$0xff] }
 0x2b6   : > { %6515 = vmatpush1.bf16.msra.mxu1 %v6514_v46  ;;  %6005 = vmatprep.subr.bf16.mxu0 %v6004_v47  ;;  %v2707_v46 = vld [vmem:[#allocation8 + $0x2a0] sm:$0xff]  ;;  %v2705_v47 = vld [vmem:[#allocation8 + $0x290] sm:$0xff]  ;;  %v7765_v53 = vadd.f32 %v7722_v43, %v1342_v49  ;;  %v2744_v49 = vld [vmem:[#allocation8 + $0x3c8] sm:$0xff] }
 0x2b7   : > { %6517 = vmatprep.subr.bf16.mxu1 %v6516_v13  ;;  %v2712_v13 = vld [vmem:[#allocation8 + $0x2c8] sm:$0xff]  ;;  %v6022_v57 = vpack.c.bf16 %v2707_v46, %v2703_v45  ;;  %7161 = verf.f32 %v2559_v3  ;;  %v2737_v45 = vld [vmem:[#allocation8 + $0x390] sm:$0xff]  ;;  %v6548_v46 = vpack.c.bf16 %v2742_v36, %v2738_v35  ;;  %v2762_v20 = vld [vmem:[#allocation8 + $0x458] sm:$0xff] }
 0x2b8   : > { %v2562_v43 = vmul.f32 0.70710677, %v7765_v53 }
 0x2b9   : > { %6007 = vmatpush1.bf16.msra.mxu0 %v6006_v58  ;;  %v6534_v58 = vpack.c.bf16 %v2709_v51, %v2705_v47  ;;  %v2741_v47 = vld [vmem:[#allocation8 + $0x3b0] sm:$0xff]  ;;  %v2746_v51 = vld [vmem:[#allocation8 + $0x3d8] sm:$0xff] }
 0x2ba   : > { %6519 = vmatpush1.bf16.msra.mxu1 %v6518_v59  ;;  %6009 = vmatprep.subr.bf16.mxu0 %v6008_v60  ;;  %v6024_v59 = vpack.c.bf16 %v2716_v52, %v2712_v13  ;;  %v2711_v60 = vld [vmem:[#allocation8 + $0x2c0] sm:$0xff]  ;;  %7163 = verf.f32 %v2562_v43  ;;  %v2750_v13 = vld [vmem:[#allocation8 + $0x3f8] sm:$0xff]  ;;  %v6550_v54 = vpack.c.bf16 %v2741_v47, %v2737_v45  ;;  %v2757_v43 = vld [vmem:[#allocation8 + $0x430] sm:$0xff] }
 0x2bb   : > { %6521 = vmatprep.subr.bf16.mxu1 %v6520_v63  ;;  %v2717_v63 = vld [vmem:[#allocation8 + $0x2f0] sm:$0xff]  ;;  %v6026_v4 = vpack.c.bf16 %v2715_v16, %v2711_v60  ;;  %v6552_v16 = vpack.c.bf16 %v2750_v13, %v2746_v51  ;;  %v2771_v45 = vld [vmem:[#allocation8 + $0x4a0] sm:$0xff]  ;;  %v2780_v51 = vld [vmem:[#allocation8 + $0x4e8] sm:$0xff] }
 0x2bc   : > { %v2778_v13 = vld [vmem:[#allocation8 + $0x4d8] sm:$0xff] }
 0x2bd   : > { %6011 = vmatpush1.bf16.msra.mxu0 %v6010_v7  ;;  %v6538_v7 = vpack.c.bf16 %v2717_v63, %v2713_v61  ;;  %v2749_v61 = vld [vmem:[#allocation8 + $0x3f0] sm:$0xff]  ;;  %v2756_v63 = vld [vmem:[#allocation8 + $0x428] sm:$0xff] }
 0x2be   : > { %6523 = vmatpush1.bf16.msra.mxu1 %v6522_v8  ;;  %6013 = vmatprep.subr.bf16.mxu0 %v6012_v10  ;;  %v6028_v8 = vpack.c.bf16 %v2724_v1, %v2720_v24  ;;  %v2719_v10 = vld [vmem:[#allocation8 + $0x300] sm:$0xff]  ;;  %v2754_v24 = vld [vmem:[#allocation8 + $0x418] sm:$0xff] }
 0x2bf   : > { %6525 = vmatprep.subr.bf16.mxu1 %v6524_v15  ;;  %v2725_v15 = vld [vmem:[#allocation8 + $0x330] sm:$0xff]  ;;  %v6030_v21 = vpack.c.bf16 %v2723_v11, %v2719_v10  ;;  %v2758_v1 = vld [vmem:[#allocation8 + $0x438] sm:$0xff]  ;;  %v2755_v10 = vld [vmem:[#allocation8 + $0x420] sm:$0xff] }
 0x2c0   : > { %v6556_v11 = vpack.c.bf16 %v2758_v1, %v2754_v24  ;;  %v2786_v24 = vld [vmem:[#allocation8 + $0x518] sm:$0xff] }
 0x2c1   : > { %6015 = vmatpush1.bf16.msra.mxu0 %v6014_v23  ;;  %v6542_v23 = vpack.c.bf16 %v2725_v15, %v2721_v12  ;;  %v7162_v60 = vpop.eup %7161  ;;  %v2753_v12 = vld [vmem:[#allocation8 + $0x410] sm:$0xff]  ;;  %v2790_v1 = vld [vmem:[#allocation8 + $0x538] sm:$0xff] }
 0x2c2   : > { %6527 = vmatpush1.bf16.msra.mxu1 %v6526_v25  ;;  %6017 = vmatprep.subr.bf16.mxu0 %v6016_v26  ;;  %v6032_v25 = vpack.c.bf16 %v2732_v18, %v2728_v17  ;;  %v2727_v26 = vld [vmem:[#allocation8 + $0x340] sm:$0xff]  ;;  %v2591_v3 = vadd.f32 1.0, %v7162_v60  ;;  %v2760_v17 = vld [vmem:[#allocation8 + $0x448] sm:$0xff]  ;;  %v2777_v60 = vld [vmem:[#allocation8 + $0x4d0] sm:$0xff] }
 0x2c3   : > { %6529 = vmatprep.subr.bf16.mxu1 %v6528_v30  ;;  %v2733_v30 = vld [vmem:[#allocation8 + $0x370] sm:$0xff]  ;;  %v6034_v37 = vpack.c.bf16 %v2731_v27, %v2727_v26  ;;  %v2764_v18 = vld [vmem:[#allocation8 + $0x468] sm:$0xff]  ;;  %v6558_v26 = vpack.c.bf16 %v2757_v43, %v2753_v12  ;;  %v2759_v27 = vld [vmem:[#allocation8 + $0x440] sm:$0xff] }
 0x2c4   : > { %v6546_v38 = vpack.c.bf16 %v2733_v30, %v2729_v28  ;;  %v7164_v2 = vpop.eup %7163  ;;  %v2763_v28 = vld [vmem:[#allocation8 + $0x460] sm:$0xff]  ;;  %v6048_v30 = vpack.c.bf16 %v2764_v18, %v2760_v17  ;;  %v2792_v12 = vld [vmem:[#allocation8 + $0x548] sm:$0xff] }
 0x2c5   : > { %6019 = vmatpush1.bf16.msra.mxu0 %v6018_v41  ;;  %v6036_v41 = vpack.c.bf16 %v2740_v33, %v2736_v32  ;;  %v2594_v15 = vadd.f32 1.0, %v7164_v2  ;;  %v2765_v32 = vld [vmem:[#allocation8 + $0x470] sm:$0xff]  ;;  %v2772_v33 = vld [vmem:[#allocation8 + $0x4a8] sm:$0xff] }
 0x2c6   : > { %6531 = vmatpush1.bf16.msra.mxu1 %v6530_v42  ;;  %6021 = vmatprep.subr.bf16.mxu0 %v6020_v44  ;;  %v2735_v42 = vld [vmem:[#allocation8 + $0x380] sm:$0xff]  ;;  %v2796_v43 = vld [vmem:[#allocation8 + $0x568] sm:$0xff] }
 0x2c7   : > { %6533 = vmatprep.subr.bf16.mxu1 %v6532_v50  ;;  %v2739_v44 = vld [vmem:[#allocation8 + $0x3a0] sm:$0xff]  ;;  %v2748_v50 = vld [vmem:[#allocation8 + $0x3e8] sm:$0xff] }
 0x2c8   : > { %v6038_v52 = vpack.c.bf16 %v2739_v44, %v2735_v42  ;;  %v6040_v55 = vpack.c.bf16 %v2748_v50, %v2744_v49  ;;  %v2767_v44 = vld [vmem:[#allocation8 + $0x480] sm:$0xff]  ;;  %v2773_v49 = vld [vmem:[#allocation8 + $0x4b0] sm:$0xff]  ;;  %v2776_v50 = vld [vmem:[#allocation8 + $0x4c8] sm:$0xff] }
 0x2c9   : > { %6023 = vmatpush1.bf16.msra.mxu0 %v6022_v57  ;;  %v2743_v57 = vld [vmem:[#allocation8 + $0x3c0] sm:$0xff] }
 0x2ca   : > { %6535 = vmatpush1.bf16.msra.mxu1 %v6534_v58  ;;  %6025 = vmatprep.subr.bf16.mxu0 %v6024_v59  ;;  %v2747_v58 = vld [vmem:[#allocation8 + $0x3e0] sm:$0xff]  ;;  %v2745_v59 = vld [vmem:[#allocation8 + $0x3d0] sm:$0xff] }
 0x2cb   : > { %6537 = vmatprep.subr.bf16.mxu1 %v6536_v62  ;;  %v2752_v62 = vld [vmem:[#allocation8 + $0x408] sm:$0xff]  ;;  %v6042_v34 = vpack.c.bf16 %v2747_v58, %v2743_v57  ;;  %v6056_v57 = vpack.c.bf16 %v2780_v51, %v2776_v50  ;;  %v2775_v58 = vld [vmem:[#allocation8 + $0x4c0] sm:$0xff] }
 0x2cd   : > { %6027 = vmatpush1.bf16.msra.mxu0 %v6026_v4  ;;  %v6554_v4 = vpack.c.bf16 %v2749_v61, %v2745_v59  ;;  %v2779_v59 = vld [vmem:[#allocation8 + $0x4e0] sm:$0xff]  ;;  %v2781_v61 = vld [vmem:[#allocation8 + $0x4f0] sm:$0xff] }
 0x2ce   : > { %6539 = vmatpush1.bf16.msra.mxu1 %v6538_v7  ;;  %6029 = vmatprep.subr.bf16.mxu0 %v6028_v8  ;;  %v6044_v7 = vpack.c.bf16 %v2756_v63, %v2752_v62  ;;  %v2751_v8 = vld [vmem:[#allocation8 + $0x400] sm:$0xff]  ;;  %v2784_v62 = vld [vmem:[#allocation8 + $0x508] sm:$0xff]  ;;  %v6058_v2 = vpack.c.bf16 %v2779_v59, %v2775_v58  ;;  %v2813_v59 = vld [vmem:[#allocation8 + $0x5f0] sm:$0xff] }
 0x2cf   : > { %6541 = vmatprep.subr.bf16.mxu1 %v6540_v14  ;;  %v2543_v14 = vmul.f32 0.5, %v7762_v56  ;;  %v6046_v19 = vpack.c.bf16 %v2755_v10, %v2751_v8  ;;  %v2768_v56 = vld [vmem:[#allocation8 + $0x488] sm:$0xff]  ;;  %v2785_v8 = vld [vmem:[#allocation8 + $0x510] sm:$0xff]  ;;  %v6572_v10 = vpack.c.bf16 %v2790_v1, %v2786_v24 }
 0x2d0   : > { %v6052_v42 = vpack.c.bf16 %v2772_v33, %v2768_v56  ;;  %v2788_v63 = vld [vmem:[#allocation8 + $0x528] sm:$0xff] }
 0x2d1   : > { %6031 = vmatpush1.bf16.msra.mxu0 %v6030_v21  ;;  %v2766_v21 = vld [vmem:[#allocation8 + $0x478] sm:$0xff] }
 0x2d2   : > { %6543 = vmatpush1.bf16.msra.mxu1 %v6542_v23  ;;  %6033 = vmatprep.subr.bf16.mxu0 %v6032_v25  ;;  %v2607_v23 = vmul.f32 %v2591_v3, %v2543_v14  ;;  %v2546_v25 = vmul.f32 0.5, %v7765_v53  ;;  %v6560_v36 = vpack.c.bf16 %v2766_v21, %v2762_v20  ;;  %v6060_v3 = vpack.c.bf16 %v2788_v63, %v2784_v62  ;;  %v2794_v14 = vld [vmem:[#allocation8 + $0x558] sm:$0xff]  ;;  %v2791_v20 = vld [vmem:[#allocation8 + $0x540] sm:$0xff] }
 0x2d3   : > { %6545 = vmatprep.subr.bf16.mxu1 %v6544_v40  ;;  %v2761_v40 = vld [vmem:[#allocation8 + $0x450] sm:$0xff]  ;;  %v2795_v21 = vld [vmem:[#allocation8 + $0x560] sm:$0xff]  ;;  %v2822_v62 = vld [vmem:[#allocation8 + $0x638] sm:$0xff] }
 0x2d4   : > { %v2610_v35 = vmul.f32 %v2594_v15, %v2546_v25  ;;  %v6562_v53 = vpack.c.bf16 %v2765_v32, %v2761_v40  ;;  %v2798_v15 = vld [vmem:[#allocation8 + $0x578] sm:$0xff]  ;;  %v6066_v32 = vpack.c.bf16 %v2795_v21, %v2791_v20  ;;  %v2825_v20 = vld [vmem:[#allocation8 + $0x650] sm:$0xff]  ;;  %v1349_v21 = vsub.s32 5, %v7736_v31 }
 0x2d5   : > { %6035 = vmatpush1.bf16.msra.mxu0 %v6034_v37  ;;  %v2770_v37 = vld [vmem:[#allocation8 + $0x498] sm:$0xff]  ;;  %v6576_v25 = vpack.c.bf16 %v2798_v15, %v2794_v14 }
 0x2d6   : > { %6547 = vmatpush1.bf16.msra.mxu1 %v6546_v38  ;;  %6037 = vmatprep.subr.bf16.mxu0 %v6036_v41  ;;  %v2774_v38 = vld [vmem:[#allocation8 + $0x4b8] sm:$0xff]  ;;  %v6050_v41 = vpack.c.bf16 %v2763_v28, %v2759_v27  ;;  %v2800_v27 = vld [vmem:[#allocation8 + $0x588] sm:$0xff] }
 0x2d7   : > { %6549 = vmatprep.subr.bf16.mxu1 %v6548_v46  ;;  %v2769_v46 = vld [vmem:[#allocation8 + $0x490] sm:$0xff]  ;;  %v6564_v47 = vpack.c.bf16 %v2774_v38, %v2770_v37  ;;  %v2804_v28 = vld [vmem:[#allocation8 + $0x5a8] sm:$0xff]  ;;  %v2802_v40 = vld [vmem:[#allocation8 + $0x598] sm:$0xff] }
 0x2d8   : > { %v6068_v33 = vpack.c.bf16 %v2804_v28, %v2800_v27  ;;  %v2801_v37 = vld [vmem:[#allocation8 + $0x590] sm:$0xff]  ;;  %v2836_v27 = vld [vmem:[#allocation8 + $0x6a8] sm:$0xff]  ;;  %v2834_v28 = vld [vmem:[#allocation8 + $0x698] sm:$0xff] }
 0x2d9   : > { %6039 = vmatpush1.bf16.msra.mxu0 %v6038_v52  ;;  %v2782_v52 = vld [vmem:[#allocation8 + $0x4f8] sm:$0xff] }
 0x2da   : > { %6551 = vmatpush1.bf16.msra.mxu1 %v6550_v54  ;;  %6041 = vmatprep.subr.bf16.mxu0 %v6040_v55  ;;  %v6054_v54 = vpack.c.bf16 %v2771_v45, %v2767_v44  ;;  %v6566_v55 = vpack.c.bf16 %v2773_v49, %v2769_v46  ;;  %v2812_v44 = vld [vmem:[#allocation8 + $0x5e8] sm:$0xff]  ;;  %v2814_v49 = vld [vmem:[#allocation8 + $0x5f8] sm:$0xff] }
 0x2db   : > { %6553 = vmatprep.subr.bf16.mxu1 %v6552_v16  ;;  %v6568_v16 = vpack.c.bf16 %v2782_v52, %v2778_v13 }
 0x2dd   : > { %6043 = vmatpush1.bf16.msra.mxu0 %v6042_v34  ;;  %v6570_v34 = vpack.c.bf16 %v2781_v61, %v2777_v60  ;;  %v2816_v60 = vld [vmem:[#allocation8 + $0x608] sm:$0xff]  ;;  %v2818_v61 = vld [vmem:[#allocation8 + $0x618] sm:$0xff] }
 0x2de   : > { %6555 = vmatpush1.bf16.msra.mxu1 %v6554_v4  ;;  %6045 = vmatprep.subr.bf16.mxu0 %v6044_v7  ;;  %v2783_v4 = vld [vmem:[#allocation8 + $0x500] sm:$0xff] }
 0x2df   : > { %6557 = vmatprep.subr.bf16.mxu1 %v6556_v11  ;;  %v2787_v7 = vld [vmem:[#allocation8 + $0x520] sm:$0xff]  ;;  %v2789_v11 = vld [vmem:[#allocation8 + $0x530] sm:$0xff] }
 0x2e0   : > { %3734 = vmatmul.mubr.f32.vlgmr.msra.gmra.mrb[8].mxu0 %v2607_v23  ;;  %v6062_v17 = vpack.c.bf16 %v2787_v7, %v2783_v4  ;;  %v6574_v18 = vpack.c.bf16 %v2789_v11, %v2785_v8  ;;  %v6588_v4 = vpack.c.bf16 %v2822_v62, %v2818_v61  ;;  %v2821_v7 = vld [vmem:[#allocation8 + $0x630] sm:$0xff]  ;;  %v2824_v8 = vld [vmem:[#allocation8 + $0x648] sm:$0xff]  ;;  %v2826_v11 = vld [vmem:[#allocation8 + $0x658] sm:$0xff] }
 0x2e1   : > { %4302 = vmatmul.mubr.f32.vlgmr.msra.gmra.mrb[8].mxu1 %v2607_v23  ;;  %6047 = vmatpush1.bf16.msra.mxu0 %v6046_v19  ;;  %v6064_v19 = vpack.c.bf16 %v2796_v43, %v2792_v12  ;;  %v2793_v23 = vld [vmem:[#allocation8 + $0x550] sm:$0xff]  ;;  %v2830_v12 = vld [vmem:[#allocation8 + $0x678] sm:$0xff]  ;;  %v7780_v43 = vsub.s32 2, %v7736_v31 }
 0x2e2   : > { %3804 = vmatprep.mubr.f32.mxu0 %v2610_v35  ;;  %6559 = vmatpush1.bf16.msra.mxu1 %v6558_v26  ;;  %v2797_v26 = vld [vmem:[#allocation8 + $0x570] sm:$0xff] }
 0x2e3   : > { %4372 = vmatprep.mubr.f32.mxu1 %v2610_v35  ;;  %6049 = vmatprep.subr.bf16.mxu0 %v6048_v30  ;;  %v2806_v30 = vld [vmem:[#allocation8 + $0x5b8] sm:$0xff]  ;;  %v6578_v56 = vpack.c.bf16 %v2797_v26, %v2793_v23  ;;  %v2799_v35 = vld [vmem:[#allocation8 + $0x580] sm:$0xff]  ;;  %v6592_v23 = vpack.c.bf16 %v2830_v12, %v2826_v11  ;;  %v2832_v26 = vld [vmem:[#allocation8 + $0x688] sm:$0xff] }
 0x2e4   : > { %6561 = vmatprep.subr.bf16.mxu1 %v6560_v36  ;;  %v2803_v36 = vld [vmem:[#allocation8 + $0x5a0] sm:$0xff]  ;;  %v2845_v62 = vld [vmem:[#allocation8 + $0x6f0] sm:$0xff] }
 0x2e5   : > { %6051 = vmatpush1.bf16.msra.mxu0 %v6050_v41  ;;  %v6580_v41 = vpack.c.bf16 %v2806_v30, %v2802_v40  ;;  %v6070_v51 = vpack.c.bf16 %v2803_v36, %v2799_v35  ;;  %v2838_v40 = vld [vmem:[#allocation8 + $0x6b8] sm:$0xff]  ;;  %v7783_v30 = vld [vmem:[#allocation7] sm:$0xff]  ;;  %v6084_v35 = vpack.c.bf16 %v2836_v27, %v2832_v26  ;;  %v2831_v36 = vld [vmem:[#allocation8 + $0x680] sm:$0xff] }
 0x2e6   : > { %6563 = vmatpush1.bf16.msra.mxu1 %v6562_v53  ;;  %6053 = vmatprep.subr.bf16.mxu0 %v6052_v42  ;;  %v2805_v53 = vld [vmem:[#allocation8 + $0x5b0] sm:$0xff]  ;;  %v2808_v42 = vld [vmem:[#allocation8 + $0x5c8] sm:$0xff]  ;;  %v2859_v26 = vld [vmem:[#allocation8 + $0x760] sm:$0xff] }
 0x2e7   : > { %6565 = vmatprep.subr.bf16.mxu1 %v6564_v47  ;;  %v2810_v47 = vld [vmem:[#allocation8 + $0x5d8] sm:$0xff]  ;;  %v6582_v13 = vpack.c.bf16 %v2805_v53, %v2801_v37  ;;  %v6072_v52 = vpack.c.bf16 %v2812_v44, %v2808_v42  ;;  %v2835_v37 = vld [vmem:[#allocation8 + $0x6a0] sm:$0xff]  ;;  %v1350_v53 = vrot.slane %v7783_v30, %v1349_v21  ;;  %v6596_v42 = vpack.c.bf16 %v2838_v40, %v2834_v28  ;;  %v2837_v44 = vld [vmem:[#allocation8 + $0x6b0] sm:$0xff] }
 0x2e8   : > { %v6584_v58 = vpack.c.bf16 %v2814_v49, %v2810_v47  ;;  %v2840_v47 = vld [vmem:[#allocation8 + $0x6c8] sm:$0xff]  ;;  %v2853_v12 = vld [vmem:[#allocation8 + $0x730] sm:$0xff] }
 0x2e9   : > { %6055 = vmatpush1.bf16.msra.mxu0 %v6054_v54  ;;  %v2807_v54 = vld [vmem:[#allocation8 + $0x5c0] sm:$0xff]  ;;  %v2844_v49 = vld [vmem:[#allocation8 + $0x6e8] sm:$0xff]  ;;  %v2857_v27 = vld [vmem:[#allocation8 + $0x750] sm:$0xff] }
 0x2ea   : > { %6567 = vmatpush1.bf16.msra.mxu1 %v6566_v55  ;;  %6057 = vmatprep.subr.bf16.mxu0 %v6056_v57  ;;  %v2811_v55 = vld [vmem:[#allocation8 + $0x5e0] sm:$0xff]  ;;  %v2809_v57 = vld [vmem:[#allocation8 + $0x5d0] sm:$0xff] }
 0x2eb   : > { %6569 = vmatprep.subr.bf16.mxu1 %v6568_v16  ;;  %v2820_v16 = vld [vmem:[#allocation8 + $0x628] sm:$0xff]  ;;  %v6074_v63 = vpack.c.bf16 %v2811_v55, %v2807_v54  ;;  %v6586_v24 = vpack.c.bf16 %v2813_v59, %v2809_v57  ;;  %v6086_v54 = vpack.c.bf16 %v2835_v37, %v2831_v36  ;;  %v6088_v57 = vpack.c.bf16 %v2844_v49, %v2840_v47  ;;  %v2843_v59 = vld [vmem:[#allocation8 + $0x6e0] sm:$0xff]  ;;  %v2861_v40 = vld [vmem:[#allocation8 + $0x770] sm:$0xff] }
 0x2ec   : > { %v6076_v1 = vpack.c.bf16 %v2820_v16, %v2816_v60  ;;  %v2841_v60 = vld [vmem:[#allocation8 + $0x6d0] sm:$0xff]  ;;  %v7794_v16 = vadd.f32 %v7732_v6, %v1350_v53  ;;  %v6610_v37 = vpack.c.bf16 %v2861_v40, %v2857_v27  ;;  %v2863_v53 = vld [vmem:[#allocation8 + $0x780] sm:$0xff]  ;;  %v2894_v27 = vld [vmem:[#allocation8 + $0x878] sm:$0xff] }
 0x2ed   : > { %6059 = vmatpush1.bf16.msra.mxu0 %v6058_v2  ;;  %v2815_v2 = vld [vmem:[#allocation8 + $0x600] sm:$0xff]  ;;  %v2869_v49 = vld [vmem:[#allocation8 + $0x7b0] sm:$0xff] }
 0x2ee   : > { %6571 = vmatpush1.bf16.msra.mxu1 %v6570_v34  ;;  %6061 = vmatprep.subr.bf16.mxu0 %v6060_v3  ;;  %v2819_v34 = vld [vmem:[#allocation8 + $0x620] sm:$0xff]  ;;  %v2817_v3 = vld [vmem:[#allocation8 + $0x610] sm:$0xff]  ;;  %v2564_v6 = vmul.f32 0.70710677, %v7794_v16  ;;  %v2548_v40 = vmul.f32 0.5, %v7794_v16 }
 0x2ef   : > { %6573 = vmatprep.subr.bf16.mxu1 %v6572_v10  ;;  %v2828_v10 = vld [vmem:[#allocation8 + $0x668] sm:$0xff]  ;;  %v6078_v14 = vpack.c.bf16 %v2819_v34, %v2815_v2  ;;  %v6590_v15 = vpack.c.bf16 %v2821_v7, %v2817_v3  ;;  %v6602_v3 = vpack.c.bf16 %v2845_v62, %v2841_v60  ;;  %v2847_v7 = vld [vmem:[#allocation8 + $0x700] sm:$0xff]  ;;  %v2873_v62 = vld [vmem:[#allocation8 + $0x7d0] sm:$0xff] }
 0x2f0   : > { %v2871_v60 = vld [vmem:[#allocation8 + $0x7c0] sm:$0xff] }
 0x2f1   : > { %6063 = vmatpush1.bf16.msra.mxu0 %v6062_v17  ;;  %v6080_v17 = vpack.c.bf16 %v2828_v10, %v2824_v8  ;;  %v2851_v8 = vld [vmem:[#allocation8 + $0x720] sm:$0xff]  ;;  %v2849_v10 = vld [vmem:[#allocation8 + $0x710] sm:$0xff] }
 0x2f2   : > { %6575 = vmatpush1.bf16.msra.mxu1 %v6574_v18  ;;  %6065 = vmatprep.subr.bf16.mxu0 %v6064_v19  ;;  %v2823_v18 = vld [vmem:[#allocation8 + $0x640] sm:$0xff] }
 0x2f3   : > { %v7771_v38 = vpop.f32.mrb[4].mxu0  ;;  %6577 = vmatprep.subr.bf16.mxu1 %v6576_v25  ;;  %v2827_v19 = vld [vmem:[#allocation8 + $0x660] sm:$0xff]  ;;  %v2829_v25 = vld [vmem:[#allocation8 + $0x670] sm:$0xff] }
 0x2f4   : > { %v7773_v45 = vpop.f32.mrb[4].mxu1  ;;  %v7775_v46 = vpop.f32.mrb[5].mxu0 }
 0x2f5   : > { %v7777_v50 = vpop.f32.mrb[5].mxu1  ;;  %6067 = vmatpush1.bf16.msra.mxu0 %v6066_v32  ;;  %v1338_v32 = vrot.slane %v7783_v30, %v7780_v43 }
 0x2f6   : > { %6579 = vmatpush1.bf16.msra.mxu1 %v6578_v56  ;;  %6069 = vmatprep.subr.bf16.mxu0 %v6068_v33  ;;  %v6082_v56 = vpack.c.bf16 %v2827_v19, %v2823_v18  ;;  %v6594_v33 = vpack.c.bf16 %v2829_v25, %v2825_v20  ;;  %v2862_v18 = vld [vmem:[#allocation8 + $0x778] sm:$0xff]  ;;  %v6094_v19 = vpack.c.bf16 %v2851_v8, %v2847_v7  ;;  %v2855_v25 = vld [vmem:[#allocation8 + $0x740] sm:$0xff] }
 0x2f7   : > { %6581 = vmatprep.subr.bf16.mxu1 %v6580_v41  ;;  %v2833_v41 = vld [vmem:[#allocation8 + $0x690] sm:$0xff]  ;;  %v6606_v20 = vpack.c.bf16 %v2853_v12, %v2849_v10  ;;  %v6098_v36 = vpack.c.bf16 %v2859_v26, %v2855_v25  ;;  %v2883_v12 = vld [vmem:[#allocation8 + $0x820] sm:$0xff]  ;;  %v2890_v26 = vld [vmem:[#allocation8 + $0x858] sm:$0xff] }
 0x2f8   : > { %v6598_v55 = vpack.c.bf16 %v2837_v44, %v2833_v41  ;;  %v2865_v44 = vld [vmem:[#allocation8 + $0x790] sm:$0xff] }
 0x2f9   : > { %6071 = vmatpush1.bf16.msra.mxu0 %v6070_v51  ;;  %v2842_v51 = vld [vmem:[#allocation8 + $0x6d8] sm:$0xff] }
 0x2fa   : > { %6583 = vmatpush1.bf16.msra.mxu1 %v6582_v13  ;;  %6073 = vmatprep.subr.bf16.mxu0 %v6072_v52  ;;  %v2846_v13 = vld [vmem:[#allocation8 + $0x6f8] sm:$0xff]  ;;  %v7791_v52 = vadd.f32 %v7718_v39, %v1338_v32  ;;  %v2864_v32 = vld [vmem:[#allocation8 + $0x788] sm:$0xff] }
 0x2fb   : > { %6585 = vmatprep.subr.bf16.mxu1 %v6584_v58  ;;  %v2839_v58 = vld [vmem:[#allocation8 + $0x6c0] sm:$0xff]  ;;  %v6600_v61 = vpack.c.bf16 %v2846_v13, %v2842_v51  ;;  %v2854_v39 = vld [vmem:[#allocation8 + $0x738] sm:$0xff]  ;;  %v2872_v51 = vld [vmem:[#allocation8 + $0x7c8] sm:$0xff] }
 0x2fc   : > { %v2561_v2 = vmul.f32 0.70710677, %v7791_v52  ;;  %v6090_v34 = vpack.c.bf16 %v2843_v59, %v2839_v58  ;;  %v2876_v13 = vld [vmem:[#allocation8 + $0x7e8] sm:$0xff]  ;;  %v6614_v58 = vpack.c.bf16 %v2869_v49, %v2865_v44  ;;  %v2898_v44 = vld [vmem:[#allocation8 + $0x898] sm:$0xff] }
 0x2fd   : > { %6075 = vmatpush1.bf16.msra.mxu0 %v6074_v63  ;;  %v2848_v63 = vld [vmem:[#allocation8 + $0x708] sm:$0xff]  ;;  %v6104_v59 = vpack.c.bf16 %v2876_v13, %v2872_v51  ;;  %v2895_v13 = vld [vmem:[#allocation8 + $0x880] sm:$0xff] }
 0x2fe   : > { %6587 = vmatpush1.bf16.msra.mxu1 %v6586_v24  ;;  %6077 = vmatprep.subr.bf16.mxu0 %v6076_v1  ;;  %v2852_v24 = vld [vmem:[#allocation8 + $0x728] sm:$0xff]  ;;  %v2850_v1 = vld [vmem:[#allocation8 + $0x718] sm:$0xff]  ;;  %7165 = verf.f32 %v2561_v2 }
 0x2ff   : > { %6589 = vmatprep.subr.bf16.mxu1 %v6588_v4  ;;  %v6092_v4 = vpack.c.bf16 %v2852_v24, %v2848_v63  ;;  %v6604_v11 = vpack.c.bf16 %v2854_v39, %v2850_v1  ;;  %7167 = verf.f32 %v2564_v6  ;;  %v2877_v1 = vld [vmem:[#allocation8 + $0x7f0] sm:$0xff]  ;;  %v2880_v39 = vld [vmem:[#allocation8 + $0x808] sm:$0xff] }
 0x300   : > { %v2884_v2 = vld [vmem:[#allocation8 + $0x828] sm:$0xff]  ;;  %v6618_v10 = vpack.c.bf16 %v2877_v1, %v2873_v62  ;;  %v2910_v62 = vld [vmem:[#allocation8 + $0x8f8] sm:$0xff] }
 0x301   : > { %6079 = vmatpush1.bf16.msra.mxu0 %v6078_v14  ;;  %v2856_v14 = vld [vmem:[#allocation8 + $0x748] sm:$0xff]  ;;  %v6108_v6 = vpack.c.bf16 %v2884_v2, %v2880_v39  ;;  %v2903_v39 = vld [vmem:[#allocation8 + $0x8c0] sm:$0xff] }
 0x302   : > { %6591 = vmatpush1.bf16.msra.mxu1 %v6590_v15  ;;  %6081 = vmatprep.subr.bf16.mxu0 %v6080_v17  ;;  %v2860_v15 = vld [vmem:[#allocation8 + $0x768] sm:$0xff]  ;;  %v2858_v17 = vld [vmem:[#allocation8 + $0x758] sm:$0xff]  ;;  %v2907_v2 = vld [vmem:[#allocation8 + $0x8e0] sm:$0xff] }
 0x303   : > { %6593 = vmatprep.subr.bf16.mxu1 %v6592_v23  ;;  %v6096_v23 = vpack.c.bf16 %v2860_v15, %v2856_v14  ;;  %v6608_v28 = vpack.c.bf16 %v2862_v18, %v2858_v17  ;;  %v2881_v15 = vld [vmem:[#allocation8 + $0x810] sm:$0xff]  ;;  %v2545_v18 = vmul.f32 0.5, %v7791_v52  ;;  %v2896_v52 = vld [vmem:[#allocation8 + $0x888] sm:$0xff] }
 0x304   : > { %v2885_v17 = vld [vmem:[#allocation8 + $0x830] sm:$0xff] }
 0x305   : > { %6083 = vmatpush1.bf16.msra.mxu0 %v6082_v56  ;;  %v2868_v56 = vld [vmem:[#allocation8 + $0x7a8] sm:$0xff] }
 0x306   : > { %6595 = vmatpush1.bf16.msra.mxu1 %v6594_v33  ;;  %6085 = vmatprep.subr.bf16.mxu0 %v6084_v35  ;;  %v2866_v33 = vld [vmem:[#allocation8 + $0x798] sm:$0xff]  ;;  %v6100_v41 = vpack.c.bf16 %v2868_v56, %v2864_v32  ;;  %v6622_v32 = vpack.c.bf16 %v2885_v17, %v2881_v15  ;;  %v2887_v56 = vld [vmem:[#allocation8 + $0x840] sm:$0xff] }
 0x307   : > { %6597 = vmatprep.subr.bf16.mxu1 %v6596_v42  ;;  %v2870_v35 = vld [vmem:[#allocation8 + $0x7b8] sm:$0xff]  ;;  %v2867_v42 = vld [vmem:[#allocation8 + $0x7a0] sm:$0xff] }
 0x308   : > { %v6612_v47 = vpack.c.bf16 %v2870_v35, %v2866_v33  ;;  %v7166_v63 = vpop.eup %7165  ;;  %v2891_v33 = vld [vmem:[#allocation8 + $0x860] sm:$0xff]  ;;  %v2889_v35 = vld [vmem:[#allocation8 + $0x850] sm:$0xff] }
 0x309   : > { %6087 = vmatpush1.bf16.msra.mxu0 %v6086_v54  ;;  %v2874_v54 = vld [vmem:[#allocation8 + $0x7d8] sm:$0xff]  ;;  %v2593_v8 = vadd.f32 1.0, %v7166_v63  ;;  %v6114_v49 = vpack.c.bf16 %v2891_v33, %v2887_v56  ;;  %v2911_v15 = vld [vmem:[#allocation8 + $0x900] sm:$0xff] }
 0x30a   : > { %6599 = vmatpush1.bf16.msra.mxu1 %v6598_v55  ;;  %6089 = vmatprep.subr.bf16.mxu0 %v6088_v57  ;;  %v2878_v55 = vld [vmem:[#allocation8 + $0x7f8] sm:$0xff]  ;;  %v6102_v57 = vpack.c.bf16 %v2867_v42, %v2863_v53  ;;  %v6624_v42 = vpack.c.bf16 %v2894_v27, %v2890_v26  ;;  %v2915_v17 = vld [vmem:[#allocation8 + $0x920] sm:$0xff] }
 0x30b   : > { %6601 = vmatprep.subr.bf16.mxu1 %v6600_v61  ;;  %v2875_v61 = vld [vmem:[#allocation8 + $0x7e0] sm:$0xff]  ;;  %v6616_v24 = vpack.c.bf16 %v2878_v55, %v2874_v54  ;;  %v2897_v55 = vld [vmem:[#allocation8 + $0x890] sm:$0xff]  ;;  %v2922_v26 = vld [vmem:[#allocation8 + $0x958] sm:$0xff] }
 0x30c   : > { %v6106_v7 = vpack.c.bf16 %v2875_v61, %v2871_v60  ;;  %v2899_v54 = vld [vmem:[#allocation8 + $0x8a0] sm:$0xff]  ;;  %v2908_v60 = vld [vmem:[#allocation8 + $0x8e8] sm:$0xff]  ;;  %v2906_v61 = vld [vmem:[#allocation8 + $0x8d8] sm:$0xff] }
 0x30d   : > { %6091 = vmatpush1.bf16.msra.mxu0 %v6090_v34  ;;  %v2882_v34 = vld [vmem:[#allocation8 + $0x818] sm:$0xff]  ;;  %v6118_v63 = vpack.c.bf16 %v2899_v54, %v2895_v13  ;;  %v2919_v56 = vld [vmem:[#allocation8 + $0x940] sm:$0xff]  ;;  %v2929_v13 = vld [vmem:[#allocation8 + $0x990] sm:$0xff] }
 0x30e   : > { %6603 = vmatpush1.bf16.msra.mxu1 %v6602_v3  ;;  %6093 = vmatprep.subr.bf16.mxu0 %v6092_v4  ;;  %v2886_v3 = vld [vmem:[#allocation8 + $0x838] sm:$0xff]  ;;  %v7168_v4 = vpop.eup %7167  ;;  %v2923_v33 = vld [vmem:[#allocation8 + $0x960] sm:$0xff] }
 0x30f   : > { %6605 = vmatprep.subr.bf16.mxu1 %v6604_v11  ;;  %v2879_v11 = vld [vmem:[#allocation8 + $0x800] sm:$0xff]  ;;  %v6620_v14 = vpack.c.bf16 %v2886_v3, %v2882_v34  ;;  %v2905_v34 = vld [vmem:[#allocation8 + $0x8d0] sm:$0xff]  ;;  %v6632_v3 = vpack.c.bf16 %v2910_v62, %v2906_v61  ;;  %v2926_v27 = vld [vmem:[#allocation8 + $0x978] sm:$0xff] }
 0x310   : > { %v6110_v25 = vpack.c.bf16 %v2883_v12, %v2879_v11  ;;  %v6122_v11 = vpack.c.bf16 %v2907_v2, %v2903_v39  ;;  %v2937_v39 = vld [vmem:[#allocation8 + $0x9d0] sm:$0xff] }
 0x311   : > { %6095 = vmatpush1.bf16.msra.mxu0 %v6094_v19  ;;  %v2596_v19 = vadd.f32 1.0, %v7168_v4  ;;  %v2909_v4 = vld [vmem:[#allocation8 + $0x8f0] sm:$0xff] }
 0x312   : > { %6607 = vmatpush1.bf16.msra.mxu1 %v6606_v20  ;;  %6097 = vmatprep.subr.bf16.mxu0 %v6096_v23  ;;  %v2888_v20 = vld [vmem:[#allocation8 + $0x848] sm:$0xff]  ;;  %v6634_v12 = vpack.c.bf16 %v2909_v4, %v2905_v34  ;;  %v2941_v34 = vld [vmem:[#allocation8 + $0x9f0] sm:$0xff] }
 0x313   : > { %6609 = vmatprep.subr.bf16.mxu1 %v6608_v28  ;;  %v2892_v23 = vld [vmem:[#allocation8 + $0x868] sm:$0xff]  ;;  %v2609_v28 = vmul.f32 %v2593_v8, %v2545_v18  ;;  %v2612_v53 = vmul.f32 %v2596_v19, %v2548_v40  ;;  %v2913_v18 = vld [vmem:[#allocation8 + $0x910] sm:$0xff] }
 0x314   : > { %v2916_v8 = vld [vmem:[#allocation8 + $0x928] sm:$0xff] }
 0x315   : > { %6099 = vmatpush1.bf16.msra.mxu0 %v6098_v36  ;;  %v6112_v36 = vpack.c.bf16 %v2892_v23, %v2888_v20  ;;  %v2917_v20 = vld [vmem:[#allocation8 + $0x930] sm:$0xff]  ;;  %v2920_v23 = vld [vmem:[#allocation8 + $0x948] sm:$0xff] }
 0x316   : > { %6611 = vmatpush1.bf16.msra.mxu1 %v6610_v37  ;;  %6101 = vmatprep.subr.bf16.mxu0 %v6100_v41  ;;  %v2893_v37 = vld [vmem:[#allocation8 + $0x870] sm:$0xff]  ;;  %v2900_v41 = vld [vmem:[#allocation8 + $0x8a8] sm:$0xff]  ;;  %v6638_v40 = vpack.c.bf16 %v2917_v20, %v2913_v18 }
 0x317   : > { %6613 = vmatprep.subr.bf16.mxu1 %v6612_v47  ;;  %v2902_v47 = vld [vmem:[#allocation8 + $0x8b8] sm:$0xff]  ;;  %v6626_v16 = vpack.c.bf16 %v2893_v37, %v2889_v35  ;;  %v6116_v51 = vpack.c.bf16 %v2900_v41, %v2896_v52  ;;  %v2921_v35 = vld [vmem:[#allocation8 + $0x950] sm:$0xff]  ;;  %v2928_v52 = vld [vmem:[#allocation8 + $0x988] sm:$0xff] }
 0x318   : > { %v2925_v37 = vld [vmem:[#allocation8 + $0x970] sm:$0xff]  ;;  %v2932_v41 = vld [vmem:[#allocation8 + $0x9a8] sm:$0xff] }
 0x319   : > { %6103 = vmatpush1.bf16.msra.mxu0 %v6102_v57  ;;  %v6628_v57 = vpack.c.bf16 %v2902_v47, %v2898_v44  ;;  %v6130_v44 = vpack.c.bf16 %v2923_v33, %v2919_v56  ;;  %v6642_v47 = vpack.c.bf16 %v2925_v37, %v2921_v35  ;;  %v2948_v4 = vld [vmem:[#allocation8 + $0xa28] sm:$0xff]  ;;  %v2949_v18 = vld [vmem:[#allocation8 + $0xa30] sm:$0xff]  ;;  %v2955_v56 = vld [vmem:[#allocation8 + $0xa60] sm:$0xff]  ;;  %v1357_v35 = vsub.s32 7, %v7736_v31 }
 0x31a   : > { %6615 = vmatpush1.bf16.msra.mxu1 %v6614_v58  ;;  %6105 = vmatprep.subr.bf16.mxu0 %v6104_v59  ;;  %v2901_v58 = vld [vmem:[#allocation8 + $0x8b0] sm:$0xff]  ;;  %v2904_v59 = vld [vmem:[#allocation8 + $0x8c8] sm:$0xff] }
 0x31b   : > { %6617 = vmatprep.subr.bf16.mxu1 %v6616_v24  ;;  %v6630_v24 = vpack.c.bf16 %v2901_v58, %v2897_v55  ;;  %v6120_v1 = vpack.c.bf16 %v2908_v60, %v2904_v59  ;;  %v2933_v55 = vld [vmem:[#allocation8 + $0x9b0] sm:$0xff]  ;;  %v2940_v58 = vld [vmem:[#allocation8 + $0x9e8] sm:$0xff]  ;;  %v2938_v59 = vld [vmem:[#allocation8 + $0x9d8] sm:$0xff] }
 0x31c   : > { %v2942_v60 = vld [vmem:[#allocation8 + $0x9f8] sm:$0xff]  ;;  %v6646_v62 = vpack.c.bf16 %v2933_v55, %v2929_v13  ;;  %v2956_v20 = vld [vmem:[#allocation8 + $0xa68] sm:$0xff]  ;;  %v2953_v33 = vld [vmem:[#allocation8 + $0xa50] sm:$0xff]  ;;  %v1358_v55 = vrot.slane %v7783_v30, %v1357_v35 }
 0x31d   : > { %6107 = vmatpush1.bf16.msra.mxu0 %v6106_v7  ;;  %v2912_v7 = vld [vmem:[#allocation8 + $0x908] sm:$0xff]  ;;  %v6648_v2 = vpack.c.bf16 %v2942_v60, %v2938_v59  ;;  %v2957_v37 = vld [vmem:[#allocation8 + $0xa70] sm:$0xff]  ;;  %v2963_v13 = vld [vmem:[#allocation8 + $0xaa0] sm:$0xff] }
 0x31e   : > { %6619 = vmatpush1.bf16.msra.mxu1 %v6618_v10  ;;  %6109 = vmatprep.subr.bf16.mxu0 %v6108_v6  ;;  %v2914_v10 = vld [vmem:[#allocation8 + $0x918] sm:$0xff]  ;;  %v2968_v59 = vld [vmem:[#allocation8 + $0xac8] sm:$0xff] }
 0x31f   : > { %6621 = vmatprep.subr.bf16.mxu1 %v6620_v14  ;;  %v2918_v6 = vld [vmem:[#allocation8 + $0x938] sm:$0xff]  ;;  %v6124_v14 = vpack.c.bf16 %v2916_v8, %v2912_v7  ;;  %v2972_v60 = vld [vmem:[#allocation8 + $0xae8] sm:$0xff] }
 0x320   : > { %3805 = vmatmul.mubr.f32.vlgmr.msra.gmra.mrb[8].mxu0 %v2609_v28  ;;  %v6636_v19 = vpack.c.bf16 %v2918_v6, %v2914_v10  ;;  %v2946_v7 = vld [vmem:[#allocation8 + $0xa18] sm:$0xff]  ;;  %v6650_v6 = vpack.c.bf16 %v2941_v34, %v2937_v39  ;;  %v6152_v39 = vpack.c.bf16 %v2972_v60, %v2968_v59  ;;  %v2971_v34 = vld [vmem:[#allocation8 + $0xae0] sm:$0xff]  ;;  %v2997_v59 = vld [vmem:[#allocation8 + $0xbb0] sm:$0xff] }
 0x321   : > { %4373 = vmatmul.mubr.f32.vlgmr.msra.gmra.mrb[8].mxu1 %v2609_v28  ;;  %6111 = vmatpush1.bf16.msra.mxu0 %v6110_v25  ;;  %v2924_v25 = vld [vmem:[#allocation8 + $0x968] sm:$0xff]  ;;  %v6126_v28 = vpack.c.bf16 %v2915_v17, %v2911_v15  ;;  %v2950_v8 = vld [vmem:[#allocation8 + $0xa38] sm:$0xff]  ;;  %v2945_v15 = vld [vmem:[#allocation8 + $0xa10] sm:$0xff] }
 0x322   : > { %3875 = vmatprep.mubr.f32.mxu0 %v2612_v53  ;;  %6623 = vmatpush1.bf16.msra.mxu1 %v6622_v32  ;;  %v6128_v32 = vpack.c.bf16 %v2924_v25, %v2920_v23  ;;  %v6652_v17 = vpack.c.bf16 %v2950_v8, %v2946_v7  ;;  %v2954_v23 = vld [vmem:[#allocation8 + $0xa58] sm:$0xff]  ;;  %v2973_v7 = vld [vmem:[#allocation8 + $0xaf0] sm:$0xff]  ;;  %v2976_v8 = vld [vmem:[#allocation8 + $0xb08] sm:$0xff] }
 0x323   : > { %4443 = vmatprep.mubr.f32.mxu1 %v2612_v53  ;;  %6113 = vmatprep.subr.bf16.mxu0 %v6112_v36  ;;  %v6640_v36 = vpack.c.bf16 %v2926_v27, %v2922_v26  ;;  %v2930_v53 = vld [vmem:[#allocation8 + $0x998] sm:$0xff]  ;;  %v1345_v26 = vsub.s32 4, %v7736_v31  ;;  %v3000_v60 = vld [vmem:[#allocation8 + $0xbc8] sm:$0xff] }
 0x324   : > { %6625 = vmatprep.subr.bf16.mxu1 %v6624_v42  ;;  %v2934_v42 = vld [vmem:[#allocation8 + $0x9b8] sm:$0xff] }
 0x325   : > { %6115 = vmatpush1.bf16.msra.mxu0 %v6114_v49  ;;  %v6132_v49 = vpack.c.bf16 %v2932_v41, %v2928_v52  ;;  %v6644_v54 = vpack.c.bf16 %v2934_v42, %v2930_v53  ;;  %v2958_v25 = vld [vmem:[#allocation8 + $0xa78] sm:$0xff]  ;;  %v2960_v52 = vld [vmem:[#allocation8 + $0xa88] sm:$0xff] }
 0x326   : > { %6627 = vmatpush1.bf16.msra.mxu1 %v6626_v16  ;;  %6117 = vmatprep.subr.bf16.mxu0 %v6116_v51  ;;  %v2927_v16 = vld [vmem:[#allocation8 + $0x980] sm:$0xff]  ;;  %v2964_v41 = vld [vmem:[#allocation8 + $0xaa8] sm:$0xff]  ;;  %v2962_v53 = vld [vmem:[#allocation8 + $0xa98] sm:$0xff] }
 0x327   : > { %6629 = vmatprep.subr.bf16.mxu1 %v6628_v57  ;;  %v2931_v51 = vld [vmem:[#allocation8 + $0x9a0] sm:$0xff]  ;;  %v2936_v57 = vld [vmem:[#allocation8 + $0x9c8] sm:$0xff]  ;;  %v2966_v42 = vld [vmem:[#allocation8 + $0xab8] sm:$0xff] }
 0x328   : > { %v6134_v61 = vpack.c.bf16 %v2931_v51, %v2927_v16  ;;  %v6148_v16 = vpack.c.bf16 %v2964_v41, %v2960_v52  ;;  %v2959_v51 = vld [vmem:[#allocation8 + $0xa80] sm:$0xff]  ;;  %v2985_v52 = vld [vmem:[#allocation8 + $0xb50] sm:$0xff] }
 0x329   : > { %6119 = vmatpush1.bf16.msra.mxu0 %v6118_v63  ;;  %v6136_v63 = vpack.c.bf16 %v2940_v58, %v2936_v57  ;;  %v6660_v57 = vpack.c.bf16 %v2966_v42, %v2962_v53  ;;  %v2965_v58 = vld [vmem:[#allocation8 + $0xab0] sm:$0xff]  ;;  %v2992_v42 = vld [vmem:[#allocation8 + $0xb88] sm:$0xff] }
 0x32a   : > { %6631 = vmatpush1.bf16.msra.mxu1 %v6630_v24  ;;  %6121 = vmatprep.subr.bf16.mxu0 %v6120_v1  ;;  %v2935_v24 = vld [vmem:[#allocation8 + $0x9c0] sm:$0xff]  ;;  %v2989_v53 = vld [vmem:[#allocation8 + $0xb70] sm:$0xff] }
 0x32b   : > { %6633 = vmatprep.subr.bf16.mxu1 %v6632_v3  ;;  %v2939_v1 = vld [vmem:[#allocation8 + $0x9e0] sm:$0xff]  ;;  %v2944_v3 = vld [vmem:[#allocation8 + $0xa08] sm:$0xff] }
 0x32c   : > { %v6138_v10 = vpack.c.bf16 %v2939_v1, %v2935_v24  ;;  %v6150_v24 = vpack.c.bf16 %v2963_v13, %v2959_v51  ;;  %v6674_v51 = vpack.c.bf16 %v2989_v53, %v2985_v52 }
 0x32d   : > { %6123 = vmatpush1.bf16.msra.mxu0 %v6122_v11  ;;  %v6140_v11 = vpack.c.bf16 %v2948_v4, %v2944_v3  ;;  %v2969_v3 = vld [vmem:[#allocation8 + $0xad0] sm:$0xff] }
 0x32e   : > { %6635 = vmatpush1.bf16.msra.mxu1 %v6634_v12  ;;  %6125 = vmatprep.subr.bf16.mxu0 %v6124_v14  ;;  %v2943_v12 = vld [vmem:[#allocation8 + $0xa00] sm:$0xff] }
 0x32f   : > { %6637 = vmatprep.subr.bf16.mxu1 %v6636_v19  ;;  %v2947_v14 = vld [vmem:[#allocation8 + $0xa20] sm:$0xff]  ;;  %v2952_v19 = vld [vmem:[#allocation8 + $0xa48] sm:$0xff] }
 0x330   : > { %v6142_v27 = vpack.c.bf16 %v2947_v14, %v2943_v12  ;;  %v6666_v14 = vpack.c.bf16 %v2973_v7, %v2969_v3  ;;  %v3003_v3 = vld [vmem:[#allocation8 + $0xbe0] sm:$0xff] }
 0x331   : > { %6127 = vmatpush1.bf16.msra.mxu0 %v6126_v28  ;;  %v6654_v28 = vpack.c.bf16 %v2949_v18, %v2945_v15  ;;  %v2979_v18 = vld [vmem:[#allocation8 + $0xb20] sm:$0xff] }
 0x332   : > { %6639 = vmatpush1.bf16.msra.mxu1 %v6638_v40  ;;  %6129 = vmatprep.subr.bf16.mxu0 %v6128_v32  ;;  %v6144_v40 = vpack.c.bf16 %v2956_v20, %v2952_v19  ;;  %v2951_v32 = vld [vmem:[#allocation8 + $0xa40] sm:$0xff]  ;;  %v2977_v19 = vld [vmem:[#allocation8 + $0xb10] sm:$0xff] }
 0x333   : > { %6641 = vmatprep.subr.bf16.mxu1 %v6640_v36  ;;  %v6656_v36 = vpack.c.bf16 %v2958_v25, %v2954_v23  ;;  %v2981_v23 = vld [vmem:[#allocation8 + $0xb30] sm:$0xff]  ;;  %v2984_v25 = vld [vmem:[#allocation8 + $0xb48] sm:$0xff] }
 0x335   : > { %6131 = vmatpush1.bf16.msra.mxu0 %v6130_v44  ;;  %v1346_v44 = vrot.slane %v7783_v30, %v1345_v26  ;;  %v7812_v30 = vadd.f32 %v7734_v9, %v1358_v55  ;;  %v2995_v55 = vld [vmem:[#allocation8 + $0xba0] sm:$0xff] }
 0x336   : > { %6643 = vmatpush1.bf16.msra.mxu1 %v6642_v47  ;;  %6133 = vmatprep.subr.bf16.mxu0 %v6132_v49  ;;  %v6146_v47 = vpack.c.bf16 %v2955_v56, %v2951_v32  ;;  %v6658_v49 = vpack.c.bf16 %v2957_v37, %v2953_v33  ;;  %v6670_v56 = vpack.c.bf16 %v2981_v23, %v2977_v19  ;;  %v2987_v37 = vld [vmem:[#allocation8 + $0xb60] sm:$0xff] }
 0x337   : > { %6645 = vmatprep.subr.bf16.mxu1 %v6644_v54  ;;  %v2961_v54 = vld [vmem:[#allocation8 + $0xa90] sm:$0xff]  ;;  %v2566_v9 = vmul.f32 0.70710677, %v7812_v30 }
 0x338   : > { %v6662_v1 = vpack.c.bf16 %v2965_v58, %v2961_v54  ;;  %v2991_v54 = vld [vmem:[#allocation8 + $0xb80] sm:$0xff] }
 0x339   : > { %6135 = vmatpush1.bf16.msra.mxu0 %v6134_v61  ;;  %v2970_v61 = vld [vmem:[#allocation8 + $0xad8] sm:$0xff] }
 0x33a   : > { %6647 = vmatpush1.bf16.msra.mxu1 %v6646_v62  ;;  %6137 = vmatprep.subr.bf16.mxu0 %v6136_v63  ;;  %v2974_v62 = vld [vmem:[#allocation8 + $0xaf8] sm:$0xff]  ;;  %v7809_v63 = vadd.f32 %v7728_v0, %v1346_v44  ;;  %v2996_v44 = vld [vmem:[#allocation8 + $0xba8] sm:$0xff] }
 0x33b   : > { %6649 = vmatprep.subr.bf16.mxu1 %v6648_v2  ;;  %v2967_v2 = vld [vmem:[#allocation8 + $0xac0] sm:$0xff]  ;;  %v6664_v4 = vpack.c.bf16 %v2974_v62, %v2970_v61  ;;  %v2982_v0 = vld [vmem:[#allocation8 + $0xb38] sm:$0xff]  ;;  %v6164_v13 = vpack.c.bf16 %v2996_v44, %v2992_v42  ;;  %v3004_v61 = vld [vmem:[#allocation8 + $0xbe8] sm:$0xff] }
 0x33c   : > { %v6154_v12 = vpack.c.bf16 %v2971_v34, %v2967_v2  ;;  %v3002_v62 = vld [vmem:[#allocation8 + $0xbd8] sm:$0xff]  ;;  %v6168_v2 = vpack.c.bf16 %v3004_v61, %v3000_v60  ;;  %v2999_v34 = vld [vmem:[#allocation8 + $0xbc0] sm:$0xff] }
 0x33d   : > { %6139 = vmatpush1.bf16.msra.mxu0 %v6138_v10  ;;  %v2980_v10 = vld [vmem:[#allocation8 + $0xb28] sm:$0xff]  ;;  %v3015_v42 = vld [vmem:[#allocation8 + $0xc40] sm:$0xff] }
 0x33e   : > { %6651 = vmatpush1.bf16.msra.mxu1 %v6650_v6  ;;  %6141 = vmatprep.subr.bf16.mxu0 %v6140_v11  ;;  %v2978_v6 = vld [vmem:[#allocation8 + $0xb18] sm:$0xff]  ;;  %v2563_v11 = vmul.f32 0.70710677, %v7809_v63  ;;  %v6156_v15 = vpack.c.bf16 %v2980_v10, %v2976_v8  ;;  %v3005_v10 = vld [vmem:[#allocation8 + $0xbf0] sm:$0xff]  ;;  %v3019_v44 = vld [vmem:[#allocation8 + $0xc60] sm:$0xff] }
 0x33f   : > { %6653 = vmatprep.subr.bf16.mxu1 %v6652_v17  ;;  %v2975_v17 = vld [vmem:[#allocation8 + $0xb00] sm:$0xff]  ;;  %v6668_v20 = vpack.c.bf16 %v2982_v0, %v2978_v6  ;;  %v3008_v6 = vld [vmem:[#allocation8 + $0xc08] sm:$0xff] }
 0x340   : > { %7169 = verf.f32 %v2563_v11  ;;  %v6158_v32 = vpack.c.bf16 %v2979_v18, %v2975_v17  ;;  %v3012_v0 = vld [vmem:[#allocation8 + $0xc28] sm:$0xff]  ;;  %v3010_v11 = vld [vmem:[#allocation8 + $0xc18] sm:$0xff]  ;;  %v3023_v60 = vld [vmem:[#allocation8 + $0xc80] sm:$0xff] }
 0x341   : > { %6143 = vmatpush1.bf16.msra.mxu0 %v6142_v27  ;;  %v2988_v27 = vld [vmem:[#allocation8 + $0xb68] sm:$0xff]  ;;  %7171 = verf.f32 %v2566_v9  ;;  %v6172_v19 = vpack.c.bf16 %v3012_v0, %v3008_v6  ;;  %v3007_v9 = vld [vmem:[#allocation8 + $0xc00] sm:$0xff]  ;;  %v3033_v0 = vld [vmem:[#allocation8 + $0xcd0] sm:$0xff] }
 0x342   : > { %6655 = vmatpush1.bf16.msra.mxu1 %v6654_v28  ;;  %6145 = vmatprep.subr.bf16.mxu0 %v6144_v40  ;;  %v2986_v28 = vld [vmem:[#allocation8 + $0xb58] sm:$0xff]  ;;  %v6160_v33 = vpack.c.bf16 %v2988_v27, %v2984_v25  ;;  %v3009_v25 = vld [vmem:[#allocation8 + $0xc10] sm:$0xff]  ;;  %v3027_v61 = vld [vmem:[#allocation8 + $0xca0] sm:$0xff] }
 0x343   : > { %6657 = vmatprep.subr.bf16.mxu1 %v6656_v36  ;;  %v2990_v40 = vld [vmem:[#allocation8 + $0xb78] sm:$0xff]  ;;  %v2983_v36 = vld [vmem:[#allocation8 + $0xb40] sm:$0xff]  ;;  %v3013_v27 = vld [vmem:[#allocation8 + $0xc30] sm:$0xff] }
 0x344   : > { %v6672_v41 = vpack.c.bf16 %v2990_v40, %v2986_v28  ;;  %v2547_v28 = vmul.f32 0.5, %v7809_v63  ;;  %v6686_v53 = vpack.c.bf16 %v3013_v27, %v3009_v25  ;;  %v3024_v63 = vld [vmem:[#allocation8 + $0xc88] sm:$0xff]  ;;  %v3035_v6 = vld [vmem:[#allocation8 + $0xce0] sm:$0xff]  ;;  %v3041_v27 = vld [vmem:[#allocation8 + $0xd10] sm:$0xff] }
 0x345   : > { %6147 = vmatpush1.bf16.msra.mxu0 %v6146_v47  ;;  %v2994_v47 = vld [vmem:[#allocation8 + $0xb98] sm:$0xff]  ;;  %v3043_v25 = vld [vmem:[#allocation8 + $0xd20] sm:$0xff] }
 0x346   : > { %6659 = vmatpush1.bf16.msra.mxu1 %v6658_v49  ;;  %6149 = vmatprep.subr.bf16.mxu0 %v6148_v16  ;;  %v2998_v49 = vld [vmem:[#allocation8 + $0xbb8] sm:$0xff]  ;;  %v6162_v16 = vpack.c.bf16 %v2987_v37, %v2983_v36 }
 0x347   : > { %6661 = vmatprep.subr.bf16.mxu1 %v6660_v57  ;;  %v2993_v57 = vld [vmem:[#allocation8 + $0xb90] sm:$0xff]  ;;  %v6676_v58 = vpack.c.bf16 %v2998_v49, %v2994_v47  ;;  %v3018_v36 = vld [vmem:[#allocation8 + $0xc58] sm:$0xff] }
 0x348   : > { %v3022_v37 = vld [vmem:[#allocation8 + $0xc78] sm:$0xff]  ;;  %v3017_v47 = vld [vmem:[#allocation8 + $0xc50] sm:$0xff] }
 0x349   : > { %6151 = vmatpush1.bf16.msra.mxu0 %v6150_v24  ;;  %v3006_v24 = vld [vmem:[#allocation8 + $0xbf8] sm:$0xff] }
 0x34a   : > { %6663 = vmatpush1.bf16.msra.mxu1 %v6662_v1  ;;  %6153 = vmatprep.subr.bf16.mxu0 %v6152_v39  ;;  %v6166_v1 = vpack.c.bf16 %v2995_v55, %v2991_v54  ;;  %v6678_v39 = vpack.c.bf16 %v2997_v59, %v2993_v57  ;;  %v7170_v7 = vpop.eup %7169  ;;  %v6680_v8 = vpack.c.bf16 %v3006_v24, %v3002_v62  ;;  %v3026_v55 = vld [vmem:[#allocation8 + $0xc98] sm:$0xff]  ;;  %v3025_v62 = vld [vmem:[#allocation8 + $0xc90] sm:$0xff] }
 0x34b   : > { %6665 = vmatprep.subr.bf16.mxu1 %v6664_v4  ;;  %v3001_v4 = vld [vmem:[#allocation8 + $0xbd0] sm:$0xff]  ;;  %v2595_v17 = vadd.f32 1.0, %v7170_v7  ;;  %v6688_v54 = vpack.c.bf16 %v3022_v37, %v3018_v36  ;;  %v3030_v57 = vld [vmem:[#allocation8 + $0xcb8] sm:$0xff] }
 0x34c   : > { %v6682_v18 = vpack.c.bf16 %v3005_v10, %v3001_v4  ;;  %v6692_v24 = vpack.c.bf16 %v3030_v57, %v3026_v55  ;;  %v6182_v4 = vpack.c.bf16 %v3027_v61, %v3023_v60  ;;  %v3031_v10 = vld [vmem:[#allocation8 + $0xcc0] sm:$0xff]  ;;  %v3054_v36 = vld [vmem:[#allocation8 + $0xd78] sm:$0xff] }
 0x34d   : > { %6155 = vmatpush1.bf16.msra.mxu0 %v6154_v12  ;;  %v3014_v12 = vld [vmem:[#allocation8 + $0xc38] sm:$0xff]  ;;  %v2611_v52 = vmul.f32 %v2595_v17, %v2547_v28 }
 0x34e   : > { %6667 = vmatpush1.bf16.msra.mxu1 %v6666_v14  ;;  %6157 = vmatprep.subr.bf16.mxu0 %v6156_v15  ;;  %v7172_v14 = vpop.eup %7171  ;;  %v6170_v15 = vpack.c.bf16 %v3003_v3, %v2999_v34  ;;  %v6684_v23 = vpack.c.bf16 %v3014_v12, %v3010_v11  ;;  %v3034_v34 = vld [vmem:[#allocation8 + $0xcd8] sm:$0xff]  ;;  %v3037_v12 = vld [vmem:[#allocation8 + $0xcf0] sm:$0xff] }
 0x34f   : > { %6669 = vmatprep.subr.bf16.mxu1 %v6668_v20  ;;  %v3011_v20 = vld [vmem:[#allocation8 + $0xc20] sm:$0xff]  ;;  %v2598_v40 = vadd.f32 1.0, %v7172_v14  ;;  %v3038_v3 = vld [vmem:[#allocation8 + $0xcf8] sm:$0xff]  ;;  %v3040_v14 = vld [vmem:[#allocation8 + $0xd08] sm:$0xff] }
 0x350   : > { %v6696_v11 = vpack.c.bf16 %v3038_v3, %v3034_v34  ;;  %v3042_v17 = vld [vmem:[#allocation8 + $0xd18] sm:$0xff] }
 0x351   : > { %6159 = vmatpush1.bf16.msra.mxu0 %v6158_v32  ;;  %v3016_v32 = vld [vmem:[#allocation8 + $0xc48] sm:$0xff]  ;;  %v3066_v34 = vld [vmem:[#allocation8 + $0xdd8] sm:$0xff] }
 0x352   : > { %6671 = vmatpush1.bf16.msra.mxu1 %v6670_v56  ;;  %6161 = vmatprep.subr.bf16.mxu0 %v6160_v33  ;;  %v3020_v56 = vld [vmem:[#allocation8 + $0xc68] sm:$0xff]  ;;  %v6174_v33 = vpack.c.bf16 %v3011_v20, %v3007_v9  ;;  %v6698_v9 = vpack.c.bf16 %v3037_v12, %v3033_v0  ;;  %v3070_v3 = vld [vmem:[#allocation8 + $0xdf8] sm:$0xff]  ;;  %v3067_v0 = vld [vmem:[#allocation8 + $0xde0] sm:$0xff] }
 0x353   : > { %6673 = vmatprep.subr.bf16.mxu1 %v6672_v41  ;;  %v2550_v41 = vmul.f32 0.5, %v7812_v30  ;;  %v6176_v49 = vpack.c.bf16 %v3020_v56, %v3016_v32  ;;  %v3048_v32 = vld [vmem:[#allocation8 + $0xd48] sm:$0xff]  ;;  %v6712_v12 = vpack.c.bf16 %v3070_v3, %v3066_v34  ;;  %v3089_v34 = vld [vmem:[#allocation8 + $0xe90] sm:$0xff] }
 0x354   : > { %v3052_v56 = vld [vmem:[#allocation8 + $0xd68] sm:$0xff] }
 0x355   : > { %6163 = vmatpush1.bf16.msra.mxu0 %v6162_v16  ;;  %v3021_v16 = vld [vmem:[#allocation8 + $0xc70] sm:$0xff] }
 0x356   : > { %6675 = vmatpush1.bf16.msra.mxu1 %v6674_v51  ;;  %6165 = vmatprep.subr.bf16.mxu0 %v6164_v13  ;;  %v3028_v51 = vld [vmem:[#allocation8 + $0xca8] sm:$0xff]  ;;  %v2614_v13 = vmul.f32 %v2598_v40, %v2550_v41  ;;  %v6690_v30 = vpack.c.bf16 %v3021_v16, %v3017_v47  ;;  %v3045_v40 = vld [vmem:[#allocation8 + $0xd30] sm:$0xff]  ;;  %v6192_v41 = vpack.c.bf16 %v3052_v56, %v3048_v32 }
 0x357   : > { %6677 = vmatprep.subr.bf16.mxu1 %v6676_v58  ;;  %v6178_v58 = vpack.c.bf16 %v3019_v44, %v3015_v42  ;;  %v6180_v59 = vpack.c.bf16 %v3028_v51, %v3024_v63  ;;  %v3051_v42 = vld [vmem:[#allocation8 + $0xd60] sm:$0xff]  ;;  %v3049_v44 = vld [vmem:[#allocation8 + $0xd50] sm:$0xff]  ;;  %v3056_v16 = vld [vmem:[#allocation8 + $0xd88] sm:$0xff] }
 0x358   : > { %v3060_v63 = vld [vmem:[#allocation8 + $0xda8] sm:$0xff]  ;;  %v3058_v51 = vld [vmem:[#allocation8 + $0xd98] sm:$0xff]  ;;  %v3077_v32 = vld [vmem:[#allocation8 + $0xe30] sm:$0xff] }
 0x359   : > { %6167 = vmatpush1.bf16.msra.mxu0 %v6166_v1  ;;  %v3029_v1 = vld [vmem:[#allocation8 + $0xcb0] sm:$0xff]  ;;  %v6196_v57 = vpack.c.bf16 %v3060_v63, %v3056_v16  ;;  %v3080_v56 = vld [vmem:[#allocation8 + $0xe48] sm:$0xff] }
 0x35a   : > { %6679 = vmatpush1.bf16.msra.mxu1 %v6678_v39  ;;  %6169 = vmatprep.subr.bf16.mxu0 %v6168_v2  ;;  %v3032_v39 = vld [vmem:[#allocation8 + $0xcc8] sm:$0xff]  ;;  %v6694_v7 = vpack.c.bf16 %v3029_v1, %v3025_v62  ;;  %v3061_v62 = vld [vmem:[#allocation8 + $0xdb0] sm:$0xff] }
 0x35b   : > { %6681 = vmatprep.subr.bf16.mxu1 %v6680_v8  ;;  %v3036_v2 = vld [vmem:[#allocation8 + $0xce8] sm:$0xff]  ;;  %v3085_v63 = vld [vmem:[#allocation8 + $0xe70] sm:$0xff] }
 0x35c   : > { %v6184_v8 = vpack.c.bf16 %v3036_v2, %v3032_v39  ;;  %v3068_v1 = vld [vmem:[#allocation8 + $0xde8] sm:$0xff] }
 0x35d   : > { %6171 = vmatpush1.bf16.msra.mxu0 %v6170_v15  ;;  %v3044_v15 = vld [vmem:[#allocation8 + $0xd28] sm:$0xff] }
 0x35e   : > { %6683 = vmatpush1.bf16.msra.mxu1 %v6682_v18  ;;  %6173 = vmatprep.subr.bf16.mxu0 %v6172_v19  ;;  %v3046_v18 = vld [vmem:[#allocation8 + $0xd38] sm:$0xff]  ;;  %v6186_v19 = vpack.c.bf16 %v3035_v6, %v3031_v10  ;;  %v6188_v20 = vpack.c.bf16 %v3044_v15, %v3040_v14  ;;  %v3063_v6 = vld [vmem:[#allocation8 + $0xdc0] sm:$0xff]  ;;  %v3069_v14 = vld [vmem:[#allocation8 + $0xdf0] sm:$0xff] }
 0x35f   : > { %6685 = vmatprep.subr.bf16.mxu1 %v6684_v23  ;;  %v3039_v23 = vld [vmem:[#allocation8 + $0xd00] sm:$0xff]  ;;  %v6700_v28 = vpack.c.bf16 %v3046_v18, %v3042_v17  ;;  %v3072_v15 = vld [vmem:[#allocation8 + $0xe08] sm:$0xff]  ;;  %v3074_v18 = vld [vmem:[#allocation8 + $0xe18] sm:$0xff] }
 0x360   : > { %3876 = vmatmul.mubr.f32.vlgmr.msra.gmra.mrb[8].mxu0 %v2611_v52  ;;  %v6190_v37 = vpack.c.bf16 %v3043_v25, %v3039_v23  ;;  %v3076_v17 = vld [vmem:[#allocation8 + $0xe28] sm:$0xff]  ;;  %v3071_v25 = vld [vmem:[#allocation8 + $0xe00] sm:$0xff] }
 0x361   : > { %4444 = vmatmul.mubr.f32.vlgmr.msra.gmra.mrb[8].mxu1 %v2611_v52  ;;  %6175 = vmatpush1.bf16.msra.mxu0 %v6174_v33  ;;  %v3050_v33 = vld [vmem:[#allocation8 + $0xd58] sm:$0xff]  ;;  %v6702_v52 = vpack.c.bf16 %v3045_v40, %v3041_v27  ;;  %v6204_v23 = vpack.c.bf16 %v3076_v17, %v3072_v15  ;;  %v3075_v27 = vld [vmem:[#allocation8 + $0xe20] sm:$0xff] }
 0x362   : > { %3946 = vmatprep.mubr.f32.mxu0 %v2614_v13  ;;  %6687 = vmatpush1.bf16.msra.mxu1 %v6686_v53  ;;  %v3047_v53 = vld [vmem:[#allocation8 + $0xd40] sm:$0xff]  ;;  %v6704_v47 = vpack.c.bf16 %v3054_v36, %v3050_v33  ;;  %v3084_v33 = vld [vmem:[#allocation8 + $0xe68] sm:$0xff]  ;;  %v3082_v36 = vld [vmem:[#allocation8 + $0xe58] sm:$0xff] }
 0x363   : > { %4514 = vmatprep.mubr.f32.mxu1 %v2614_v13  ;;  %6177 = vmatprep.subr.bf16.mxu0 %v6176_v49  ;;  %v3053_v49 = vld [vmem:[#allocation8 + $0xd70] sm:$0xff]  ;;  %v3062_v13 = vld [vmem:[#allocation8 + $0xdb8] sm:$0xff] }
 0x364   : > { %6689 = vmatprep.subr.bf16.mxu1 %v6688_v54  ;;  %v6194_v54 = vpack.c.bf16 %v3051_v42, %v3047_v53  ;;  %v6706_v55 = vpack.c.bf16 %v3053_v49, %v3049_v44  ;;  %v6708_v61 = vpack.c.bf16 %v3062_v13, %v3058_v51  ;;  %v6208_v42 = vpack.c.bf16 %v3084_v33, %v3080_v56  ;;  %v3079_v44 = vld [vmem:[#allocation8 + $0xe40] sm:$0xff]  ;;  %v3081_v49 = vld [vmem:[#allocation8 + $0xe50] sm:$0xff]  ;;  %v3088_v51 = vld [vmem:[#allocation8 + $0xe88] sm:$0xff] }
 0x365   : > { %6179 = vmatpush1.bf16.msra.mxu0 %v6178_v58  ;;  %v3055_v58 = vld [vmem:[#allocation8 + $0xd80] sm:$0xff]  ;;  %v3092_v13 = vld [vmem:[#allocation8 + $0xea8] sm:$0xff] }
 0x366   : > { %6691 = vmatpush1.bf16.msra.mxu1 %v6690_v30  ;;  %6181 = vmatprep.subr.bf16.mxu0 %v6180_v59  ;;  %v3059_v30 = vld [vmem:[#allocation8 + $0xda0] sm:$0xff]  ;;  %v3057_v59 = vld [vmem:[#allocation8 + $0xd90] sm:$0xff] }
 0x367   : > { %6693 = vmatprep.subr.bf16.mxu1 %v6692_v24  ;;  %v3064_v24 = vld [vmem:[#allocation8 + $0xdc8] sm:$0xff] }
 0x368   : > { %v6200_v10 = vpack.c.bf16 %v3068_v1, %v3064_v24  ;;  %v3087_v24 = vld [vmem:[#allocation8 + $0xe80] sm:$0xff] }
 0x369   : > { %6183 = vmatpush1.bf16.msra.mxu0 %v6182_v4  ;;  %v3091_v1 = vld [vmem:[#allocation8 + $0xea0] sm:$0xff] }
 0x36a   : > { %6695 = vmatpush1.bf16.msra.mxu1 %v6694_v7  ;;  %6185 = vmatprep.subr.bf16.mxu0 %v6184_v8  ;;  %v6198_v7 = vpack.c.bf16 %v3059_v30, %v3055_v58  ;;  %v6710_v8 = vpack.c.bf16 %v3061_v62, %v3057_v59  ;;  %v7202_v58 = vld [vmem:[#allocation7] sm:$0xff]  ;;  %v6212_v62 = vpack.c.bf16 %v3092_v13, %v3088_v51 }
 0x36b   : > { %6697 = vmatprep.subr.bf16.mxu1 %v6696_v11  ;;  %v3065_v11 = vld [vmem:[#allocation8 + $0xdd0] sm:$0xff] }
 0x36d   : > { %6187 = vmatpush1.bf16.msra.mxu0 %v6186_v19  ;;  %v3078_v19 = vld [vmem:[#allocation8 + $0xe38] sm:$0xff] }
 0x36e   : > { %6699 = vmatpush1.bf16.msra.mxu1 %v6698_v9  ;;  %6189 = vmatprep.subr.bf16.mxu0 %v6188_v20  ;;  %v6202_v9 = vpack.c.bf16 %v3067_v0, %v3063_v6  ;;  %v6714_v20 = vpack.c.bf16 %v3069_v14, %v3065_v11  ;;  %v6716_v40 = vpack.c.bf16 %v3078_v19, %v3074_v18  ;;  %v3100_v6 = vld [vmem:[#allocation8 + $0xee8] sm:$0xff]  ;;  %v3098_v0 = vld [vmem:[#allocation8 + $0xed8] sm:$0xff]  ;;  %v3095_v18 = vld [vmem:[#allocation8 + $0xec0] sm:$0xff] }
 0x36f   : > { %6701 = vmatprep.subr.bf16.mxu1 %v6700_v28  ;;  %v3073_v28 = vld [vmem:[#allocation8 + $0xe10] sm:$0xff]  ;;  %v3102_v11 = vld [vmem:[#allocation8 + $0xef8] sm:$0xff]  ;;  %v6214_v14 = vpack.c.bf16 %v3091_v1, %v3087_v24  ;;  %v3099_v19 = vld [vmem:[#allocation8 + $0xee0] sm:$0xff] }
 0x370   : > { %v6718_v53 = vpack.c.bf16 %v3077_v32, %v3073_v28  ;;  %v3108_v28 = vld [vmem:[#allocation8 + $0xf28] sm:$0xff]  ;;  %v6218_v56 = vpack.c.bf16 %v3099_v19, %v3095_v18  ;;  %v3122_v1 = vld [vmem:[#allocation8 + $0xf98] sm:$0xff] }
 0x371   : > { %6191 = vmatpush1.bf16.msra.mxu0 %v6190_v37  ;;  %v3086_v37 = vld [vmem:[#allocation8 + $0xe78] sm:$0xff]  ;;  %v3124_v24 = vld [vmem:[#allocation8 + $0xfa8] sm:$0xff] }
 0x372   : > { %6703 = vmatpush1.bf16.msra.mxu1 %v6702_v52  ;;  %6193 = vmatprep.subr.bf16.mxu0 %v6192_v41  ;;  %v1353_v52 = vsub.s32 6, %v7736_v31  ;;  %v6206_v41 = vpack.c.bf16 %v3075_v27, %v3071_v25  ;;  %v6720_v16 = vpack.c.bf16 %v3086_v37, %v3082_v36  ;;  %v3101_v25 = vld [vmem:[#allocation8 + $0xef0] sm:$0xff]  ;;  %v3104_v27 = vld [vmem:[#allocation8 + $0xf08] sm:$0xff]  ;;  %v3103_v37 = vld [vmem:[#allocation8 + $0xf00] sm:$0xff] }
 0x373   : > { %v7818_v60 = vpop.f32.mrb[6].mxu0  ;;  %6705 = vmatprep.subr.bf16.mxu1 %v6704_v47  ;;  %v3083_v47 = vld [vmem:[#allocation8 + $0xe60] sm:$0xff]  ;;  %v6220_v36 = vpack.c.bf16 %v3108_v28, %v3104_v27  ;;  %v3130_v18 = vld [vmem:[#allocation8 + $0xfd8] sm:$0xff] }
 0x374   : > { %v7820_v39 = vpop.f32.mrb[6].mxu1  ;;  %v7822_v2 = vpop.f32.mrb[7].mxu0  ;;  %v1354_v30 = vrot.slane %v7202_v58, %v1353_v52  ;;  %v6210_v59 = vpack.c.bf16 %v3083_v47, %v3079_v44  ;;  %v3109_v44 = vld [vmem:[#allocation8 + $0xf30] sm:$0xff]  ;;  %v3112_v47 = vld [vmem:[#allocation8 + $0xf48] sm:$0xff]  ;;  %v3115_v58 = vld [vmem:[#allocation8 + $0xf60] sm:$0xff] }
 0x375   : > { %v7824_v4 = vpop.f32.mrb[7].mxu1  ;;  %6195 = vmatpush1.bf16.msra.mxu0 %v6194_v54  ;;  %v7827_v54 = vld [vmem:[#allocation7 + $0x8] sm:$0xff]  ;;  %v3127_v27 = vld [vmem:[#allocation8 + $0xfc0] sm:$0xff] }
 0x376   : > { %6707 = vmatpush1.bf16.msra.mxu1 %v6706_v55  ;;  %6197 = vmatprep.subr.bf16.mxu0 %v6196_v57  ;;  %v3090_v55 = vld [vmem:[#allocation8 + $0xe98] sm:$0xff]  ;;  %v1366_v3 = vrot.slane %v7827_v54, %v7739_v48  ;;  %v3131_v28 = vld [vmem:[#allocation8 + $0xfe0] sm:$0xff] }
 0x377   : > { %6709 = vmatprep.subr.bf16.mxu1 %v6708_v61  ;;  %v3094_v57 = vld [vmem:[#allocation8 + $0xeb8] sm:$0xff]  ;;  %v6722_v61 = vpack.c.bf16 %v3085_v63, %v3081_v49  ;;  %v3116_v49 = vld [vmem:[#allocation8 + $0xf68] sm:$0xff] }
 0x378   : > { %v3118_v63 = vld [vmem:[#allocation8 + $0xf78] sm:$0xff] }
 0x379   : > { %6199 = vmatpush1.bf16.msra.mxu0 %v6198_v7  ;;  %v6724_v7 = vpack.c.bf16 %v3094_v57, %v3090_v55  ;;  %v6224_v55 = vpack.c.bf16 %v3116_v49, %v3112_v47  ;;  %v3111_v57 = vld [vmem:[#allocation8 + $0xf40] sm:$0xff]  ;;  %v3134_v19 = vld [vmem:[#allocation8 + $0xff8] sm:$0xff] }
 0x37a   : > { %6711 = vmatpush1.bf16.msra.mxu1 %v6710_v8  ;;  %6201 = vmatprep.subr.bf16.mxu0 %v6200_v10  ;;  %v3093_v8 = vld [vmem:[#allocation8 + $0xeb0] sm:$0xff]  ;;  %v3096_v10 = vld [vmem:[#allocation8 + $0xec8] sm:$0xff]  ;;  %v3135_v49 = vld [vmem:[#allocation8 + $0x1000] sm:$0xff] }
 0x37b   : > { %6713 = vmatprep.subr.bf16.mxu1 %v6712_v12  ;;  %v7834_v12 = vadd.f32 %v7730_v5, %v1354_v30  ;;  %v6726_v15 = vpack.c.bf16 %v3093_v8, %v3089_v34  ;;  %v6216_v17 = vpack.c.bf16 %v3100_v6, %v3096_v10  ;;  %v3110_v5 = vld [vmem:[#allocation8 + $0xf38] sm:$0xff]  ;;  %v3113_v30 = vld [vmem:[#allocation8 + $0xf50] sm:$0xff]  ;;  %v3119_v10 = vld [vmem:[#allocation8 + $0xf80] sm:$0xff] }
 0x37c   : > { %v3126_v34 = vld [vmem:[#allocation8 + $0xfb8] sm:$0xff]  ;;  %v3123_v6 = vld [vmem:[#allocation8 + $0xfa0] sm:$0xff] }
 0x37d   : > { %6203 = vmatpush1.bf16.msra.mxu0 %v6202_v9  ;;  %v3097_v9 = vld [vmem:[#allocation8 + $0xed0] sm:$0xff]  ;;  %v2565_v32 = vmul.f32 0.70710677, %v7834_v12 }
 0x37e   : > { %6715 = vmatpush1.bf16.msra.mxu1 %v6714_v20  ;;  %6205 = vmatprep.subr.bf16.mxu0 %v6204_v23  ;;  %v7837_v20 = vadd.f32 %v7775_v46, %v1366_v3  ;;  %v6728_v23 = vpack.c.bf16 %v3102_v11, %v3098_v0  ;;  %v6730_v33 = vpack.c.bf16 %v3101_v25, %v3097_v9  ;;  %v3121_v0 = vld [vmem:[#allocation8 + $0xf90] sm:$0xff] }
 0x37f   : > { %6717 = vmatprep.subr.bf16.mxu1 %v6716_v40  ;;  %v3106_v40 = vld [vmem:[#allocation8 + $0xf18] sm:$0xff]  ;;  %7173 = verf.f32 %v2565_v32  ;;  %v6226_v3 = vpack.c.bf16 %v3115_v58, %v3111_v57  ;;  %v6740_v11 = vpack.c.bf16 %v3126_v34, %v3122_v1  ;;  %v6230_v9 = vpack.c.bf16 %v3123_v6, %v3119_v10  ;;  %v3144_v58 = vld [vmem:[#allocation8 + $0x1048] sm:$0xff]  ;;  %v3149_v6 = vld [vmem:[#allocation8 + $0x1070] sm:$0xff] }
 0x380   : > { %v2568_v46 = vmul.f32 0.70710677, %v7837_v20  ;;  %v6744_v32 = vpack.c.bf16 %v3134_v19, %v3130_v18  ;;  %v2552_v1 = vmul.f32 0.5, %v7837_v20 }
 0x381   : > { %6207 = vmatpush1.bf16.msra.mxu0 %v6206_v41  ;;  %v3107_v41 = vld [vmem:[#allocation8 + $0xf20] sm:$0xff] }
 0x382   : > { %6719 = vmatpush1.bf16.msra.mxu1 %v6718_v53  ;;  %6209 = vmatprep.subr.bf16.mxu0 %v6208_v42  ;;  %v3105_v53 = vld [vmem:[#allocation8 + $0xf10] sm:$0xff]  ;;  %v6732_v42 = vpack.c.bf16 %v3110_v5, %v3106_v40  ;;  %v6222_v51 = vpack.c.bf16 %v3107_v41, %v3103_v37  ;;  %7175 = verf.f32 %v2568_v46  ;;  %v3138_v37 = vld [vmem:[#allocation8 + $0x1018] sm:$0xff]  ;;  %v6234_v46 = vpack.c.bf16 %v3131_v28, %v3127_v27 }
 0x383   : > { %6721 = vmatprep.subr.bf16.mxu1 %v6720_v16  ;;  %v3114_v16 = vld [vmem:[#allocation8 + $0xf58] sm:$0xff]  ;;  %v6734_v13 = vpack.c.bf16 %v3109_v44, %v3105_v53  ;;  %v3129_v40 = vld [vmem:[#allocation8 + $0xfd0] sm:$0xff] }
 0x384   : > { %v3142_v41 = vld [vmem:[#allocation8 + $0x1038] sm:$0xff]  ;;  %v3157_v28 = vld [vmem:[#allocation8 + $0x10b0] sm:$0xff] }
 0x385   : > { %6211 = vmatpush1.bf16.msra.mxu0 %v6210_v59  ;;  %v6736_v59 = vpack.c.bf16 %v3118_v63, %v3114_v16  ;;  %v3139_v16 = vld [vmem:[#allocation8 + $0x1020] sm:$0xff]  ;;  %v6748_v63 = vpack.c.bf16 %v3142_v41, %v3138_v37 }
 0x386   : > { %6723 = vmatpush1.bf16.msra.mxu1 %v6722_v61  ;;  %6213 = vmatprep.subr.bf16.mxu0 %v6212_v62  ;;  %v3117_v61 = vld [vmem:[#allocation8 + $0xf70] sm:$0xff]  ;;  %v3120_v62 = vld [vmem:[#allocation8 + $0xf88] sm:$0xff]  ;;  %v3159_v41 = vld [vmem:[#allocation8 + $0x10c0] sm:$0xff] }
 0x387   : > { %6725 = vmatprep.subr.bf16.mxu1 %v6724_v7  ;;  %v6738_v7 = vpack.c.bf16 %v3117_v61, %v3113_v30  ;;  %v6228_v8 = vpack.c.bf16 %v3124_v24, %v3120_v62  ;;  %v3148_v30 = vld [vmem:[#allocation8 + $0x1068] sm:$0xff]  ;;  %v3146_v61 = vld [vmem:[#allocation8 + $0x1058] sm:$0xff] }
 0x388   : > { %v3150_v62 = vld [vmem:[#allocation8 + $0x1078] sm:$0xff]  ;;  %v6240_v10 = vpack.c.bf16 %v3148_v30, %v3144_v58  ;;  %v3171_v58 = vld [vmem:[#allocation8 + $0x1120] sm:$0xff]  ;;  %v3169_v30 = vld [vmem:[#allocation8 + $0x1110] sm:$0xff] }
 0x389   : > { %6215 = vmatpush1.bf16.msra.mxu0 %v6214_v14  ;;  %v3125_v14 = vld [vmem:[#allocation8 + $0xfb0] sm:$0xff]  ;;  %v7174_v5 = vpop.eup %7173 }
 0x38a   : > { %6727 = vmatpush1.bf16.msra.mxu1 %v6726_v15  ;;  %6217 = vmatprep.subr.bf16.mxu0 %v6216_v17  ;;  %v3128_v15 = vld [vmem:[#allocation8 + $0xfc8] sm:$0xff] }
 0x38b   : > { %6729 = vmatprep.subr.bf16.mxu1 %v6728_v23  ;;  %v3132_v17 = vld [vmem:[#allocation8 + $0xfe8] sm:$0xff]  ;;  %v6742_v23 = vpack.c.bf16 %v3125_v14, %v3121_v0  ;;  %v6752_v14 = vpack.c.bf16 %v3150_v62, %v3146_v61  ;;  %v3173_v61 = vld [vmem:[#allocation8 + $0x1130] sm:$0xff] }
 0x38c   : > { %v6232_v25 = vpack.c.bf16 %v3132_v17, %v3128_v15  ;;  %v7176_v53 = vpop.eup %7175  ;;  %v3156_v0 = vld [vmem:[#allocation8 + $0x10a8] sm:$0xff]  ;;  %v3154_v15 = vld [vmem:[#allocation8 + $0x1098] sm:$0xff] }
 0x38d   : > { %6219 = vmatpush1.bf16.msra.mxu0 %v6218_v56  ;;  %v3133_v56 = vld [vmem:[#allocation8 + $0xff0] sm:$0xff]  ;;  %v2600_v57 = vadd.f32 1.0, %v7176_v53  ;;  %v3158_v17 = vld [vmem:[#allocation8 + $0x10b8] sm:$0xff]  ;;  %v3163_v53 = vld [vmem:[#allocation8 + $0x10e0] sm:$0xff] }
 0x38e   : > { %6731 = vmatpush1.bf16.msra.mxu1 %v6730_v33  ;;  %6221 = vmatprep.subr.bf16.mxu0 %v6220_v36  ;;  %v3136_v33 = vld [vmem:[#allocation8 + $0x1008] sm:$0xff]  ;;  %v6746_v44 = vpack.c.bf16 %v3133_v56, %v3129_v40  ;;  %v6756_v27 = vpack.c.bf16 %v3158_v17, %v3154_v15  ;;  %v3166_v56 = vld [vmem:[#allocation8 + $0x10f8] sm:$0xff] }
 0x38f   : > { %6733 = vmatprep.subr.bf16.mxu1 %v6732_v42  ;;  %v3140_v36 = vld [vmem:[#allocation8 + $0x1028] sm:$0xff]  ;;  %v2597_v42 = vadd.f32 1.0, %v7174_v5  ;;  %v3186_v17 = vld [vmem:[#allocation8 + $0x1198] sm:$0xff] }
 0x390   : > { %v6236_v47 = vpack.c.bf16 %v3140_v36, %v3136_v33  ;;  %v3160_v40 = vld [vmem:[#allocation8 + $0x10c8] sm:$0xff] }
 0x391   : > { %6223 = vmatpush1.bf16.msra.mxu0 %v6222_v51  ;;  %v3137_v51 = vld [vmem:[#allocation8 + $0x1010] sm:$0xff]  ;;  %v3164_v5 = vld [vmem:[#allocation8 + $0x10e8] sm:$0xff] }
 0x392   : > { %6735 = vmatpush1.bf16.msra.mxu1 %v6734_v13  ;;  %6225 = vmatprep.subr.bf16.mxu0 %v6224_v55  ;;  %v3141_v13 = vld [vmem:[#allocation8 + $0x1030] sm:$0xff]  ;;  %v2549_v55 = vmul.f32 0.5, %v7834_v12  ;;  %v3152_v12 = vld [vmem:[#allocation8 + $0x1088] sm:$0xff]  ;;  %v6248_v37 = vpack.c.bf16 %v3164_v5, %v3160_v40 }
 0x393   : > { %6737 = vmatprep.subr.bf16.mxu1 %v6736_v59  ;;  %v6238_v59 = vpack.c.bf16 %v3139_v16, %v3135_v49  ;;  %v6750_v34 = vpack.c.bf16 %v3141_v13, %v3137_v51  ;;  %v6244_v19 = vpack.c.bf16 %v3156_v0, %v3152_v12  ;;  %v3172_v49 = vld [vmem:[#allocation8 + $0x1128] sm:$0xff]  ;;  %v3170_v16 = vld [vmem:[#allocation8 + $0x1118] sm:$0xff]  ;;  %v6250_v51 = vpack.c.bf16 %v3163_v53, %v3159_v41  ;;  %v3177_v12 = vld [vmem:[#allocation8 + $0x1150] sm:$0xff] }
 0x394   : > { %v2613_v24 = vmul.f32 %v2597_v42, %v2549_v55  ;;  %v3176_v62 = vld [vmem:[#allocation8 + $0x1148] sm:$0xff]  ;;  %v3189_v40 = vld [vmem:[#allocation8 + $0x11b0] sm:$0xff]  ;;  %v3191_v53 = vld [vmem:[#allocation8 + $0x11c0] sm:$0xff] }
 0x395   : > { %6227 = vmatpush1.bf16.msra.mxu0 %v6226_v3  ;;  %v3143_v3 = vld [vmem:[#allocation8 + $0x1040] sm:$0xff]  ;;  %v3188_v15 = vld [vmem:[#allocation8 + $0x11a8] sm:$0xff] }
 0x396   : > { %6739 = vmatpush1.bf16.msra.mxu1 %v6738_v7  ;;  %6229 = vmatprep.subr.bf16.mxu0 %v6228_v8  ;;  %v3147_v7 = vld [vmem:[#allocation8 + $0x1060] sm:$0xff]  ;;  %v3145_v8 = vld [vmem:[#allocation8 + $0x1050] sm:$0xff]  ;;  %v3192_v5 = vld [vmem:[#allocation8 + $0x11c8] sm:$0xff] }
 0x397   : > { %6741 = vmatprep.subr.bf16.mxu1 %v6740_v11  ;;  %v2616_v11 = vmul.f32 %v2600_v57, %v2552_v1  ;;  %v6242_v18 = vpack.c.bf16 %v3147_v7, %v3143_v3  ;;  %v6754_v20 = vpack.c.bf16 %v3149_v6, %v3145_v8  ;;  %v3167_v57 = vld [vmem:[#allocation8 + $0x1100] sm:$0xff]  ;;  %v3178_v1 = vld [vmem:[#allocation8 + $0x1158] sm:$0xff]  ;;  %v6766_v7 = vpack.c.bf16 %v3173_v61, %v3169_v30 }
 0x398   : > { %v6254_v3 = vpack.c.bf16 %v3171_v58, %v3167_v57  ;;  %v3179_v6 = vld [vmem:[#allocation8 + $0x1160] sm:$0xff] }
 0x399   : > { %6231 = vmatpush1.bf16.msra.mxu0 %v6230_v9  ;;  %v3151_v9 = vld [vmem:[#allocation8 + $0x1080] sm:$0xff] }
 0x39a   : > { %6743 = vmatpush1.bf16.msra.mxu1 %v6742_v23  ;;  %6233 = vmatprep.subr.bf16.mxu0 %v6232_v25  ;;  %v3155_v23 = vld [vmem:[#allocation8 + $0x10a0] sm:$0xff]  ;;  %v3153_v25 = vld [vmem:[#allocation8 + $0x1090] sm:$0xff] }
 0x39b   : > { %6745 = vmatprep.subr.bf16.mxu1 %v6744_v32  ;;  %v3162_v32 = vld [vmem:[#allocation8 + $0x10d8] sm:$0xff]  ;;  %v6246_v33 = vpack.c.bf16 %v3155_v23, %v3151_v9  ;;  %v6758_v36 = vpack.c.bf16 %v3157_v28, %v3153_v25  ;;  %v3183_v23 = vld [vmem:[#allocation8 + $0x1180] sm:$0xff] }
 0x39c   : > { %v6760_v42 = vpack.c.bf16 %v3166_v56, %v3162_v32  ;;  %v3187_v25 = vld [vmem:[#allocation8 + $0x11a0] sm:$0xff]  ;;  %v3196_v32 = vld [vmem:[#allocation8 + $0x11e8] sm:$0xff]  ;;  %v3194_v56 = vld [vmem:[#allocation8 + $0x11d8] sm:$0xff] }
 0x39d   : > { %6235 = vmatpush1.bf16.msra.mxu0 %v6234_v46  ;;  %v3161_v46 = vld [vmem:[#allocation8 + $0x10d0] sm:$0xff]  ;;  %v6264_v41 = vpack.c.bf16 %v3196_v32, %v3192_v5  ;;  %v3199_v58 = vld [vmem:[#allocation8 + $0x1200] sm:$0xff]  ;;  %v1374_v5 = vrot.slane %v7827_v54, %v7755_v29 }
 0x39e   : > { %6747 = vmatpush1.bf16.msra.mxu1 %v6746_v44  ;;  %6237 = vmatprep.subr.bf16.mxu0 %v6236_v47  ;;  %v3165_v44 = vld [vmem:[#allocation8 + $0x10f0] sm:$0xff]  ;;  %v3168_v47 = vld [vmem:[#allocation8 + $0x1108] sm:$0xff]  ;;  %v3203_v30 = vld [vmem:[#allocation8 + $0x1220] sm:$0xff] }
 0x39f   : > { %6749 = vmatprep.subr.bf16.mxu1 %v6748_v63  ;;  %v3174_v63 = vld [vmem:[#allocation8 + $0x1138] sm:$0xff]  ;;  %v6762_v13 = vpack.c.bf16 %v3165_v44, %v3161_v46  ;;  %v6252_v55 = vpack.c.bf16 %v3172_v49, %v3168_v47  ;;  %v3195_v46 = vld [vmem:[#allocation8 + $0x11e0] sm:$0xff]  ;;  %v3197_v47 = vld [vmem:[#allocation8 + $0x11f0] sm:$0xff] }
 0x3a0   : > { %3947 = vmatmul.mubr.f32.vlgmr.msra.gmra.mrb[8].mxu0 %v2613_v24  ;;  %v3200_v49 = vld [vmem:[#allocation8 + $0x1208] sm:$0xff] }
 0x3a1   : > { %4515 = vmatmul.mubr.f32.vlgmr.msra.gmra.mrb[8].mxu1 %v2613_v24  ;;  %6239 = vmatpush1.bf16.msra.mxu0 %v6238_v59  ;;  %v6764_v59 = vpack.c.bf16 %v3174_v63, %v3170_v16  ;;  %v3180_v24 = vld [vmem:[#allocation8 + $0x1168] sm:$0xff]  ;;  %v3202_v63 = vld [vmem:[#allocation8 + $0x1218] sm:$0xff] }
 0x3a2   : > { %4017 = vmatprep.mubr.f32.mxu0 %v2616_v11  ;;  %6751 = vmatpush1.bf16.msra.mxu1 %v6750_v34  ;;  %v3182_v34 = vld [vmem:[#allocation8 + $0x1178] sm:$0xff]  ;;  %v6256_v8 = vpack.c.bf16 %v3180_v24, %v3176_v62  ;;  %v3204_v16 = vld [vmem:[#allocation8 + $0x1228] sm:$0xff]  ;;  %v3205_v62 = vld [vmem:[#allocation8 + $0x1230] sm:$0xff] }
 0x3a3   : > { %4585 = vmatprep.mubr.f32.mxu1 %v2616_v11  ;;  %6241 = vmatprep.subr.bf16.mxu0 %v6240_v10  ;;  %v3175_v10 = vld [vmem:[#allocation8 + $0x1140] sm:$0xff]  ;;  %v6768_v0 = vpack.c.bf16 %v3182_v34, %v3178_v1  ;;  %v3181_v11 = vld [vmem:[#allocation8 + $0x1170] sm:$0xff]  ;;  %v6268_v57 = vpack.c.bf16 %v3204_v16, %v3200_v49  ;;  %v3208_v24 = vld [vmem:[#allocation8 + $0x1248] sm:$0xff] }
 0x3a4   : > { %6753 = vmatprep.subr.bf16.mxu1 %v6752_v14  ;;  %v3184_v14 = vld [vmem:[#allocation8 + $0x1188] sm:$0xff]  ;;  %v3210_v34 = vld [vmem:[#allocation8 + $0x1258] sm:$0xff]  ;;  %v3227_v49 = vld [vmem:[#allocation8 + $0x12e0] sm:$0xff] }
 0x3a5   : > { %6243 = vmatpush1.bf16.msra.mxu0 %v6242_v18  ;;  %v3190_v18 = vld [vmem:[#allocation8 + $0x11b8] sm:$0xff]  ;;  %v6260_v9 = vpack.c.bf16 %v3188_v15, %v3184_v14  ;;  %v3212_v1 = vld [vmem:[#allocation8 + $0x1268] sm:$0xff]  ;;  %v3213_v14 = vld [vmem:[#allocation8 + $0x1270] sm:$0xff] }
 0x3a6   : > { %6755 = vmatpush1.bf16.msra.mxu1 %v6754_v20  ;;  %6245 = vmatprep.subr.bf16.mxu0 %v6244_v19  ;;  %v6258_v20 = vpack.c.bf16 %v3179_v6, %v3175_v10  ;;  %v6770_v19 = vpack.c.bf16 %v3181_v11, %v3177_v12  ;;  %v6772_v28 = vpack.c.bf16 %v3190_v18, %v3186_v17  ;;  %v3207_v6 = vld [vmem:[#allocation8 + $0x1240] sm:$0xff]  ;;  %v3216_v15 = vld [vmem:[#allocation8 + $0x1288] sm:$0xff]  ;;  %v3218_v18 = vld [vmem:[#allocation8 + $0x1298] sm:$0xff] }
 0x3a7   : > { %6757 = vmatprep.subr.bf16.mxu1 %v6756_v27  ;;  %v3185_v27 = vld [vmem:[#allocation8 + $0x1190] sm:$0xff]  ;;  %v6272_v10 = vpack.c.bf16 %v3212_v1, %v3208_v24  ;;  %v3211_v12 = vld [vmem:[#allocation8 + $0x1260] sm:$0xff]  ;;  %v3220_v17 = vld [vmem:[#allocation8 + $0x12a8] sm:$0xff] }
 0x3a8   : > { %v3225_v16 = vld [vmem:[#allocation8 + $0x12d0] sm:$0xff]  ;;  %v3235_v24 = vld [vmem:[#allocation8 + $0x1320] sm:$0xff] }
 0x3a9   : > { %6247 = vmatpush1.bf16.msra.mxu0 %v6246_v33  ;;  %v3198_v33 = vld [vmem:[#allocation8 + $0x11f8] sm:$0xff]  ;;  %v3233_v1 = vld [vmem:[#allocation8 + $0x1310] sm:$0xff] }
 0x3aa   : > { %6759 = vmatpush1.bf16.msra.mxu1 %v6758_v36  ;;  %6249 = vmatprep.subr.bf16.mxu0 %v6248_v37  ;;  %v6262_v36 = vpack.c.bf16 %v3187_v25, %v3183_v23  ;;  %v6774_v37 = vpack.c.bf16 %v3189_v40, %v3185_v27  ;;  %v6776_v44 = vpack.c.bf16 %v3198_v33, %v3194_v56  ;;  %v3215_v27 = vld [vmem:[#allocation8 + $0x1280] sm:$0xff]  ;;  %v3217_v40 = vld [vmem:[#allocation8 + $0x1290] sm:$0xff]  ;;  %v3224_v33 = vld [vmem:[#allocation8 + $0x12c8] sm:$0xff] }
 0x3ab   : > { %6761 = vmatprep.subr.bf16.mxu1 %v6760_v42  ;;  %v3193_v42 = vld [vmem:[#allocation8 + $0x11d0] sm:$0xff]  ;;  %v6276_v25 = vpack.c.bf16 %v3220_v17, %v3216_v15  ;;  %v3243_v15 = vld [vmem:[#allocation8 + $0x1360] sm:$0xff] }
 0x3ac   : > { %v3221_v56 = vld [vmem:[#allocation8 + $0x12b0] sm:$0xff] }
 0x3ad   : > { %6251 = vmatpush1.bf16.msra.mxu0 %v6250_v51  ;;  %v3206_v51 = vld [vmem:[#allocation8 + $0x1238] sm:$0xff]  ;;  %v3241_v17 = vld [vmem:[#allocation8 + $0x1350] sm:$0xff] }
 0x3ae   : > { %6763 = vmatpush1.bf16.msra.mxu1 %v6762_v13  ;;  %6253 = vmatprep.subr.bf16.mxu0 %v6252_v55  ;;  %v6266_v13 = vpack.c.bf16 %v3195_v46, %v3191_v53  ;;  %v6778_v55 = vpack.c.bf16 %v3197_v47, %v3193_v42  ;;  %v6780_v61 = vpack.c.bf16 %v3206_v51, %v3202_v63  ;;  %v3223_v47 = vld [vmem:[#allocation8 + $0x12c0] sm:$0xff]  ;;  %v3229_v51 = vld [vmem:[#allocation8 + $0x12f0] sm:$0xff] }
 0x3af   : > { %6765 = vmatprep.subr.bf16.mxu1 %v6764_v59  ;;  %v3201_v59 = vld [vmem:[#allocation8 + $0x1210] sm:$0xff]  ;;  %v6790_v42 = vpack.c.bf16 %v3221_v56, %v3217_v40 }
 0x3b0   : > { %v3249_v56 = vld [vmem:[#allocation8 + $0x1390] sm:$0xff] }
 0x3b1   : > { %6255 = vmatpush1.bf16.msra.mxu0 %v6254_v3  ;;  %v3214_v3 = vld [vmem:[#allocation8 + $0x1278] sm:$0xff] }
 0x3b2   : > { %6767 = vmatpush1.bf16.msra.mxu1 %v6766_v7  ;;  %6257 = vmatprep.subr.bf16.mxu0 %v6256_v8  ;;  %v6270_v7 = vpack.c.bf16 %v3203_v30, %v3199_v58  ;;  %v6782_v8 = vpack.c.bf16 %v3205_v62, %v3201_v59  ;;  %v6784_v11 = vpack.c.bf16 %v3214_v3, %v3210_v34  ;;  %v3231_v62 = vld [vmem:[#allocation8 + $0x1300] sm:$0xff]  ;;  %v3237_v3 = vld [vmem:[#allocation8 + $0x1330] sm:$0xff] }
 0x3b3   : > { %6769 = vmatprep.subr.bf16.mxu1 %v6768_v0  ;;  %v3209_v0 = vld [vmem:[#allocation8 + $0x1250] sm:$0xff]  ;;  %v6282_v30 = vpack.c.bf16 %v3227_v49, %v3223_v47  ;;  %v6794_v59 = vpack.c.bf16 %v3229_v51, %v3225_v16  ;;  %v3255_v16 = vld [vmem:[#allocation8 + $0x13c0] sm:$0xff] }
 0x3b4   : > { %v6786_v23 = vpack.c.bf16 %v3213_v14, %v3209_v0  ;;  %v6798_v0 = vpack.c.bf16 %v3237_v3, %v3233_v1  ;;  %v3239_v14 = vld [vmem:[#allocation8 + $0x1340] sm:$0xff]  ;;  %v3257_v51 = vld [vmem:[#allocation8 + $0x13d0] sm:$0xff] }
 0x3b5   : > { %6259 = vmatpush1.bf16.msra.mxu0 %v6258_v20  ;;  %v3222_v20 = vld [vmem:[#allocation8 + $0x12b8] sm:$0xff]  ;;  %v3267_v3 = vld [vmem:[#allocation8 + $0x1420] sm:$0xff] }
 0x3b6   : > { %6771 = vmatpush1.bf16.msra.mxu1 %v6770_v19  ;;  %6261 = vmatprep.subr.bf16.mxu0 %v6260_v9  ;;  %v1362_v19 = vrot.slane %v7827_v54, %v7752_v22  ;;  %v6274_v9 = vpack.c.bf16 %v3211_v12, %v3207_v6  ;;  %v6788_v32 = vpack.c.bf16 %v3222_v20, %v3218_v18  ;;  %v3246_v6 = vld [vmem:[#allocation8 + $0x1378] sm:$0xff]  ;;  %v3245_v20 = vld [vmem:[#allocation8 + $0x1370] sm:$0xff] }
 0x3b7   : > { %6773 = vmatprep.subr.bf16.mxu1 %v6772_v28  ;;  %v3219_v28 = vld [vmem:[#allocation8 + $0x12a0] sm:$0xff]  ;;  %v7851_v54 = vadd.f32 %v7777_v50, %v1374_v5  ;;  %v6286_v12 = vpack.c.bf16 %v3235_v24, %v3231_v62 }
 0x3b8   : > { %v7848_v53 = vadd.f32 %v7771_v38, %v1362_v19  ;;  %v6278_v46 = vpack.c.bf16 %v3219_v28, %v3215_v27  ;;  %v3238_v38 = vld [vmem:[#allocation8 + $0x1338] sm:$0xff]  ;;  %v3248_v19 = vld [vmem:[#allocation8 + $0x1388] sm:$0xff]  ;;  %v6290_v27 = vpack.c.bf16 %v3243_v15, %v3239_v14  ;;  %v6802_v28 = vpack.c.bf16 %v3245_v20, %v3241_v17  ;;  %v3247_v5 = vld [vmem:[#allocation8 + $0x1380] sm:$0xff] }
 0x3b9   : > { %6263 = vmatpush1.bf16.msra.mxu0 %v6262_v36  ;;  %v3228_v36 = vld [vmem:[#allocation8 + $0x12e8] sm:$0xff]  ;;  %v2570_v50 = vmul.f32 0.70710677, %v7851_v54  ;;  %v3274_v15 = vld [vmem:[#allocation8 + $0x1458] sm:$0xff]  ;;  %v2554_v20 = vmul.f32 0.5, %v7851_v54 }
 0x3ba   : > { %6775 = vmatpush1.bf16.msra.mxu1 %v6774_v37  ;;  %6265 = vmatprep.subr.bf16.mxu0 %v6264_v41  ;;  %v3226_v37 = vld [vmem:[#allocation8 + $0x12d8] sm:$0xff]  ;;  %v2567_v58 = vmul.f32 0.70710677, %v7848_v53 }
 0x3bb   : > { %6777 = vmatprep.subr.bf16.mxu1 %v6776_v44  ;;  %v3230_v41 = vld [vmem:[#allocation8 + $0x12f8] sm:$0xff]  ;;  %v6280_v44 = vpack.c.bf16 %v3228_v36, %v3224_v33  ;;  %v3253_v36 = vld [vmem:[#allocation8 + $0x13b0] sm:$0xff] }
 0x3bc   : > { %v6792_v63 = vpack.c.bf16 %v3230_v41, %v3226_v37  ;;  %7177 = verf.f32 %v2567_v58  ;;  %v3256_v37 = vld [vmem:[#allocation8 + $0x13c8] sm:$0xff]  ;;  %v6806_v47 = vpack.c.bf16 %v3253_v36, %v3249_v56  ;;  %v3278_v17 = vld [vmem:[#allocation8 + $0x1478] sm:$0xff] }
 0x3bd   : > { %6267 = vmatpush1.bf16.msra.mxu0 %v6266_v13  ;;  %v3232_v13 = vld [vmem:[#allocation8 + $0x1308] sm:$0xff]  ;;  %7179 = verf.f32 %v2570_v50  ;;  %v3282_v56 = vld [vmem:[#allocation8 + $0x1498] sm:$0xff] }
 0x3be   : > { %6779 = vmatpush1.bf16.msra.mxu1 %v6778_v55  ;;  %6269 = vmatprep.subr.bf16.mxu0 %v6268_v57  ;;  %v3236_v55 = vld [vmem:[#allocation8 + $0x1328] sm:$0xff]  ;;  %v3234_v57 = vld [vmem:[#allocation8 + $0x1318] sm:$0xff] }
 0x3bf   : > { %6781 = vmatprep.subr.bf16.mxu1 %v6780_v61  ;;  %v6284_v61 = vpack.c.bf16 %v3236_v55, %v3232_v13  ;;  %v6796_v34 = vpack.c.bf16 %v3238_v38, %v3234_v57  ;;  %v3260_v41 = vld [vmem:[#allocation8 + $0x13e8] sm:$0xff]  ;;  %v3261_v57 = vld [vmem:[#allocation8 + $0x13f0] sm:$0xff] }
 0x3c0   : > { %v6296_v49 = vpack.c.bf16 %v3260_v41, %v3256_v37  ;;  %v3264_v38 = vld [vmem:[#allocation8 + $0x1408] sm:$0xff]  ;;  %v6810_v1 = vpack.c.bf16 %v3261_v57, %v3257_v51  ;;  %v3279_v41 = vld [vmem:[#allocation8 + $0x1480] sm:$0xff]  ;;  %v3294_v51 = vld [vmem:[#allocation8 + $0x14f8] sm:$0xff] }
 0x3c1   : > { %6271 = vmatpush1.bf16.msra.mxu0 %v6270_v7  ;;  %v3240_v7 = vld [vmem:[#allocation8 + $0x1348] sm:$0xff] }
 0x3c2   : > { %6783 = vmatpush1.bf16.msra.mxu1 %v6782_v8  ;;  %6273 = vmatprep.subr.bf16.mxu0 %v6272_v10  ;;  %v3244_v8 = vld [vmem:[#allocation8 + $0x1368] sm:$0xff]  ;;  %v3242_v10 = vld [vmem:[#allocation8 + $0x1358] sm:$0xff] }
 0x3c3   : > { %6785 = vmatprep.subr.bf16.mxu1 %v6784_v11  ;;  %v6288_v11 = vpack.c.bf16 %v3244_v8, %v3240_v7  ;;  %v6800_v18 = vpack.c.bf16 %v3246_v6, %v3242_v10  ;;  %v3268_v58 = vld [vmem:[#allocation8 + $0x1428] sm:$0xff]  ;;  %v3265_v8 = vld [vmem:[#allocation8 + $0x1410] sm:$0xff]  ;;  %v2551_v6 = vmul.f32 0.5, %v7848_v53 }
 0x3c4   : > { %v6300_v50 = vpack.c.bf16 %v3268_v58, %v3264_v38  ;;  %v3269_v10 = vld [vmem:[#allocation8 + $0x1430] sm:$0xff]  ;;  %v3280_v53 = vld [vmem:[#allocation8 + $0x1488] sm:$0xff]  ;;  %v3287_v38 = vld [vmem:[#allocation8 + $0x14c0] sm:$0xff] }
 0x3c5   : > { %6275 = vmatpush1.bf16.msra.mxu0 %v6274_v9  ;;  %v3252_v9 = vld [vmem:[#allocation8 + $0x13a8] sm:$0xff]  ;;  %v3291_v58 = vld [vmem:[#allocation8 + $0x14e0] sm:$0xff] }
 0x3c6   : > { %6787 = vmatpush1.bf16.msra.mxu1 %v6786_v23  ;;  %6277 = vmatprep.subr.bf16.mxu0 %v6276_v25  ;;  %v3250_v23 = vld [vmem:[#allocation8 + $0x1398] sm:$0xff]  ;;  %v6292_v40 = vpack.c.bf16 %v3252_v9, %v3248_v19  ;;  %v7178_v13 = vpop.eup %7177  ;;  %v6814_v19 = vpack.c.bf16 %v3269_v10, %v3265_v8  ;;  %v3271_v9 = vld [vmem:[#allocation8 + $0x1440] sm:$0xff] }
 0x3c7   : > { %6789 = vmatprep.subr.bf16.mxu1 %v6788_v32  ;;  %v3254_v25 = vld [vmem:[#allocation8 + $0x13b8] sm:$0xff]  ;;  %v3251_v32 = vld [vmem:[#allocation8 + $0x13a0] sm:$0xff]  ;;  %v2599_v24 = vadd.f32 1.0, %v7178_v13 }
 0x3c8   : > { %v6804_v33 = vpack.c.bf16 %v3254_v25, %v3250_v23  ;;  %v3275_v23 = vld [vmem:[#allocation8 + $0x1460] sm:$0xff]  ;;  %v3273_v25 = vld [vmem:[#allocation8 + $0x1450] sm:$0xff] }
 0x3c9   : > { %6279 = vmatpush1.bf16.msra.mxu0 %v6278_v46  ;;  %v3258_v46 = vld [vmem:[#allocation8 + $0x13d8] sm:$0xff]  ;;  %v6306_v36 = vpack.c.bf16 %v3275_v23, %v3271_v9  ;;  %v3295_v8 = vld [vmem:[#allocation8 + $0x1500] sm:$0xff] }
 0x3ca   : > { %6791 = vmatpush1.bf16.msra.mxu1 %v6790_v42  ;;  %6281 = vmatprep.subr.bf16.mxu0 %v6280_v44  ;;  %v3262_v42 = vld [vmem:[#allocation8 + $0x13f8] sm:$0xff]  ;;  %v6294_v44 = vpack.c.bf16 %v3251_v32, %v3247_v5  ;;  %v6816_v32 = vpack.c.bf16 %v3278_v17, %v3274_v15  ;;  %v3299_v10 = vld [vmem:[#allocation8 + $0x1520] sm:$0xff] }
 0x3cb   : > { %6793 = vmatprep.subr.bf16.mxu1 %v6792_v63  ;;  %v3259_v63 = vld [vmem:[#allocation8 + $0x13e0] sm:$0xff]  ;;  %v6808_v55 = vpack.c.bf16 %v3262_v42, %v3258_v46  ;;  %v3281_v42 = vld [vmem:[#allocation8 + $0x1490] sm:$0xff]  ;;  %v3306_v15 = vld [vmem:[#allocation8 + $0x1558] sm:$0xff] }
 0x3cc   : > { %v6298_v62 = vpack.c.bf16 %v3259_v63, %v3255_v16  ;;  %v3283_v46 = vld [vmem:[#allocation8 + $0x14a0] sm:$0xff]  ;;  %v3292_v16 = vld [vmem:[#allocation8 + $0x14e8] sm:$0xff]  ;;  %v3290_v63 = vld [vmem:[#allocation8 + $0x14d8] sm:$0xff] }
 0x3cd   : > { %6283 = vmatpush1.bf16.msra.mxu0 %v6282_v30  ;;  %v3266_v30 = vld [vmem:[#allocation8 + $0x1418] sm:$0xff]  ;;  %v6310_v13 = vpack.c.bf16 %v3283_v46, %v3279_v41  ;;  %v3303_v9 = vld [vmem:[#allocation8 + $0x1540] sm:$0xff]  ;;  %v3313_v41 = vld [vmem:[#allocation8 + $0x1590] sm:$0xff] }
 0x3ce   : > { %6795 = vmatpush1.bf16.msra.mxu1 %v6794_v59  ;;  %6285 = vmatprep.subr.bf16.mxu0 %v6284_v61  ;;  %v3270_v59 = vld [vmem:[#allocation8 + $0x1438] sm:$0xff]  ;;  %v7180_v61 = vpop.eup %7179  ;;  %v3307_v23 = vld [vmem:[#allocation8 + $0x1560] sm:$0xff] }
 0x3cf   : > { %6797 = vmatprep.subr.bf16.mxu1 %v6796_v34  ;;  %v3263_v34 = vld [vmem:[#allocation8 + $0x1400] sm:$0xff]  ;;  %v6812_v7 = vpack.c.bf16 %v3270_v59, %v3266_v30  ;;  %v3289_v30 = vld [vmem:[#allocation8 + $0x14d0] sm:$0xff]  ;;  %v6824_v59 = vpack.c.bf16 %v3294_v51, %v3290_v63  ;;  %v3310_v17 = vld [vmem:[#allocation8 + $0x1578] sm:$0xff] }
 0x3d0   : > { %v6302_v14 = vpack.c.bf16 %v3267_v3, %v3263_v34  ;;  %v6314_v34 = vpack.c.bf16 %v3291_v58, %v3287_v38  ;;  %v3321_v38 = vld [vmem:[#allocation8 + $0x15d0] sm:$0xff] }
 0x3d1   : > { %6287 = vmatpush1.bf16.msra.mxu0 %v6286_v12  ;;  %v2602_v12 = vadd.f32 1.0, %v7180_v61  ;;  %v3293_v61 = vld [vmem:[#allocation8 + $0x14f0] sm:$0xff] }
 0x3d2   : > { %6799 = vmatpush1.bf16.msra.mxu1 %v6798_v0  ;;  %6289 = vmatprep.subr.bf16.mxu0 %v6288_v11  ;;  %v3272_v0 = vld [vmem:[#allocation8 + $0x1448] sm:$0xff]  ;;  %v6826_v3 = vpack.c.bf16 %v3293_v61, %v3289_v30  ;;  %v3325_v30 = vld [vmem:[#allocation8 + $0x15f0] sm:$0xff] }
 0x3d3   : > { %6801 = vmatprep.subr.bf16.mxu1 %v6800_v18  ;;  %v3276_v11 = vld [vmem:[#allocation8 + $0x1468] sm:$0xff]  ;;  %v2615_v18 = vmul.f32 %v2599_v24, %v2551_v6  ;;  %v2618_v5 = vmul.f32 %v2602_v12, %v2554_v20  ;;  %v3297_v6 = vld [vmem:[#allocation8 + $0x1510] sm:$0xff] }
 0x3d4   : > { %v3300_v24 = vld [vmem:[#allocation8 + $0x1528] sm:$0xff] }
 0x3d5   : > { %6291 = vmatpush1.bf16.msra.mxu0 %v6290_v27  ;;  %v6304_v27 = vpack.c.bf16 %v3276_v11, %v3272_v0  ;;  %v3301_v0 = vld [vmem:[#allocation8 + $0x1530] sm:$0xff]  ;;  %v3304_v11 = vld [vmem:[#allocation8 + $0x1548] sm:$0xff] }
 0x3d6   : > { %6803 = vmatpush1.bf16.msra.mxu1 %v6802_v28  ;;  %6293 = vmatprep.subr.bf16.mxu0 %v6292_v40  ;;  %v3277_v28 = vld [vmem:[#allocation8 + $0x1470] sm:$0xff]  ;;  %v3284_v40 = vld [vmem:[#allocation8 + $0x14a8] sm:$0xff]  ;;  %v6830_v20 = vpack.c.bf16 %v3301_v0, %v3297_v6 }
 0x3d7   : > { %6805 = vmatprep.subr.bf16.mxu1 %v6804_v33  ;;  %v3286_v33 = vld [vmem:[#allocation8 + $0x14b8] sm:$0xff]  ;;  %v6818_v54 = vpack.c.bf16 %v3277_v28, %v3273_v25  ;;  %v6308_v37 = vpack.c.bf16 %v3284_v40, %v3280_v53  ;;  %v3305_v25 = vld [vmem:[#allocation8 + $0x1550] sm:$0xff]  ;;  %v3312_v53 = vld [vmem:[#allocation8 + $0x1588] sm:$0xff] }
 0x3d8   : > { %v3309_v28 = vld [vmem:[#allocation8 + $0x1570] sm:$0xff]  ;;  %v3316_v40 = vld [vmem:[#allocation8 + $0x15a8] sm:$0xff] }
 0x3d9   : > { %6295 = vmatpush1.bf16.msra.mxu0 %v6294_v44  ;;  %v6820_v44 = vpack.c.bf16 %v3286_v33, %v3282_v56  ;;  %v6322_v56 = vpack.c.bf16 %v3307_v23, %v3303_v9  ;;  %v6834_v33 = vpack.c.bf16 %v3309_v28, %v3305_v25  ;;  %v3332_v61 = vld [vmem:[#allocation8 + $0x1628] sm:$0xff]  ;;  %v3333_v6 = vld [vmem:[#allocation8 + $0x1630] sm:$0xff] }
 0x3da   : > { %6807 = vmatpush1.bf16.msra.mxu1 %v6806_v47  ;;  %6297 = vmatprep.subr.bf16.mxu0 %v6296_v49  ;;  %v3285_v47 = vld [vmem:[#allocation8 + $0x14b0] sm:$0xff]  ;;  %v3288_v49 = vld [vmem:[#allocation8 + $0x14c8] sm:$0xff] }
 0x3db   : > { %6809 = vmatprep.subr.bf16.mxu1 %v6808_v55  ;;  %v6822_v55 = vpack.c.bf16 %v3285_v47, %v3281_v42  ;;  %v6312_v57 = vpack.c.bf16 %v3292_v16, %v3288_v49  ;;  %v3317_v42 = vld [vmem:[#allocation8 + $0x15b0] sm:$0xff]  ;;  %v3324_v47 = vld [vmem:[#allocation8 + $0x15e8] sm:$0xff]  ;;  %v3322_v49 = vld [vmem:[#allocation8 + $0x15d8] sm:$0xff] }
 0x3dc   : > { %v3326_v16 = vld [vmem:[#allocation8 + $0x15f8] sm:$0xff]  ;;  %v6838_v51 = vpack.c.bf16 %v3317_v42, %v3313_v41  ;;  %v3340_v0 = vld [vmem:[#allocation8 + $0x1668] sm:$0xff]  ;;  %v3337_v9 = vld [vmem:[#allocation8 + $0x1650] sm:$0xff] }
 0x3dd   : > { %6299 = vmatpush1.bf16.msra.mxu0 %v6298_v62  ;;  %v3296_v62 = vld [vmem:[#allocation8 + $0x1508] sm:$0xff]  ;;  %v6840_v58 = vpack.c.bf16 %v3326_v16, %v3322_v49  ;;  %v3341_v25 = vld [vmem:[#allocation8 + $0x1670] sm:$0xff]  ;;  %v3354_v16 = vld [vmem:[#allocation8 + $0x16d8] sm:$0xff] }
 0x3de   : > { %6811 = vmatpush1.bf16.msra.mxu1 %v6810_v1  ;;  %6301 = vmatprep.subr.bf16.mxu0 %v6300_v50  ;;  %v3298_v1 = vld [vmem:[#allocation8 + $0x1518] sm:$0xff]  ;;  %v3348_v28 = vld [vmem:[#allocation8 + $0x16a8] sm:$0xff]  ;;  %v3345_v41 = vld [vmem:[#allocation8 + $0x1690] sm:$0xff] }
 0x3df   : > { %6813 = vmatprep.subr.bf16.mxu1 %v6812_v7  ;;  %v3302_v50 = vld [vmem:[#allocation8 + $0x1538] sm:$0xff]  ;;  %v6316_v7 = vpack.c.bf16 %v3300_v24, %v3296_v62  ;;  %v3356_v49 = vld [vmem:[#allocation8 + $0x16e8] sm:$0xff] }
 0x3e0   : > { %4018 = vmatmul.mubr.f32.vlgmr.msra.gmra.mrb[8].mxu0 %v2615_v18  ;;  %v6828_v12 = vpack.c.bf16 %v3302_v50, %v3298_v1  ;;  %v3330_v62 = vld [vmem:[#allocation8 + $0x1618] sm:$0xff]  ;;  %v6842_v50 = vpack.c.bf16 %v3325_v30, %v3321_v38  ;;  %v3351_v38 = vld [vmem:[#allocation8 + $0x16c0] sm:$0xff]  ;;  %v3353_v30 = vld [vmem:[#allocation8 + $0x16d0] sm:$0xff] }
 0x3e1   : > { %4586 = vmatmul.mubr.f32.vlgmr.msra.gmra.mrb[8].mxu1 %v2615_v18  ;;  %6303 = vmatpush1.bf16.msra.mxu0 %v6302_v14  ;;  %v3308_v14 = vld [vmem:[#allocation8 + $0x1568] sm:$0xff]  ;;  %v6318_v18 = vpack.c.bf16 %v3299_v10, %v3295_v8  ;;  %v3334_v24 = vld [vmem:[#allocation8 + $0x1638] sm:$0xff]  ;;  %v3329_v8 = vld [vmem:[#allocation8 + $0x1610] sm:$0xff] }
 0x3e2   : > { %4088 = vmatprep.mubr.f32.mxu0 %v2618_v5  ;;  %6815 = vmatpush1.bf16.msra.mxu1 %v6814_v19  ;;  %v6320_v19 = vpack.c.bf16 %v3308_v14, %v3304_v11  ;;  %v6844_v10 = vpack.c.bf16 %v3334_v24, %v3330_v62  ;;  %v3338_v11 = vld [vmem:[#allocation8 + $0x1658] sm:$0xff]  ;;  %v3360_v62 = vld [vmem:[#allocation8 + $0x1708] sm:$0xff] }
 0x3e3   : > { %4656 = vmatprep.mubr.f32.mxu1 %v2618_v5  ;;  %6305 = vmatprep.subr.bf16.mxu0 %v6304_v27  ;;  %v6832_v27 = vpack.c.bf16 %v3310_v17, %v3306_v15  ;;  %v3314_v5 = vld [vmem:[#allocation8 + $0x1598] sm:$0xff]  ;;  %v6846_v17 = vpack.c.bf16 %v3333_v6, %v3329_v8  ;;  %v3364_v24 = vld [vmem:[#allocation8 + $0x1728] sm:$0xff]  ;;  %v3359_v8 = vld [vmem:[#allocation8 + $0x1700] sm:$0xff] }
 0x3e4   : > { %6817 = vmatprep.subr.bf16.mxu1 %v6816_v32  ;;  %v3318_v32 = vld [vmem:[#allocation8 + $0x15b8] sm:$0xff]  ;;  %v3361_v6 = vld [vmem:[#allocation8 + $0x1710] sm:$0xff] }
 0x3e5   : > { %6307 = vmatpush1.bf16.msra.mxu0 %v6306_v36  ;;  %v6324_v36 = vpack.c.bf16 %v3316_v40, %v3312_v53  ;;  %v6836_v46 = vpack.c.bf16 %v3318_v32, %v3314_v5  ;;  %v3342_v14 = vld [vmem:[#allocation8 + $0x1678] sm:$0xff] }
 0x3e6   : > { %6819 = vmatpush1.bf16.msra.mxu1 %v6818_v54  ;;  %6309 = vmatprep.subr.bf16.mxu0 %v6308_v37  ;;  %v3311_v54 = vld [vmem:[#allocation8 + $0x1580] sm:$0xff]  ;;  %v6848_v23 = vpack.c.bf16 %v3342_v14, %v3338_v11  ;;  %v3346_v53 = vld [vmem:[#allocation8 + $0x1698] sm:$0xff]  ;;  %v3368_v11 = vld [vmem:[#allocation8 + $0x1748] sm:$0xff] }
 0x3e7   : > { %6821 = vmatprep.subr.bf16.mxu1 %v6820_v44  ;;  %v3315_v37 = vld [vmem:[#allocation8 + $0x15a0] sm:$0xff]  ;;  %v3320_v44 = vld [vmem:[#allocation8 + $0x15c8] sm:$0xff]  ;;  %v3350_v40 = vld [vmem:[#allocation8 + $0x16b8] sm:$0xff] }
 0x3e8   : > { %v6326_v63 = vpack.c.bf16 %v3315_v37, %v3311_v54  ;;  %v7857_v5 = vld [vmem:[#allocation7 + $0x8] sm:$0xff]  ;;  %v3343_v54 = vld [vmem:[#allocation8 + $0x1680] sm:$0xff]  ;;  %v6852_v42 = vpack.c.bf16 %v3350_v40, %v3346_v53  ;;  %v3372_v14 = vld [vmem:[#allocation8 + $0x1768] sm:$0xff] }
 0x3e9   : > { %6311 = vmatpush1.bf16.msra.mxu0 %v6310_v13  ;;  %v6328_v13 = vpack.c.bf16 %v3324_v47, %v3320_v44  ;;  %v1370_v32 = vrot.slane %v7857_v5, %v7780_v43  ;;  %v3347_v37 = vld [vmem:[#allocation8 + $0x16a0] sm:$0xff]  ;;  %v3349_v44 = vld [vmem:[#allocation8 + $0x16b0] sm:$0xff]  ;;  %v3352_v47 = vld [vmem:[#allocation8 + $0x16c8] sm:$0xff] }
 0x3ea   : > { %6823 = vmatpush1.bf16.msra.mxu1 %v6822_v55  ;;  %6313 = vmatprep.subr.bf16.mxu0 %v6312_v57  ;;  %v3319_v55 = vld [vmem:[#allocation8 + $0x15c0] sm:$0xff]  ;;  %v3376_v53 = vld [vmem:[#allocation8 + $0x1788] sm:$0xff] }
 0x3eb   : > { %6825 = vmatprep.subr.bf16.mxu1 %v6824_v59  ;;  %v3323_v57 = vld [vmem:[#allocation8 + $0x15e0] sm:$0xff]  ;;  %v3328_v59 = vld [vmem:[#allocation8 + $0x1608] sm:$0xff] }
 0x3ec   : > { %v6330_v1 = vpack.c.bf16 %v3323_v57, %v3319_v55  ;;  %v6854_v55 = vpack.c.bf16 %v3349_v44, %v3345_v41  ;;  %v6344_v57 = vpack.c.bf16 %v3356_v49, %v3352_v47  ;;  %v3380_v40 = vld [vmem:[#allocation8 + $0x17a8] sm:$0xff]  ;;  %v3379_v41 = vld [vmem:[#allocation8 + $0x17a0] sm:$0xff]  ;;  %v3381_v44 = vld [vmem:[#allocation8 + $0x17b0] sm:$0xff] }
 0x3ed   : > { %6315 = vmatpush1.bf16.msra.mxu0 %v6314_v34  ;;  %v6332_v34 = vpack.c.bf16 %v3332_v61, %v3328_v59  ;;  %v3357_v61 = vld [vmem:[#allocation8 + $0x16f0] sm:$0xff]  ;;  %v3384_v47 = vld [vmem:[#allocation8 + $0x17c8] sm:$0xff] }
 0x3ee   : > { %6827 = vmatpush1.bf16.msra.mxu1 %v6826_v3  ;;  %6317 = vmatprep.subr.bf16.mxu0 %v6316_v7  ;;  %v3327_v3 = vld [vmem:[#allocation8 + $0x1600] sm:$0xff]  ;;  %v3388_v49 = vld [vmem:[#allocation8 + $0x17e8] sm:$0xff] }
 0x3ef   : > { %6829 = vmatprep.subr.bf16.mxu1 %v6828_v12  ;;  %v3331_v7 = vld [vmem:[#allocation8 + $0x1620] sm:$0xff]  ;;  %v3336_v12 = vld [vmem:[#allocation8 + $0x1648] sm:$0xff] }
 0x3f0   : > { %v6334_v15 = vpack.c.bf16 %v3331_v7, %v3327_v3  ;;  %v6858_v3 = vpack.c.bf16 %v3357_v61, %v3353_v30  ;;  %v6348_v7 = vpack.c.bf16 %v3364_v24, %v3360_v62  ;;  %v3385_v30 = vld [vmem:[#allocation8 + $0x17d0] sm:$0xff]  ;;  %v3392_v24 = vld [vmem:[#allocation8 + $0x1808] sm:$0xff] }
 0x3f1   : > { %6319 = vmatpush1.bf16.msra.mxu0 %v6318_v18  ;;  %v6336_v18 = vpack.c.bf16 %v3340_v0, %v3336_v12  ;;  %v3365_v0 = vld [vmem:[#allocation8 + $0x1730] sm:$0xff] }
 0x3f2   : > { %6831 = vmatpush1.bf16.msra.mxu1 %v6830_v20  ;;  %6321 = vmatprep.subr.bf16.mxu0 %v6320_v19  ;;  %v3335_v20 = vld [vmem:[#allocation8 + $0x1640] sm:$0xff]  ;;  %v3389_v62 = vld [vmem:[#allocation8 + $0x17f0] sm:$0xff] }
 0x3f3   : > { %6833 = vmatprep.subr.bf16.mxu1 %v6832_v27  ;;  %v3339_v19 = vld [vmem:[#allocation8 + $0x1660] sm:$0xff]  ;;  %v3344_v27 = vld [vmem:[#allocation8 + $0x1688] sm:$0xff] }
 0x3f5   : > { %6323 = vmatpush1.bf16.msra.mxu0 %v6322_v56  ;;  %v6338_v56 = vpack.c.bf16 %v3339_v19, %v3335_v20  ;;  %v6862_v20 = vpack.c.bf16 %v3365_v0, %v3361_v6  ;;  %v6352_v19 = vpack.c.bf16 %v3372_v14, %v3368_v11  ;;  %v3391_v6 = vld [vmem:[#allocation8 + $0x1800] sm:$0xff]  ;;  %v3393_v0 = vld [vmem:[#allocation8 + $0x1810] sm:$0xff] }
 0x3f6   : > { %6835 = vmatpush1.bf16.msra.mxu1 %v6834_v33  ;;  %6325 = vmatprep.subr.bf16.mxu0 %v6324_v36  ;;  %v6850_v33 = vpack.c.bf16 %v3341_v25, %v3337_v9  ;;  %v6340_v36 = vpack.c.bf16 %v3348_v28, %v3344_v27  ;;  %v3367_v9 = vld [vmem:[#allocation8 + $0x1740] sm:$0xff]  ;;  %v3369_v25 = vld [vmem:[#allocation8 + $0x1750] sm:$0xff] }
 0x3f7   : > { %6837 = vmatprep.subr.bf16.mxu1 %v6836_v46  ;;  %v1382_v46 = vrot.slane %v7857_v5, %v1349_v21  ;;  %v3373_v28 = vld [vmem:[#allocation8 + $0x1770] sm:$0xff] }
 0x3f8   : > { %v3397_v11 = vld [vmem:[#allocation8 + $0x1830] sm:$0xff] }
 0x3f9   : > { %6327 = vmatpush1.bf16.msra.mxu0 %v6326_v63  ;;  %v3358_v63 = vld [vmem:[#allocation8 + $0x16f8] sm:$0xff]  ;;  %v7868_v21 = vadd.f32 %v7822_v2, %v1382_v46  ;;  %v3377_v46 = vld [vmem:[#allocation8 + $0x1790] sm:$0xff] }
 0x3fa   : > { %6839 = vmatpush1.bf16.msra.mxu1 %v6838_v51  ;;  %6329 = vmatprep.subr.bf16.mxu0 %v6328_v13  ;;  %v7865_v51 = vadd.f32 %v7773_v45, %v1370_v32  ;;  %v6342_v13 = vpack.c.bf16 %v3347_v37, %v3343_v54  ;;  %v6856_v59 = vpack.c.bf16 %v3358_v63, %v3354_v16  ;;  %v3366_v45 = vld [vmem:[#allocation8 + $0x1738] sm:$0xff]  ;;  %v3375_v37 = vld [vmem:[#allocation8 + $0x1780] sm:$0xff] }
 0x3fb   : > { %6841 = vmatprep.subr.bf16.mxu1 %v6840_v58  ;;  %v3355_v58 = vld [vmem:[#allocation8 + $0x16e0] sm:$0xff]  ;;  %v2572_v2 = vmul.f32 0.70710677, %v7868_v21  ;;  %v3378_v32 = vld [vmem:[#allocation8 + $0x1798] sm:$0xff]  ;;  %v6356_v54 = vpack.c.bf16 %v3380_v40, %v3376_v53  ;;  %v3401_v40 = vld [vmem:[#allocation8 + $0x1850] sm:$0xff] }
 0x3fc   : > { %v3386_v16 = vld [vmem:[#allocation8 + $0x17d8] sm:$0xff]  ;;  %v2553_v14 = vmul.f32 0.5, %v7865_v51  ;;  %v3403_v53 = vld [vmem:[#allocation8 + $0x1860] sm:$0xff] }
 0x3fd   : > { %6331 = vmatpush1.bf16.msra.mxu0 %v6330_v1  ;;  %v3362_v1 = vld [vmem:[#allocation8 + $0x1718] sm:$0xff] }
 0x3fe   : > { %6843 = vmatpush1.bf16.msra.mxu1 %v6842_v50  ;;  %6333 = vmatprep.subr.bf16.mxu0 %v6332_v34  ;;  %v2569_v50 = vmul.f32 0.70710677, %v7865_v51  ;;  %v6346_v34 = vpack.c.bf16 %v3355_v58, %v3351_v38  ;;  %v6860_v12 = vpack.c.bf16 %v3366_v45, %v3362_v1  ;;  %v3390_v63 = vld [vmem:[#allocation8 + $0x17f8] sm:$0xff]  ;;  %v3383_v38 = vld [vmem:[#allocation8 + $0x17c0] sm:$0xff]  ;;  %v3396_v1 = vld [vmem:[#allocation8 + $0x1828] sm:$0xff] }
 0x3ff   : > { %6845 = vmatprep.subr.bf16.mxu1 %v6844_v10  ;;  %v3363_v10 = vld [vmem:[#allocation8 + $0x1720] sm:$0xff]  ;;  %v6872_v61 = vpack.c.bf16 %v3390_v63, %v3386_v16  ;;  %v3394_v45 = vld [vmem:[#allocation8 + $0x1818] sm:$0xff]  ;;  %v3408_v51 = vld [vmem:[#allocation8 + $0x1888] sm:$0xff] }
 0x400   : > { %7181 = verf.f32 %v2569_v50  ;;  %v3387_v58 = vld [vmem:[#allocation8 + $0x17e0] sm:$0xff]  ;;  %v3398_v50 = vld [vmem:[#allocation8 + $0x1838] sm:$0xff]  ;;  %v3413_v63 = vld [vmem:[#allocation8 + $0x18b0] sm:$0xff] }
 0x401   : > { %6335 = vmatpush1.bf16.msra.mxu0 %v6334_v15  ;;  %v3370_v15 = vld [vmem:[#allocation8 + $0x1758] sm:$0xff]  ;;  %7183 = verf.f32 %v2572_v2  ;;  %v3395_v2 = vld [vmem:[#allocation8 + $0x1820] sm:$0xff] }
 0x402   : > { %6847 = vmatpush1.bf16.msra.mxu1 %v6846_v17  ;;  %6337 = vmatprep.subr.bf16.mxu0 %v6336_v18  ;;  %v3374_v17 = vld [vmem:[#allocation8 + $0x1778] sm:$0xff]  ;;  %v6350_v18 = vpack.c.bf16 %v3363_v10, %v3359_v8  ;;  %v6874_v8 = vpack.c.bf16 %v3389_v62, %v3385_v30  ;;  %v6364_v10 = vpack.c.bf16 %v3396_v1, %v3392_v24  ;;  %v3419_v62 = vld [vmem:[#allocation8 + $0x18e0] sm:$0xff]  ;;  %v3417_v24 = vld [vmem:[#allocation8 + $0x18d0] sm:$0xff] }
 0x403   : > { %6849 = vmatprep.subr.bf16.mxu1 %v6848_v23  ;;  %v3371_v23 = vld [vmem:[#allocation8 + $0x1760] sm:$0xff]  ;;  %v6864_v27 = vpack.c.bf16 %v3374_v17, %v3370_v15  ;;  %v3400_v17 = vld [vmem:[#allocation8 + $0x1848] sm:$0xff] }
 0x405   : > { %6339 = vmatpush1.bf16.msra.mxu0 %v6338_v56  ;;  %v3382_v56 = vld [vmem:[#allocation8 + $0x17b8] sm:$0xff] }
 0x406   : > { %6851 = vmatpush1.bf16.msra.mxu1 %v6850_v33  ;;  %6341 = vmatprep.subr.bf16.mxu0 %v6340_v36  ;;  %v6354_v33 = vpack.c.bf16 %v3371_v23, %v3367_v9  ;;  %v6866_v36 = vpack.c.bf16 %v3373_v28, %v3369_v25  ;;  %v3406_v9 = vld [vmem:[#allocation8 + $0x1878] sm:$0xff]  ;;  %v2556_v25 = vmul.f32 0.5, %v7868_v21  ;;  %v3399_v28 = vld [vmem:[#allocation8 + $0x1840] sm:$0xff] }
 0x407   : > { %6853 = vmatprep.subr.bf16.mxu1 %v6852_v42  ;;  %v6868_v42 = vpack.c.bf16 %v3382_v56, %v3378_v32  ;;  %v3405_v56 = vld [vmem:[#allocation8 + $0x1870] sm:$0xff] }
 0x408   : > { %v6882_v21 = vpack.c.bf16 %v3405_v56, %v3401_v40  ;;  %v3437_v40 = vld [vmem:[#allocation8 + $0x1970] sm:$0xff]  ;;  %v3444_v56 = vld [vmem:[#allocation8 + $0x19a8] sm:$0xff] }
 0x409   : > { %6343 = vmatpush1.bf16.msra.mxu0 %v6342_v13  ;;  %v6358_v13 = vpack.c.bf16 %v3379_v41, %v3375_v37  ;;  %v3410_v37 = vld [vmem:[#allocation8 + $0x1898] sm:$0xff] }
 0x40a   : > { %6855 = vmatpush1.bf16.msra.mxu1 %v6854_v55  ;;  %6345 = vmatprep.subr.bf16.mxu0 %v6344_v57  ;;  %v6870_v55 = vpack.c.bf16 %v3381_v44, %v3377_v46  ;;  %v6360_v57 = vpack.c.bf16 %v3388_v49, %v3384_v47  ;;  %v3414_v41 = vld [vmem:[#allocation8 + $0x18b8] sm:$0xff]  ;;  %v6370_v46 = vpack.c.bf16 %v3403_v53, %v3399_v28  ;;  %v3407_v44 = vld [vmem:[#allocation8 + $0x1880] sm:$0xff]  ;;  %v3409_v49 = vld [vmem:[#allocation8 + $0x1890] sm:$0xff] }
 0x40b   : > { %6857 = vmatprep.subr.bf16.mxu1 %v6856_v59  ;;  %v7182_v59 = vpop.eup %7181  ;;  %v3411_v47 = vld [vmem:[#allocation8 + $0x18a0] sm:$0xff]  ;;  %v6884_v16 = vpack.c.bf16 %v3414_v41, %v3410_v37  ;;  %v6886_v30 = vpack.c.bf16 %v3413_v63, %v3409_v49  ;;  %v3433_v28 = vld [vmem:[#allocation8 + $0x1950] sm:$0xff]  ;;  %v3452_v49 = vld [vmem:[#allocation8 + $0x19e8] sm:$0xff] }
 0x40c   : > { %v3439_v41 = vld [vmem:[#allocation8 + $0x1980] sm:$0xff]  ;;  %v3454_v63 = vld [vmem:[#allocation8 + $0x19f8] sm:$0xff] }
 0x40d   : > { %6347 = vmatpush1.bf16.msra.mxu0 %v6346_v34  ;;  %v7184_v34 = vpop.eup %7183 }
 0x40e   : > { %6859 = vmatpush1.bf16.msra.mxu1 %v6858_v3  ;;  %6349 = vmatprep.subr.bf16.mxu0 %v6348_v7  ;;  %v6362_v3 = vpack.c.bf16 %v3387_v58, %v3383_v38  ;;  %v2601_v7 = vadd.f32 1.0, %v7182_v59  ;;  %v2604_v15 = vadd.f32 1.0, %v7184_v34  ;;  %v3422_v38 = vld [vmem:[#allocation8 + $0x18f8] sm:$0xff]  ;;  %v6374_v58 = vpack.c.bf16 %v3411_v47, %v3407_v44  ;;  %v3428_v34 = vld [vmem:[#allocation8 + $0x1928] sm:$0xff]  ;;  %v3445_v44 = vld [vmem:[#allocation8 + $0x19b0] sm:$0xff] }
 0x40f   : > { %6861 = vmatprep.subr.bf16.mxu1 %v6860_v12  ;;  %v6876_v12 = vpack.c.bf16 %v3398_v50, %v3394_v45  ;;  %v3421_v45 = vld [vmem:[#allocation8 + $0x18f0] sm:$0xff]  ;;  %v3424_v50 = vld [vmem:[#allocation8 + $0x1908] sm:$0xff] }
 0x410   : > { %v2617_v23 = vmul.f32 %v2601_v7, %v2553_v14  ;;  %v3430_v7 = vld [vmem:[#allocation8 + $0x1938] sm:$0xff]  ;;  %v3429_v14 = vld [vmem:[#allocation8 + $0x1930] sm:$0xff]  ;;  %v3448_v47 = vld [vmem:[#allocation8 + $0x19c8] sm:$0xff] }
 0x411   : > { %6351 = vmatpush1.bf16.msra.mxu0 %v6350_v18  ;;  %v3404_v18 = vld [vmem:[#allocation8 + $0x1868] sm:$0xff] }
 0x412   : > { %6863 = vmatpush1.bf16.msra.mxu1 %v6862_v20  ;;  %6353 = vmatprep.subr.bf16.mxu0 %v6352_v19  ;;  %v6366_v20 = vpack.c.bf16 %v3395_v2, %v3391_v6  ;;  %v3402_v19 = vld [vmem:[#allocation8 + $0x1858] sm:$0xff]  ;;  %v6368_v32 = vpack.c.bf16 %v3404_v18, %v3400_v17  ;;  %v6380_v6 = vpack.c.bf16 %v3428_v34, %v3424_v50  ;;  %v3423_v2 = vld [vmem:[#allocation8 + $0x1900] sm:$0xff]  ;;  %v3436_v17 = vld [vmem:[#allocation8 + $0x1968] sm:$0xff] }
 0x413   : > { %6865 = vmatprep.subr.bf16.mxu1 %v6864_v27  ;;  %v6878_v27 = vpack.c.bf16 %v3397_v11, %v3393_v0  ;;  %v3425_v0 = vld [vmem:[#allocation8 + $0x1910] sm:$0xff]  ;;  %v3434_v18 = vld [vmem:[#allocation8 + $0x1958] sm:$0xff] }
 0x415   : > { %6355 = vmatpush1.bf16.msra.mxu0 %v6354_v33  ;;  %v3412_v33 = vld [vmem:[#allocation8 + $0x18a8] sm:$0xff] }
 0x416   : > { %6867 = vmatpush1.bf16.msra.mxu1 %v6866_v36  ;;  %6357 = vmatprep.subr.bf16.mxu0 %v6356_v54  ;;  %v2620_v36 = vmul.f32 %v2604_v15, %v2556_v25  ;;  %v6880_v54 = vpack.c.bf16 %v3406_v9, %v3402_v19  ;;  %v3432_v15 = vld [vmem:[#allocation8 + $0x1948] sm:$0xff]  ;;  %v6894_v9 = vpack.c.bf16 %v3429_v14, %v3425_v0  ;;  %v3431_v25 = vld [vmem:[#allocation8 + $0x1940] sm:$0xff]  ;;  %v3470_v14 = vld [vmem:[#allocation8 + $0x1a78] sm:$0xff] }
 0x417   : > { %6869 = vmatprep.subr.bf16.mxu1 %v6868_v42  ;;  %v6372_v42 = vpack.c.bf16 %v3412_v33, %v3408_v51  ;;  %v3442_v51 = vld [vmem:[#allocation8 + $0x1998] sm:$0xff]  ;;  %v3468_v0 = vld [vmem:[#allocation8 + $0x1a68] sm:$0xff] }
 0x418   : > { %v3446_v33 = vld [vmem:[#allocation8 + $0x19b8] sm:$0xff] }
 0x419   : > { %6359 = vmatpush1.bf16.msra.mxu0 %v6358_v13  ;;  %v3416_v13 = vld [vmem:[#allocation8 + $0x18c8] sm:$0xff] }
 0x41a   : > { %6871 = vmatpush1.bf16.msra.mxu1 %v6870_v55  ;;  %6361 = vmatprep.subr.bf16.mxu0 %v6360_v57  ;;  %v3420_v55 = vld [vmem:[#allocation8 + $0x18e8] sm:$0xff]  ;;  %v3418_v57 = vld [vmem:[#allocation8 + $0x18d8] sm:$0xff] }
 0x41b   : > { %6873 = vmatprep.subr.bf16.mxu1 %v6872_v61  ;;  %v6376_v59 = vpack.c.bf16 %v3420_v55, %v3416_v13  ;;  %v3415_v61 = vld [vmem:[#allocation8 + $0x18c0] sm:$0xff]  ;;  %v6888_v1 = vpack.c.bf16 %v3422_v38, %v3418_v57  ;;  %v6392_v57 = vpack.c.bf16 %v3452_v49, %v3448_v47  ;;  %v3482_v47 = vld [vmem:[#allocation8 + $0x1ad8] sm:$0xff] }
 0x41c   : > { %v3447_v38 = vld [vmem:[#allocation8 + $0x19c0] sm:$0xff] }
 0x41d   : > { %6363 = vmatpush1.bf16.msra.mxu0 %v6362_v3  ;;  %v3426_v3 = vld [vmem:[#allocation8 + $0x1918] sm:$0xff] }
 0x41e   : > { %6875 = vmatpush1.bf16.msra.mxu1 %v6874_v8  ;;  %6365 = vmatprep.subr.bf16.mxu0 %v6364_v10  ;;  %v6378_v8 = vpack.c.bf16 %v3419_v62, %v3415_v61  ;;  %v6890_v10 = vpack.c.bf16 %v3421_v45, %v3417_v24  ;;  %v6892_v11 = vpack.c.bf16 %v3430_v7, %v3426_v3  ;;  %v3453_v61 = vld [vmem:[#allocation8 + $0x19f0] sm:$0xff]  ;;  %v3456_v62 = vld [vmem:[#allocation8 + $0x1a08] sm:$0xff]  ;;  %v3462_v45 = vld [vmem:[#allocation8 + $0x1a38] sm:$0xff] }
 0x41f   : > { %6877 = vmatprep.subr.bf16.mxu1 %v6876_v12  ;;  %v3427_v12 = vld [vmem:[#allocation8 + $0x1920] sm:$0xff]  ;;  %v3460_v24 = vld [vmem:[#allocation8 + $0x1a28] sm:$0xff] }
 0x420   : > { %4089 = vmatmul.mubr.f32.vlgmr.msra.gmra.mrb[8].mxu0 %v2617_v23  ;;  %v6382_v19 = vpack.c.bf16 %v3427_v12, %v3423_v2  ;;  %v6396_v3 = vpack.c.bf16 %v3460_v24, %v3456_v62  ;;  %v3455_v7 = vld [vmem:[#allocation8 + $0x1a00] sm:$0xff]  ;;  %v3461_v2 = vld [vmem:[#allocation8 + $0x1a30] sm:$0xff]  ;;  %v3464_v12 = vld [vmem:[#allocation8 + $0x1a48] sm:$0xff] }
 0x421   : > { %4657 = vmatmul.mubr.f32.vlgmr.msra.gmra.mrb[8].mxu1 %v2617_v23  ;;  %6367 = vmatpush1.bf16.msra.mxu0 %v6366_v20  ;;  %v3438_v20 = vld [vmem:[#allocation8 + $0x1978] sm:$0xff]  ;;  %v6384_v23 = vpack.c.bf16 %v3436_v17, %v3432_v15 }
 0x422   : > { %4159 = vmatprep.mubr.f32.mxu0 %v2620_v36  ;;  %6879 = vmatpush1.bf16.msra.mxu1 %v6878_v27  ;;  %v3435_v27 = vld [vmem:[#allocation8 + $0x1960] sm:$0xff]  ;;  %v6896_v53 = vpack.c.bf16 %v3438_v20, %v3434_v18  ;;  %v6400_v18 = vpack.c.bf16 %v3468_v0, %v3464_v12  ;;  %v3502_v12 = vld [vmem:[#allocation8 + $0x1b78] sm:$0xff] }
 0x423   : > { %4727 = vmatprep.mubr.f32.mxu1 %v2620_v36  ;;  %6369 = vmatprep.subr.bf16.mxu0 %v6368_v32  ;;  %v3440_v32 = vld [vmem:[#allocation8 + $0x1988] sm:$0xff]  ;;  %v6386_v36 = vpack.c.bf16 %v3435_v27, %v3431_v25  ;;  %v3463_v20 = vld [vmem:[#allocation8 + $0x1a40] sm:$0xff]  ;;  %v3469_v25 = vld [vmem:[#allocation8 + $0x1a70] sm:$0xff] }
 0x424   : > { %6881 = vmatprep.subr.bf16.mxu1 %v6880_v54  ;;  %v6898_v54 = vpack.c.bf16 %v3437_v40, %v3433_v28  ;;  %v6388_v37 = vpack.c.bf16 %v3444_v56, %v3440_v32  ;;  %v3472_v27 = vld [vmem:[#allocation8 + $0x1a88] sm:$0xff]  ;;  %v3478_v40 = vld [vmem:[#allocation8 + $0x1ab8] sm:$0xff]  ;;  %v1378_v32 = vrot.slane %v7857_v5, %v1345_v26 }
 0x425   : > { %6371 = vmatpush1.bf16.msra.mxu0 %v6370_v46  ;;  %v3443_v46 = vld [vmem:[#allocation8 + $0x19a0] sm:$0xff]  ;;  %v3476_v28 = vld [vmem:[#allocation8 + $0x1aa8] sm:$0xff]  ;;  %v3486_v26 = vld [vmem:[#allocation8 + $0x1af8] sm:$0xff] }
 0x426   : > { %6883 = vmatpush1.bf16.msra.mxu1 %v6882_v21  ;;  %6373 = vmatprep.subr.bf16.mxu0 %v6372_v42  ;;  %v3441_v21 = vld [vmem:[#allocation8 + $0x1990] sm:$0xff]  ;;  %v6900_v42 = vpack.c.bf16 %v3446_v33, %v3442_v51  ;;  %v6390_v13 = vpack.c.bf16 %v3443_v46, %v3439_v41  ;;  %v6404_v33 = vpack.c.bf16 %v3476_v28, %v3472_v27  ;;  %v3510_v27 = vld [vmem:[#allocation8 + $0x1bb8] sm:$0xff] }
 0x427   : > { %6885 = vmatprep.subr.bf16.mxu1 %v6884_v16  ;;  %v3450_v16 = vld [vmem:[#allocation8 + $0x19d8] sm:$0xff]  ;;  %v6902_v55 = vpack.c.bf16 %v3445_v44, %v3441_v21  ;;  %v1390_v41 = vrot.slane %v7857_v5, %v1357_v35  ;;  %v3477_v21 = vld [vmem:[#allocation8 + $0x1ab0] sm:$0xff]  ;;  %v3484_v44 = vld [vmem:[#allocation8 + $0x1ae8] sm:$0xff]  ;;  %v7881_v49 = vadd.f32 %v7818_v60, %v1378_v32  ;;  %v6920_v5 = vpack.c.bf16 %v3486_v26, %v3482_v47 }
 0x428   : > { %v3494_v60 = vld [vmem:[#allocation8 + $0x1b38] sm:$0xff]  ;;  %v3503_v32 = vld [vmem:[#allocation8 + $0x1b80] sm:$0xff] }
 0x429   : > { %6375 = vmatpush1.bf16.msra.mxu0 %v6374_v58  ;;  %v3451_v58 = vld [vmem:[#allocation8 + $0x19e0] sm:$0xff]  ;;  %v7884_v35 = vadd.f32 %v7824_v4, %v1390_v41  ;;  %v2571_v62 = vmul.f32 0.70710677, %v7881_v49  ;;  %v3514_v41 = vld [vmem:[#allocation8 + $0x1bd8] sm:$0xff] }
 0x42a   : > { %6887 = vmatpush1.bf16.msra.mxu1 %v6886_v30  ;;  %6377 = vmatprep.subr.bf16.mxu0 %v6376_v59  ;;  %v3449_v30 = vld [vmem:[#allocation8 + $0x19d0] sm:$0xff]  ;;  %v6904_v59 = vpack.c.bf16 %v3454_v63, %v3450_v16  ;;  %v6394_v50 = vpack.c.bf16 %v3451_v58, %v3447_v38  ;;  %v3511_v47 = vld [vmem:[#allocation8 + $0x1bc0] sm:$0xff] }
 0x42b   : > { %6889 = vmatprep.subr.bf16.mxu1 %v6888_v1  ;;  %v3458_v1 = vld [vmem:[#allocation8 + $0x1a18] sm:$0xff]  ;;  %v6906_v34 = vpack.c.bf16 %v3453_v61, %v3449_v30  ;;  %v3481_v38 = vld [vmem:[#allocation8 + $0x1ad0] sm:$0xff]  ;;  %v3488_v30 = vld [vmem:[#allocation8 + $0x1b08] sm:$0xff]  ;;  %v2574_v4 = vmul.f32 0.70710677, %v7884_v35  ;;  %7185 = verf.f32 %v2571_v62 }
 0x42c   : > { %v3485_v58 = vld [vmem:[#allocation8 + $0x1af0] sm:$0xff]  ;;  %v3490_v61 = vld [vmem:[#allocation8 + $0x1b18] sm:$0xff]  ;;  %v3515_v26 = vld [vmem:[#allocation8 + $0x1be0] sm:$0xff] }
 0x42d   : > { %6379 = vmatpush1.bf16.msra.mxu0 %v6378_v8  ;;  %v3459_v8 = vld [vmem:[#allocation8 + $0x1a20] sm:$0xff]  ;;  %7187 = verf.f32 %v2574_v4 }
 0x42e   : > { %6891 = vmatpush1.bf16.msra.mxu1 %v6890_v10  ;;  %6381 = vmatprep.subr.bf16.mxu0 %v6380_v6  ;;  %v3457_v10 = vld [vmem:[#allocation8 + $0x1a10] sm:$0xff]  ;;  %v6908_v6 = vpack.c.bf16 %v3462_v45, %v3458_v1  ;;  %v6398_v15 = vpack.c.bf16 %v3459_v8, %v3455_v7  ;;  %v6922_v1 = vpack.c.bf16 %v3485_v58, %v3481_v38  ;;  %v3524_v38 = vld [vmem:[#allocation8 + $0x1c28] sm:$0xff]  ;;  %v3526_v58 = vld [vmem:[#allocation8 + $0x1c38] sm:$0xff] }
 0x42f   : > { %6893 = vmatprep.subr.bf16.mxu1 %v6892_v11  ;;  %v3466_v11 = vld [vmem:[#allocation8 + $0x1a58] sm:$0xff]  ;;  %v6910_v17 = vpack.c.bf16 %v3461_v2, %v3457_v10  ;;  %v6924_v7 = vpack.c.bf16 %v3494_v60, %v3490_v61  ;;  %v3493_v8 = vld [vmem:[#allocation8 + $0x1b30] sm:$0xff]  ;;  %v3496_v10 = vld [vmem:[#allocation8 + $0x1b48] sm:$0xff] }
 0x430   : > { %v3498_v2 = vld [vmem:[#allocation8 + $0x1b58] sm:$0xff] }
 0x431   : > { %6383 = vmatpush1.bf16.msra.mxu0 %v6382_v19  ;;  %v3467_v19 = vld [vmem:[#allocation8 + $0x1a60] sm:$0xff] }
 0x432   : > { %6895 = vmatpush1.bf16.msra.mxu1 %v6894_v9  ;;  %6385 = vmatprep.subr.bf16.mxu0 %v6384_v23  ;;  %v3465_v9 = vld [vmem:[#allocation8 + $0x1a50] sm:$0xff]  ;;  %v6912_v23 = vpack.c.bf16 %v3470_v14, %v3466_v11  ;;  %v6402_v56 = vpack.c.bf16 %v3467_v19, %v3463_v20  ;;  %v6928_v20 = vpack.c.bf16 %v3502_v12, %v3498_v2  ;;  %v3534_v2 = vld [vmem:[#allocation8 + $0x1c78] sm:$0xff] }
 0x433   : > { %6897 = vmatprep.subr.bf16.mxu1 %v6896_v53  ;;  %v3474_v53 = vld [vmem:[#allocation8 + $0x1a98] sm:$0xff]  ;;  %v6914_v51 = vpack.c.bf16 %v3469_v25, %v3465_v9  ;;  %v3501_v19 = vld [vmem:[#allocation8 + $0x1b70] sm:$0xff]  ;;  %v3504_v9 = vld [vmem:[#allocation8 + $0x1b88] sm:$0xff] }
 0x434   : > { %v6916_v46 = vpack.c.bf16 %v3478_v40, %v3474_v53  ;;  %v3506_v25 = vld [vmem:[#allocation8 + $0x1b98] sm:$0xff] }
 0x435   : > { %6387 = vmatpush1.bf16.msra.mxu0 %v6386_v36  ;;  %v3471_v36 = vld [vmem:[#allocation8 + $0x1a80] sm:$0xff] }
 0x436   : > { %6899 = vmatpush1.bf16.msra.mxu1 %v6898_v54  ;;  %6389 = vmatprep.subr.bf16.mxu0 %v6388_v37  ;;  %v3475_v54 = vld [vmem:[#allocation8 + $0x1aa0] sm:$0xff]  ;;  %v3473_v37 = vld [vmem:[#allocation8 + $0x1a90] sm:$0xff] }
 0x437   : > { %6901 = vmatprep.subr.bf16.mxu1 %v6900_v42  ;;  %v3480_v42 = vld [vmem:[#allocation8 + $0x1ac8] sm:$0xff]  ;;  %v6406_v16 = vpack.c.bf16 %v3475_v54, %v3471_v36  ;;  %v6918_v63 = vpack.c.bf16 %v3477_v21, %v3473_v37  ;;  %v3509_v36 = vld [vmem:[#allocation8 + $0x1bb0] sm:$0xff] }
 0x438   : > { %v3512_v54 = vld [vmem:[#allocation8 + $0x1bc8] sm:$0xff] }
 0x439   : > { %6391 = vmatpush1.bf16.msra.mxu0 %v6390_v13  ;;  %v6408_v13 = vpack.c.bf16 %v3484_v44, %v3480_v42  ;;  %v3516_v37 = vld [vmem:[#allocation8 + $0x1be8] sm:$0xff] }
 0x43a   : > { %6903 = vmatpush1.bf16.msra.mxu1 %v6902_v55  ;;  %6393 = vmatprep.subr.bf16.mxu0 %v6392_v57  ;;  %v3479_v55 = vld [vmem:[#allocation8 + $0x1ac0] sm:$0xff]  ;;  %v6424_v44 = vpack.c.bf16 %v3516_v37, %v3512_v54  ;;  %v3548_v54 = vld [vmem:[#allocation8 + $0x1ce8] sm:$0xff]  ;;  %v3546_v37 = vld [vmem:[#allocation8 + $0x1cd8] sm:$0xff] }
 0x43b   : > { %6905 = vmatprep.subr.bf16.mxu1 %v6904_v59  ;;  %v3483_v57 = vld [vmem:[#allocation8 + $0x1ae0] sm:$0xff]  ;;  %v3492_v59 = vld [vmem:[#allocation8 + $0x1b28] sm:$0xff] }
 0x43c   : > { %v6410_v24 = vpack.c.bf16 %v3483_v57, %v3479_v55  ;;  %v6412_v45 = vpack.c.bf16 %v3492_v59, %v3488_v30  ;;  %v3517_v55 = vld [vmem:[#allocation8 + $0x1bf0] sm:$0xff]  ;;  %v3520_v57 = vld [vmem:[#allocation8 + $0x1c08] sm:$0xff]  ;;  %v6426_v59 = vpack.c.bf16 %v3515_v26, %v3511_v47  ;;  %v3547_v47 = vld [vmem:[#allocation8 + $0x1ce0] sm:$0xff] }
 0x43d   : > { %6395 = vmatpush1.bf16.msra.mxu0 %v6394_v50  ;;  %v3487_v50 = vld [vmem:[#allocation8 + $0x1b00] sm:$0xff]  ;;  %v6428_v62 = vpack.c.bf16 %v3524_v38, %v3520_v57  ;;  %v3545_v26 = vld [vmem:[#allocation8 + $0x1cd0] sm:$0xff]  ;;  %v3554_v57 = vld [vmem:[#allocation8 + $0x1d18] sm:$0xff] }
 0x43e   : > { %6907 = vmatpush1.bf16.msra.mxu1 %v6906_v34  ;;  %6397 = vmatprep.subr.bf16.mxu0 %v6396_v3  ;;  %v3491_v34 = vld [vmem:[#allocation8 + $0x1b20] sm:$0xff]  ;;  %v3489_v3 = vld [vmem:[#allocation8 + $0x1b10] sm:$0xff]  ;;  %v3558_v38 = vld [vmem:[#allocation8 + $0x1d38] sm:$0xff] }
 0x43f   : > { %6909 = vmatprep.subr.bf16.mxu1 %v6908_v6  ;;  %v3500_v6 = vld [vmem:[#allocation8 + $0x1b68] sm:$0xff]  ;;  %v6414_v0 = vpack.c.bf16 %v3491_v34, %v3487_v50  ;;  %v6926_v11 = vpack.c.bf16 %v3493_v8, %v3489_v3  ;;  %v3521_v50 = vld [vmem:[#allocation8 + $0x1c10] sm:$0xff]  ;;  %v2555_v3 = vmul.f32 0.5, %v7881_v49 }
 0x440   : > { %v6416_v14 = vpack.c.bf16 %v3500_v6, %v3496_v10  ;;  %v3525_v34 = vld [vmem:[#allocation8 + $0x1c30] sm:$0xff]  ;;  %v3532_v8 = vld [vmem:[#allocation8 + $0x1c68] sm:$0xff]  ;;  %v3530_v6 = vld [vmem:[#allocation8 + $0x1c58] sm:$0xff] }
 0x441   : > { %6399 = vmatpush1.bf16.msra.mxu0 %v6398_v15  ;;  %v3495_v15 = vld [vmem:[#allocation8 + $0x1b40] sm:$0xff]  ;;  %v3536_v49 = vld [vmem:[#allocation8 + $0x1c88] sm:$0xff] }
 0x442   : > { %6911 = vmatpush1.bf16.msra.mxu1 %v6910_v17  ;;  %6401 = vmatprep.subr.bf16.mxu0 %v6400_v18  ;;  %v3499_v17 = vld [vmem:[#allocation8 + $0x1b60] sm:$0xff]  ;;  %v3497_v18 = vld [vmem:[#allocation8 + $0x1b50] sm:$0xff] }
 0x443   : > { %6913 = vmatprep.subr.bf16.mxu1 %v6912_v23  ;;  %v3508_v23 = vld [vmem:[#allocation8 + $0x1ba8] sm:$0xff]  ;;  %v6418_v28 = vpack.c.bf16 %v3499_v17, %v3495_v15  ;;  %v6930_v53 = vpack.c.bf16 %v3501_v19, %v3497_v18  ;;  %v3531_v15 = vld [vmem:[#allocation8 + $0x1c60] sm:$0xff]  ;;  %v3529_v17 = vld [vmem:[#allocation8 + $0x1c50] sm:$0xff] }
 0x444   : > { %v6420_v40 = vpack.c.bf16 %v3508_v23, %v3504_v9  ;;  %v3540_v19 = vld [vmem:[#allocation8 + $0x1ca8] sm:$0xff]  ;;  %v6944_v23 = vpack.c.bf16 %v3534_v2, %v3530_v6  ;;  %v3561_v6 = vld [vmem:[#allocation8 + $0x1d50] sm:$0xff] }
 0x445   : > { %6403 = vmatpush1.bf16.msra.mxu0 %v6402_v56  ;;  %v3507_v56 = vld [vmem:[#allocation8 + $0x1ba0] sm:$0xff] }
 0x446   : > { %6915 = vmatpush1.bf16.msra.mxu1 %v6914_v51  ;;  %6405 = vmatprep.subr.bf16.mxu0 %v6404_v33  ;;  %v3505_v51 = vld [vmem:[#allocation8 + $0x1b90] sm:$0xff]  ;;  %v6932_v33 = vpack.c.bf16 %v3510_v27, %v3506_v25  ;;  %v6422_v21 = vpack.c.bf16 %v3507_v56, %v3503_v32  ;;  %v3538_v25 = vld [vmem:[#allocation8 + $0x1c98] sm:$0xff]  ;;  %v3539_v32 = vld [vmem:[#allocation8 + $0x1ca0] sm:$0xff] }
 0x447   : > { %6917 = vmatprep.subr.bf16.mxu1 %v6916_v46  ;;  %v3518_v46 = vld [vmem:[#allocation8 + $0x1bf8] sm:$0xff]  ;;  %v6934_v42 = vpack.c.bf16 %v3509_v36, %v3505_v51  ;;  %v3537_v56 = vld [vmem:[#allocation8 + $0x1c90] sm:$0xff]  ;;  %v3544_v36 = vld [vmem:[#allocation8 + $0x1cc8] sm:$0xff] }
 0x448   : > { %v3542_v27 = vld [vmem:[#allocation8 + $0x1cb8] sm:$0xff] }
 0x449   : > { %6407 = vmatpush1.bf16.msra.mxu0 %v6406_v16  ;;  %v3513_v16 = vld [vmem:[#allocation8 + $0x1bd0] sm:$0xff]  ;;  %v6948_v51 = vpack.c.bf16 %v3542_v27, %v3538_v25  ;;  %v3576_v27 = vld [vmem:[#allocation8 + $0x1dc8] sm:$0xff] }
 0x44a   : > { %6919 = vmatpush1.bf16.msra.mxu1 %v6918_v63  ;;  %6409 = vmatprep.subr.bf16.mxu0 %v6408_v13  ;;  %v7186_v63 = vpop.eup %7185  ;;  %v6936_v13 = vpack.c.bf16 %v3518_v46, %v3514_v41  ;;  %v6938_v60 = vpack.c.bf16 %v3517_v55, %v3513_v16  ;;  %v3550_v41 = vld [vmem:[#allocation8 + $0x1cf8] sm:$0xff]  ;;  %v3556_v55 = vld [vmem:[#allocation8 + $0x1d28] sm:$0xff]  ;;  %v3573_v25 = vld [vmem:[#allocation8 + $0x1db0] sm:$0xff] }
 0x44b   : > { %6921 = vmatprep.subr.bf16.mxu1 %v6920_v5  ;;  %v3522_v5 = vld [vmem:[#allocation8 + $0x1c18] sm:$0xff]  ;;  %v7188_v30 = vpop.eup %7187  ;;  %v2603_v61 = vadd.f32 1.0, %v7186_v63  ;;  %v6952_v16 = vpack.c.bf16 %v3550_v41, %v3546_v37  ;;  %v3549_v63 = vld [vmem:[#allocation8 + $0x1cf0] sm:$0xff]  ;;  %v3584_v41 = vld [vmem:[#allocation8 + $0x1e08] sm:$0xff] }
 0x44c   : > { %v2606_v4 = vadd.f32 1.0, %v7188_v30  ;;  %v3581_v37 = vld [vmem:[#allocation8 + $0x1df0] sm:$0xff] }
 0x44d   : > { %6411 = vmatpush1.bf16.msra.mxu0 %v6410_v24  ;;  %v3519_v24 = vld [vmem:[#allocation8 + $0x1c00] sm:$0xff]  ;;  %v2619_v12 = vmul.f32 %v2603_v61, %v2555_v3 }
 0x44e   : > { %6923 = vmatpush1.bf16.msra.mxu1 %v6922_v1  ;;  %6413 = vmatprep.subr.bf16.mxu0 %v6412_v45  ;;  %v3523_v1 = vld [vmem:[#allocation8 + $0x1c20] sm:$0xff]  ;;  %v6940_v45 = vpack.c.bf16 %v3526_v58, %v3522_v5  ;;  %v6954_v58 = vpack.c.bf16 %v3549_v63, %v3545_v26 }
 0x44f   : > { %6925 = vmatprep.subr.bf16.mxu1 %v6924_v7  ;;  %v3528_v7 = vld [vmem:[#allocation8 + $0x1c48] sm:$0xff]  ;;  %v6430_v10 = vpack.c.bf16 %v3523_v1, %v3519_v24  ;;  %v3555_v61 = vld [vmem:[#allocation8 + $0x1d20] sm:$0xff]  ;;  %v3557_v24 = vld [vmem:[#allocation8 + $0x1d30] sm:$0xff] }
 0x450   : > { %v6432_v18 = vpack.c.bf16 %v3532_v8, %v3528_v7  ;;  %v3560_v1 = vld [vmem:[#allocation8 + $0x1d48] sm:$0xff]  ;;  %v3559_v8 = vld [vmem:[#allocation8 + $0x1d40] sm:$0xff] }
 0x451   : > { %6415 = vmatpush1.bf16.msra.mxu0 %v6414_v0  ;;  %v2558_v0 = vmul.f32 0.5, %v7884_v35  ;;  %v3587_v63 = vld [vmem:[#allocation8 + $0x1e20] sm:$0xff] }
 0x452   : > { %6927 = vmatpush1.bf16.msra.mxu1 %v6926_v11  ;;  %6417 = vmatprep.subr.bf16.mxu0 %v6416_v14  ;;  %v6942_v11 = vpack.c.bf16 %v3525_v34, %v3521_v50  ;;  %v3527_v14 = vld [vmem:[#allocation8 + $0x1c40] sm:$0xff]  ;;  %v3562_v50 = vld [vmem:[#allocation8 + $0x1d58] sm:$0xff] }
 0x453   : > { %6929 = vmatprep.subr.bf16.mxu1 %v6928_v20  ;;  %v3533_v20 = vld [vmem:[#allocation8 + $0x1c70] sm:$0xff]  ;;  %v2622_v9 = vmul.f32 %v2606_v4, %v2558_v0  ;;  %v3566_v34 = vld [vmem:[#allocation8 + $0x1d78] sm:$0xff]  ;;  %v3568_v0 = vld [vmem:[#allocation8 + $0x1d88] sm:$0xff] }
 0x454   : > { %v6946_v35 = vpack.c.bf16 %v3533_v20, %v3529_v17  ;;  %v6960_v2 = vpack.c.bf16 %v3566_v34, %v3562_v50  ;;  %v3597_v50 = vld [vmem:[#allocation8 + $0x1e70] sm:$0xff]  ;;  %v3600_v34 = vld [vmem:[#allocation8 + $0x1e88] sm:$0xff] }
 0x455   : > { %6419 = vmatpush1.bf16.msra.mxu0 %v6418_v28  ;;  %v6434_v28 = vpack.c.bf16 %v3531_v15, %v3527_v14  ;;  %v3570_v14 = vld [vmem:[#allocation8 + $0x1d98] sm:$0xff] }
 0x456   : > { %6931 = vmatpush1.bf16.msra.mxu1 %v6930_v53  ;;  %6421 = vmatprep.subr.bf16.mxu0 %v6420_v40  ;;  %v6436_v53 = vpack.c.bf16 %v3540_v19, %v3536_v49  ;;  %v3535_v40 = vld [vmem:[#allocation8 + $0x1c80] sm:$0xff]  ;;  %v3574_v15 = vld [vmem:[#allocation8 + $0x1db8] sm:$0xff] }
 0x457   : > { %6933 = vmatprep.subr.bf16.mxu1 %v6932_v33  ;;  %v3541_v33 = vld [vmem:[#allocation8 + $0x1cb0] sm:$0xff]  ;;  %v6438_v46 = vpack.c.bf16 %v3539_v32, %v3535_v40  ;;  %v3567_v49 = vld [vmem:[#allocation8 + $0x1d80] sm:$0xff] }
 0x458   : > { %v3571_v19 = vld [vmem:[#allocation8 + $0x1da0] sm:$0xff] }
 0x459   : > { %6423 = vmatpush1.bf16.msra.mxu0 %v6422_v21  ;;  %v6950_v21 = vpack.c.bf16 %v3541_v33, %v3537_v56  ;;  %v6454_v40 = vpack.c.bf16 %v3571_v19, %v3567_v49  ;;  %v3579_v33 = vld [vmem:[#allocation8 + $0x1de0] sm:$0xff]  ;;  %v3610_v49 = vld [vmem:[#allocation8 + $0x1ed8] sm:$0xff] }
 0x45a   : > { %6935 = vmatpush1.bf16.msra.mxu1 %v6934_v42  ;;  %6425 = vmatprep.subr.bf16.mxu0 %v6424_v44  ;;  %v6440_v42 = vpack.c.bf16 %v3548_v54, %v3544_v36  ;;  %v3543_v44 = vld [vmem:[#allocation8 + $0x1cc0] sm:$0xff]  ;;  %v3577_v36 = vld [vmem:[#allocation8 + $0x1dd0] sm:$0xff]  ;;  %v3614_v19 = vld [vmem:[#allocation8 + $0x1ef8] sm:$0xff] }
 0x45b   : > { %6937 = vmatprep.subr.bf16.mxu1 %v6936_v13  ;;  %v3552_v13 = vld [vmem:[#allocation8 + $0x1d08] sm:$0xff]  ;;  %v6442_v5 = vpack.c.bf16 %v3547_v47, %v3543_v44  ;;  %v6970_v47 = vpack.c.bf16 %v3581_v37, %v3577_v36  ;;  %v3615_v37 = vld [vmem:[#allocation8 + $0x1f00] sm:$0xff] }
 0x45c   : > { %v6444_v30 = vpack.c.bf16 %v3556_v55, %v3552_v13  ;;  %v3585_v13 = vld [vmem:[#allocation8 + $0x1e10] sm:$0xff] }
 0x45d   : > { %6427 = vmatpush1.bf16.msra.mxu0 %v6426_v59  ;;  %v3551_v59 = vld [vmem:[#allocation8 + $0x1d00] sm:$0xff] }
 0x45e   : > { %6939 = vmatpush1.bf16.msra.mxu1 %v6938_v60  ;;  %6429 = vmatprep.subr.bf16.mxu0 %v6428_v62  ;;  %v3553_v60 = vld [vmem:[#allocation8 + $0x1d10] sm:$0xff]  ;;  %v6956_v62 = vpack.c.bf16 %v3558_v38, %v3554_v57  ;;  %v6446_v3 = vpack.c.bf16 %v3555_v61, %v3551_v59  ;;  %v3592_v38 = vld [vmem:[#allocation8 + $0x1e48] sm:$0xff] }
 0x45f   : > { %6941 = vmatprep.subr.bf16.mxu1 %v6940_v45  ;;  %v3564_v45 = vld [vmem:[#allocation8 + $0x1d68] sm:$0xff]  ;;  %v6958_v4 = vpack.c.bf16 %v3557_v24, %v3553_v60  ;;  %v3589_v57 = vld [vmem:[#allocation8 + $0x1e30] sm:$0xff]  ;;  %v3595_v24 = vld [vmem:[#allocation8 + $0x1e60] sm:$0xff] }
 0x460   : > { %4160 = vmatmul.mubr.f32.vlgmr.msra.gmra.mrb[8].mxu0 %v2619_v12  ;;  %v6448_v7 = vpack.c.bf16 %v3564_v45, %v3560_v1  ;;  %v6974_v61 = vpack.c.bf16 %v3589_v57, %v3585_v13  ;;  %v3593_v1 = vld [vmem:[#allocation8 + $0x1e50] sm:$0xff]  ;;  %v3623_v57 = vld [vmem:[#allocation8 + $0x1f40] sm:$0xff] }
 0x461   : > { %4728 = vmatmul.mubr.f32.vlgmr.msra.gmra.mrb[8].mxu1 %v2619_v12  ;;  %6431 = vmatpush1.bf16.msra.mxu0 %v6430_v10  ;;  %v3563_v10 = vld [vmem:[#allocation8 + $0x1d60] sm:$0xff]  ;;  %v3565_v12 = vld [vmem:[#allocation8 + $0x1d70] sm:$0xff] }
 0x462   : > { %4230 = vmatprep.mubr.f32.mxu0 %v2622_v9  ;;  %6943 = vmatpush1.bf16.msra.mxu1 %v6942_v11  ;;  %v3572_v11 = vld [vmem:[#allocation8 + $0x1da8] sm:$0xff]  ;;  %v6450_v17 = vpack.c.bf16 %v3563_v10, %v3559_v8  ;;  %v7204_v8 = vld [vmem:[#allocation7 + $0x8] sm:$0xff] }
 0x463   : > { %4798 = vmatprep.mubr.f32.mxu1 %v2622_v9  ;;  %6433 = vmatprep.subr.bf16.mxu0 %v6432_v18  ;;  %v6962_v18 = vpack.c.bf16 %v3565_v12, %v3561_v6  ;;  %v6452_v20 = vpack.c.bf16 %v3572_v11, %v3568_v0  ;;  %v3569_v9 = vld [vmem:[#allocation8 + $0x1d90] sm:$0xff]  ;;  %v1386_v10 = vrot.slane %v7204_v8, %v1353_v52  ;;  %v3599_v0 = vld [vmem:[#allocation8 + $0x1e80] sm:$0xff]  ;;  %v3640_v8 = vld [vmem:[#allocation8 + $0x1fc8] sm:$0xff] }
 0x464   : > { %6945 = vmatprep.subr.bf16.mxu1 %v6944_v23  ;;  %v6964_v23 = vpack.c.bf16 %v3574_v15, %v3570_v14  ;;  %v6966_v32 = vpack.c.bf16 %v3573_v25, %v3569_v9  ;;  %v3603_v11 = vld [vmem:[#allocation8 + $0x1ea0] sm:$0xff]  ;;  %v3601_v14 = vld [vmem:[#allocation8 + $0x1e90] sm:$0xff] }
 0x465   : > { %6435 = vmatpush1.bf16.msra.mxu0 %v6434_v28  ;;  %v3580_v28 = vld [vmem:[#allocation8 + $0x1de8] sm:$0xff]  ;;  %v7893_v9 = vadd.f32 %v7820_v39, %v1386_v10  ;;  %v6470_v31 = vpack.c.bf16 %v3603_v11, %v3599_v0  ;;  %v3607_v25 = vld [vmem:[#allocation8 + $0x1ec0] sm:$0xff] }
 0x466   : > { %6947 = vmatpush1.bf16.msra.mxu1 %v6946_v35  ;;  %6437 = vmatprep.subr.bf16.mxu0 %v6436_v53  ;;  %v3578_v35 = vld [vmem:[#allocation8 + $0x1dd8] sm:$0xff]  ;;  %v6456_v56 = vpack.c.bf16 %v3580_v28, %v3576_v27  ;;  %v3611_v27 = vld [vmem:[#allocation8 + $0x1ee0] sm:$0xff]  ;;  %v3609_v28 = vld [vmem:[#allocation8 + $0x1ed0] sm:$0xff] }
 0x467   : > { %6949 = vmatprep.subr.bf16.mxu1 %v6948_v51  ;;  %v3582_v53 = vld [vmem:[#allocation8 + $0x1df8] sm:$0xff]  ;;  %v3575_v51 = vld [vmem:[#allocation8 + $0x1dc0] sm:$0xff]  ;;  %v6474_v39 = vpack.c.bf16 %v3611_v27, %v3607_v25  ;;  %v3644_v10 = vld [vmem:[#allocation8 + $0x1fe8] sm:$0xff] }
 0x468   : > { %v6968_v54 = vpack.c.bf16 %v3582_v53, %v3578_v35  ;;  %v6458_v44 = vpack.c.bf16 %v3579_v33, %v3575_v51  ;;  %v6984_v35 = vpack.c.bf16 %v3614_v19, %v3610_v49  ;;  %v3613_v53 = vld [vmem:[#allocation8 + $0x1ef0] sm:$0xff]  ;;  %v3622_v51 = vld [vmem:[#allocation8 + $0x1f38] sm:$0xff]  ;;  %v2573_v33 = vmul.f32 0.70710677, %v7893_v9  ;;  %v3647_v27 = vld [vmem:[#allocation10] sm:$0xf] }
 0x469   : > { %6439 = vmatpush1.bf16.msra.mxu0 %v6438_v46  ;;  %v3588_v46 = vld [vmem:[#allocation8 + $0x1e28] sm:$0xff]  ;;  %v6986_v36 = vpack.c.bf16 %v3613_v53, %v3609_v28  ;;  %v6488_v11 = vpack.c.bf16 %v3644_v10, %v3640_v8  ;;  %v3645_v49 = vld [vmem:[#allocation8 + $0x1ff0] sm:$0xff]  ;;  %v3652_v28 = vrot.slane %v3647_v27, %v7752_v22  ;;  %v3656_v53 = vrot.slane %v3647_v27, %v7739_v48 }
 0x46a   : > { %6951 = vmatpush1.bf16.msra.mxu1 %v6950_v21  ;;  %6441 = vmatprep.subr.bf16.mxu0 %v6440_v42  ;;  %v3586_v21 = vld [vmem:[#allocation8 + $0x1e18] sm:$0xff]  ;;  %v6460_v26 = vpack.c.bf16 %v3588_v46, %v3584_v41  ;;  %v3619_v41 = vld [vmem:[#allocation8 + $0x1f20] sm:$0xff]  ;;  %v3617_v46 = vld [vmem:[#allocation8 + $0x1f10] sm:$0xff]  ;;  %7189 = verf.f32 %v2573_v33 }
 0x46b   : > { %6953 = vmatprep.subr.bf16.mxu1 %v6952_v16  ;;  %v3590_v42 = vld [vmem:[#allocation8 + $0x1e38] sm:$0xff]  ;;  %v3583_v16 = vld [vmem:[#allocation8 + $0x1e00] sm:$0xff] }
 0x46c   : > { %v6972_v55 = vpack.c.bf16 %v3590_v42, %v3586_v21  ;;  %v6462_v59 = vpack.c.bf16 %v3587_v63, %v3583_v16  ;;  %v3621_v42 = vld [vmem:[#allocation8 + $0x1f30] sm:$0xff]  ;;  %v3630_v16 = vld [vmem:[#allocation8 + $0x1f78] sm:$0xff]  ;;  %v6478_v63 = vpack.c.bf16 %v3619_v41, %v3615_v37 }
 0x46d   : > { %6443 = vmatpush1.bf16.msra.mxu0 %v6442_v5  ;;  %v3596_v5 = vld [vmem:[#allocation8 + $0x1e68] sm:$0xff]  ;;  %v6990_v13 = vpack.c.bf16 %v3621_v42, %v3617_v46 }
 0x46e   : > { %6955 = vmatpush1.bf16.msra.mxu1 %v6954_v58  ;;  %6445 = vmatprep.subr.bf16.mxu0 %v6444_v30  ;;  %v3594_v58 = vld [vmem:[#allocation8 + $0x1e58] sm:$0xff]  ;;  %v6464_v60 = vpack.c.bf16 %v3596_v5, %v3592_v38  ;;  %v3627_v38 = vld [vmem:[#allocation8 + $0x1f60] sm:$0xff]  ;;  %v3625_v5 = vld [vmem:[#allocation8 + $0x1f50] sm:$0xff] }
 0x46f   : > { %6957 = vmatprep.subr.bf16.mxu1 %v6956_v62  ;;  %v3598_v30 = vld [vmem:[#allocation8 + $0x1e78] sm:$0xff]  ;;  %v3591_v62 = vld [vmem:[#allocation8 + $0x1e40] sm:$0xff] }
 0x470   : > { %v6976_v45 = vpack.c.bf16 %v3598_v30, %v3594_v58  ;;  %v6466_v6 = vpack.c.bf16 %v3595_v24, %v3591_v62  ;;  %v3629_v30 = vld [vmem:[#allocation8 + $0x1f70] sm:$0xff]  ;;  %v3638_v62 = vld [vmem:[#allocation8 + $0x1fb8] sm:$0xff]  ;;  %v6482_v24 = vpack.c.bf16 %v3627_v38, %v3623_v57 }
 0x471   : > { %6447 = vmatpush1.bf16.msra.mxu0 %v6446_v3  ;;  %v3604_v3 = vld [vmem:[#allocation8 + $0x1ea8] sm:$0xff] }
 0x472   : > { %6959 = vmatpush1.bf16.msra.mxu1 %v6958_v4  ;;  %6449 = vmatprep.subr.bf16.mxu0 %v6448_v7  ;;  %v3602_v4 = vld [vmem:[#allocation8 + $0x1e98] sm:$0xff]  ;;  %v6468_v12 = vpack.c.bf16 %v3604_v3, %v3600_v34  ;;  %v3635_v34 = vld [vmem:[#allocation8 + $0x1fa0] sm:$0xff]  ;;  %v3633_v3 = vld [vmem:[#allocation8 + $0x1f90] sm:$0xff] }
 0x473   : > { %6961 = vmatprep.subr.bf16.mxu1 %v6960_v2  ;;  %v3606_v7 = vld [vmem:[#allocation8 + $0x1eb8] sm:$0xff]  ;;  %v6978_v2 = vpack.c.bf16 %v3597_v50, %v3593_v1  ;;  %v6994_v1 = vpack.c.bf16 %v3629_v30, %v3625_v5  ;;  %v3631_v50 = vld [vmem:[#allocation8 + $0x1f80] sm:$0xff] }
 0x474   : > { %v6980_v15 = vpack.c.bf16 %v3606_v7, %v3602_v4  ;;  %v3637_v7 = vld [vmem:[#allocation8 + $0x1fb0] sm:$0xff] }
 0x475   : > { %6451 = vmatpush1.bf16.msra.mxu0 %v6450_v17  ;;  %v3605_v17 = vld [vmem:[#allocation8 + $0x1eb0] sm:$0xff]  ;;  %v6998_v0 = vpack.c.bf16 %v3637_v7, %v3633_v3 }
 0x476   : > { %6963 = vmatpush1.bf16.msra.mxu1 %v6962_v18  ;;  %6453 = vmatprep.subr.bf16.mxu0 %v6452_v20  ;;  %v3608_v18 = vld [vmem:[#allocation8 + $0x1ec8] sm:$0xff]  ;;  %v6982_v52 = vpack.c.bf16 %v3605_v17, %v3601_v14  ;;  %v3639_v14 = vld [vmem:[#allocation8 + $0x1fc0] sm:$0xff]  ;;  %v7190_v17 = vpop.eup %7189 }
 0x477   : > { %6965 = vmatprep.subr.bf16.mxu1 %v6964_v23  ;;  %v3612_v20 = vld [vmem:[#allocation8 + $0x1ee8] sm:$0xff] }
 0x478   : > { %v6472_v23 = vpack.c.bf16 %v3612_v20, %v3608_v18  ;;  %v3641_v20 = vld [vmem:[#allocation8 + $0x1fd0] sm:$0xff] }
 0x479   : > { %6455 = vmatpush1.bf16.msra.mxu0 %v6454_v40  ;;  %v3616_v40 = vld [vmem:[#allocation8 + $0x1f08] sm:$0xff] }
 0x47a   : > { %6967 = vmatpush1.bf16.msra.mxu1 %v6966_v32  ;;  %6457 = vmatprep.subr.bf16.mxu0 %v6456_v56  ;;  %v3620_v32 = vld [vmem:[#allocation8 + $0x1f28] sm:$0xff]  ;;  %v3618_v56 = vld [vmem:[#allocation8 + $0x1f18] sm:$0xff] }
 0x47b   : > { %6969 = vmatprep.subr.bf16.mxu1 %v6968_v54  ;;  %v6476_v54 = vpack.c.bf16 %v3620_v32, %v3616_v40  ;;  %v6988_v21 = vpack.c.bf16 %v3622_v51, %v3618_v56  ;;  %v3664_v40 = vrot.slane %v3647_v27, %v7755_v29 }
 0x47d   : > { %6459 = vmatpush1.bf16.msra.mxu0 %v6458_v44  ;;  %v3624_v44 = vld [vmem:[#allocation8 + $0x1f48] sm:$0xff] }
 0x47e   : > { %6971 = vmatpush1.bf16.msra.mxu1 %v6970_v47  ;;  %6461 = vmatprep.subr.bf16.mxu0 %v6460_v26  ;;  %v3628_v47 = vld [vmem:[#allocation8 + $0x1f68] sm:$0xff]  ;;  %v3626_v26 = vld [vmem:[#allocation8 + $0x1f58] sm:$0xff] }
 0x47f   : > { %6973 = vmatprep.subr.bf16.mxu1 %v6972_v55  ;;  %v6480_v55 = vpack.c.bf16 %v3628_v47, %v3624_v44  ;;  %v6992_v58 = vpack.c.bf16 %v3630_v16, %v3626_v26 }
 0x481   : > { %6463 = vmatpush1.bf16.msra.mxu0 %v6462_v59  ;;  %v3632_v59 = vld [vmem:[#allocation8 + $0x1f88] sm:$0xff] }
 0x482   : > { %6975 = vmatpush1.bf16.msra.mxu1 %v6974_v61  ;;  %6465 = vmatprep.subr.bf16.mxu0 %v6464_v60  ;;  %v3636_v61 = vld [vmem:[#allocation8 + $0x1fa8] sm:$0xff]  ;;  %v3634_v60 = vld [vmem:[#allocation8 + $0x1f98] sm:$0xff] }
 0x483   : > { %6977 = vmatprep.subr.bf16.mxu1 %v6976_v45  ;;  %v6484_v45 = vpack.c.bf16 %v3636_v61, %v3632_v59  ;;  %v6996_v4 = vpack.c.bf16 %v3638_v62, %v3634_v60 }
 0x485   : > { %6467 = vmatpush1.bf16.msra.mxu0 %v6466_v6  ;;  %v3642_v6 = vld [vmem:[#allocation8 + $0x1fd8] sm:$0xff] }
 0x486   : > { %6979 = vmatpush1.bf16.msra.mxu1 %v6978_v2  ;;  %6469 = vmatprep.subr.bf16.mxu0 %v6468_v12  ;;  %v3646_v2 = vld [vmem:[#allocation8 + $0x1ff8] sm:$0xff]  ;;  %v6486_v12 = vpack.c.bf16 %v3635_v34, %v3631_v50 }
 0x487   : > { %6981 = vmatprep.subr.bf16.mxu1 %v6980_v15  ;;  %v3643_v15 = vld [vmem:[#allocation8 + $0x1fe0] sm:$0xff]  ;;  %v7000_v18 = vpack.c.bf16 %v3646_v2, %v3642_v6 }
 0x488   : > { %v6490_v19 = vpack.c.bf16 %v3643_v15, %v3639_v14 }
 0x489   : > { %6471 = vmatpush1.bf16.msra.mxu0 %v6470_v31  ;;  %v2605_v31 = vadd.f32 1.0, %v7190_v17 }
 0x48a   : > { %6983 = vmatpush1.bf16.msra.mxu1 %v6982_v52  ;;  %6473 = vmatprep.subr.bf16.mxu0 %v6472_v23  ;;  %v7002_v52 = vpack.c.bf16 %v3645_v49, %v3641_v20  ;;  %v2557_v23 = vmul.f32 0.5, %v7893_v9 }
 0x48b   : > { %6985 = vmatprep.subr.bf16.mxu1 %v6984_v35  ;;  %v3660_v35 = vrot.slane %v3647_v27, %v7780_v43 }
 0x48c   : > { %v2621_v25 = vmul.f32 %v2605_v31, %v2557_v23 }
 0x48d   : > { %6475 = vmatpush1.bf16.msra.mxu0 %v6474_v39 }
 0x48e   : > { %6987 = vmatpush1.bf16.msra.mxu1 %v6986_v36  ;;  %6477 = vmatprep.subr.bf16.mxu0 %v6476_v54 }
 0x48f   : > { %6989 = vmatprep.subr.bf16.mxu1 %v6988_v21 }
 0x491   : > { %6479 = vmatpush1.bf16.msra.mxu0 %v6478_v63 }
 0x492   : > { %6991 = vmatpush1.bf16.msra.mxu1 %v6990_v13  ;;  %6481 = vmatprep.subr.bf16.mxu0 %v6480_v55 }
 0x493   : > { %6993 = vmatprep.subr.bf16.mxu1 %v6992_v58 }
 0x495   : > { %6483 = vmatpush1.bf16.msra.mxu0 %v6482_v24 }
 0x496   : > { %6995 = vmatpush1.bf16.msra.mxu1 %v6994_v1  ;;  %6485 = vmatprep.subr.bf16.mxu0 %v6484_v45 }
 0x497   : > { %6997 = vmatprep.subr.bf16.mxu1 %v6996_v4 }
 0x499   : > { %6487 = vmatpush1.bf16.msra.mxu0 %v6486_v12 }
 0x49a   : > { %6999 = vmatpush1.bf16.msra.mxu1 %v6998_v0  ;;  %6489 = vmatprep.subr.bf16.mxu0 %v6488_v11 }
 0x49b   : > { %7001 = vmatprep.subr.bf16.mxu1 %v7000_v18 }
 0x49d   : > { %6491 = vmatpush1.bf16.msra.mxu0 %v6490_v19 }
 0x49e   : > { %7003 = vmatpush1.bf16.msra.mxu1 %v7002_v52 }
 0x4a0   : > { %4231 = vmatmul.mubr.f32.vlgmr.msra.gmra.mrb[8].mxu0 %v2621_v25 }
 0x4a1   : > { %4799 = vmatmul.mubr.f32.vlgmr.msra.gmra.mrb[8].mxu1 %v2621_v25 }
 0x573   : > { %v4232_v32 = vpop.f32.mrb[8].mxu0 }
 0x574   : > { %v7020_v9 = vadd.f32 %v4232_v32, %v3652_v28  ;;  %v4800_v56 = vpop.f32.mrb[8].mxu1  ;;  %v4234_v51 = vpop.f32.mrb[9].mxu0 }
 0x575   : > { %v7022_v33 = vadd.f32 %v4800_v56, %v3660_v35  ;;  %v7021_v39 = vadd.f32 %v4234_v51, %v3656_v53  ;;  %v4802_v36 = vpop.f32.mrb[9].mxu1 }
 0x576   : > { %4805 = vst [vmem:[%s294_s9] sm:$0xff] %v7020_v9  ;;  %v7023_v22 = vadd.f32 %v4802_v36, %v3664_v40 }
 0x577   : > { %4807 = vst [vmem:[%s294_s9 + $0x10] sm:$0xff] %v7022_v33  ;;  %4806 = vst [vmem:[%s294_s9 + $0x8] sm:$0xff] %v7021_v39 }
 0x578   : > { %4808 = vst [vmem:[%s294_s9 + $0x18] sm:$0xff] %v7023_v22 }
 0x579   : > { %7360 = shalt.err (!%p7357_p12)
}
 0x57a   : > { %s7361_s16 = scalar_lea.hbm %s7907_s29, 512  ;;  %s7365_s6 = scalar_lea.hbm %s7956_s5, 1024 }
 0x57b   : > { %p7362_p13 = scmp.ne.s32.totalorder %s7907_s29, %s7361_s16  ;;  %p7366_p9 = scmp.lt.u32.totalorder %s7907_s29, %s7956_s5 }
 0x57c   : > { %p7367_p4 = scmp.lt.u32.totalorder %s7365_s6, %s7361_s16  ;;  %p7369_p6 = scmp.lt.u32.totalorder %s7361_s16, %s7907_s29 }
 0x57d   : > { %p7363_p1 = pnand %p7362_p13, %p7974_p0 }
 0x57e   : > { %p7368_p8 = por %p7367_p4, %p7366_p9 }
 0x57f   : > { %p7364_p7 = pneg %p7363_p1 }
 0x580   : > { %p7370_p2 = por %p7369_p6, %p7368_p8 }
 0x582   : > { %p7371_p5 = pnand %p7370_p2, %p7364_p7 }
 0x584   : > { %7374 = shalt.err (!%p7371_p5)
}
 0x585   : > { %7086 = dma.vmem_to_hbm [thread:$0]  (%p7974_p0), %s7909_s17, 512, %s7907_s29, %s4810_s24  }
 0x586 PF: > { %s4836_s25 = sand.u32 1, %s7409_s18   ;;  %p7975_p10 = scmp.ne.s32.totalorder %s7967_s12, 0 }
 0x587   : > { %p7976_p11 = scmp.ge.s32.totalorder %s7421_s21, 2  ;;  %s4837_s9 = scalar_lea.sflag [#allocation4], %s4836_s25 }
 0x589   : > { %p7106_p3 = pnand %p7976_p11, %p7975_p10 }
 0x58b   : > { %7404 = dma.done.wait (!%p7106_p3), %s4837_s9, 512  }
 0x58c   : > { %7406 = vsyncadd (!%p7106_p3), %s4837_s9, 4294966784  ;;  %p20_p12 = scmp.ge.s32.totalorder %s7599_s28, 4   ;;  %s7977_s18 = smov %s7413_s19 }
 0x58d   : > { %s7978_s19 = smov %s7417_s20  ;;  %s7979_s20 = smov %s7610_s8 }
 0x58e   : > { %s7980_s21 = smov %s7599_s28  ;;  %22 = sbr.rel (!%p20_p12) target bundleno = 7 (0x7), region = 101 }
 0x595   :  { %4842 = vsyncpa [#allocation3], 1 }
 0x596   :  { %4844 = vsyncpa [#allocation3 + $0x1], 1 }
 0x597   :  { %4845 = vsyncpa [#allocation6], 1 }
 0x598   :  { %4846 = vsyncpa [#allocation9], 1 }
 0x599   :  { %4847 = vsyncpa [#allocation4], 1 }
 0x59a   :  { %4849 = vsyncpa [#allocation4 + $0x1], 1 }

</bundles_post_ra>
